<compile_context>
chip_gen: v7x
topology: tpu7x:2x2x1
jax: 0.10.0
libtpu: 0.0.40
codegen_flags: <defaults>
</compile_context>

<pallas_src>
import jax
import jax.numpy as jnp
from jax.experimental import pallas as pl
from jax.experimental.pallas import tpu as pltpu


MXU_DTYPE = jnp.bfloat16   # bf16 MXU operands on all generations; f32 accum.


# ------------------------------ small helpers ------------------------------

def _const_spec(a):
    """Full-array BlockSpec for a grid-invariant (weight/bias) input."""
    zeros = (0,) * a.ndim
    return pl.BlockSpec(a.shape, lambda n, _z=zeros: _z)


def _pad_axis(w, axis, to):
    pad = to - w.shape[axis]
    if pad <= 0:
        return w
    cfg = [(0, 0)] * w.ndim
    cfg[axis] = (0, pad)
    return jnp.pad(w, cfg)


def _silu(x):
    return x * jax.nn.sigmoid(x)


def _mxu_dot(a, b):
    return jnp.dot(a.astype(MXU_DTYPE), b.astype(MXU_DTYPE),
                   preferred_element_type=jnp.float32)


# ------------------------------ fused kernel -------------------------------

def _dw_se_proj(xpad_ref, dw_w, dw_b, s1w, s1b, s2w, s2b, pw, pb):
    """MBConv core on one image, reading the halo-padded slab from VMEM:
       dw3x3(+folded BN, SiLU) -> SE squeeze/excite -> channel scale -> 1x1
       project.  Returns (Ho*Wo, Cout) kept in vregs."""
    Hp, Wp, C = xpad_ref.shape
    Ho, Wo = Hp - 2, Wp - 2

    # Depthwise 3x3: seed accumulator with tap (0,0).  Tap slices are loaded
    # straight from the VMEM scratch ref (bounds live ranges per tap).
    # TODO(synk): kw=1,2 sublane-offset slices could become pltpu.roll (XLU)
    # once roll-along-sublane of non-multiple-of-8 extents is exercised.
    acc = xpad_ref[0:Ho, 0:Wo, :] * dw_w[0, 0][None, None, :]
    for kh in range(3):
        for kw in range(3):
            if kh == 0 and kw == 0:
                continue
            acc = acc + (xpad_ref[kh:kh + Ho, kw:kw + Wo, :]
                         * dw_w[kh, kw][None, None, :])
    h = acc + dw_b.reshape(1, 1, C)
    h = _silu(h)
    h2d = h.reshape(Ho * Wo, C)

    # Squeeze-and-Excite entirely in-kernel.  The pooled vector is broadcast
    # to 8 rows so the tiny FC matmuls use a well-formed (8, K) MXU tile.
    pooled = jnp.broadcast_to(jnp.mean(h2d, axis=0, keepdims=True), (8, C))
    s = _silu(_mxu_dot(pooled, s1w) + s1b)
    s = jax.nn.sigmoid(_mxu_dot(s, s2w) + s2b)     # (8, C), rows identical

    hs = h2d * s[0:1, :]                           # excite (no HBM trip)
    return _mxu_dot(hs, pw) + pb                   # 1x1 project (+folded BN)


def _fused_forward_kernel(
        patches_ref,
        stem_w, stem_b,
        b1_dww, b1_dwb, b1_s1w, b1_s1b, b1_s2w, b1_s2b, b1_pw, b1_pb,
        b2_ew, b2_eb,
        b2_dww, b2_dwb, b2_s1w, b2_s1b, b2_s2w, b2_s2b, b2_pw, b2_pb,
        head_w, head_b, fc_w, fc_b,
        o_ref,
        xpad1, xpad2):
    """Whole network for one image; all intermediates stay in VMEM/vregs."""
    Hp, Wp, C1 = xpad1.shape
    H, W = Hp - 2, Wp - 2
    C2 = xpad2.shape[-1]

    # ---- stem 3x3-s2 conv as a single im2col matmul (+folded BN, SiLU)
    y = _mxu_dot(patches_ref[0], stem_w[...]) + stem_b[...]
    y = _silu(y)                                           # (H*W, C1)

    # ---- MBConv-1 (expand=1): in-VMEM halo pad -> dw+SE+proj -> MBConv-2
    #      1x1 expand (+SiLU) fused in.
    xpad1[...] = jnp.zeros_like(xpad1)
    xpad1[1:H + 1, 1:W + 1, :] = y.reshape(H, W, C1)
    y1 = _dw_se_proj(xpad1, b1_dww[...], b1_dwb[...], b1_s1w[...], b1_s1b[...],
                     b1_s2w[...], b1_s2b[...], b1_pw[...], b1_pb[...])
    y1 = _silu(_mxu_dot(y1, b2_ew[...]) + b2_eb[...])      # (H*W, C2=128)

    # ---- MBConv-2 core -> head 1x1(+SiLU) -> global-avg-pool -> myfc
    xpad2[...] = jnp.zeros_like(xpad2)
    xpad2[1:H + 1, 1:W + 1, :] = y1.reshape(H, W, C2)
    y2 = _dw_se_proj(xpad2, b2_dww[...], b2_dwb[...], b2_s1w[...], b2_s1b[...],
                     b2_s2w[...], b2_s2b[...], b2_pw[...], b2_pb[...])
    y2 = _silu(_mxu_dot(y2, head_w[...]) + head_b[...])    # (H*W, 128)

    feat = jnp.broadcast_to(jnp.mean(y2, axis=0, keepdims=True),
                            (8, y2.shape[1]))              # GAP features
    logits = _mxu_dot(feat, fc_w[...]) + fc_b[...]         # (8, out_dim)
    o_ref[...] = logits[0:1, :].reshape(1, 1, -1).astype(o_ref.dtype)


def pallas_fused_forward(patches, p):
    """patches: (N, H*W, K) stem im2col matrix.  Returns (N, out_dim)."""
    N, HW, K = patches.shape
    H = W = int(round(HW ** 0.5))
    C1 = p["stem_w"].shape[1]
    C2 = p["b2_exp_w"].shape[1]
    odim = p["fc_w"].shape[1]
    consts = (p["stem_w"], p["stem_b"],
              p["b1_dw_w"], p["b1_dw_b"], p["b1_se1_w"], p["b1_se1_b"],
              p["b1_se2_w"], p["b1_se2_b"], p["b1_proj_w"], p["b1_proj_b"],
              p["b2_exp_w"], p["b2_exp_b"],
              p["b2_dw_w"], p["b2_dw_b"], p["b2_se1_w"], p["b2_se1_b"],
              p["b2_se2_w"], p["b2_se2_b"], p["b2_proj_w"], p["b2_proj_b"],
              p["head_w"], p["head_b"], p["fc_w"], p["fc_b"])
    out = pl.pallas_call(
        _fused_forward_kernel,
        out_shape=jax.ShapeDtypeStruct((N, 1, odim), jnp.float32),
        grid=(N,),
        in_specs=[pl.BlockSpec((1, HW, K), lambda n: (n, 0, 0))]
                 + [_const_spec(a) for a in consts],
        out_specs=pl.BlockSpec((1, 1, odim), lambda n: (n, 0, 0)),
        scratch_shapes=[pltpu.VMEM((H + 2, W + 2, C1), jnp.float32),
                        pltpu.VMEM((H + 2, W + 2, C2), jnp.float32)],
        compiler_params=pltpu.CompilerParams(
            dimension_semantics=("parallel",)),
    )(patches, *consts)
    return out[:, 0, :]


# ------------------------------- glue (JAX) --------------------------------

def im2col_stem(x, k=3, stride=2, pad=1, k_pad_to=32):
    """NHWC patch extraction for the stem conv; feature order (kh, kw, cin),
    contraction dim zero-padded to `k_pad_to` inside the same concat."""
    N, H, W, C = x.shape
    xp = jnp.pad(x, ((0, 0), (pad, pad), (pad, pad), (0, 0)))
    Hp, Wp = H + 2 * pad, W + 2 * pad
    Ho = (Hp - k) // stride + 1
    Wo = (Wp - k) // stride + 1
    cols = []
    for kh in range(k):
        for kw in range(k):
            cols.append(xp[:, kh:kh + (Ho - 1) * stride + 1:stride,
                           kw:kw + (Wo - 1) * stride + 1:stride, :])
    K = k * k * C
    if k_pad_to > K:
        cols.append(jnp.zeros((N, Ho, Wo, k_pad_to - K), x.dtype))
    patches = jnp.concatenate(cols, axis=-1)
    return patches.reshape(N, Ho * Wo, max(K, k_pad_to)), (N, Ho, Wo)


def _bn_fold(key, cout, eps=1e-3):
    k1, k2, k3, k4 = jax.random.split(key, 4)
    gamma = 1.0 + 0.1 * jax.random.normal(k1, (cout,), jnp.float32)
    beta = 0.1 * jax.random.normal(k2, (cout,), jnp.float32)
    mean = 0.1 * jax.random.normal(k3, (cout,), jnp.float32)
    var = 1.0 + 0.1 * jax.random.uniform(k4, (cout,), jnp.float32)
    scale = gamma / jnp.sqrt(var + eps)
    bias = beta - mean * scale
    return scale, bias


def init_conv_bn(key, cin, cout, k):
    kw_, kb_ = jax.random.split(key)
    w = jax.random.normal(kw_, (k, k, cin, cout), jnp.float32) / jnp.sqrt(k * k * cin)
    scale, bias = _bn_fold(kb_, cout)
    w = (w * scale).reshape(k * k * cin, cout)   # matches im2col (kh, kw, cin)
    return w, bias.reshape(1, cout)


def init_dwconv_bn(key, c):
    kw_, kb_ = jax.random.split(key)
    w = jax.random.normal(kw_, (3, 3, c), jnp.float32) / 3.0
    scale, bias = _bn_fold(kb_, c)
    return w * scale[None, None, :], bias.reshape(1, c)


def init_fc(key, cin, cout):
    kw_, kb_ = jax.random.split(key)
    w = jax.random.normal(kw_, (cin, cout), jnp.float32) / jnp.sqrt(cin)
    b = 0.01 * jax.random.normal(kb_, (cout,), jnp.float32)
    return w, b.reshape(1, cout)


def init_params(key):
    keys = jax.random.split(key, 16)
    p = {}
    stem_w, stem_b = init_conv_bn(keys[0], 3, 32, 3)                 # stem 3x3 s2
    p["stem_w"] = _pad_axis(stem_w, 0, 32)    # contraction 27 -> 32 (zero rows)
    p["stem_b"] = stem_b

    p["b1_dw_w"], p["b1_dw_b"] = init_dwconv_bn(keys[1], 32)         # MBConv1 (exp=1)
    p["b1_se1_w"], p["b1_se1_b"] = init_fc(keys[2], 32, 8)
    p["b1_se2_w"], p["b1_se2_b"] = init_fc(keys[3], 8, 32)
    p["b1_proj_w"], p["b1_proj_b"] = init_conv_bn(keys[4], 32, 16, 1)

    C2, C2P = 96, 128          # MBConv-6 expand width, lane-padded to 128
    ew, eb = init_conv_bn(keys[5], 16, C2, 1)
    p["b2_exp_w"], p["b2_exp_b"] = _pad_axis(ew, 1, C2P), _pad_axis(eb, 1, C2P)
    dww, dwb = init_dwconv_bn(keys[6], C2)
    p["b2_dw_w"], p["b2_dw_b"] = _pad_axis(dww, 2, C2P), _pad_axis(dwb, 1, C2P)
    s1w, s1b = init_fc(keys[7], C2, 24)
    p["b2_se1_w"], p["b2_se1_b"] = _pad_axis(s1w, 0, C2P), s1b
    s2w, s2b = init_fc(keys[8], 24, C2)
    p["b2_se2_w"], p["b2_se2_b"] = _pad_axis(s2w, 1, C2P), _pad_axis(s2b, 1, C2P)
    pw, pb = init_conv_bn(keys[9], C2, 24, 1)
    p["b2_proj_w"], p["b2_proj_b"] = _pad_axis(pw, 0, C2P), pb

    p["head_w"], p["head_b"] = init_conv_bn(keys[10], 24, 128, 1)    # head 1x1
    p["fc_w"], p["fc_b"] = init_fc(keys[11], 128, 5)                 # myfc
    return p, keys[15]


def model_forward(params, x_nchw):
    x = jnp.transpose(x_nchw, (0, 2, 3, 1))                 # NCHW -> NHWC
    patches, _ = im2col_stem(x, k=3, stride=2, pad=1, k_pad_to=32)
    return pallas_fused_forward(patches, params)            # (N, out_dim=5)


if __name__ == "__main__":
    key = jax.random.PRNGKey(0)
    params, kx = init_params(key)
    x = jax.random.normal(kx, (2, 3, 32, 32), jnp.float32)  # NCHW, like PyTorch
    fwd = jax.jit(model_forward)
    out = jax.block_until_ready(fwd(params, x))
    assert out.shape == (2, 5), out.shape
    assert bool(jnp.all(jnp.isfinite(out)))
    print("KERNEL_OK")
</pallas_src>

<mosaic_0001>
module attributes {stable_mosaic.version = 11 : i64} {
  func.func @_fused_forward_kernel(%arg0: i32, %arg1: memref<1x256x32xf32, #tpu.memory_space<vmem>>, %arg2: memref<32x32xf32, #tpu.memory_space<vmem>>, %arg3: memref<1x32xf32, #tpu.memory_space<vmem>>, %arg4: memref<3x3x32xf32, #tpu.memory_space<vmem>>, %arg5: memref<1x32xf32, #tpu.memory_space<vmem>>, %arg6: memref<32x8xf32, #tpu.memory_space<vmem>>, %arg7: memref<1x8xf32, #tpu.memory_space<vmem>>, %arg8: memref<8x32xf32, #tpu.memory_space<vmem>>, %arg9: memref<1x32xf32, #tpu.memory_space<vmem>>, %arg10: memref<32x16xf32, #tpu.memory_space<vmem>>, %arg11: memref<1x16xf32, #tpu.memory_space<vmem>>, %arg12: memref<16x128xf32, #tpu.memory_space<vmem>>, %arg13: memref<1x128xf32, #tpu.memory_space<vmem>>, %arg14: memref<3x3x128xf32, #tpu.memory_space<vmem>>, %arg15: memref<1x128xf32, #tpu.memory_space<vmem>>, %arg16: memref<128x24xf32, #tpu.memory_space<vmem>>, %arg17: memref<1x24xf32, #tpu.memory_space<vmem>>, %arg18: memref<24x128xf32, #tpu.memory_space<vmem>>, %arg19: memref<1x128xf32, #tpu.memory_space<vmem>>, %arg20: memref<128x24xf32, #tpu.memory_space<vmem>>, %arg21: memref<1x24xf32, #tpu.memory_space<vmem>>, %arg22: memref<24x128xf32, #tpu.memory_space<vmem>>, %arg23: memref<1x128xf32, #tpu.memory_space<vmem>>, %arg24: memref<128x5xf32, #tpu.memory_space<vmem>>, %arg25: memref<1x5xf32, #tpu.memory_space<vmem>>, %arg26: memref<1x1x5xf32, #tpu.memory_space<vmem>>, %arg27: memref<18x18x32xf32, #tpu.memory_space<vmem>>, %arg28: memref<18x18x128xf32, #tpu.memory_space<vmem>>) attributes {dimension_semantics = [#tpu.dimension_semantics<parallel>], iteration_bounds = array<i64: 2>, scalar_prefetch = 0 : i64, scratch_operands = 2 : i64, tpu.core_type = #tpu.core_type<tc>, window_params = [{transform_indices = @transform_0, window_bounds = array<i64: 1, 256, 32>}, {pipeline_mode = #tpu.pipeline_mode<synchronous>, transform_indices = @transform_1, window_bounds = array<i64: 32, 32>}, {pipeline_mode = #tpu.pipeline_mode<synchronous>, transform_indices = @transform_2, window_bounds = array<i64: 1, 32>}, {pipeline_mode = #tpu.pipeline_mode<synchronous>, transform_indices = @transform_3, window_bounds = array<i64: 3, 3, 32>}, {pipeline_mode = #tpu.pipeline_mode<synchronous>, transform_indices = @transform_4, window_bounds = array<i64: 1, 32>}, {pipeline_mode = #tpu.pipeline_mode<synchronous>, transform_indices = @transform_5, window_bounds = array<i64: 32, 8>}, {pipeline_mode = #tpu.pipeline_mode<synchronous>, transform_indices = @transform_6, window_bounds = array<i64: 1, 8>}, {pipeline_mode = #tpu.pipeline_mode<synchronous>, transform_indices = @transform_7, window_bounds = array<i64: 8, 32>}, {pipeline_mode = #tpu.pipeline_mode<synchronous>, transform_indices = @transform_8, window_bounds = array<i64: 1, 32>}, {pipeline_mode = #tpu.pipeline_mode<synchronous>, transform_indices = @transform_9, window_bounds = array<i64: 32, 16>}, {pipeline_mode = #tpu.pipeline_mode<synchronous>, transform_indices = @transform_10, window_bounds = array<i64: 1, 16>}, {pipeline_mode = #tpu.pipeline_mode<synchronous>, transform_indices = @transform_11, window_bounds = array<i64: 16, 128>}, {pipeline_mode = #tpu.pipeline_mode<synchronous>, transform_indices = @transform_12, window_bounds = array<i64: 1, 128>}, {pipeline_mode = #tpu.pipeline_mode<synchronous>, transform_indices = @transform_13, window_bounds = array<i64: 3, 3, 128>}, {pipeline_mode = #tpu.pipeline_mode<synchronous>, transform_indices = @transform_14, window_bounds = array<i64: 1, 128>}, {pipeline_mode = #tpu.pipeline_mode<synchronous>, transform_indices = @transform_15, window_bounds = array<i64: 128, 24>}, {pipeline_mode = #tpu.pipeline_mode<synchronous>, transform_indices = @transform_16, window_bounds = array<i64: 1, 24>}, {pipeline_mode = #tpu.pipeline_mode<synchronous>, transform_indices = @transform_17, window_bounds = array<i64: 24, 128>}, {pipeline_mode = #tpu.pipeline_mode<synchronous>, transform_indices = @transform_18, window_bounds = array<i64: 1, 128>}, {pipeline_mode = #tpu.pipeline_mode<synchronous>, transform_indices = @transform_19, window_bounds = array<i64: 128, 24>}, {pipeline_mode = #tpu.pipeline_mode<synchronous>, transform_indices = @transform_20, window_bounds = array<i64: 1, 24>}, {pipeline_mode = #tpu.pipeline_mode<synchronous>, transform_indices = @transform_21, window_bounds = array<i64: 24, 128>}, {pipeline_mode = #tpu.pipeline_mode<synchronous>, transform_indices = @transform_22, window_bounds = array<i64: 1, 128>}, {pipeline_mode = #tpu.pipeline_mode<synchronous>, transform_indices = @transform_23, window_bounds = array<i64: 128, 5>}, {pipeline_mode = #tpu.pipeline_mode<synchronous>, transform_indices = @transform_24, window_bounds = array<i64: 1, 5>}, {transform_indices = @transform_25, window_bounds = array<i64: 1, 1, 5>}]} {
    %c0 = arith.constant 0 : index
    %c0_0 = arith.constant 0 : index
    %c0_1 = arith.constant 0 : index
    %0 = vector.load %arg1[%c0, %c0_0, %c0_1] : memref<1x256x32xf32, #tpu.memory_space<vmem>>, vector<1x256x32xf32>
    %1 = vector.shape_cast %0 : vector<1x256x32xf32> to vector<256x32xf32>
    %c0_2 = arith.constant 0 : index
    %c0_3 = arith.constant 0 : index
    %2 = vector.load %arg2[%c0_2, %c0_3] : memref<32x32xf32, #tpu.memory_space<vmem>>, vector<32x32xf32>
    %3 = arith.truncf %1 : vector<256x32xf32> to vector<256x32xbf16>
    %4 = arith.truncf %2 : vector<32x32xf32> to vector<32x32xbf16>
    %cst = arith.constant dense<0.000000e+00> : vector<256x32xf32>
    %5 = tpu.matmul %3, %4, %cst {dimension_numbers = #tpu.dot_dimension_numbers<[1], [0], [0], [1], [0, 0, 1, 1], [], []>} : vector<256x32xbf16>, vector<32x32xbf16>, vector<256x32xf32> -> vector<256x32xf32>
    %c0_4 = arith.constant 0 : index
    %c0_5 = arith.constant 0 : index
    %6 = vector.load %arg3[%c0_4, %c0_5] : memref<1x32xf32, #tpu.memory_space<vmem>>, vector<1x32xf32>
    %7 = vector.broadcast %6 : vector<1x32xf32> to vector<256x32xf32>
    %8 = arith.addf %5, %7 : vector<256x32xf32>
    %9 = arith.negf %8 : vector<256x32xf32>
    %10 = math.exp %9 : vector<256x32xf32>
    %cst_6 = arith.constant 1.000000e+00 : f32
    %11 = vector.broadcast %cst_6 : f32 to vector<256x32xf32>
    %12 = arith.addf %11, %10 : vector<256x32xf32>
    %13 = arith.divf %11, %12 : vector<256x32xf32>
    %14 = arith.mulf %8, %13 : vector<256x32xf32>
    %cst_7 = arith.constant 0.000000e+00 : f32
    %15 = vector.broadcast %cst_7 : f32 to vector<18x18x32xf32>
    %c0_8 = arith.constant 0 : index
    %c0_9 = arith.constant 0 : index
    %c0_10 = arith.constant 0 : index
    %16 = vector.load %arg27[%c0_8, %c0_9, %c0_10] : memref<18x18x32xf32, #tpu.memory_space<vmem>>, vector<18x18x32xf32>
    tpu.vector_store %arg27[%c0_8, %c0_9, %c0_10], %15 {strides = array<i32>} : memref<18x18x32xf32, #tpu.memory_space<vmem>>, vector<18x18x32xf32>,
    %17 = vector.shape_cast %14 : vector<256x32xf32> to vector<16x16x32xf32>
    %c1 = arith.constant 1 : index
    %c1_11 = arith.constant 1 : index
    %c0_12 = arith.constant 0 : index
    %18 = vector.load %arg27[%c1, %c1_11, %c0_12] : memref<18x18x32xf32, #tpu.memory_space<vmem>>, vector<16x16x32xf32>
    tpu.vector_store %arg27[%c1, %c1_11, %c0_12], %17 {strides = array<i32>} : memref<18x18x32xf32, #tpu.memory_space<vmem>>, vector<16x16x32xf32>,
    %c0_13 = arith.constant 0 : index
    %c0_14 = arith.constant 0 : index
    %c0_15 = arith.constant 0 : index
    %19 = vector.load %arg4[%c0_13, %c0_14, %c0_15] : memref<3x3x32xf32, #tpu.memory_space<vmem>>, vector<3x3x32xf32>
    %c0_16 = arith.constant 0 : index
    %c0_17 = arith.constant 0 : index
    %20 = vector.load %arg5[%c0_16, %c0_17] : memref<1x32xf32, #tpu.memory_space<vmem>>, vector<1x32xf32>
    %c0_18 = arith.constant 0 : index
    %c0_19 = arith.constant 0 : index
    %21 = vector.load %arg6[%c0_18, %c0_19] : memref<32x8xf32, #tpu.memory_space<vmem>>, vector<32x8xf32>
    %c0_20 = arith.constant 0 : index
    %c0_21 = arith.constant 0 : index
    %22 = vector.load %arg7[%c0_20, %c0_21] : memref<1x8xf32, #tpu.memory_space<vmem>>, vector<1x8xf32>
    %c0_22 = arith.constant 0 : index
    %c0_23 = arith.constant 0 : index
    %23 = vector.load %arg8[%c0_22, %c0_23] : memref<8x32xf32, #tpu.memory_space<vmem>>, vector<8x32xf32>
    %c0_24 = arith.constant 0 : index
    %c0_25 = arith.constant 0 : index
    %24 = vector.load %arg9[%c0_24, %c0_25] : memref<1x32xf32, #tpu.memory_space<vmem>>, vector<1x32xf32>
    %c0_26 = arith.constant 0 : index
    %c0_27 = arith.constant 0 : index
    %25 = vector.load %arg10[%c0_26, %c0_27] : memref<32x16xf32, #tpu.memory_space<vmem>>, vector<32x16xf32>
    %c0_28 = arith.constant 0 : index
    %c0_29 = arith.constant 0 : index
    %26 = vector.load %arg11[%c0_28, %c0_29] : memref<1x16xf32, #tpu.memory_space<vmem>>, vector<1x16xf32>
    %c0_30 = arith.constant 0 : index
    %c0_31 = arith.constant 0 : index
    %c0_32 = arith.constant 0 : index
    %27 = vector.load %arg27[%c0_30, %c0_31, %c0_32] : memref<18x18x32xf32, #tpu.memory_space<vmem>>, vector<16x16x32xf32>
    %28 = vector.extract_strided_slice %19 {offsets = [0, 0, 0], sizes = [1, 1, 32], strides = [1, 1, 1]} : vector<3x3x32xf32> to vector<1x1x32xf32>
    %29 = vector.shape_cast %28 : vector<1x1x32xf32> to vector<32xf32>
    %30 = vector.shape_cast %29 : vector<32xf32> to vector<1x1x32xf32>
    %31 = vector.broadcast %30 : vector<1x1x32xf32> to vector<16x16x32xf32>
    %32 = arith.mulf %27, %31 : vector<16x16x32xf32>
    %c0_33 = arith.constant 0 : index
    %c1_34 = arith.constant 1 : index
    %c0_35 = arith.constant 0 : index
    %33 = vector.load %arg27[%c0_33, %c1_34, %c0_35] : memref<18x18x32xf32, #tpu.memory_space<vmem>>, vector<16x16x32xf32>
    %34 = vector.extract_strided_slice %19 {offsets = [0, 1, 0], sizes = [1, 1, 32], strides = [1, 1, 1]} : vector<3x3x32xf32> to vector<1x1x32xf32>
    %35 = vector.shape_cast %34 : vector<1x1x32xf32> to vector<32xf32>
    %36 = vector.shape_cast %35 : vector<32xf32> to vector<1x1x32xf32>
    %37 = vector.broadcast %36 : vector<1x1x32xf32> to vector<16x16x32xf32>
    %38 = arith.mulf %33, %37 : vector<16x16x32xf32>
    %39 = arith.addf %32, %38 : vector<16x16x32xf32>
    %c0_36 = arith.constant 0 : index
    %c2 = arith.constant 2 : index
    %c0_37 = arith.constant 0 : index
    %40 = vector.load %arg27[%c0_36, %c2, %c0_37] : memref<18x18x32xf32, #tpu.memory_space<vmem>>, vector<16x16x32xf32>
    %41 = vector.extract_strided_slice %19 {offsets = [0, 2, 0], sizes = [1, 1, 32], strides = [1, 1, 1]} : vector<3x3x32xf32> to vector<1x1x32xf32>
    %42 = vector.shape_cast %41 : vector<1x1x32xf32> to vector<32xf32>
    %43 = vector.shape_cast %42 : vector<32xf32> to vector<1x1x32xf32>
    %44 = vector.broadcast %43 : vector<1x1x32xf32> to vector<16x16x32xf32>
    %45 = arith.mulf %40, %44 : vector<16x16x32xf32>
    %46 = arith.addf %39, %45 : vector<16x16x32xf32>
    %c1_38 = arith.constant 1 : index
    %c0_39 = arith.constant 0 : index
    %c0_40 = arith.constant 0 : index
    %47 = vector.load %arg27[%c1_38, %c0_39, %c0_40] : memref<18x18x32xf32, #tpu.memory_space<vmem>>, vector<16x16x32xf32>
    %48 = vector.extract_strided_slice %19 {offsets = [1, 0, 0], sizes = [1, 1, 32], strides = [1, 1, 1]} : vector<3x3x32xf32> to vector<1x1x32xf32>
    %49 = vector.shape_cast %48 : vector<1x1x32xf32> to vector<32xf32>
    %50 = vector.shape_cast %49 : vector<32xf32> to vector<1x1x32xf32>
    %51 = vector.broadcast %50 : vector<1x1x32xf32> to vector<16x16x32xf32>
    %52 = arith.mulf %47, %51 : vector<16x16x32xf32>
    %53 = arith.addf %46, %52 : vector<16x16x32xf32>
    %c1_41 = arith.constant 1 : index
    %c1_42 = arith.constant 1 : index
    %c0_43 = arith.constant 0 : index
    %54 = vector.load %arg27[%c1_41, %c1_42, %c0_43] : memref<18x18x32xf32, #tpu.memory_space<vmem>>, vector<16x16x32xf32>
    %55 = vector.extract_strided_slice %19 {offsets = [1, 1, 0], sizes = [1, 1, 32], strides = [1, 1, 1]} : vector<3x3x32xf32> to vector<1x1x32xf32>
    %56 = vector.shape_cast %55 : vector<1x1x32xf32> to vector<32xf32>
    %57 = vector.shape_cast %56 : vector<32xf32> to vector<1x1x32xf32>
    %58 = vector.broadcast %57 : vector<1x1x32xf32> to vector<16x16x32xf32>
    %59 = arith.mulf %54, %58 : vector<16x16x32xf32>
    %60 = arith.addf %53, %59 : vector<16x16x32xf32>
    %c1_44 = arith.constant 1 : index
    %c2_45 = arith.constant 2 : index
    %c0_46 = arith.constant 0 : index
    %61 = vector.load %arg27[%c1_44, %c2_45, %c0_46] : memref<18x18x32xf32, #tpu.memory_space<vmem>>, vector<16x16x32xf32>
    %62 = vector.extract_strided_slice %19 {offsets = [1, 2, 0], sizes = [1, 1, 32], strides = [1, 1, 1]} : vector<3x3x32xf32> to vector<1x1x32xf32>
    %63 = vector.shape_cast %62 : vector<1x1x32xf32> to vector<32xf32>
    %64 = vector.shape_cast %63 : vector<32xf32> to vector<1x1x32xf32>
    %65 = vector.broadcast %64 : vector<1x1x32xf32> to vector<16x16x32xf32>
    %66 = arith.mulf %61, %65 : vector<16x16x32xf32>
    %67 = arith.addf %60, %66 : vector<16x16x32xf32>
    %c2_47 = arith.constant 2 : index
    %c0_48 = arith.constant 0 : index
    %c0_49 = arith.constant 0 : index
    %68 = vector.load %arg27[%c2_47, %c0_48, %c0_49] : memref<18x18x32xf32, #tpu.memory_space<vmem>>, vector<16x16x32xf32>
    %69 = vector.extract_strided_slice %19 {offsets = [2, 0, 0], sizes = [1, 1, 32], strides = [1, 1, 1]} : vector<3x3x32xf32> to vector<1x1x32xf32>
    %70 = vector.shape_cast %69 : vector<1x1x32xf32> to vector<32xf32>
    %71 = vector.shape_cast %70 : vector<32xf32> to vector<1x1x32xf32>
    %72 = vector.broadcast %71 : vector<1x1x32xf32> to vector<16x16x32xf32>
    %73 = arith.mulf %68, %72 : vector<16x16x32xf32>
    %74 = arith.addf %67, %73 : vector<16x16x32xf32>
    %c2_50 = arith.constant 2 : index
    %c1_51 = arith.constant 1 : index
    %c0_52 = arith.constant 0 : index
    %75 = vector.load %arg27[%c2_50, %c1_51, %c0_52] : memref<18x18x32xf32, #tpu.memory_space<vmem>>, vector<16x16x32xf32>
    %76 = vector.extract_strided_slice %19 {offsets = [2, 1, 0], sizes = [1, 1, 32], strides = [1, 1, 1]} : vector<3x3x32xf32> to vector<1x1x32xf32>
    %77 = vector.shape_cast %76 : vector<1x1x32xf32> to vector<32xf32>
    %78 = vector.shape_cast %77 : vector<32xf32> to vector<1x1x32xf32>
    %79 = vector.broadcast %78 : vector<1x1x32xf32> to vector<16x16x32xf32>
    %80 = arith.mulf %75, %79 : vector<16x16x32xf32>
    %81 = arith.addf %74, %80 : vector<16x16x32xf32>
    %c2_53 = arith.constant 2 : index
    %c2_54 = arith.constant 2 : index
    %c0_55 = arith.constant 0 : index
    %82 = vector.load %arg27[%c2_53, %c2_54, %c0_55] : memref<18x18x32xf32, #tpu.memory_space<vmem>>, vector<16x16x32xf32>
    %83 = vector.extract_strided_slice %19 {offsets = [2, 2, 0], sizes = [1, 1, 32], strides = [1, 1, 1]} : vector<3x3x32xf32> to vector<1x1x32xf32>
    %84 = vector.shape_cast %83 : vector<1x1x32xf32> to vector<32xf32>
    %85 = vector.shape_cast %84 : vector<32xf32> to vector<1x1x32xf32>
    %86 = vector.broadcast %85 : vector<1x1x32xf32> to vector<16x16x32xf32>
    %87 = arith.mulf %82, %86 : vector<16x16x32xf32>
    %88 = arith.addf %81, %87 : vector<16x16x32xf32>
    %89 = vector.shape_cast %20 : vector<1x32xf32> to vector<1x1x32xf32>
    %90 = vector.broadcast %89 : vector<1x1x32xf32> to vector<16x16x32xf32>
    %91 = arith.addf %88, %90 : vector<16x16x32xf32>
    %92 = arith.negf %91 : vector<16x16x32xf32>
    %93 = math.exp %92 : vector<16x16x32xf32>
    %cst_56 = arith.constant 1.000000e+00 : f32
    %94 = vector.broadcast %cst_56 : f32 to vector<16x16x32xf32>
    %95 = arith.addf %94, %93 : vector<16x16x32xf32>
    %96 = arith.divf %94, %95 : vector<16x16x32xf32>
    %97 = arith.mulf %91, %96 : vector<16x16x32xf32>
    %98 = vector.shape_cast %97 : vector<16x16x32xf32> to vector<256x32xf32>
    %cst_57 = arith.constant dense<0.000000e+00> : vector<32xf32>
    %99 = vector.multi_reduction <add>, %98, %cst_57 [0] : vector<256x32xf32> to vector<32xf32>
    %100 = vector.shape_cast %99 : vector<32xf32> to vector<1x32xf32>
    %cst_58 = arith.constant 2.560000e+02 : f32
    %101 = vector.broadcast %cst_58 : f32 to vector<1x32xf32>
    %102 = arith.divf %100, %101 : vector<1x32xf32>
    %103 = vector.shape_cast %102 : vector<1x32xf32> to vector<1x32xf32>
    %104 = vector.broadcast %103 : vector<1x32xf32> to vector<8x32xf32>
    %105 = arith.truncf %104 : vector<8x32xf32> to vector<8x32xbf16>
    %106 = arith.truncf %21 : vector<32x8xf32> to vector<32x8xbf16>
    %cst_59 = arith.constant dense<0.000000e+00> : vector<8x8xf32>
    %107 = tpu.matmul %105, %106, %cst_59 {dimension_numbers = #tpu.dot_dimension_numbers<[1], [0], [0], [1], [0, 0, 1, 1], [], []>} : vector<8x32xbf16>, vector<32x8xbf16>, vector<8x8xf32> -> vector<8x8xf32>
    %108 = vector.broadcast %22 : vector<1x8xf32> to vector<8x8xf32>
    %109 = arith.addf %107, %108 : vector<8x8xf32>
    %110 = arith.negf %109 : vector<8x8xf32>
    %111 = math.exp %110 : vector<8x8xf32>
    %cst_60 = arith.constant 1.000000e+00 : f32
    %112 = vector.broadcast %cst_60 : f32 to vector<8x8xf32>
    %113 = arith.addf %112, %111 : vector<8x8xf32>
    %114 = arith.divf %112, %113 : vector<8x8xf32>
    %115 = arith.mulf %109, %114 : vector<8x8xf32>
    %116 = arith.truncf %115 : vector<8x8xf32> to vector<8x8xbf16>
    %117 = arith.truncf %23 : vector<8x32xf32> to vector<8x32xbf16>
    %cst_61 = arith.constant dense<0.000000e+00> : vector<8x32xf32>
    %118 = tpu.matmul %116, %117, %cst_61 {dimension_numbers = #tpu.dot_dimension_numbers<[1], [0], [0], [1], [0, 0, 1, 1], [], []>} : vector<8x8xbf16>, vector<8x32xbf16>, vector<8x32xf32> -> vector<8x32xf32>
    %119 = vector.broadcast %24 : vector<1x32xf32> to vector<8x32xf32>
    %120 = arith.addf %118, %119 : vector<8x32xf32>
    %121 = arith.negf %120 : vector<8x32xf32>
    %122 = math.exp %121 : vector<8x32xf32>
    %cst_62 = arith.constant 1.000000e+00 : f32
    %123 = vector.broadcast %cst_62 : f32 to vector<8x32xf32>
    %124 = arith.addf %123, %122 : vector<8x32xf32>
    %125 = arith.divf %123, %124 : vector<8x32xf32>
    %126 = vector.extract_strided_slice %125 {offsets = [0, 0], sizes = [1, 32], strides = [1, 1]} : vector<8x32xf32> to vector<1x32xf32>
    %127 = vector.broadcast %126 : vector<1x32xf32> to vector<256x32xf32>
    %128 = arith.mulf %98, %127 : vector<256x32xf32>
    %129 = arith.truncf %128 : vector<256x32xf32> to vector<256x32xbf16>
    %130 = arith.truncf %25 : vector<32x16xf32> to vector<32x16xbf16>
    %cst_63 = arith.constant dense<0.000000e+00> : vector<256x16xf32>
    %131 = tpu.matmul %129, %130, %cst_63 {dimension_numbers = #tpu.dot_dimension_numbers<[1], [0], [0], [1], [0, 0, 1, 1], [], []>} : vector<256x32xbf16>, vector<32x16xbf16>, vector<256x16xf32> -> vector<256x16xf32>
    %132 = vector.broadcast %26 : vector<1x16xf32> to vector<256x16xf32>
    %133 = arith.addf %131, %132 : vector<256x16xf32>
    %c0_64 = arith.constant 0 : index
    %c0_65 = arith.constant 0 : index
    %134 = vector.load %arg12[%c0_64, %c0_65] : memref<16x128xf32, #tpu.memory_space<vmem>>, vector<16x128xf32>
    %135 = arith.truncf %133 : vector<256x16xf32> to vector<256x16xbf16>
    %136 = arith.truncf %134 : vector<16x128xf32> to vector<16x128xbf16>
    %cst_66 = arith.constant dense<0.000000e+00> : vector<256x128xf32>
    %137 = tpu.matmul %135, %136, %cst_66 {dimension_numbers = #tpu.dot_dimension_numbers<[1], [0], [0], [1], [0, 0, 1, 1], [], []>} : vector<256x16xbf16>, vector<16x128xbf16>, vector<256x128xf32> -> vector<256x128xf32>
    %c0_67 = arith.constant 0 : index
    %c0_68 = arith.constant 0 : index
    %138 = vector.load %arg13[%c0_67, %c0_68] : memref<1x128xf32, #tpu.memory_space<vmem>>, vector<1x128xf32>
    %139 = vector.broadcast %138 : vector<1x128xf32> to vector<256x128xf32>
    %140 = arith.addf %137, %139 : vector<256x128xf32>
    %141 = arith.negf %140 : vector<256x128xf32>
    %142 = math.exp %141 : vector<256x128xf32>
    %cst_69 = arith.constant 1.000000e+00 : f32
    %143 = vector.broadcast %cst_69 : f32 to vector<256x128xf32>
    %144 = arith.addf %143, %142 : vector<256x128xf32>
    %145 = arith.divf %143, %144 : vector<256x128xf32>
    %146 = arith.mulf %140, %145 : vector<256x128xf32>
    %cst_70 = arith.constant 0.000000e+00 : f32
    %147 = vector.broadcast %cst_70 : f32 to vector<18x18x128xf32>
    %c0_71 = arith.constant 0 : index
    %c0_72 = arith.constant 0 : index
    %c0_73 = arith.constant 0 : index
    %148 = vector.load %arg28[%c0_71, %c0_72, %c0_73] : memref<18x18x128xf32, #tpu.memory_space<vmem>>, vector<18x18x128xf32>
    tpu.vector_store %arg28[%c0_71, %c0_72, %c0_73], %147 {strides = array<i32>} : memref<18x18x128xf32, #tpu.memory_space<vmem>>, vector<18x18x128xf32>,
    %149 = vector.shape_cast %146 : vector<256x128xf32> to vector<16x16x128xf32>
    %c1_74 = arith.constant 1 : index
    %c1_75 = arith.constant 1 : index
    %c0_76 = arith.constant 0 : index
    %150 = vector.load %arg28[%c1_74, %c1_75, %c0_76] : memref<18x18x128xf32, #tpu.memory_space<vmem>>, vector<16x16x128xf32>
    tpu.vector_store %arg28[%c1_74, %c1_75, %c0_76], %149 {strides = array<i32>} : memref<18x18x128xf32, #tpu.memory_space<vmem>>, vector<16x16x128xf32>,
    %c0_77 = arith.constant 0 : index
    %c0_78 = arith.constant 0 : index
    %c0_79 = arith.constant 0 : index
    %151 = vector.load %arg14[%c0_77, %c0_78, %c0_79] : memref<3x3x128xf32, #tpu.memory_space<vmem>>, vector<3x3x128xf32>
    %c0_80 = arith.constant 0 : index
    %c0_81 = arith.constant 0 : index
    %152 = vector.load %arg15[%c0_80, %c0_81] : memref<1x128xf32, #tpu.memory_space<vmem>>, vector<1x128xf32>
    %c0_82 = arith.constant 0 : index
    %c0_83 = arith.constant 0 : index
    %153 = vector.load %arg16[%c0_82, %c0_83] : memref<128x24xf32, #tpu.memory_space<vmem>>, vector<128x24xf32>
    %c0_84 = arith.constant 0 : index
    %c0_85 = arith.constant 0 : index
    %154 = vector.load %arg17[%c0_84, %c0_85] : memref<1x24xf32, #tpu.memory_space<vmem>>, vector<1x24xf32>
    %c0_86 = arith.constant 0 : index
    %c0_87 = arith.constant 0 : index
    %155 = vector.load %arg18[%c0_86, %c0_87] : memref<24x128xf32, #tpu.memory_space<vmem>>, vector<24x128xf32>
    %c0_88 = arith.constant 0 : index
    %c0_89 = arith.constant 0 : index
    %156 = vector.load %arg19[%c0_88, %c0_89] : memref<1x128xf32, #tpu.memory_space<vmem>>, vector<1x128xf32>
    %c0_90 = arith.constant 0 : index
    %c0_91 = arith.constant 0 : index
    %157 = vector.load %arg20[%c0_90, %c0_91] : memref<128x24xf32, #tpu.memory_space<vmem>>, vector<128x24xf32>
    %c0_92 = arith.constant 0 : index
    %c0_93 = arith.constant 0 : index
    %158 = vector.load %arg21[%c0_92, %c0_93] : memref<1x24xf32, #tpu.memory_space<vmem>>, vector<1x24xf32>
    %c0_94 = arith.constant 0 : index
    %c0_95 = arith.constant 0 : index
    %c0_96 = arith.constant 0 : index
    %159 = vector.load %arg28[%c0_94, %c0_95, %c0_96] : memref<18x18x128xf32, #tpu.memory_space<vmem>>, vector<16x16x128xf32>
    %160 = vector.extract_strided_slice %151 {offsets = [0, 0, 0], sizes = [1, 1, 128], strides = [1, 1, 1]} : vector<3x3x128xf32> to vector<1x1x128xf32>
    %161 = vector.shape_cast %160 : vector<1x1x128xf32> to vector<128xf32>
    %162 = vector.shape_cast %161 : vector<128xf32> to vector<1x1x128xf32>
    %163 = vector.broadcast %162 : vector<1x1x128xf32> to vector<16x16x128xf32>
    %164 = arith.mulf %159, %163 : vector<16x16x128xf32>
    %c0_97 = arith.constant 0 : index
    %c1_98 = arith.constant 1 : index
    %c0_99 = arith.constant 0 : index
    %165 = vector.load %arg28[%c0_97, %c1_98, %c0_99] : memref<18x18x128xf32, #tpu.memory_space<vmem>>, vector<16x16x128xf32>
    %166 = vector.extract_strided_slice %151 {offsets = [0, 1, 0], sizes = [1, 1, 128], strides = [1, 1, 1]} : vector<3x3x128xf32> to vector<1x1x128xf32>
    %167 = vector.shape_cast %166 : vector<1x1x128xf32> to vector<128xf32>
    %168 = vector.shape_cast %167 : vector<128xf32> to vector<1x1x128xf32>
    %169 = vector.broadcast %168 : vector<1x1x128xf32> to vector<16x16x128xf32>
    %170 = arith.mulf %165, %169 : vector<16x16x128xf32>
    %171 = arith.addf %164, %170 : vector<16x16x128xf32>
    %c0_100 = arith.constant 0 : index
    %c2_101 = arith.constant 2 : index
    %c0_102 = arith.constant 0 : index
    %172 = vector.load %arg28[%c0_100, %c2_101, %c0_102] : memref<18x18x128xf32, #tpu.memory_space<vmem>>, vector<16x16x128xf32>
    %173 = vector.extract_strided_slice %151 {offsets = [0, 2, 0], sizes = [1, 1, 128], strides = [1, 1, 1]} : vector<3x3x128xf32> to vector<1x1x128xf32>
    %174 = vector.shape_cast %173 : vector<1x1x128xf32> to vector<128xf32>
    %175 = vector.shape_cast %174 : vector<128xf32> to vector<1x1x128xf32>
    %176 = vector.broadcast %175 : vector<1x1x128xf32> to vector<16x16x128xf32>
    %177 = arith.mulf %172, %176 : vector<16x16x128xf32>
    %178 = arith.addf %171, %177 : vector<16x16x128xf32>
    %c1_103 = arith.constant 1 : index
    %c0_104 = arith.constant 0 : index
    %c0_105 = arith.constant 0 : index
    %179 = vector.load %arg28[%c1_103, %c0_104, %c0_105] : memref<18x18x128xf32, #tpu.memory_space<vmem>>, vector<16x16x128xf32>
    %180 = vector.extract_strided_slice %151 {offsets = [1, 0, 0], sizes = [1, 1, 128], strides = [1, 1, 1]} : vector<3x3x128xf32> to vector<1x1x128xf32>
    %181 = vector.shape_cast %180 : vector<1x1x128xf32> to vector<128xf32>
    %182 = vector.shape_cast %181 : vector<128xf32> to vector<1x1x128xf32>
    %183 = vector.broadcast %182 : vector<1x1x128xf32> to vector<16x16x128xf32>
    %184 = arith.mulf %179, %183 : vector<16x16x128xf32>
    %185 = arith.addf %178, %184 : vector<16x16x128xf32>
    %c1_106 = arith.constant 1 : index
    %c1_107 = arith.constant 1 : index
    %c0_108 = arith.constant 0 : index
    %186 = vector.load %arg28[%c1_106, %c1_107, %c0_108] : memref<18x18x128xf32, #tpu.memory_space<vmem>>, vector<16x16x128xf32>
    %187 = vector.extract_strided_slice %151 {offsets = [1, 1, 0], sizes = [1, 1, 128], strides = [1, 1, 1]} : vector<3x3x128xf32> to vector<1x1x128xf32>
    %188 = vector.shape_cast %187 : vector<1x1x128xf32> to vector<128xf32>
    %189 = vector.shape_cast %188 : vector<128xf32> to vector<1x1x128xf32>
    %190 = vector.broadcast %189 : vector<1x1x128xf32> to vector<16x16x128xf32>
    %191 = arith.mulf %186, %190 : vector<16x16x128xf32>
    %192 = arith.addf %185, %191 : vector<16x16x128xf32>
    %c1_109 = arith.constant 1 : index
    %c2_110 = arith.constant 2 : index
    %c0_111 = arith.constant 0 : index
    %193 = vector.load %arg28[%c1_109, %c2_110, %c0_111] : memref<18x18x128xf32, #tpu.memory_space<vmem>>, vector<16x16x128xf32>
    %194 = vector.extract_strided_slice %151 {offsets = [1, 2, 0], sizes = [1, 1, 128], strides = [1, 1, 1]} : vector<3x3x128xf32> to vector<1x1x128xf32>
    %195 = vector.shape_cast %194 : vector<1x1x128xf32> to vector<128xf32>
    %196 = vector.shape_cast %195 : vector<128xf32> to vector<1x1x128xf32>
    %197 = vector.broadcast %196 : vector<1x1x128xf32> to vector<16x16x128xf32>
    %198 = arith.mulf %193, %197 : vector<16x16x128xf32>
    %199 = arith.addf %192, %198 : vector<16x16x128xf32>
    %c2_112 = arith.constant 2 : index
    %c0_113 = arith.constant 0 : index
    %c0_114 = arith.constant 0 : index
    %200 = vector.load %arg28[%c2_112, %c0_113, %c0_114] : memref<18x18x128xf32, #tpu.memory_space<vmem>>, vector<16x16x128xf32>
    %201 = vector.extract_strided_slice %151 {offsets = [2, 0, 0], sizes = [1, 1, 128], strides = [1, 1, 1]} : vector<3x3x128xf32> to vector<1x1x128xf32>
    %202 = vector.shape_cast %201 : vector<1x1x128xf32> to vector<128xf32>
    %203 = vector.shape_cast %202 : vector<128xf32> to vector<1x1x128xf32>
    %204 = vector.broadcast %203 : vector<1x1x128xf32> to vector<16x16x128xf32>
    %205 = arith.mulf %200, %204 : vector<16x16x128xf32>
    %206 = arith.addf %199, %205 : vector<16x16x128xf32>
    %c2_115 = arith.constant 2 : index
    %c1_116 = arith.constant 1 : index
    %c0_117 = arith.constant 0 : index
    %207 = vector.load %arg28[%c2_115, %c1_116, %c0_117] : memref<18x18x128xf32, #tpu.memory_space<vmem>>, vector<16x16x128xf32>
    %208 = vector.extract_strided_slice %151 {offsets = [2, 1, 0], sizes = [1, 1, 128], strides = [1, 1, 1]} : vector<3x3x128xf32> to vector<1x1x128xf32>
    %209 = vector.shape_cast %208 : vector<1x1x128xf32> to vector<128xf32>
    %210 = vector.shape_cast %209 : vector<128xf32> to vector<1x1x128xf32>
    %211 = vector.broadcast %210 : vector<1x1x128xf32> to vector<16x16x128xf32>
    %212 = arith.mulf %207, %211 : vector<16x16x128xf32>
    %213 = arith.addf %206, %212 : vector<16x16x128xf32>
    %c2_118 = arith.constant 2 : index
    %c2_119 = arith.constant 2 : index
    %c0_120 = arith.constant 0 : index
    %214 = vector.load %arg28[%c2_118, %c2_119, %c0_120] : memref<18x18x128xf32, #tpu.memory_space<vmem>>, vector<16x16x128xf32>
    %215 = vector.extract_strided_slice %151 {offsets = [2, 2, 0], sizes = [1, 1, 128], strides = [1, 1, 1]} : vector<3x3x128xf32> to vector<1x1x128xf32>
    %216 = vector.shape_cast %215 : vector<1x1x128xf32> to vector<128xf32>
    %217 = vector.shape_cast %216 : vector<128xf32> to vector<1x1x128xf32>
    %218 = vector.broadcast %217 : vector<1x1x128xf32> to vector<16x16x128xf32>
    %219 = arith.mulf %214, %218 : vector<16x16x128xf32>
    %220 = arith.addf %213, %219 : vector<16x16x128xf32>
    %221 = vector.shape_cast %152 : vector<1x128xf32> to vector<1x1x128xf32>
    %222 = vector.broadcast %221 : vector<1x1x128xf32> to vector<16x16x128xf32>
    %223 = arith.addf %220, %222 : vector<16x16x128xf32>
    %224 = arith.negf %223 : vector<16x16x128xf32>
    %225 = math.exp %224 : vector<16x16x128xf32>
    %cst_121 = arith.constant 1.000000e+00 : f32
    %226 = vector.broadcast %cst_121 : f32 to vector<16x16x128xf32>
    %227 = arith.addf %226, %225 : vector<16x16x128xf32>
    %228 = arith.divf %226, %227 : vector<16x16x128xf32>
    %229 = arith.mulf %223, %228 : vector<16x16x128xf32>
    %230 = vector.shape_cast %229 : vector<16x16x128xf32> to vector<256x128xf32>
    %cst_122 = arith.constant dense<0.000000e+00> : vector<128xf32>
    %231 = vector.multi_reduction <add>, %230, %cst_122 [0] : vector<256x128xf32> to vector<128xf32>
    %232 = vector.shape_cast %231 : vector<128xf32> to vector<1x128xf32>
    %cst_123 = arith.constant 2.560000e+02 : f32
    %233 = vector.broadcast %cst_123 : f32 to vector<1x128xf32>
    %234 = arith.divf %232, %233 : vector<1x128xf32>
    %235 = vector.shape_cast %234 : vector<1x128xf32> to vector<1x128xf32>
    %236 = vector.broadcast %235 : vector<1x128xf32> to vector<8x128xf32>
    %237 = arith.truncf %236 : vector<8x128xf32> to vector<8x128xbf16>
    %238 = arith.truncf %153 : vector<128x24xf32> to vector<128x24xbf16>
    %cst_124 = arith.constant dense<0.000000e+00> : vector<8x24xf32>
    %239 = tpu.matmul %237, %238, %cst_124 {dimension_numbers = #tpu.dot_dimension_numbers<[1], [0], [0], [1], [0, 0, 1, 1], [], []>} : vector<8x128xbf16>, vector<128x24xbf16>, vector<8x24xf32> -> vector<8x24xf32>
    %240 = vector.broadcast %154 : vector<1x24xf32> to vector<8x24xf32>
    %241 = arith.addf %239, %240 : vector<8x24xf32>
    %242 = arith.negf %241 : vector<8x24xf32>
    %243 = math.exp %242 : vector<8x24xf32>
    %cst_125 = arith.constant 1.000000e+00 : f32
    %244 = vector.broadcast %cst_125 : f32 to vector<8x24xf32>
    %245 = arith.addf %244, %243 : vector<8x24xf32>
    %246 = arith.divf %244, %245 : vector<8x24xf32>
    %247 = arith.mulf %241, %246 : vector<8x24xf32>
    %248 = arith.truncf %247 : vector<8x24xf32> to vector<8x24xbf16>
    %249 = arith.truncf %155 : vector<24x128xf32> to vector<24x128xbf16>
    %cst_126 = arith.constant dense<0.000000e+00> : vector<8x128xf32>
    %250 = tpu.matmul %248, %249, %cst_126 {dimension_numbers = #tpu.dot_dimension_numbers<[1], [0], [0], [1], [0, 0, 1, 1], [], []>} : vector<8x24xbf16>, vector<24x128xbf16>, vector<8x128xf32> -> vector<8x128xf32>
    %251 = vector.broadcast %156 : vector<1x128xf32> to vector<8x128xf32>
    %252 = arith.addf %250, %251 : vector<8x128xf32>
    %253 = arith.negf %252 : vector<8x128xf32>
    %254 = math.exp %253 : vector<8x128xf32>
    %cst_127 = arith.constant 1.000000e+00 : f32
    %255 = vector.broadcast %cst_127 : f32 to vector<8x128xf32>
    %256 = arith.addf %255, %254 : vector<8x128xf32>
    %257 = arith.divf %255, %256 : vector<8x128xf32>
    %258 = vector.extract_strided_slice %257 {offsets = [0, 0], sizes = [1, 128], strides = [1, 1]} : vector<8x128xf32> to vector<1x128xf32>
    %259 = vector.broadcast %258 : vector<1x128xf32> to vector<256x128xf32>
    %260 = arith.mulf %230, %259 : vector<256x128xf32>
    %261 = arith.truncf %260 : vector<256x128xf32> to vector<256x128xbf16>
    %262 = arith.truncf %157 : vector<128x24xf32> to vector<128x24xbf16>
    %cst_128 = arith.constant dense<0.000000e+00> : vector<256x24xf32>
    %263 = tpu.matmul %261, %262, %cst_128 {dimension_numbers = #tpu.dot_dimension_numbers<[1], [0], [0], [1], [0, 0, 1, 1], [], []>} : vector<256x128xbf16>, vector<128x24xbf16>, vector<256x24xf32> -> vector<256x24xf32>
    %264 = vector.broadcast %158 : vector<1x24xf32> to vector<256x24xf32>
    %265 = arith.addf %263, %264 : vector<256x24xf32>
    %c0_129 = arith.constant 0 : index
    %c0_130 = arith.constant 0 : index
    %266 = vector.load %arg22[%c0_129, %c0_130] : memref<24x128xf32, #tpu.memory_space<vmem>>, vector<24x128xf32>
    %267 = arith.truncf %265 : vector<256x24xf32> to vector<256x24xbf16>
    %268 = arith.truncf %266 : vector<24x128xf32> to vector<24x128xbf16>
    %cst_131 = arith.constant dense<0.000000e+00> : vector<256x128xf32>
    %269 = tpu.matmul %267, %268, %cst_131 {dimension_numbers = #tpu.dot_dimension_numbers<[1], [0], [0], [1], [0, 0, 1, 1], [], []>} : vector<256x24xbf16>, vector<24x128xbf16>, vector<256x128xf32> -> vector<256x128xf32>
    %c0_132 = arith.constant 0 : index
    %c0_133 = arith.constant 0 : index
    %270 = vector.load %arg23[%c0_132, %c0_133] : memref<1x128xf32, #tpu.memory_space<vmem>>, vector<1x128xf32>
    %271 = vector.broadcast %270 : vector<1x128xf32> to vector<256x128xf32>
    %272 = arith.addf %269, %271 : vector<256x128xf32>
    %273 = arith.negf %272 : vector<256x128xf32>
    %274 = math.exp %273 : vector<256x128xf32>
    %cst_134 = arith.constant 1.000000e+00 : f32
    %275 = vector.broadcast %cst_134 : f32 to vector<256x128xf32>
    %276 = arith.addf %275, %274 : vector<256x128xf32>
    %277 = arith.divf %275, %276 : vector<256x128xf32>
    %278 = arith.mulf %272, %277 : vector<256x128xf32>
    %cst_135 = arith.constant dense<0.000000e+00> : vector<128xf32>
    %279 = vector.multi_reduction <add>, %278, %cst_135 [0] : vector<256x128xf32> to vector<128xf32>
    %280 = vector.shape_cast %279 : vector<128xf32> to vector<1x128xf32>
    %cst_136 = arith.constant 2.560000e+02 : f32
    %281 = vector.broadcast %cst_136 : f32 to vector<1x128xf32>
    %282 = arith.divf %280, %281 : vector<1x128xf32>
    %283 = vector.shape_cast %282 : vector<1x128xf32> to vector<1x128xf32>
    %284 = vector.broadcast %283 : vector<1x128xf32> to vector<8x128xf32>
    %c0_137 = arith.constant 0 : index
    %c0_138 = arith.constant 0 : index
    %285 = vector.load %arg24[%c0_137, %c0_138] : memref<128x5xf32, #tpu.memory_space<vmem>>, vector<128x5xf32>
    %286 = arith.truncf %284 : vector<8x128xf32> to vector<8x128xbf16>
    %287 = arith.truncf %285 : vector<128x5xf32> to vector<128x5xbf16>
    %cst_139 = arith.constant dense<0.000000e+00> : vector<8x5xf32>
    %288 = tpu.matmul %286, %287, %cst_139 {dimension_numbers = #tpu.dot_dimension_numbers<[1], [0], [0], [1], [0, 0, 1, 1], [], []>} : vector<8x128xbf16>, vector<128x5xbf16>, vector<8x5xf32> -> vector<8x5xf32>
    %c0_140 = arith.constant 0 : index
    %c0_141 = arith.constant 0 : index
    %289 = vector.load %arg25[%c0_140, %c0_141] : memref<1x5xf32, #tpu.memory_space<vmem>>, vector<1x5xf32>
    %290 = vector.broadcast %289 : vector<1x5xf32> to vector<8x5xf32>
    %291 = arith.addf %288, %290 : vector<8x5xf32>
    %292 = vector.extract_strided_slice %291 {offsets = [0, 0], sizes = [1, 5], strides = [1, 1]} : vector<8x5xf32> to vector<1x5xf32>
    %293 = vector.shape_cast %292 : vector<1x5xf32> to vector<1x1x5xf32>
    %c0_142 = arith.constant 0 : index
    %c0_143 = arith.constant 0 : index
    %c0_144 = arith.constant 0 : index
    %294 = vector.load %arg26[%c0_142, %c0_143, %c0_144] : memref<1x1x5xf32, #tpu.memory_space<vmem>>, vector<1x1x5xf32>
    tpu.vector_store %arg26[%c0_142, %c0_143, %c0_144], %293 {strides = array<i32>} : memref<1x1x5xf32, #tpu.memory_space<vmem>>, vector<1x1x5xf32>,
    return
  }
  func.func @transform_0(%arg0: i32) -> (i32, i32, i32) {
    %c0_i32 = arith.constant 0 : i32
    %c0_i32_0 = arith.constant 0 : i32
    %c0_i32_1 = arith.constant 0 : i32
    return %arg0, %c0_i32, %c0_i32_0 : i32, i32, i32
  }
  func.func @transform_1(%arg0: i32) -> (i32, i32) {
    %c0_i32 = arith.constant 0 : i32
    %c0_i32_0 = arith.constant 0 : i32
    %c0_i32_1 = arith.constant 0 : i32
    return %c0_i32, %c0_i32_0 : i32, i32
  }
  func.func @transform_2(%arg0: i32) -> (i32, i32) {
    %c0_i32 = arith.constant 0 : i32
    %c0_i32_0 = arith.constant 0 : i32
    %c0_i32_1 = arith.constant 0 : i32
    return %c0_i32, %c0_i32_0 : i32, i32
  }
  func.func @transform_3(%arg0: i32) -> (i32, i32, i32) {
    %c0_i32 = arith.constant 0 : i32
    %c0_i32_0 = arith.constant 0 : i32
    %c0_i32_1 = arith.constant 0 : i32
    %c0_i32_2 = arith.constant 0 : i32
    return %c0_i32, %c0_i32_0, %c0_i32_1 : i32, i32, i32
  }
  func.func @transform_4(%arg0: i32) -> (i32, i32) {
    %c0_i32 = arith.constant 0 : i32
    %c0_i32_0 = arith.constant 0 : i32
    %c0_i32_1 = arith.constant 0 : i32
    return %c0_i32, %c0_i32_0 : i32, i32
  }
  func.func @transform_5(%arg0: i32) -> (i32, i32) {
    %c0_i32 = arith.constant 0 : i32
    %c0_i32_0 = arith.constant 0 : i32
    %c0_i32_1 = arith.constant 0 : i32
    return %c0_i32, %c0_i32_0 : i32, i32
  }
  func.func @transform_6(%arg0: i32) -> (i32, i32) {
    %c0_i32 = arith.constant 0 : i32
    %c0_i32_0 = arith.constant 0 : i32
    %c0_i32_1 = arith.constant 0 : i32
    return %c0_i32, %c0_i32_0 : i32, i32
  }
  func.func @transform_7(%arg0: i32) -> (i32, i32) {
    %c0_i32 = arith.constant 0 : i32
    %c0_i32_0 = arith.constant 0 : i32
    %c0_i32_1 = arith.constant 0 : i32
    return %c0_i32, %c0_i32_0 : i32, i32
  }
  func.func @transform_8(%arg0: i32) -> (i32, i32) {
    %c0_i32 = arith.constant 0 : i32
    %c0_i32_0 = arith.constant 0 : i32
    %c0_i32_1 = arith.constant 0 : i32
    return %c0_i32, %c0_i32_0 : i32, i32
  }
  func.func @transform_9(%arg0: i32) -> (i32, i32) {
    %c0_i32 = arith.constant 0 : i32
    %c0_i32_0 = arith.constant 0 : i32
    %c0_i32_1 = arith.constant 0 : i32
    return %c0_i32, %c0_i32_0 : i32, i32
  }
  func.func @transform_10(%arg0: i32) -> (i32, i32) {
    %c0_i32 = arith.constant 0 : i32
    %c0_i32_0 = arith.constant 0 : i32
    %c0_i32_1 = arith.constant 0 : i32
    return %c0_i32, %c0_i32_0 : i32, i32
  }
  func.func @transform_11(%arg0: i32) -> (i32, i32) {
    %c0_i32 = arith.constant 0 : i32
    %c0_i32_0 = arith.constant 0 : i32
    %c0_i32_1 = arith.constant 0 : i32
    return %c0_i32, %c0_i32_0 : i32, i32
  }
  func.func @transform_12(%arg0: i32) -> (i32, i32) {
    %c0_i32 = arith.constant 0 : i32
    %c0_i32_0 = arith.constant 0 : i32
    %c0_i32_1 = arith.constant 0 : i32
    return %c0_i32, %c0_i32_0 : i32, i32
  }
  func.func @transform_13(%arg0: i32) -> (i32, i32, i32) {
    %c0_i32 = arith.constant 0 : i32
    %c0_i32_0 = arith.constant 0 : i32
    %c0_i32_1 = arith.constant 0 : i32
    %c0_i32_2 = arith.constant 0 : i32
    return %c0_i32, %c0_i32_0, %c0_i32_1 : i32, i32, i32
  }
  func.func @transform_14(%arg0: i32) -> (i32, i32) {
    %c0_i32 = arith.constant 0 : i32
    %c0_i32_0 = arith.constant 0 : i32
    %c0_i32_1 = arith.constant 0 : i32
    return %c0_i32, %c0_i32_0 : i32, i32
  }
  func.func @transform_15(%arg0: i32) -> (i32, i32) {
    %c0_i32 = arith.constant 0 : i32
    %c0_i32_0 = arith.constant 0 : i32
    %c0_i32_1 = arith.constant 0 : i32
    return %c0_i32, %c0_i32_0 : i32, i32
  }
  func.func @transform_16(%arg0: i32) -> (i32, i32) {
    %c0_i32 = arith.constant 0 : i32
    %c0_i32_0 = arith.constant 0 : i32
    %c0_i32_1 = arith.constant 0 : i32
    return %c0_i32, %c0_i32_0 : i32, i32
  }
  func.func @transform_17(%arg0: i32) -> (i32, i32) {
    %c0_i32 = arith.constant 0 : i32
    %c0_i32_0 = arith.constant 0 : i32
    %c0_i32_1 = arith.constant 0 : i32
    return %c0_i32, %c0_i32_0 : i32, i32
  }
  func.func @transform_18(%arg0: i32) -> (i32, i32) {
    %c0_i32 = arith.constant 0 : i32
    %c0_i32_0 = arith.constant 0 : i32
    %c0_i32_1 = arith.constant 0 : i32
    return %c0_i32, %c0_i32_0 : i32, i32
  }
  func.func @transform_19(%arg0: i32) -> (i32, i32) {
    %c0_i32 = arith.constant 0 : i32
    %c0_i32_0 = arith.constant 0 : i32
    %c0_i32_1 = arith.constant 0 : i32
    return %c0_i32, %c0_i32_0 : i32, i32
  }
  func.func @transform_20(%arg0: i32) -> (i32, i32) {
    %c0_i32 = arith.constant 0 : i32
    %c0_i32_0 = arith.constant 0 : i32
    %c0_i32_1 = arith.constant 0 : i32
    return %c0_i32, %c0_i32_0 : i32, i32
  }
  func.func @transform_21(%arg0: i32) -> (i32, i32) {
    %c0_i32 = arith.constant 0 : i32
    %c0_i32_0 = arith.constant 0 : i32
    %c0_i32_1 = arith.constant 0 : i32
    return %c0_i32, %c0_i32_0 : i32, i32
  }
  func.func @transform_22(%arg0: i32) -> (i32, i32) {
    %c0_i32 = arith.constant 0 : i32
    %c0_i32_0 = arith.constant 0 : i32
    %c0_i32_1 = arith.constant 0 : i32
    return %c0_i32, %c0_i32_0 : i32, i32
  }
  func.func @transform_23(%arg0: i32) -> (i32, i32) {
    %c0_i32 = arith.constant 0 : i32
    %c0_i32_0 = arith.constant 0 : i32
    %c0_i32_1 = arith.constant 0 : i32
    return %c0_i32, %c0_i32_0 : i32, i32
  }
  func.func @transform_24(%arg0: i32) -> (i32, i32) {
    %c0_i32 = arith.constant 0 : i32
    %c0_i32_0 = arith.constant 0 : i32
    %c0_i32_1 = arith.constant 0 : i32
    return %c0_i32, %c0_i32_0 : i32, i32
  }
  func.func @transform_25(%arg0: i32) -> (i32, i32, i32) {
    %c0_i32 = arith.constant 0 : i32
    %c0_i32_0 = arith.constant 0 : i32
    %c0_i32_1 = arith.constant 0 : i32
    return %arg0, %c0_i32, %c0_i32_0 : i32, i32, i32
  }
}

</mosaic_0001>

<bundles_post_ra>
// kernel: model_forward.1
= control target key start
LH: loop header
LB: loop body
LE: loop exit
PB: predicated region body
PF: predicated region fallthrough
CT: control target
= control target key end

     0   :  { %s10653_s0 = inlined_call_operand.vmem [shape: f32[2,256,32], index: 0, kind: input, shape index: {}]   ;;  %s10654_s1 = inlined_call_operand.vmem [shape: f32[32,32], index: 1, kind: input, shape index: {}]   ;;  %s10655_s2 = inlined_call_operand.vmem [shape: f32[1,32], index: 2, kind: input, shape index: {}]   ;;  %s10656_s3 = inlined_call_operand.vmem [shape: f32[3,3,32], index: 3, kind: input, shape index: {}]   ;;  %s10657_s4 = inlined_call_operand.vmem [shape: f32[1,32], index: 4, kind: input, shape index: {}]   ;;  %s10658_s5 = inlined_call_operand.vmem [shape: f32[32,8], index: 5, kind: input, shape index: {}]   ;;  %s10659_s6 = inlined_call_operand.vmem [shape: f32[1,8], index: 6, kind: input, shape index: {}]   ;;  %s10660_s7 = inlined_call_operand.vmem [shape: f32[8,32], index: 7, kind: input, shape index: {}]   ;;  %s10661_s8 = inlined_call_operand.vmem [shape: f32[1,32], index: 8, kind: input, shape index: {}]   ;;  %s10662_s9 = inlined_call_operand.vmem [shape: f32[32,16], index: 9, kind: input, shape index: {}]   ;;  %s10663_s10 = inlined_call_operand.vmem [shape: f32[1,16], index: 10, kind: input, shape index: {}]   ;;  %s10664_s11 = inlined_call_operand.vmem [shape: f32[16,128], index: 11, kind: input, shape index: {}]   ;;  %s10665_s12 = inlined_call_operand.vmem [shape: f32[1,128], index: 12, kind: input, shape index: {}]   ;;  %s10666_s13 = inlined_call_operand.vmem [shape: f32[3,3,128], index: 13, kind: input, shape index: {}]   ;;  %s10667_s14 = inlined_call_operand.vmem [shape: f32[1,128], index: 14, kind: input, shape index: {}]   ;;  %s10668_s15 = inlined_call_operand.vmem [shape: f32[128,24], index: 15, kind: input, shape index: {}]   ;;  %s10669_s16 = inlined_call_operand.vmem [shape: f32[1,24], index: 16, kind: input, shape index: {}]   ;;  %s10670_s17 = inlined_call_operand.vmem [shape: f32[24,128], index: 17, kind: input, shape index: {}]   ;;  %s10671_s18 = inlined_call_operand.vmem [shape: f32[1,128], index: 18, kind: input, shape index: {}]   ;;  %s10672_s19 = inlined_call_operand.vmem [shape: f32[128,24], index: 19, kind: input, shape index: {}]   ;;  %s10673_s20 = inlined_call_operand.vmem [shape: f32[1,24], index: 20, kind: input, shape index: {}]   ;;  %s10674_s21 = inlined_call_operand.vmem [shape: f32[24,128], index: 21, kind: input, shape index: {}]   ;;  %s10675_s22 = inlined_call_operand.vmem [shape: f32[1,128], index: 22, kind: input, shape index: {}]   ;;  %s10676_s23 = inlined_call_operand.vmem [shape: f32[128,5], index: 23, kind: input, shape index: {}]   ;;  %s10677_s24 = inlined_call_operand.vmem [shape: f32[1,5], index: 24, kind: input, shape index: {}]   ;;  %s10678_s25 = inlined_call_operand.hbm [shape: f32[2,1,5], index: 25, kind: output, shape index: {}]  }
   0x1   :  { %10763 = sst [smem:[#allocation51_spill]] %s10653_s0 }
   0x2   :  { %10764 = sst [smem:[#allocation52_spill]] %s10654_s1 }
   0x3   :  { %10765 = sst [smem:[#allocation53_spill]] %s10655_s2 }
   0x4   :  { %10766 = sst [smem:[#allocation54_spill]] %s10656_s3 }
   0x5   :  { %10767 = sst [smem:[#allocation55_spill]] %s10657_s4 }
   0x6   :  { %10768 = sst [smem:[#allocation56_spill]] %s10658_s5 }
   0x7   :  { %10769 = sst [smem:[#allocation57_spill]] %s10659_s6 }
   0x8   :  { %10770 = sst [smem:[#allocation58_spill]] %s10660_s7 }
   0x9   :  { %10771 = sst [smem:[#allocation59_spill]] %s10661_s8 }
   0xa   :  { %10772 = sst [smem:[#allocation60_spill]] %s10662_s9 }
   0xb   :  { %10773 = sst [smem:[#allocation61_spill]] %s10663_s10 }
   0xc   :  { %30 = vsyncpa [#allocation5], 0 }
   0xd   :  { %32 = vsyncpa [#allocation5 + $0x1], 0  ;;  %s7236_s29 = smov 0   ;;  %s7238_s2 = smov 0  }
   0xe   :  { %s7240_s6 = smov 0   ;;  %s7242_s30 = smov 0  }
   0xf LB: > { %10774 = sst [smem:[#allocation7_spill]] %s7089_s29  ;;  %s7257_s7 = sadd.s32 4294967295, %s7101_s30   ;;  %s7101_s30 = sphi %s7242_s30, %s10997_s30   ;;  %s7097_s6 = sphi %s7240_s6, %s11002_s6   ;;  %s7093_s2 = sphi %s7238_s2, %s11001_s2   ;;  %s7089_s29 = sphi %s7236_s29, %s11000_s29  }
  0x10   : > { %10775 = sst [smem:[#allocation8_spill]] %s7097_s6  ;;  %s5707_s3 = sadd.s32 4294967294, %s7101_s30  }
  0x11   : > { %s7261_s26 = sadd.s32 1, %s7101_s30   ;;  %s575_s1 = sadd.s32 1, %s7097_s6 }
  0x12   : > { %10776 = sst [smem:[#allocation9_spill]] %s7261_s26  ;;  %s572_s8 = ssub.s32 %s7101_s30, %s7261_s26 }
  0x13   : > { %p585_p0 = scmp.ne.s32.totalorder %s7097_s6, %s7093_s2  ;;  %p573_p1 = scmp.eq.s32.totalorder %s572_s8, 0 }
  0x14   : > { %p586_p2 = scmp.eq.s32.totalorder %s7257_s7, 1  ;;  %p591_p3 = scmp.ne.s32.totalorder %s7093_s2, %s7089_s29 }
  0x15   : > { %p592_p4 = scmp.eq.s32.totalorder %s5707_s3, 1  ;;  %p5710_p7 = scmp.ge.s32.totalorder %s7101_s30, 1 }
  0x16   : > { %s7272_s27 = scalar_select %p573_p1, %s7097_s6, %s575_s1  }
  0x17   : > { %p7274_p5 = por %p586_p2, %p585_p0  ;;  %p7278_p6 = por %p592_p4, %p591_p3 }
  0x18   : > { %10777 = sst [smem:[#allocation10_spill]] %s7272_s27  ;;  %p690_p8 = scmp.lt.s32.totalorder %s7101_s30, 3 }
  0x19   : > { %s10779_s28 = scalar_select %p7278_p6, 1, 0 }
  0x1a   : > { %p691_p9 = pnand %p5710_p7, %p690_p8 }
  0x1b   : > { %10780 = sst [smem:[#allocation11_spill]] %s10779_s28 }
  0x1c   : > { %694 = sbr.rel (%p691_p9) target bundleno = 3065 (0xbf9), region = 120 }
  0x23   : > { %s10781_s0 = sld [smem:[#allocation52_spill]]  ;;  %p757_p10 = scmp.lt.s32.totalorder %s7257_s7, 1  ;;  %vm824_vm0 = vcmask 261120   ;;  %v7103_v54 = vmov 0.0   ;;  %vm1260_vm1 = vcmask 254976   ;;  %vm7104_vm2 = vmmov 0  }
  0x24   : > { %s10782_s3 = sld [smem:[#allocation51_spill]]  ;;  %1265 = vst.msk [vmem:[#allocation2 + $0x30] sm:$0xff] %vm824_vm0, %v7103_v54  ;;  %1266 = vst.msk [vmem:[#allocation2 + $0x38] sm:$0xff] %vm824_vm0, %v7103_v54  ;;  %6117 = vmatprep.subr.bf16.mxu1 %v7103_v54  ;;  %s10783_s26 = sld [smem:[#allocation53_spill]]  ;;  %vm2635_vm3 = vcmask 1043456   ;;  %vm2631_vm4 = vcmask 64512  }
  0x25   : > { %s758_s28 = scalar_select %p757_p10, %s7257_s7, 1  ;;  %1258 = vst.msk [vmem:[#allocation2] sm:$0xff] %vm824_vm0, %v7103_v54  ;;  %1259 = vst.msk [vmem:[#allocation2 + $0x8] sm:$0xff] %vm824_vm0, %v7103_v54  ;;  %vm2980_vm5 = vcmask 130048   ;;  %vm4783_vm6 = vcmask 195584   ;;  %vm5637_vm7 = vcmask 32768  }
  0x26   : > { %1262 = vst.msk [vmem:[#allocation2 + $0x18] sm:$0xff] %vm824_vm0, %v7103_v54  ;;  %1263 = vst.msk [vmem:[#allocation2 + $0x20] sm:$0xff] %vm824_vm0, %v7103_v54  ;;  %s10786_s8 = sld [smem:[#allocation54_spill]]  ;;  %s10798_s27 = sld [smem:[#allocation55_spill]] }
  0x27   : > { %s5959_s9 = sshll.u32 %s758_s28, 8  ;;  %1268 = vst.msk [vmem:[#allocation2 + $0x48] sm:$0xff] %vm824_vm0, %v7103_v54  ;;  %1269 = vst.msk [vmem:[#allocation2 + $0x50] sm:$0xff] %vm824_vm0, %v7103_v54  ;;  %s10887_s5 = sld [smem:[#allocation58_spill]] }
  0x28   : > { %1271 = vst.msk [vmem:[#allocation2 + $0x60] sm:$0xff] %vm824_vm0, %v7103_v54  ;;  %1272 = vst.msk [vmem:[#allocation2 + $0x68] sm:$0xff] %vm824_vm0, %v7103_v54  ;;  %s10888_s6 = sld [smem:[#allocation57_spill]]  ;;  %s10903_s10 = sld [smem:[#allocation61_spill]] }
  0x29   : > { %v795_v0 = vld [vmem:[%s10781_s0] sm:$0xff]  ;;  %v796_v1 = vld [vmem:[%s10781_s0 + $0x8] sm:$0xff]  ;;  %v797_v2 = vld [vmem:[%s10781_s0 + $0x10] sm:$0xff]  ;;  %1274 = vst.msk [vmem:[#allocation2 + $0x78] sm:$0xff] %vm824_vm0, %v7103_v54  ;;  %s5956_s28 = sshll.u32 %s7257_s7, 4 }
  0x2a   : > { %v815_v3 = vpack.c.bf16 %v796_v1, %v795_v0  ;;  %v798_v4 = vld [vmem:[%s10781_s0 + $0x18] sm:$0xff]  ;;  %s7301_s1 = scalar_lea.vmem %s10782_s3, %s5959_s9  ;;  %1275 = vst.msk [vmem:[#allocation2 + $0x80] sm:$0xff] %vm824_vm0, %v7103_v54  ;;  %1277 = vst.msk [vmem:[#allocation2 + $0x90] sm:$0xff] %vm824_vm0, %v7103_v54  ;;  %v7517_v55 = vld [vmem:[%s10783_s26] ss:$0 sm:$0xff]  ;;  %s10611_s0 = scalar_lea.hbm %s10678_s25, %s5956_s28 }
  0x2b   : > { %v816_v5 = vpack.c.bf16 %v798_v4, %v797_v2  ;;  %v763_v6 = vld [vmem:[%s7301_s1] sm:$0xff]  ;;  %v764_v7 = vld [vmem:[%s7301_s1 + $0x8] sm:$0xff]  ;;  %v765_v8 = vld [vmem:[%s7301_s1 + $0x10] sm:$0xff]  ;;  %1278 = vst.msk [vmem:[#allocation2 + $0x98] sm:$0xff] %vm824_vm0, %v7103_v54 }
  0x2c   : > { %6081 = vmatprep.subr.bf16.mxu0 %v815_v3  ;;  %v799_v9 = vpack.c.bf16 %v764_v7, %v763_v6  ;;  %v766_v10 = vld [vmem:[%s7301_s1 + $0x18] sm:$0xff]  ;;  %v767_v11 = vld [vmem:[%s7301_s1 + $0x20] sm:$0xff]  ;;  %v768_v12 = vld [vmem:[%s7301_s1 + $0x28] sm:$0xff]  ;;  %1280 = vst.msk [vmem:[#allocation2 + $0xa8] sm:$0xff] %vm824_vm0, %v7103_v54 }
  0x2d   : > { %6082 = vmatpush3.bf16.msra.mxu0 %v815_v3  ;;  %v800_v13 = vpack.c.bf16 %v766_v10, %v765_v8  ;;  %v801_v14 = vpack.c.bf16 %v768_v12, %v767_v11  ;;  %v769_v15 = vld [vmem:[%s7301_s1 + $0x30] sm:$0xff]  ;;  %v770_v16 = vld [vmem:[%s7301_s1 + $0x38] sm:$0xff]  ;;  %v771_v17 = vld [vmem:[%s7301_s1 + $0x40] sm:$0xff]  ;;  %1281 = vst.msk [vmem:[#allocation2 + $0xb0] sm:$0xff] %vm824_vm0, %v7103_v54 }
  0x2e   : > { %6083 = vmatprep.subr.bf16.mxu0 %v816_v5  ;;  %6085 = vmatprep.mubr.msk.bf16.mxu0 %vm824_vm0, %v799_v9  ;;  %v772_v18 = vld [vmem:[%s7301_s1 + $0x48] sm:$0xff]  ;;  %v802_v19 = vpack.c.bf16 %v770_v16, %v769_v15  ;;  %v773_v21 = vld [vmem:[%s7301_s1 + $0x50] sm:$0xff]  ;;  %v774_v22 = vld [vmem:[%s7301_s1 + $0x58] sm:$0xff]  ;;  %1283 = vst.msk [vmem:[#allocation2 + $0xc0] sm:$0xff] %vm824_vm0, %v7103_v54 }
  0x2f   : > { %v803_v20 = vpack.c.bf16 %v772_v18, %v771_v17  ;;  %v775_v23 = vld [vmem:[%s7301_s1 + $0x60] sm:$0xff]  ;;  %v776_v24 = vld [vmem:[%s7301_s1 + $0x68] sm:$0xff]  ;;  %v804_v25 = vpack.c.bf16 %v774_v22, %v773_v21  ;;  %v777_v27 = vld [vmem:[%s7301_s1 + $0x70] sm:$0xff]  ;;  %1284 = vst.msk [vmem:[#allocation2 + $0xc8] sm:$0xff] %vm824_vm0, %v7103_v54 }
  0x30   : > { %v805_v26 = vpack.c.bf16 %v776_v24, %v775_v23  ;;  %v778_v28 = vld [vmem:[%s7301_s1 + $0x78] sm:$0xff]  ;;  %v779_v29 = vld [vmem:[%s7301_s1 + $0x80] sm:$0xff]  ;;  %v780_v30 = vld [vmem:[%s7301_s1 + $0x88] sm:$0xff]  ;;  %1286 = vst.msk [vmem:[#allocation2 + $0xd8] sm:$0xff] %vm824_vm0, %v7103_v54 }
  0x31   : > { %6084 = vmatpush3.bf16.msra.mxu0 %v816_v5  ;;  %v806_v31 = vpack.c.bf16 %v778_v28, %v777_v27  ;;  %v807_v32 = vpack.c.bf16 %v780_v30, %v779_v29  ;;  %v781_v33 = vld [vmem:[%s7301_s1 + $0x90] sm:$0xff]  ;;  %v782_v34 = vld [vmem:[%s7301_s1 + $0x98] sm:$0xff]  ;;  %v783_v35 = vld [vmem:[%s7301_s1 + $0xa0] sm:$0xff]  ;;  %1287 = vst.msk [vmem:[#allocation2 + $0xe0] sm:$0xff] %vm824_vm0, %v7103_v54 }
  0x32   : > { %v784_v36 = vld [vmem:[%s7301_s1 + $0xa8] sm:$0xff]  ;;  %v808_v37 = vpack.c.bf16 %v782_v34, %v781_v33  ;;  %v785_v39 = vld [vmem:[%s7301_s1 + $0xb0] sm:$0xff]  ;;  %v786_v40 = vld [vmem:[%s7301_s1 + $0xb8] sm:$0xff]  ;;  %1289 = vst.msk [vmem:[#allocation2 + $0xf0] sm:$0xff] %vm824_vm0, %v7103_v54 }
  0x33   : > { %v809_v38 = vpack.c.bf16 %v784_v36, %v783_v35  ;;  %v787_v41 = vld [vmem:[%s7301_s1 + $0xc0] sm:$0xff]  ;;  %v788_v42 = vld [vmem:[%s7301_s1 + $0xc8] sm:$0xff]  ;;  %v810_v43 = vpack.c.bf16 %v786_v40, %v785_v39  ;;  %v789_v45 = vld [vmem:[%s7301_s1 + $0xd0] sm:$0xff]  ;;  %1290 = vst.msk [vmem:[#allocation2 + $0xf8] sm:$0xff] %vm824_vm0, %v7103_v54 }
  0x34   : > { %6086 = vmatmul.mubr.msk.bf16.vlgmr.msra.gmra.mrb[0].mxu0 %vm824_vm0, %v800_v13  ;;  %v811_v44 = vpack.c.bf16 %v788_v42, %v787_v41  ;;  %v790_v46 = vld [vmem:[%s7301_s1 + $0xd8] sm:$0xff]  ;;  %v791_v47 = vld [vmem:[%s7301_s1 + $0xe0] sm:$0xff]  ;;  %v792_v48 = vld [vmem:[%s7301_s1 + $0xe8] sm:$0xff]  ;;  %1292 = vst.msk [vmem:[#allocation2 + $0x108] sm:$0xff] %vm824_vm0, %v7103_v54  ;;  %v1394_v13 = vlaneseq }
  0x35   : > { %6089 = vmatprep.mubr.msk.bf16.mxu0 %vm824_vm0, %v801_v14  ;;  %v812_v49 = vpack.c.bf16 %v790_v46, %v789_v45  ;;  %v813_v50 = vpack.c.bf16 %v792_v48, %v791_v47  ;;  %v793_v51 = vld [vmem:[%s7301_s1 + $0xf0] sm:$0xff]  ;;  %v794_v52 = vld [vmem:[%s7301_s1 + $0xf8] sm:$0xff]  ;;  %1293 = vst.msk [vmem:[#allocation2 + $0x110] sm:$0xff] %vm824_vm0, %v7103_v54  ;;  %1295 = vst.msk [vmem:[#allocation2 + $0x120] sm:$0xff] %vm824_vm0, %v7103_v54  ;;  %s10829_s1 = sld [smem:[#allocation56_spill]] }
  0x36   : > { %v814_v53 = vpack.c.bf16 %v794_v52, %v793_v51  ;;  %1296 = vst.msk [vmem:[#allocation2 + $0x128] sm:$0xff] %vm824_vm0, %v7103_v54  ;;  %1298 = vst.msk [vmem:[#allocation2 + $0x138] sm:$0xff] %vm824_vm0, %v7103_v54  ;;  %v1395_v21 = vshrl.u32 %v1394_v13, 7  ;;  %v1346_v41 = vld [vmem:[%s10786_s8] sm:$0x7] }
  0x37   : > { %1299 = vst.msk [vmem:[#allocation2 + $0x140] sm:$0xff] %vm824_vm0, %v7103_v54  ;;  %1301 = vst.msk [vmem:[#allocation2 + $0x150] sm:$0xff] %vm824_vm0, %v7103_v54 }
  0x38   : > { %1302 = vst.msk [vmem:[#allocation2 + $0x158] sm:$0xff] %vm824_vm0, %v7103_v54  ;;  %1304 = vst.msk [vmem:[#allocation2 + $0x168] sm:$0xff] %vm824_vm0, %v7103_v54  ;;  %v7568_v39 = vsub.s32 1, %v1395_v21  ;;  %v7586_v51 = vsub.s32 2, %v1395_v21 }
  0x39   : > { %1305 = vst.msk [vmem:[#allocation2 + $0x170] sm:$0xff] %vm824_vm0, %v7103_v54  ;;  %1307 = vst.msk [vmem:[#allocation2 + $0x180] sm:$0xff] %vm824_vm0, %v7103_v54 }
  0x3a   : > { %1308 = vst.msk [vmem:[#allocation2 + $0x188] sm:$0xff] %vm824_vm0, %v7103_v54  ;;  %1310 = vst.msk [vmem:[#allocation2 + $0x198] sm:$0xff] %vm824_vm0, %v7103_v54 }
  0x3b   : > { %1311 = vst.msk [vmem:[#allocation2 + $0x1a0] sm:$0xff] %vm824_vm0, %v7103_v54  ;;  %3414 = vst [vmem:[#allocation3] sm:$0xff] %v7103_v54 }
  0x3c   : > { %6090 = vmatmul.mubr.msk.bf16.gmra.mrb[4].mxu0 %vm824_vm0, %v802_v19  ;;  %3415 = vst [vmem:[#allocation3 + $0x8] sm:$0xff] %v7103_v54  ;;  %3416 = vst [vmem:[#allocation3 + $0x10] sm:$0x3] %v7103_v54 }
  0x3d   : > { %6093 = vmatprep.mubr.msk.bf16.mxu0 %vm824_vm0, %v803_v20  ;;  %3417 = vst [vmem:[#allocation3 + $0x18] sm:$0xff] %v7103_v54  ;;  %3418 = vst [vmem:[#allocation3 + $0x20] sm:$0xff] %v7103_v54 }
  0x3e   : > { %3419 = vst [vmem:[#allocation3 + $0x28] sm:$0x3] %v7103_v54  ;;  %3420 = vst [vmem:[#allocation3 + $0x30] sm:$0xff] %v7103_v54 }
  0x3f   : > { %3421 = vst [vmem:[#allocation3 + $0x38] sm:$0xff] %v7103_v54  ;;  %3422 = vst [vmem:[#allocation3 + $0x40] sm:$0x3] %v7103_v54 }
  0x40   : > { %3423 = vst [vmem:[#allocation3 + $0x48] sm:$0xff] %v7103_v54  ;;  %3424 = vst [vmem:[#allocation3 + $0x50] sm:$0xff] %v7103_v54 }
  0x41   : > { %3425 = vst [vmem:[#allocation3 + $0x58] sm:$0x3] %v7103_v54  ;;  %3426 = vst [vmem:[#allocation3 + $0x60] sm:$0xff] %v7103_v54 }
  0x42   : > { %3427 = vst [vmem:[#allocation3 + $0x68] sm:$0xff] %v7103_v54  ;;  %3428 = vst [vmem:[#allocation3 + $0x70] sm:$0x3] %v7103_v54 }
  0x43   : > { %3429 = vst [vmem:[#allocation3 + $0x78] sm:$0xff] %v7103_v54  ;;  %3430 = vst [vmem:[#allocation3 + $0x80] sm:$0xff] %v7103_v54 }
  0x44   : > { %6094 = vmatmul.mubr.msk.bf16.gmra.mrb[8].mxu0 %vm824_vm0, %v804_v25  ;;  %3431 = vst [vmem:[#allocation3 + $0x88] sm:$0x3] %v7103_v54  ;;  %3432 = vst [vmem:[#allocation3 + $0x90] sm:$0xff] %v7103_v54 }
  0x45   : > { %6097 = vmatprep.mubr.msk.bf16.mxu0 %vm824_vm0, %v805_v26  ;;  %3433 = vst [vmem:[#allocation3 + $0x98] sm:$0xff] %v7103_v54  ;;  %3434 = vst [vmem:[#allocation3 + $0xa0] sm:$0x3] %v7103_v54 }
  0x46   : > { %3435 = vst [vmem:[#allocation3 + $0xa8] sm:$0xff] %v7103_v54  ;;  %3436 = vst [vmem:[#allocation3 + $0xb0] sm:$0xff] %v7103_v54 }
  0x47   : > { %3437 = vst [vmem:[#allocation3 + $0xb8] sm:$0x3] %v7103_v54  ;;  %3438 = vst [vmem:[#allocation3 + $0xc0] sm:$0xff] %v7103_v54 }
  0x48   : > { %3439 = vst [vmem:[#allocation3 + $0xc8] sm:$0xff] %v7103_v54  ;;  %3440 = vst [vmem:[#allocation3 + $0xd0] sm:$0x3] %v7103_v54 }
  0x49   : > { %3441 = vst [vmem:[#allocation3 + $0xd8] sm:$0xff] %v7103_v54  ;;  %3442 = vst [vmem:[#allocation3 + $0xe0] sm:$0xff] %v7103_v54 }
  0x4a   : > { %3443 = vst [vmem:[#allocation3 + $0xe8] sm:$0x3] %v7103_v54  ;;  %3444 = vst [vmem:[#allocation3 + $0xf0] sm:$0xff] %v7103_v54 }
  0x4b   : > { %3445 = vst [vmem:[#allocation3 + $0xf8] sm:$0xff] %v7103_v54  ;;  %3446 = vst [vmem:[#allocation3 + $0x100] sm:$0x3] %v7103_v54 }
  0x4c   : > { %6098 = vmatmul.mubr.msk.bf16.gmra.mrb[12].mxu0 %vm824_vm0, %v806_v31  ;;  %3447 = vst [vmem:[#allocation3 + $0x108] sm:$0xff] %v7103_v54  ;;  %3448 = vst [vmem:[#allocation3 + $0x110] sm:$0xff] %v7103_v54 }
  0x4d   : > { %6101 = vmatprep.mubr.msk.bf16.mxu0 %vm824_vm0, %v807_v32  ;;  %3449 = vst [vmem:[#allocation3 + $0x118] sm:$0x3] %v7103_v54  ;;  %3450 = vst [vmem:[#allocation3 + $0x120] sm:$0xff] %v7103_v54 }
  0x4e   : > { %3451 = vst [vmem:[#allocation3 + $0x128] sm:$0xff] %v7103_v54  ;;  %3452 = vst [vmem:[#allocation3 + $0x130] sm:$0x3] %v7103_v54 }
  0x4f   : > { %3453 = vst [vmem:[#allocation3 + $0x138] sm:$0xff] %v7103_v54  ;;  %3454 = vst [vmem:[#allocation3 + $0x140] sm:$0xff] %v7103_v54 }
  0x50   : > { %3455 = vst [vmem:[#allocation3 + $0x148] sm:$0x3] %v7103_v54  ;;  %3456 = vst [vmem:[#allocation3 + $0x150] sm:$0xff] %v7103_v54 }
  0x51   : > { %3457 = vst [vmem:[#allocation3 + $0x158] sm:$0xff] %v7103_v54  ;;  %3458 = vst [vmem:[#allocation3 + $0x160] sm:$0x3] %v7103_v54 }
  0x52   : > { %3459 = vst [vmem:[#allocation3 + $0x168] sm:$0xff] %v7103_v54  ;;  %3460 = vst [vmem:[#allocation3 + $0x170] sm:$0xff] %v7103_v54 }
  0x53   : > { %3461 = vst [vmem:[#allocation3 + $0x178] sm:$0x3] %v7103_v54  ;;  %3462 = vst [vmem:[#allocation3 + $0x180] sm:$0xff] %v7103_v54 }
  0x54   : > { %6102 = vmatmul.mubr.msk.bf16.gmra.mrb[16].mxu0 %vm824_vm0, %v808_v37  ;;  %3463 = vst [vmem:[#allocation3 + $0x188] sm:$0xff] %v7103_v54  ;;  %3464 = vst [vmem:[#allocation3 + $0x190] sm:$0x3] %v7103_v54 }
  0x55   : > { %6105 = vmatprep.mubr.msk.bf16.mxu0 %vm824_vm0, %v809_v38  ;;  %3465 = vst [vmem:[#allocation3 + $0x198] sm:$0xff] %v7103_v54  ;;  %3466 = vst [vmem:[#allocation3 + $0x1a0] sm:$0xff] %v7103_v54  ;;  %v7566_v38 = vsub.s32 0, %v1395_v21 }
  0x56   : > { %3467 = vst [vmem:[#allocation3 + $0x1a8] sm:$0x3] %v7103_v54  ;;  %1267 = vst.msk [vmem:[#allocation2 + $0x40] sm:$0x3] %vm1260_vm1, %v7103_v54 }
  0x57   : > { %1261 = vst.msk [vmem:[#allocation2 + $0x10] sm:$0x3] %vm1260_vm1, %v7103_v54  ;;  %1264 = vst.msk [vmem:[#allocation2 + $0x28] sm:$0x3] %vm1260_vm1, %v7103_v54 }
  0x58   : > { %1270 = vst.msk [vmem:[#allocation2 + $0x58] sm:$0x3] %vm1260_vm1, %v7103_v54  ;;  %1273 = vst.msk [vmem:[#allocation2 + $0x70] sm:$0x3] %vm1260_vm1, %v7103_v54 }
  0x59   : > { %1276 = vst.msk [vmem:[#allocation2 + $0x88] sm:$0x3] %vm1260_vm1, %v7103_v54  ;;  %1279 = vst.msk [vmem:[#allocation2 + $0xa0] sm:$0x3] %vm1260_vm1, %v7103_v54 }
  0x5a   : > { %1282 = vst.msk [vmem:[#allocation2 + $0xb8] sm:$0x3] %vm1260_vm1, %v7103_v54  ;;  %1285 = vst.msk [vmem:[#allocation2 + $0xd0] sm:$0x3] %vm1260_vm1, %v7103_v54 }
  0x5b   : > { %1288 = vst.msk [vmem:[#allocation2 + $0xe8] sm:$0x3] %vm1260_vm1, %v7103_v54  ;;  %1291 = vst.msk [vmem:[#allocation2 + $0x100] sm:$0x3] %vm1260_vm1, %v7103_v54 }
  0x5c   : > { %6106 = vmatmul.mubr.msk.bf16.gmra.mrb[20].mxu0 %vm824_vm0, %v810_v43  ;;  %1294 = vst.msk [vmem:[#allocation2 + $0x118] sm:$0x3] %vm1260_vm1, %v7103_v54  ;;  %1297 = vst.msk [vmem:[#allocation2 + $0x130] sm:$0x3] %vm1260_vm1, %v7103_v54 }
  0x5d   : > { %6109 = vmatprep.mubr.msk.bf16.mxu0 %vm824_vm0, %v811_v44  ;;  %1300 = vst.msk [vmem:[#allocation2 + $0x148] sm:$0x3] %vm1260_vm1, %v7103_v54  ;;  %1303 = vst.msk [vmem:[#allocation2 + $0x160] sm:$0x3] %vm1260_vm1, %v7103_v54 }
  0x5e   : > { %1306 = vst.msk [vmem:[#allocation2 + $0x178] sm:$0x3] %vm1260_vm1, %v7103_v54  ;;  %1309 = vst.msk [vmem:[#allocation2 + $0x190] sm:$0x3] %vm1260_vm1, %v7103_v54  ;;  %v1431_v13 = vld [vmem:[#allocation2 + $0x9] sm:$0xff] }
  0x5f   : > { %1312 = vst.msk [vmem:[#allocation2 + $0x1a8] sm:$0x3] %vm1260_vm1, %v7103_v54  ;;  %10784 = vst [vmem:[#allocation12_spill] sm:$0xff] %v7566_v38  ;;  %v1362_v54 = vld [vmem:[#allocation2] sm:$0xff] }
  0x60   : > { %10785 = vst [vmem:[#allocation13_spill] sm:$0xff] %v7568_v39  ;;  %10789 = vst [vmem:[#allocation16_spill] sm:$0xff] %v7586_v51 }
  0x64   : > { %6110 = vmatmul.mubr.msk.bf16.gmra.mrb[24].mxu0 %vm824_vm0, %v812_v49  ;;  %v7581_v49 = vrot.slane %v1346_v41, %v7566_v38 }
  0x65   : > { %6113 = vmatprep.mubr.msk.bf16.mxu0 %vm824_vm0, %v813_v50  ;;  %v7584_v50 = vrot.slane %v1346_v41, %v7568_v39 }
  0x66   : > { %10787 = vst [vmem:[#allocation14_spill] sm:$0xff] %v7581_v49 }
  0x67   : > { %10788 = vst [vmem:[#allocation15_spill] sm:$0xff] %v7584_v50 }
  0x6c   : > { %6114 = vmatmul.mubr.msk.bf16.gmra.mrb[28].mxu0 %vm824_vm0, %v814_v53 }
 0x107   : > { %v6087_v56 = vpop.f32.mrb[0].mxu0 }
 0x108   : > { %v7520_v57 = vadd.f32 %v6087_v56, %v7517_v55  ;;  %v907_v58 = vpop.f32.mrb[1].mxu0  ;;  %v1430_v56 = vld [vmem:[#allocation2 + $0x1] sm:$0xff] }
 0x109   : > { %v7523_v59 = vadd.f32 %v7517_v55, %v907_v58  ;;  %v6088_v60 = vpop.f32.mrb[2].mxu0 }
 0x10a   : > { %v5732_v61 = vmul.f32 -1.442695, %v7520_v57  ;;  %v7527_v62 = vadd.f32 %v6088_v60, %v7517_v55  ;;  %v910_v63 = vpop.f32.mrb[3].mxu0 }
 0x10b   : > { %v5730_v0 = vmul.f32 -1.442695, %v7523_v59  ;;  %v7531_v1 = vadd.f32 %v7517_v55, %v910_v63 }
 0x10c   : > { %6375 = vpow2.f32 %v5732_v61  ;;  %v5733_v2 = vmul.f32 -1.442695, %v7527_v62 }
 0x10d   : > { %6377 = vpow2.f32 %v5730_v0  ;;  %v5731_v3 = vmul.f32 -1.442695, %v7531_v1 }
 0x10e   : > { %6379 = vpow2.f32 %v5733_v2  ;;  %v1398_v2 = vmul.f32 %v7581_v49, %v1362_v54 }
 0x10f   : > { %6381 = vpow2.f32 %v5731_v3  ;;  %v6091_v4 = vpop.f32.mrb[4].mxu0  ;;  %v1466_v3 = vmul.f32 %v7584_v50, %v1430_v56 }
 0x110   : > { %v7536_v5 = vadd.f32 %v6091_v4, %v7517_v55  ;;  %v923_v6 = vpop.f32.mrb[5].mxu0  ;;  %v7596_v4 = vrot.slane %v1346_v41, %v7586_v51 }
 0x111   : > { %v7539_v7 = vadd.f32 %v7517_v55, %v923_v6  ;;  %v6092_v8 = vpop.f32.mrb[6].mxu0 }
 0x112   : > { %v5736_v9 = vmul.f32 -1.442695, %v7536_v5  ;;  %v7543_v10 = vadd.f32 %v6092_v8, %v7517_v55  ;;  %v926_v11 = vpop.f32.mrb[7].mxu0 }
 0x113   : > { %v5734_v12 = vmul.f32 -1.442695, %v7539_v7  ;;  %v7548_v15 = vadd.f32 %v7517_v55, %v926_v11 }
 0x114   : > { %6383 = vpow2.f32 %v5736_v9  ;;  %v5737_v14 = vmul.f32 -1.442695, %v7543_v10  ;;  %v1530_v9 = vld [vmem:[#allocation2 + $0x2] sm:$0xff] }
 0x115   : > { %6385 = vpow2.f32 %v5734_v12  ;;  %v5735_v27 = vmul.f32 -1.442695, %v7548_v15  ;;  %v1363_v12 = vld [vmem:[#allocation2 + $0x8] sm:$0xff] }
 0x116   : > { %v6376_v16 = vpop.eup %6375  ;;  %6387 = vpow2.f32 %v5737_v14 }
 0x117   : > { %v6378_v17 = vpop.eup %6377  ;;  %v1132_v18 = vadd.f32 1.0, %v6376_v16  ;;  %v6095_v19 = vpop.f32.mrb[8].mxu0 }
 0x118   : > { %v6380_v20 = vpop.eup %6379  ;;  %v1130_v22 = vadd.f32 1.0, %v6378_v17  ;;  %v7551_v23 = vadd.f32 %v6095_v19, %v7517_v55  ;;  %v939_v24 = vpop.f32.mrb[9].mxu0  ;;  %v1566_v19 = vmul.f32 %v7596_v4, %v1530_v9 }
 0x119   : > { %v6382_v25 = vpop.eup %6381  ;;  %6389 = vrcp.f32 %v1132_v18  ;;  %v1133_v26 = vadd.f32 1.0, %v6380_v20  ;;  %v7555_v28 = vadd.f32 %v7517_v55, %v939_v24  ;;  %v6096_v29 = vpop.f32.mrb[10].mxu0  ;;  %v1467_v24 = vmul.f32 %v7584_v50, %v1431_v13 }
 0x11a   : > { %6391 = vrcp.f32 %v1130_v22  ;;  %v1131_v30 = vadd.f32 1.0, %v6382_v25  ;;  %v5740_v31 = vmul.f32 -1.442695, %v7551_v23  ;;  %v7559_v32 = vadd.f32 %v6096_v29, %v7517_v55  ;;  %v942_v33 = vpop.f32.mrb[11].mxu0 }
 0x11b   : > { %6393 = vrcp.f32 %v1133_v26  ;;  %v5738_v34 = vmul.f32 -1.442695, %v7555_v28  ;;  %v7563_v35 = vadd.f32 %v7517_v55, %v942_v33  ;;  %v1399_v22 = vmul.f32 %v7581_v49, %v1363_v12  ;;  %v1531_v33 = vld [vmem:[#allocation2 + $0xa] sm:$0xff] }
 0x11c   : > { %6395 = vrcp.f32 %v1131_v30  ;;  %v5741_v36 = vmul.f32 -1.442695, %v7559_v32  ;;  %v1567_v54 = vmul.f32 %v7596_v4, %v1531_v33 }
 0x11d   : > { %6397 = vpow2.f32 %v5735_v27  ;;  %v5739_v43 = vmul.f32 -1.442695, %v7563_v35 }
 0x11e   : > { %v6384_v37 = vpop.eup %6383  ;;  %6399 = vpow2.f32 %v5740_v31 }
 0x11f   : > { %v6386_v40 = vpop.eup %6385  ;;  %v1136_v42 = vadd.f32 1.0, %v6384_v37  ;;  %6401 = vpow2.f32 %v5738_v34  ;;  %v7574_v44 = vpop.f32.mrb[12].mxu0 }
 0x120   : > { %v1134_v45 = vadd.f32 1.0, %v6386_v40  ;;  %6403 = vpow2.f32 %v5741_v36  ;;  %v7576_v46 = vpop.f32.mrb[13].mxu0  ;;  %v6388_v48 = vpop.eup %6387 }
 0x121   : > { %6405 = vrcp.f32 %v1136_v42  ;;  %v7578_v47 = vpop.f32.mrb[14].mxu0  ;;  %v1137_v25 = vadd.f32 1.0, %v6388_v48 }
 0x122   : > { %6407 = vrcp.f32 %v1134_v45  ;;  %v7588_v52 = vpop.f32.mrb[15].mxu0  ;;  %v1499_v45 = vadd.f32 %v1467_v24, %v1399_v22 }
 0x123   : > { %v6390_v53 = vpop.eup %6389  ;;  %6409 = vpow2.f32 %v5739_v43 }
 0x124   : > { %v6392_v58 = vpop.eup %6391  ;;  %v1228_v60 = vmul.f32 %v6390_v53, %v7520_v57  ;;  %6411 = vrcp.f32 %v1137_v25 }
 0x125   : > { %v6394_v61 = vpop.eup %6393  ;;  %v1226_v63 = vmul.f32 %v6392_v58, %v7523_v59 }
 0x126   : > { %v6396_v0 = vpop.eup %6395  ;;  %1316 = vst.msk [vmem:[#allocation2 + $0x31] sm:$0xff] %vm824_vm0, %v1228_v60  ;;  %v1229_v6 = vmul.f32 %v6394_v61, %v7527_v62  ;;  %v1347_v62 = vld [vmem:[%s10786_s8 + $0x4] sm:$0x7] }
 0x127   : > { %v6398_v8 = vpop.eup %6397  ;;  %1314 = vst.msk [vmem:[#allocation2 + $0x19] sm:$0xff] %vm824_vm0, %v1226_v63  ;;  %v1227_v57 = vmul.f32 %v6396_v0, %v7531_v1  ;;  %v7601_v11 = vpop.f32.mrb[16].mxu0  ;;  %v1498_v1 = vadd.f32 %v1466_v3, %v1398_v2  ;;  %v7618_v27 = vrot.slane %v1347_v62, %v7566_v38  ;;  %v7623_v37 = vrot.slane %v1347_v62, %v7568_v39 }
 0x128   : > { %v6400_v59 = vpop.eup %6399  ;;  %1317 = vst.msk [vmem:[#allocation2 + $0x39] sm:$0xff] %vm824_vm0, %v1229_v6  ;;  %v7604_v14 = vpop.f32.mrb[17].mxu0  ;;  %v1135_v30 = vadd.f32 1.0, %v6398_v8  ;;  %v7642_v3 = vrot.slane %v1347_v62, %v7586_v51 }
 0x129   : > { %v6402_v16 = vpop.eup %6401  ;;  %1315 = vst.msk [vmem:[#allocation2 + $0x21] sm:$0xff] %vm824_vm0, %v1227_v57  ;;  %v7610_v17 = vpop.f32.mrb[18].mxu0  ;;  %v1140_v36 = vadd.f32 1.0, %v6400_v59  ;;  %v1598_v42 = vadd.f32 %v1566_v19, %v1498_v1  ;;  %v7651_v59 = vadd.f32 %v7574_v44, %v7517_v55  ;;  %v7656_v19 = vadd.f32 %v7517_v55, %v7576_v46 }
 0x12a   : > { %v6404_v18 = vpop.eup %6403  ;;  %v7613_v20 = vpop.f32.mrb[19].mxu0  ;;  %v1138_v43 = vadd.f32 1.0, %v6402_v16  ;;  %6413 = vrcp.f32 %v1135_v30  ;;  %10790 = vst [vmem:[#allocation17_spill] sm:$0xff] %v7642_v3  ;;  %v1599_v16 = vadd.f32 %v1567_v54, %v1499_v45  ;;  %v7662_v44 = vadd.f32 %v7578_v47, %v7517_v55 }
 0x12b   : > { %v6406_v21 = vpop.eup %6405  ;;  %6415 = vrcp.f32 %v1140_v36  ;;  %v5744_v30 = vmul.f32 -1.442695, %v7651_v59 }
 0x12c   : > { %v6408_v26 = vpop.eup %6407  ;;  %v1232_v29 = vmul.f32 %v6406_v21, %v7536_v5  ;;  %v1141_v5 = vadd.f32 1.0, %v6404_v18  ;;  %6417 = vrcp.f32 %v1138_v43 }
 0x12d   : > { %v6410_v31 = vpop.eup %6409  ;;  %v1230_v34 = vmul.f32 %v6408_v26, %v7539_v7  ;;  %v1348_v7 = vld [vmem:[%s10786_s8 + $0x8] sm:$0x7]  ;;  %v1366_v12 = vld [vmem:[#allocation2 + $0x30] sm:$0xff]  ;;  %s10890_s8 = sld [smem:[#allocation59_spill]] }
 0x12e   : > { %v1364_v40 = vld [vmem:[#allocation2 + $0x18] sm:$0xff]  ;;  %1320 = vst.msk [vmem:[#allocation2 + $0x61] sm:$0xff] %vm824_vm0, %v1232_v29  ;;  %v1139_v56 = vadd.f32 1.0, %v6410_v31  ;;  %v7647_v9 = vrot.slane %v1348_v7, %v7566_v38  ;;  %6419 = vrcp.f32 %v1141_v5  ;;  %v7666_v25 = vrot.slane %v1348_v7, %v7568_v39 }
 0x12f   : > { %v1432_v41 = vld [vmem:[#allocation2 + $0x19] sm:$0xff]  ;;  %1318 = vst.msk [vmem:[#allocation2 + $0x49] sm:$0xff] %vm824_vm0, %v1230_v34  ;;  %v7627_v48 = vpop.f32.mrb[20].mxu0  ;;  %v1666_v53 = vmul.f32 %v7618_v27, %v1364_v40  ;;  %v1400_v60 = vmul.f32 %v7581_v49, %v1364_v40  ;;  %v1434_v31 = vld [vmem:[#allocation2 + $0x31] sm:$0xff]  ;;  %v7677_v43 = vrot.slane %v1348_v7, %v7586_v51  ;;  %v7680_v5 = vmul.f32 -1.442695, %v7656_v19 }
 0x130   : > { %v7634_v58 = vpop.f32.mrb[21].mxu0  ;;  %v1468_v61 = vmul.f32 %v7584_v50, %v1432_v41  ;;  %v1766_v2 = vmul.f32 %v7623_v37, %v1432_v41  ;;  %v1532_v6 = vld [vmem:[#allocation2 + $0x1a] sm:$0xff]  ;;  %6421 = vrcp.f32 %v1139_v56  ;;  %v1967_v24 = vmul.f32 %v7647_v9, %v1366_v12  ;;  %v1533_v29 = vld [vmem:[#allocation2 + $0x22] sm:$0xff]  ;;  %v6412_v41 = vpop.eup %6411 }
 0x131   : > { %v7638_v63 = vpop.f32.mrb[22].mxu0  ;;  %v1698_v0 = vadd.f32 %v1666_v53, %v1598_v42  ;;  %v1365_v57 = vld [vmem:[#allocation2 + $0x20] sm:$0xff]  ;;  %v1568_v1 = vmul.f32 %v7596_v4, %v1532_v6  ;;  %v1866_v22 = vmul.f32 %v7642_v3, %v1532_v6  ;;  %v1367_v42 = vld [vmem:[#allocation2 + $0x38] sm:$0xff]  ;;  %v7684_v53 = vadd.f32 %v7517_v55, %v7588_v52 }
 0x132   : > { %v7644_v8 = vpop.f32.mrb[23].mxu0  ;;  %v1500_v18 = vadd.f32 %v1468_v61, %v1400_v60  ;;  %v1433_v62 = vld [vmem:[#allocation2 + $0x21] sm:$0xff]  ;;  %v1667_v21 = vmul.f32 %v7618_v27, %v1365_v57  ;;  %v1401_v26 = vmul.f32 %v7581_v49, %v1365_v57  ;;  %v7688_v60 = vld [vmem:[#allocation2 + $0x39] sm:$0xff]  ;;  %v5745_v7 = vmul.f32 -1.442695, %v7662_v44 }
 0x133   : > { %10791 = vst [vmem:[#allocation18_spill] sm:$0xff] %v7644_v8  ;;  %v1798_v13 = vadd.f32 %v1766_v2, %v1698_v0  ;;  %v1469_v33 = vmul.f32 %v7584_v50, %v1433_v62  ;;  %v1767_v36 = vmul.f32 %v7623_v37, %v1433_v62  ;;  %v1867_v0 = vmul.f32 %v7642_v3, %v1533_v29 }
 0x134   : > { %v1699_v34 = vadd.f32 %v1667_v21, %v1599_v16  ;;  %v1600_v45 = vadd.f32 %v1568_v1, %v1500_v18  ;;  %v6414_v56 = vpop.eup %6413  ;;  %v1470_v16 = vmul.f32 %v7584_v50, %v1434_v31  ;;  %v1668_v52 = vmul.f32 %v7618_v27, %v1366_v12 }
 0x135   : > { %v1898_v47 = vadd.f32 %v1866_v22, %v1798_v13  ;;  %v6416_v57 = vpop.eup %6415  ;;  %v1402_v13 = vmul.f32 %v7581_v49, %v1366_v12  ;;  %6423 = vpow2.f32 %v5744_v30  ;;  %v2067_v62 = vmul.f32 %v7666_v25, %v1434_v31 }
 0x136   : > { %v1799_v61 = vadd.f32 %v1767_v36, %v1699_v34  ;;  %v6418_v18 = vpop.eup %6417  ;;  %v1968_v1 = vmul.f32 %v7647_v9, %v1367_v42  ;;  %v1501_v21 = vadd.f32 %v1469_v33, %v1401_v26  ;;  %v1768_v34 = vmul.f32 %v7623_v37, %v1434_v31  ;;  %v1534_v36 = vld [vmem:[#allocation2 + $0x32] sm:$0xff]  ;;  %v1535_v33 = vld [vmem:[#allocation2 + $0x3a] sm:$0xff]  ;;  %v1368_v8 = vld [vmem:[#allocation2 + $0x48] sm:$0xff] }
 0x137   : > { %v7670_v46 = vpop.f32.mrb[24].mxu0  ;;  %v1999_v2 = vadd.f32 %v1967_v24, %v1898_v47  ;;  %v2068_v47 = vmul.f32 %v7666_v25, %v7688_v60  ;;  %v1700_v51 = vadd.f32 %v1668_v52, %v1600_v45  ;;  %v5743_v39 = vmul.f32 -1.442695, %v7684_v53 }
 0x138   : > { %10792 = vst [vmem:[#allocation19_spill] sm:$0xff] %v7670_v46  ;;  %v7674_v40 = vpop.f32.mrb[25].mxu0  ;;  %v1899_v22 = vadd.f32 %v1867_v0, %v1799_v61  ;;  %v6420_v24 = vpop.eup %6419  ;;  %v1569_v12 = vmul.f32 %v7596_v4, %v1533_v29  ;;  %v1403_v26 = vmul.f32 %v7581_v49, %v1367_v42  ;;  %v1231_v31 = vmul.f32 %v6414_v56, %v7548_v15 }
 0x139   : > { %10793 = vst [vmem:[#allocation20_spill] sm:$0xff] %v7674_v40  ;;  %v7686_v54 = vpop.f32.mrb[26].mxu0  ;;  %v1502_v40 = vadd.f32 %v1470_v16, %v1402_v13  ;;  %v1236_v61 = vmul.f32 %v6416_v57, %v7551_v23  ;;  %v2167_v45 = vmul.f32 %v7677_v43, %v1534_v36  ;;  %v1234_v29 = vmul.f32 %v6418_v18, %v7555_v28  ;;  %v7729_v13 = vld [vmem:[%s10798_s27] ss:$0 sm:$0xff] }
 0x13a   : > { %10794 = vst [vmem:[#allocation21_spill] sm:$0xff] %v7686_v54  ;;  %v7692_v6 = vpop.f32.mrb[27].mxu0  ;;  %v6422_v38 = vpop.eup %6421  ;;  %v2000_v30 = vadd.f32 %v1968_v1, %v1899_v22  ;;  %v1233_v54 = vmul.f32 %v6412_v41, %v7543_v10  ;;  %v1601_v52 = vadd.f32 %v1569_v12, %v1501_v21  ;;  %v1570_v41 = vmul.f32 %v7596_v4, %v1534_v36 }
 0x13b   : > { %10795 = vst [vmem:[#allocation22_spill] sm:$0xff] %v7692_v6  ;;  %v2099_v6 = vadd.f32 %v2067_v62, %v1999_v2  ;;  %v1800_v2 = vadd.f32 %v1768_v34, %v1700_v51  ;;  %1319 = vst.msk [vmem:[#allocation2 + $0x51] sm:$0xff] %vm824_vm0, %v1231_v31  ;;  %v1237_v15 = vmul.f32 %v6420_v24, %v7559_v32  ;;  %6425 = vpow2.f32 %v7680_v5  ;;  %v1436_v62 = vld [vmem:[#allocation2 + $0x49] sm:$0xff] }
 0x13c   : > { %v2100_v46 = vadd.f32 %v2068_v47, %v2000_v30  ;;  %1321 = vst.msk [vmem:[#allocation2 + $0x69] sm:$0xff] %vm824_vm0, %v1233_v54  ;;  %1324 = vst.msk [vmem:[#allocation2 + $0x91] sm:$0xff] %vm824_vm0, %v1236_v61  ;;  %v1235_v23 = vmul.f32 %v6422_v38, %v7563_v35  ;;  %v1471_v56 = vmul.f32 %v7584_v50, %v7688_v60  ;;  %6427 = vpow2.f32 %v5745_v7 }
 0x13d   : > { %v1669_v54 = vmul.f32 %v7618_v27, %v1367_v42  ;;  %v2168_v28 = vmul.f32 %v7677_v43, %v1535_v33  ;;  %v2199_v57 = vadd.f32 %v2167_v45, %v2099_v6  ;;  %1322 = vst.msk [vmem:[#allocation2 + $0x79] sm:$0xff] %vm824_vm0, %v1234_v29  ;;  %v1868_v51 = vmul.f32 %v7642_v3, %v1534_v36  ;;  %v1438_v36 = vld [vmem:[#allocation2 + $0x61] sm:$0xff] }
 0x13e   : > { %v1670_v32 = vmul.f32 %v7618_v27, %v1368_v8  ;;  %1325 = vst.msk [vmem:[#allocation2 + $0x99] sm:$0xff] %vm824_vm0, %v1237_v15  ;;  %1323 = vst.msk [vmem:[#allocation2 + $0x81] sm:$0xff] %vm824_vm0, %v1235_v23  ;;  %v1602_v18 = vadd.f32 %v1570_v41, %v1502_v40  ;;  %v1503_v21 = vadd.f32 %v1471_v56, %v1403_v26  ;;  %6429 = vpow2.f32 %v5743_v39 }
 0x13f   : > { %v7708_v0 = vpop.f32.mrb[28].mxu0  ;;  %v1701_v38 = vadd.f32 %v1669_v54, %v1601_v52  ;;  %v2200_v42 = vadd.f32 %v2168_v28, %v2100_v46  ;;  %v6424_v16 = vpop.eup %6423  ;;  %v1900_v1 = vadd.f32 %v1868_v51, %v1800_v2  ;;  %v1769_v22 = vmul.f32 %v7623_v37, %v7688_v60  ;;  %v1370_v46 = vld [vmem:[#allocation2 + $0x60] sm:$0xff] }
 0x140   : > { %10796 = vst [vmem:[#allocation23_spill] sm:$0xff] %v7708_v0  ;;  %v7713_v10 = vpop.f32.mrb[29].mxu0  ;;  %v7742_v24 = vadd.f32 %v7729_v13, %v2199_v57  ;;  %v1571_v34 = vmul.f32 %v7596_v4, %v1535_v33  ;;  %v1702_v5 = vadd.f32 %v1670_v32, %v1602_v18  ;;  %v1969_v47 = vmul.f32 %v7647_v9, %v1368_v8 }
 0x141   : > { %10797 = vst [vmem:[#allocation24_spill] sm:$0xff] %v7713_v10  ;;  %v7734_v35 = vpop.f32.mrb[30].mxu0  ;;  %v7748_v40 = vadd.f32 %v7601_v11, %v7517_v55  ;;  %v7751_v7 = vadd.f32 %v7729_v13, %v2200_v42  ;;  %v1404_v60 = vmul.f32 %v7581_v49, %v1368_v8  ;;  %v1472_v12 = vmul.f32 %v7584_v50, %v1436_v62 }
 0x142   : > { %10799 = vst [vmem:[#allocation25_spill] sm:$0xff] %v7734_v35  ;;  %v7737_v6 = vpop.f32.mrb[31].mxu0  ;;  %10801 = vst [vmem:[#allocation27_spill] sm:$0xff] %v7742_v24  ;;  %v1801_v30 = vadd.f32 %v1769_v22, %v1701_v38  ;;  %v1869_v39 = vmul.f32 %v7642_v3, %v1535_v33  ;;  %v1770_v26 = vmul.f32 %v7623_v37, %v1436_v62  ;;  %v1536_v61 = vld [vmem:[#allocation2 + $0x4a] sm:$0xff]  ;;  %v5763_v52 = vmul.f32 -1.442695, %v7742_v24 }
 0x143   : > { %10800 = vst [vmem:[#allocation26_spill] sm:$0xff] %v7737_v6  ;;  %10802 = vst [vmem:[#allocation28_spill] sm:$0xff] %v7748_v40  ;;  %v2001_v31 = vadd.f32 %v1969_v47, %v1900_v1  ;;  %v7759_v45 = vadd.f32 %v7517_v55, %v7604_v14  ;;  %v1603_v11 = vadd.f32 %v1571_v34, %v1503_v21  ;;  %v1369_v41 = vld [vmem:[#allocation2 + $0x50] sm:$0xff]  ;;  %v5764_v56 = vmul.f32 -1.442695, %v7751_v7 }
 0x144   : > { %v1406_v29 = vmul.f32 %v7581_v49, %v1370_v46  ;;  %v1474_v8 = vmul.f32 %v7584_v50, %v1438_v36  ;;  %v1672_v2 = vmul.f32 %v7618_v27, %v1370_v46  ;;  %v7766_v33 = vmul.f32 %v7623_v37, %v1438_v36  ;;  %v1437_v54 = vld [vmem:[#allocation2 + $0x51] sm:$0xff] }
 0x145   : > { %v1802_v15 = vadd.f32 %v1770_v26, %v1702_v5  ;;  %v2069_v23 = vmul.f32 %v7666_v25, %v1436_v62  ;;  %v1504_v14 = vadd.f32 %v1472_v12, %v1404_v60  ;;  %v1572_v28 = vmul.f32 %v7596_v4, %v1536_v61  ;;  %v6426_v18 = vpop.eup %6425  ;;  %v1537_v21 = vld [vmem:[#allocation2 + $0x52] sm:$0xff] }
 0x146   : > { %v1901_v57 = vadd.f32 %v1869_v39, %v1801_v30  ;;  %v1971_v51 = vmul.f32 %v7647_v9, %v1370_v46  ;;  %v1671_v38 = vmul.f32 %v7618_v27, %v1369_v41  ;;  %v1870_v42 = vmul.f32 %v7642_v3, %v1536_v61  ;;  %v6428_v34 = vpop.eup %6427  ;;  %v7778_v30 = vld [vmem:[#allocation2 + $0x68] sm:$0xff] }
 0x147   : > { %v2101_v32 = vadd.f32 %v2069_v23, %v2001_v31  ;;  %6431 = vpow2.f32 %v5763_v52  ;;  %v2071_v1 = vmul.f32 %v7666_v25, %v1438_v36  ;;  %v1970_v62 = vmul.f32 %v7647_v9, %v1369_v41 }
 0x148   : > { %v1144_v22 = vadd.f32 1.0, %v6424_v16  ;;  %v1703_v5 = vadd.f32 %v1671_v38, %v1603_v11  ;;  %v1771_v47 = vmul.f32 %v7623_v37, %v1437_v54  ;;  %v1902_v60 = vadd.f32 %v1870_v42, %v1802_v15  ;;  %v6430_v12 = vpop.eup %6429  ;;  %v7782_v11 = vld [vmem:[#allocation2 + $0x69] sm:$0xff] }
 0x149   : > { %v2169_v46 = vmul.f32 %v7677_v43, %v1536_v61  ;;  %6433 = vpow2.f32 %v5764_v56  ;;  %v1604_v39 = vadd.f32 %v1572_v28, %v1504_v14  ;;  %v2002_v26 = vadd.f32 %v1970_v62, %v1901_v57  ;;  %v1538_v38 = vld [vmem:[#allocation2 + $0x62] sm:$0xff]  ;;  %v1539_v62 = vld [vmem:[#allocation2 + $0x6a] sm:$0xff] }
 0x14a   : > { %v2070_v31 = vmul.f32 %v7666_v25, %v1437_v54  ;;  %v1803_v36 = vadd.f32 %v1771_v47, %v1703_v5  ;;  %v1871_v52 = vmul.f32 %v7642_v3, %v1537_v21  ;;  %v2003_v23 = vadd.f32 %v1971_v51, %v1902_v60 }
 0x14b   : > { %v2201_v16 = vadd.f32 %v2169_v46, %v2101_v32  ;;  %v1506_v6 = vadd.f32 %v1474_v8, %v1406_v29  ;;  %v2170_v61 = vmul.f32 %v7677_v43, %v1537_v21  ;;  %v1142_v42 = vadd.f32 1.0, %v6426_v18 }
 0x14c   : > { %v2102_v15 = vadd.f32 %v2070_v31, %v2002_v26  ;;  %v1972_v56 = vmul.f32 %v7647_v9, %v7778_v30  ;;  %v1903_v14 = vadd.f32 %v1871_v52, %v1803_v36  ;;  %v2103_v28 = vadd.f32 %v2071_v1, %v2003_v23  ;;  %v1372_v31 = vld [vmem:[#allocation2 + $0x78] sm:$0xff] }
 0x14d   : > { %v7788_v57 = vadd.f32 %v7729_v13, %v2201_v16  ;;  %v1405_v51 = vmul.f32 %v7581_v49, %v1369_v41  ;;  %v1473_v29 = vmul.f32 %v7584_v50, %v1437_v54  ;;  %v1704_v8 = vadd.f32 %v1672_v2, %v1604_v39 }
 0x14e   : > { %v2202_v32 = vadd.f32 %v2170_v61, %v2102_v15  ;;  %v2072_v5 = vmul.f32 %v7666_v25, %v7782_v11  ;;  %v2171_v18 = vmul.f32 %v7677_v43, %v1538_v38  ;;  %v2004_v47 = vadd.f32 %v1972_v56, %v1903_v14 }
 0x14f   : > { %10803 = vst [vmem:[#allocation29_spill] sm:$0xff] %v7788_v57  ;;  %6435 = vrcp.f32 %v1144_v22  ;;  %v1407_v1 = vmul.f32 %v7581_v49, %v7778_v30  ;;  %v1145_v46 = vadd.f32 1.0, %v6428_v34  ;;  %v1143_v26 = vadd.f32 1.0, %v6430_v12 }
 0x150   : > { %v7798_v60 = vadd.f32 %v7729_v13, %v2202_v32  ;;  %v2172_v41 = vmul.f32 %v7677_v43, %v1539_v62  ;;  %v2104_v54 = vadd.f32 %v2072_v5, %v2004_v47  ;;  %v2203_v2 = vadd.f32 %v2171_v18, %v2103_v28 }
 0x151   : > { %v5765_v39 = vmul.f32 -1.442695, %v7788_v57  ;;  %v6432_v36 = vpop.eup %6431  ;;  %v1475_v52 = vmul.f32 %v7584_v50, %v7782_v11  ;;  %v1574_v22 = vmul.f32 %v7596_v4, %v1538_v38  ;;  %v1505_v23 = vadd.f32 %v1473_v29, %v1405_v51 }
 0x152   : > { %10804 = vst [vmem:[#allocation30_spill] sm:$0xff] %v7798_v60  ;;  %v1804_v16 = vadd.f32 %v7766_v33, %v1704_v8  ;;  %v1872_v15 = vmul.f32 %v7642_v3, %v1538_v38  ;;  %v2204_v34 = vadd.f32 %v2172_v41, %v2104_v54  ;;  %v5766_v12 = vmul.f32 -1.442695, %v7798_v60  ;;  %v1440_v8 = vld [vmem:[#allocation2 + $0x79] sm:$0xff] }
 0x153   : > { %6437 = vrcp.f32 %v1142_v42  ;;  %v6434_v61 = vpop.eup %6433  ;;  %v1573_v56 = vmul.f32 %v7596_v4, %v1537_v21  ;;  %v1674_v14 = vmul.f32 %v7618_v27, %v1372_v31  ;;  %v7811_v28 = vmul.f32 -1.442695, %v7748_v40 }
 0x154   : > { %6439 = vrcp.f32 %v1145_v46  ;;  %v7814_v32 = vadd.f32 %v7729_v13, %v2203_v2  ;;  %v1904_v33 = vadd.f32 %v1872_v15, %v1804_v16  ;;  %v7818_v38 = vadd.f32 %v7610_v17, %v7517_v55  ;;  %v7835_v16 = vld [vmem:[#allocation2 + $0x91] sm:$0xff] }
 0x155   : > { %10805 = vst [vmem:[#allocation31_spill] sm:$0xff] %v7811_v28  ;;  %6441 = vpow2.f32 %v5765_v39  ;;  %v1507_v51 = vadd.f32 %v1475_v52, %v1407_v1  ;;  %v1606_v42 = vadd.f32 %v1574_v22, %v1506_v6  ;;  %v1605_v29 = vadd.f32 %v1573_v56, %v1505_v23  ;;  %v7828_v1 = vld [vmem:[#allocation2 + $0x90] sm:$0xff] }
 0x156   : > { %10806 = vst [vmem:[#allocation32_spill] sm:$0xff] %v7814_v32  ;;  %6443 = vrcp.f32 %v1143_v26  ;;  %v2365_v21 = vadd.f32 1.0, %v6432_v36  ;;  %v7821_v5 = vadd.f32 %v7729_v13, %v2204_v34  ;;  %v1973_v18 = vmul.f32 %v7647_v9, %v1372_v31  ;;  %v1373_v36 = vld [vmem:[#allocation2 + $0x80] sm:$0xff] }
 0x157   : > { %6445 = vpow2.f32 %v5766_v12  ;;  %v2366_v47 = vadd.f32 1.0, %v6434_v61  ;;  %v1575_v46 = vmul.f32 %v7596_v4, %v1539_v62  ;;  %v1673_v41 = vmul.f32 %v7618_v27, %v7778_v30  ;;  %v1441_v12 = vld [vmem:[#allocation2 + $0x81] sm:$0xff] }
 0x158   : > { %10807 = vst [vmem:[#allocation33_spill] sm:$0xff] %v7821_v5  ;;  %v1706_v17 = vadd.f32 %v1674_v14, %v1606_v42  ;;  %v5767_v6 = vmul.f32 -1.442695, %v7814_v32  ;;  %v1408_v26 = vmul.f32 %v7581_v49, %v1372_v31  ;;  %v1476_v2 = vmul.f32 %v7584_v50, %v1440_v8  ;;  %v1540_v61 = vld [vmem:[#allocation2 + $0x7a] sm:$0xff] }
 0x159   : > { %v6436_v54 = vpop.eup %6435  ;;  %v2005_v39 = vadd.f32 %v1973_v18, %v1904_v33  ;;  %v1773_v52 = vmul.f32 %v7623_v37, %v7782_v11  ;;  %v1873_v22 = vmul.f32 %v7642_v3, %v1539_v62  ;;  %v1705_v23 = vadd.f32 %v1673_v41, %v1605_v29  ;;  %v7842_v14 = vld [vmem:[#allocation2 + $0x98] sm:$0xff]  ;;  %v7851_v18 = vld [vmem:[#allocation2 + $0x82] sm:$0xff] }
 0x15a   : > { %v1774_v30 = vmul.f32 %v7623_v37, %v1440_v8  ;;  %6447 = vrcp.f32 %v2365_v21  ;;  %v1607_v15 = vadd.f32 %v1575_v46, %v1507_v51  ;;  %v5768_v34 = vmul.f32 -1.442695, %v7821_v5  ;;  %v7844_v62 = vld [vmem:[#allocation2 + $0x99] sm:$0xff] }
 0x15b   : > { %v2073_v31 = vmul.f32 %v7666_v25, %v1440_v8  ;;  %6449 = vrcp.f32 %v2366_v47  ;;  %v1975_v56 = vmul.f32 %v7647_v9, %v7828_v1  ;;  %10808 = vst [vmem:[#allocation34_spill] sm:$0xff] %v7844_v62  ;;  %v7846_v33 = vld [vmem:[#allocation2 + $0x92] sm:$0xff]  ;;  %v1675_v42 = vmul.f32 %v7618_v27, %v1373_v36 }
 0x15c   : > { %v1806_v11 = vadd.f32 %v1774_v30, %v1706_v17  ;;  %6451 = vpow2.f32 %v5767_v6  ;;  %v2075_v29 = vmul.f32 %v7666_v25, %v7835_v16  ;;  %v1508_v8 = vadd.f32 %v1476_v2, %v1408_v26 }
 0x15d   : > { %v6438_v51 = vpop.eup %6437  ;;  %v2105_v21 = vadd.f32 %v2073_v31, %v2005_v39  ;;  %v1707_v46 = vadd.f32 %v1675_v42, %v1607_v15  ;;  %v1775_v41 = vmul.f32 %v7623_v37, %v1441_v12  ;;  %v1805_v17 = vadd.f32 %v1773_v52, %v1705_v23 }
 0x15e   : > { %v6440_v47 = vpop.eup %6439  ;;  %v1874_v30 = vmul.f32 %v7642_v3, %v1540_v61  ;;  %6453 = vpow2.f32 %v5768_v34  ;;  %v1976_v10 = vmul.f32 %v7647_v9, %v7842_v14  ;;  %v2076_v6 = vmul.f32 %v7666_v25, %v7844_v62 }
 0x15f   : > { %v6442_v35 = vpop.eup %6441  ;;  %v2175_v26 = vmul.f32 %v7677_v43, %v7846_v33  ;;  %v1807_v39 = vadd.f32 %v1775_v41, %v1707_v46  ;;  %v1875_v15 = vmul.f32 %v7642_v3, %v7851_v18  ;;  %v1905_v31 = vadd.f32 %v1873_v22, %v1805_v17 }
 0x160   : > { %v6444_v2 = vpop.eup %6443  ;;  %v1906_v52 = vadd.f32 %v1874_v30, %v1806_v11  ;;  %v1409_v42 = vmul.f32 %v7581_v49, %v1373_v36  ;;  %v1477_v34 = vmul.f32 %v7584_v50, %v1441_v12  ;;  %v1576_v0 = vmul.f32 %v7596_v4, %v1540_v61  ;;  %v7871_v30 = vld [vmem:[#allocation2 + $0x9a] sm:$0xff] }
 0x161   : > { %v6446_v23 = vpop.eup %6445  ;;  %v1974_v40 = vmul.f32 %v7647_v9, %v1373_v36  ;;  %v2367_v5 = vadd.f32 1.0, %v6442_v35  ;;  %v1907_v32 = vadd.f32 %v1875_v15, %v1807_v39  ;;  %v2173_v57 = vmul.f32 %v7677_v43, %v1540_v61 }
 0x162   : > { %v2007_v60 = vadd.f32 %v1975_v56, %v1906_v52  ;;  %v2074_v41 = vmul.f32 %v7666_v25, %v1441_v12  ;;  %v1240_v22 = vmul.f32 %v6436_v54, %v7651_v59  ;;  %v1238_v11 = vmul.f32 %v6438_v51, %v7656_v19 }
 0x163   : > { %v2006_v46 = vadd.f32 %v1974_v40, %v1905_v31  ;;  %v2368_v17 = vadd.f32 1.0, %v6446_v23  ;;  %v2008_v3 = vadd.f32 %v1976_v10, %v1907_v32  ;;  %v2205_v62 = vadd.f32 %v2173_v57, %v2105_v21 }
 0x164   : > { %v2107_v28 = vadd.f32 %v2075_v29, %v2007_v60  ;;  %v6448_v24 = vpop.eup %6447  ;;  %v2174_v35 = vmul.f32 %v7677_v43, %v7851_v18  ;;  %1328 = vst.msk [vmem:[#allocation2 + $0xc1] sm:$0xff] %vm824_vm0, %v1240_v22  ;;  %1326 = vst.msk [vmem:[#allocation2 + $0xa9] sm:$0xff] %vm824_vm0, %v1238_v11  ;;  %v1241_v40 = vmul.f32 %v6440_v47, %v7662_v44  ;;  %6455 = vrcp.f32 %v2367_v5  ;;  %v10810_v22 = vld [vmem:[#allocation27_spill] sm:$0xff] }
 0x165   : > { %v2106_v36 = vadd.f32 %v2074_v41, %v2006_v46  ;;  %v1239_v59 = vmul.f32 %v6444_v2, %v7684_v53  ;;  %v6450_v19 = vpop.eup %6449  ;;  %v2108_v54 = vadd.f32 %v2076_v6, %v2008_v3  ;;  %v7880_v10 = vadd.f32 %v7729_v13, %v2205_v62 }
 0x166   : > { %v2207_v12 = vadd.f32 %v2175_v26, %v2107_v28  ;;  %v6452_v57 = vpop.eup %6451  ;;  %v2176_v60 = vmul.f32 %v7677_v43, %v7871_v30  ;;  %1329 = vst.msk [vmem:[#allocation2 + $0xc9] sm:$0xff] %vm824_vm0, %v1241_v40  ;;  %v5746_v44 = vmul.f32 -1.442695, %v7759_v45  ;;  %v7889_v53 = vadd.f32 %v7517_v55, %v7613_v20 }
 0x167   : > { %v2206_v32 = vadd.f32 %v2174_v35, %v2106_v36  ;;  %1327 = vst.msk [vmem:[#allocation2 + $0xb1] sm:$0xff] %vm824_vm0, %v1239_v59  ;;  %v1410_v3 = vmul.f32 %v7581_v49, %v7828_v1  ;;  %v1608_v28 = vadd.f32 %v1576_v0, %v1508_v8  ;;  %v5769_v61 = vmul.f32 -1.442695, %v7880_v10  ;;  %v10813_v59 = vld [vmem:[#allocation31_spill] sm:$0xff] }
 0x168   : > { %v7894_v5 = vadd.f32 %v7729_v13, %v2207_v12  ;;  %v6454_v56 = vpop.eup %6453  ;;  %6457 = vrcp.f32 %v2368_v17  ;;  %v1509_v62 = vadd.f32 %v1477_v34, %v1409_v42  ;;  %v2208_v51 = vadd.f32 %v2176_v60, %v2108_v54 }
 0x169   : > { %v7898_v29 = vadd.f32 %v7729_v13, %v2206_v32  ;;  %v2369_v21 = vadd.f32 1.0, %v6452_v57  ;;  %v1478_v20 = vmul.f32 %v7584_v50, %v7835_v16  ;;  %v1676_v47 = vmul.f32 %v7618_v27, %v7828_v1  ;;  %v10815_v57 = vld [vmem:[#allocation29_spill] sm:$0xff] }
 0x16a   : > { %6459 = vpow2.f32 %v5769_v61  ;;  %v1577_v0 = vmul.f32 %v7596_v4, %v7851_v18  ;;  %v5749_v6 = vmul.f32 -1.442695, %v7818_v38  ;;  %v5747_v26 = vmul.f32 -1.442695, %v7889_v53 }
 0x16b   : > { %v5770_v8 = vmul.f32 -1.442695, %v7898_v29  ;;  %v1708_v2 = vadd.f32 %v1676_v47, %v1608_v28  ;;  %v5771_v39 = vmul.f32 -1.442695, %v7894_v5  ;;  %v7912_v15 = vadd.f32 %v7627_v48, %v7517_v55  ;;  %v7929_v34 = vld [vmem:[#allocation2 + $0xa8] sm:$0xff] }
 0x16c   : > { %v7916_v1 = vadd.f32 %v7517_v55, %v7634_v58  ;;  %v1609_v31 = vadd.f32 %v1577_v0, %v1509_v62  ;;  %v7919_v18 = vadd.f32 %v7729_v13, %v2208_v51  ;;  %v7923_v52 = vadd.f32 %v7638_v63, %v7517_v55 }
 0x16d   : > { %6461 = vpow2.f32 %v5770_v8  ;;  %v1510_v23 = vadd.f32 %v1478_v20, %v1410_v3  ;;  %v1776_v42 = vmul.f32 %v7623_v37, %v7835_v16  ;;  %v1578_v48 = vmul.f32 %v7596_v4, %v7846_v33  ;;  %v10812_v16 = vld [vmem:[#allocation34_spill] sm:$0xff] }
 0x16e   : > { %6463 = vrcp.f32 %v2369_v21  ;;  %v7932_v58 = vmul.f32 %v6450_v19, %v7751_v7  ;;  %v2370_v46 = vadd.f32 1.0, %v6454_v56  ;;  %v1411_v41 = vmul.f32 %v7581_v49, %v7842_v14  ;;  %v6456_v63 = vpop.eup %6455 }
 0x16f   : > { %v1677_v55 = vmul.f32 %v7618_v27, %v7842_v14  ;;  %v7939_v11 = vmul.f32 %v6448_v24, %v10810_v22  ;;  %v1479_v17 = vmul.f32 %v7584_v50, %v10812_v16  ;;  %6465 = vpow2.f32 %v5771_v39  ;;  %v10814_v14 = vld [vmem:[#allocation17_spill] sm:$0xff] }
 0x170   : > { %10809 = vst [vmem:[#allocation35_spill] sm:$0xff] %v7932_v58  ;;  %v1808_v36 = vadd.f32 %v1776_v42, %v1708_v2  ;;  %v5772_v7 = vmul.f32 -1.442695, %v7919_v18  ;;  %v1678_v40 = vmul.f32 %v7618_v27, %v7929_v34  ;;  %6467 = vpow2.f32 %v10813_v59  ;;  %v10817_v2 = vld [vmem:[#allocation30_spill] sm:$0xff] }
 0x171   : > { %10811 = vst [vmem:[#allocation27_spill] sm:$0xff] %v7939_v11  ;;  %v1709_v35 = vadd.f32 %v1677_v55, %v1609_v31  ;;  %v1610_v19 = vadd.f32 %v1578_v48, %v1510_v23  ;;  %v1876_v54 = vmul.f32 %v10814_v14, %v7846_v33  ;;  %6469 = vpow2.f32 %v5746_v44  ;;  %v7961_v44 = vld [vmem:[#allocation2 + $0xa9] sm:$0xff] }
 0x172   : > { %v7950_v24 = vmul.f32 -1.442695, %v7912_v15  ;;  %v6458_v12 = vpop.eup %6457  ;;  %6471 = vrcp.f32 %v2370_v46  ;;  %v7953_v60 = vmul.f32 %v6456_v63, %v10815_v57  ;;  %v2494_v32 = vsel %vm824_vm0, %v7932_v58, 0.0  ;;  %v7976_v42 = vld [vmem:[#allocation2 + $0xb0] sm:$0xff]  ;;  %v7978_v46 = vld [vmem:[#allocation2 + $0xc0] sm:$0xff] }
 0x173   : > { %v1777_v3 = vmul.f32 %v7623_v37, %v10812_v16  ;;  %v1511_v61 = vadd.f32 %v1479_v17, %v1411_v41  ;;  %v1579_v33 = vmul.f32 %v7596_v4, %v7871_v30  ;;  %v1908_v56 = vadd.f32 %v1876_v54, %v1808_v36  ;;  %v7988_v63 = vld [vmem:[%s10783_s26] ss:$0 sm:$0xff]  ;;  %v8002_v57 = vld [vmem:[#allocation2 + $0xb2] sm:$0xff] }
 0x174   : > { %10816 = vst [vmem:[#allocation34_spill] sm:$0xff] %v7953_v60  ;;  %v6460_v28 = vpop.eup %6459  ;;  %6473 = vpow2.f32 %v5749_v6  ;;  %v2493_v62 = vsel %vm824_vm0, %v7939_v11, 0.0  ;;  %v1710_v51 = vadd.f32 %v1678_v40, %v1610_v19  ;;  %v1977_v0 = vmul.f32 %v7647_v9, %v7929_v34  ;;  %v10820_v16 = vld [vmem:[#allocation19_spill] sm:$0xff]  ;;  %v7998_v40 = vld [vmem:[#allocation2 + $0xb1] sm:$0xff] }
 0x175   : > { %6475 = vpow2.f32 %v5772_v7  ;;  %v1809_v21 = vadd.f32 %v1777_v3, %v1709_v35  ;;  %v2495_v20 = vadd.f32 %v2494_v32, %v2493_v62  ;;  %v2371_v47 = vadd.f32 1.0, %v6460_v28  ;;  %v10821_v28 = vld [vmem:[#allocation32_spill] sm:$0xff] }
 0x176   : > { %6477 = vpow2.f32 %v5747_v26  ;;  %v7968_v39 = vmul.f32 %v6458_v12, %v10817_v2  ;;  %v2496_v31 = vsel %vm824_vm0, %v7953_v60, 0.0  ;;  %v1877_v6 = vmul.f32 %v10814_v14, %v7871_v30  ;;  %v7980_v26 = vld [vmem:[#allocation2 + $0xaa] sm:$0xff]  ;;  %v10819_v30 = vld [vmem:[#allocation18_spill] sm:$0xff] }
 0x177   : > { %v6462_v8 = vpop.eup %6461  ;;  %v1778_v23 = vmul.f32 %v7623_v37, %v7961_v44  ;;  %v2009_v41 = vadd.f32 %v1977_v0, %v1908_v56  ;;  %v7983_v55 = vmul.f32 -1.442695, %v7916_v1  ;;  %v7992_v22 = vadd.f32 %v7988_v63, %v10819_v30 }
 0x178   : > { %10818 = vst [vmem:[#allocation31_spill] sm:$0xff] %v7968_v39  ;;  %v6464_v48 = vpop.eup %6463  ;;  %v7996_v17 = vadd.f32 %v7988_v63, %v10820_v16  ;;  %v1611_v36 = vadd.f32 %v1579_v33, %v1511_v61  ;;  %v2372_v35 = vadd.f32 1.0, %v6462_v8  ;;  %v1909_v59 = vadd.f32 %v1877_v6, %v1809_v21 }
 0x179   : > { %v1810_v7 = vadd.f32 %v1778_v23, %v1710_v51  ;;  %v6466_v19 = vpop.eup %6465  ;;  %v2497_v54 = vadd.f32 %v2496_v31, %v2495_v20  ;;  %6479 = vrcp.f32 %v2371_v47  ;;  %v2077_v12 = vmul.f32 %v7666_v25, %v7961_v44 }
 0x17a   : > { %v1679_v32 = vmul.f32 %v7618_v27, %v7976_v42  ;;  %v6468_v3 = vpop.eup %6467  ;;  %v8007_v56 = vmul.f32 %v6464_v48, %v10821_v28  ;;  %v2498_v61 = vsel %vm824_vm0, %v7968_v39, 0.0  ;;  %v1979_v33 = vmul.f32 %v7647_v9, %v7978_v46  ;;  %v8021_v48 = vld [vmem:[#allocation2 + $0xc1] sm:$0xff] }
 0x17b   : > { %v1878_v62 = vmul.f32 %v10814_v14, %v7980_v26  ;;  %v6470_v51 = vpop.eup %6469  ;;  %v2109_v21 = vadd.f32 %v2077_v12, %v2009_v41  ;;  %v1779_v47 = vmul.f32 %v7623_v37, %v7998_v40  ;;  %v1978_v0 = vmul.f32 %v7647_v9, %v7976_v42 }
 0x17c   : > { %10822 = vst [vmem:[#allocation17_spill] sm:$0xff] %v8007_v56  ;;  %v1711_v20 = vadd.f32 %v1679_v32, %v1611_v36  ;;  %v6472_v8 = vpop.eup %6471  ;;  %v2373_v2 = vadd.f32 1.0, %v6466_v19  ;;  %6481 = vrcp.f32 %v2372_v35  ;;  %v1879_v31 = vmul.f32 %v10814_v14, %v8002_v57  ;;  %v8027_v19 = vld [vmem:[#allocation2 + $0xc8] sm:$0xff] }
 0x17d   : > { %v1910_v6 = vadd.f32 %v1878_v62, %v1810_v7  ;;  %v2010_v16 = vadd.f32 %v1978_v0, %v1909_v59  ;;  %v2078_v41 = vmul.f32 %v7666_v25, %v7998_v40  ;;  %v1148_v36 = vadd.f32 1.0, %v6468_v3 }
 0x17e   : > { %v6474_v23 = vpop.eup %6473  ;;  %v1811_v30 = vadd.f32 %v1779_v47, %v1711_v20  ;;  %v2499_v32 = vadd.f32 %v2498_v61, %v2497_v54  ;;  %v2500_v28 = vsel %vm824_vm0, %v8007_v56, 0.0  ;;  %v2177_v35 = vmul.f32 %v7677_v43, %v7980_v26  ;;  %v8033_v47 = vld [vmem:[#allocation2 + $0xc9] sm:$0xff] }
 0x17f   : > { %v6476_v12 = vpop.eup %6475  ;;  %v1146_v7 = vadd.f32 1.0, %v6470_v51  ;;  %v2011_v60 = vadd.f32 %v1979_v33, %v1910_v6  ;;  %v2110_v20 = vadd.f32 %v2078_v41, %v2010_v16  ;;  %6483 = vrcp.f32 %v1148_v36  ;;  %v8042_v6 = vld [vmem:[#allocation2 + $0xc2] sm:$0xff] }
 0x180   : > { %v6478_v62 = vpop.eup %6477  ;;  %v1911_v39 = vadd.f32 %v1879_v31, %v1811_v30  ;;  %v2079_v59 = vmul.f32 %v7666_v25, %v8021_v48  ;;  %v2209_v3 = vadd.f32 %v2177_v35, %v2109_v21  ;;  %v1149_v54 = vadd.f32 1.0, %v6474_v23  ;;  %v10823_v31 = vld [vmem:[#allocation33_spill] sm:$0xff] }
 0x181   : > { %6485 = vrcp.f32 %v1146_v7  ;;  %v2374_v61 = vadd.f32 1.0, %v6476_v12  ;;  %v1980_v0 = vmul.f32 %v7647_v9, %v8027_v19  ;;  %v2178_v51 = vmul.f32 %v7677_v43, %v8002_v57 }
 0x182   : > { %6487 = vrcp.f32 %v2373_v2  ;;  %v8040_v33 = vmul.f32 %v6472_v8, %v10823_v31  ;;  %v1147_v30 = vadd.f32 1.0, %v6478_v62  ;;  %v8045_v21 = vmul.f32 -1.442695, %v7923_v52 }
 0x183   : > { %6489 = vrcp.f32 %v1149_v54  ;;  %v6480_v23 = vpop.eup %6479  ;;  %v1412_v2 = vmul.f32 %v7581_v49, %v7929_v34  ;;  %v2012_v16 = vadd.f32 %v1980_v0, %v1911_v39  ;;  %v2111_v41 = vadd.f32 %v2079_v59, %v2011_v60  ;;  %v10826_v54 = vld [vmem:[#allocation20_spill] sm:$0xff] }
 0x184   : > { %10824 = vst [vmem:[#allocation29_spill] sm:$0xff] %v8040_v33  ;;  %v2210_v36 = vadd.f32 %v2178_v51, %v2110_v20  ;;  %v2501_v12 = vadd.f32 %v2500_v28, %v2499_v32  ;;  %v1480_v35 = vmul.f32 %v7584_v50, %v7961_v44  ;;  %v2080_v8 = vmul.f32 %v7666_v25, %v8033_v47  ;;  %v8067_v28 = vld [vmem:[#allocation2 + $0xca] sm:$0xff] }
 0x185   : > { %v8054_v7 = vadd.f32 %v7729_v13, %v2209_v3  ;;  %6491 = vrcp.f32 %v2374_v61  ;;  %v2179_v62 = vmul.f32 %v7677_v43, %v8042_v6  ;;  %v1413_v34 = vmul.f32 %v7581_v49, %v7976_v42 }
 0x186   : > { %v1481_v60 = vmul.f32 %v7584_v50, %v7998_v40  ;;  %v6482_v39 = vpop.eup %6481  ;;  %v8063_v32 = vmul.f32 %v6480_v23, %v7880_v10  ;;  %v2502_v44 = vsel %vm824_vm0, %v8040_v33, 0.0  ;;  %6493 = vrcp.f32 %v1147_v30 }
 0x187   : > { %v8070_v20 = vmul.f32 -1.442695, %v7992_v22  ;;  %v2112_v59 = vadd.f32 %v2080_v8, %v2012_v16  ;;  %v2211_v3 = vadd.f32 %v2179_v62, %v2111_v41  ;;  %v8073_v42 = vadd.f32 %v7729_v13, %v2210_v36 }
 0x188   : > { %10825 = vst [vmem:[#allocation30_spill] sm:$0xff] %v8063_v32  ;;  %v8077_v40 = vadd.f32 %v7988_v63, %v10826_v54  ;;  %v1414_v10 = vmul.f32 %v7581_v49, %v7978_v46  ;;  %v1482_v61 = vmul.f32 %v7584_v50, %v8021_v48  ;;  %v1512_v0 = vadd.f32 %v1480_v35, %v1412_v2  ;;  %v10828_v35 = vld [vmem:[#allocation28_spill] sm:$0xff] }
 0x189   : > { %v5773_v51 = vmul.f32 -1.442695, %v8054_v7  ;;  %v6484_v31 = vpop.eup %6483  ;;  %v2503_v30 = vadd.f32 %v2502_v44, %v2501_v12  ;;  %v2180_v23 = vmul.f32 %v7677_v43, %v8067_v28  ;;  %v1513_v16 = vadd.f32 %v1481_v60, %v1413_v34  ;;  %v1350_v12 = vld [vmem:[%s10829_s1] sm:$0xff] }
 0x18a   : > { %v1580_v41 = vmul.f32 %v7596_v4, %v7980_v26  ;;  %v8089_v8 = vmul.f32 %v6482_v39, %v7898_v29  ;;  %v2504_v62 = vsel %vm824_vm0, %v8063_v32, 0.0  ;;  %v1581_v2 = vmul.f32 %v7596_v4, %v8002_v57  ;;  %v1351_v26 = vld [vmem:[%s10829_s1 + $0x8] sm:$0xff] }
 0x18b   : > { %v6486_v36 = vpop.eup %6485  ;;  %v1244_v54 = vmul.f32 %v6484_v31, %v10828_v35  ;;  %v2212_v60 = vadd.f32 %v2180_v23, %v2112_v59  ;;  %v8103_v29 = vadd.f32 %v7729_v13, %v2211_v3  ;;  %v5774_v39 = vmul.f32 -1.442695, %v8073_v42  ;;  %v1352_v59 = vld [vmem:[%s10829_s1 + $0x10] sm:$0xff] }
 0x18c   : > { %10827 = vst [vmem:[#allocation18_spill] sm:$0xff] %v8089_v8  ;;  %v6488_v34 = vpop.eup %6487  ;;  %v1242_v44 = vmul.f32 %v6486_v36, %v7759_v45  ;;  %v1680_v31 = vmul.f32 %v7618_v27, %v7978_v46  ;;  %v1415_v35 = vmul.f32 %v7581_v49, %v8027_v19  ;;  %v1483_v32 = vmul.f32 %v7584_v50, %v8033_v47  ;;  %v1353_v45 = vld [vmem:[%s10829_s1 + $0x18] sm:$0xff]  ;;  %s7105_s1 = smov [#allocation4]  }
 0x18d   : > { %10830 = vst [vmem:[#allocation19_spill] sm:$0xff] %v8103_v29  ;;  %v6490_v57 = vpop.eup %6489  ;;  %6495 = vpow2.f32 %v5773_v51  ;;  %1332 = vst.msk [vmem:[#allocation2 + $0xf1] sm:$0xff] %vm824_vm0, %v1244_v54  ;;  %v1612_v3 = vadd.f32 %v1580_v41, %v1512_v0  ;;  %v1613_v23 = vadd.f32 %v1581_v2, %v1513_v16  ;;  %v2565_v36 = vpack.c.bf16 %v1351_v26, %v1350_v12 }
 0x18e   : > { %1330 = vst.msk [vmem:[#allocation2 + $0xd9] sm:$0xff] %vm824_vm0, %v1242_v44  ;;  %v1245_v46 = vmul.f32 %v6490_v57, %v7818_v38  ;;  %v8123_v33 = vmul.f32 %v6488_v34, %v7894_v5  ;;  %v2505_v51 = vadd.f32 %v2504_v62, %v2503_v30  ;;  %v2506_v54 = vsel %vm824_vm0, %v8089_v8, 0.0  ;;  %v7032_v38 = vld [vmem:[#allocation3] sm:$0xff] }
 0x18f   : > { %v6492_v56 = vpop.eup %6491  ;;  %v8128_v58 = vadd.f32 %v7729_v13, %v2212_v60  ;;  %6497 = vpow2.f32 %v5774_v39  ;;  %v5775_v0 = vmul.f32 -1.442695, %v8103_v29  ;;  %6118 = vmatpush3.bf16.msra.mxu1 %v2565_v36  ;;  %v2566_v16 = vpack.c.bf16 %v1353_v45, %v1352_v59  ;;  %6121 = vmatprep.mubr.msk.bf16.mxu1 %vm7104_vm2, %v7032_v38  ;;  %v10833_v62 = vld [vmem:[#allocation21_spill] sm:$0xff] }
 0x190   : > { %10831 = vst [vmem:[#allocation32_spill] sm:$0xff] %v8123_v33  ;;  %1333 = vst.msk [vmem:[#allocation2 + $0xf9] sm:$0xff] %vm824_vm0, %v1245_v46  ;;  %v6494_v5 = vpop.eup %6493  ;;  %v1514_v30 = vadd.f32 %v1482_v61, %v1414_v10  ;;  %v1582_v41 = vmul.f32 %v7596_v4, %v8042_v6  ;;  %v1681_v13 = vmul.f32 %v7618_v27, %v8027_v19  ;;  %6119 = vmatprep.subr.bf16.mxu1 %v7032_v38 }
 0x191   : > { %10832 = vst [vmem:[#allocation33_spill] sm:$0xff] %v8128_v58  ;;  %v8139_v2 = vadd.f32 %v7988_v63, %v10833_v62  ;;  %v1515_v12 = vadd.f32 %v1483_v32, %v1415_v35  ;;  %v1712_v26 = vadd.f32 %v1680_v31, %v1612_v3  ;;  %v1243_v34 = vmul.f32 %v6494_v5, %v7889_v53 }
 0x192   : > { %v5756_v60 = vmul.f32 -1.442695, %v7996_v17  ;;  %v2507_v39 = vadd.f32 %v2506_v54, %v2505_v51  ;;  %v1780_v10 = vmul.f32 %v7623_v37, %v8021_v48  ;;  %v1583_v61 = vmul.f32 %v7596_v4, %v8067_v28 }
 0x193   : > { %v1713_v44 = vadd.f32 %v1681_v13, %v1613_v23  ;;  %v8148_v19 = vmul.f32 %v6492_v56, %v7919_v18  ;;  %v2508_v57 = vsel %vm824_vm0, %v8123_v33, 0.0  ;;  %6499 = vpow2.f32 %v5775_v0  ;;  %1331 = vst.msk [vmem:[#allocation2 + $0xe1] sm:$0xff] %vm824_vm0, %v1243_v34  ;;  %6120 = vmatpush3.bf16.msra.mxu1 %v2566_v16  ;;  %v10838_v16 = vld [vmem:[#allocation25_spill] sm:$0xff]  ;;  %v10839_v13 = vld [vmem:[#allocation26_spill] sm:$0xff] }
 0x194   : > { %v5776_v32 = vmul.f32 -1.442695, %v8128_v58  ;;  %v1614_v53 = vadd.f32 %v1582_v41, %v1514_v30  ;;  %v1781_v48 = vmul.f32 %v7623_v37, %v8033_v47  ;;  %v1880_v31 = vmul.f32 %v10814_v14, %v8042_v6  ;;  %6125 = vmatprep.subr.bf16.mxu1 %v7032_v38  ;;  %v10835_v47 = vld [vmem:[#allocation22_spill] sm:$0xff] }
 0x195   : > { %10834 = vst [vmem:[#allocation20_spill] sm:$0xff] %v8148_v19  ;;  %v8158_v35 = vld [vmem:[#allocation2 + $0xd8] sm:$0xff]  ;;  %v5754_v18 = vmul.f32 -1.442695, %v8077_v40  ;;  %v1615_v56 = vadd.f32 %v1583_v61, %v1515_v12  ;;  %v1881_v59 = vmul.f32 %v10814_v14, %v8067_v28  ;;  %v1812_v45 = vadd.f32 %v1780_v10, %v1712_v26 }
 0x196   : > { %6501 = vpow2.f32 %v7950_v24  ;;  %v2509_v23 = vadd.f32 %v2508_v57, %v2507_v39  ;;  %v1813_v46 = vadd.f32 %v1781_v48, %v1713_v44  ;;  %v8167_v6 = vadd.f32 %v7988_v63, %v10835_v47  ;;  %v10836_v28 = vld [vmem:[#allocation23_spill] sm:$0xff] }
 0x197   : > { %v6496_v3 = vpop.eup %6495  ;;  %6503 = vpow2.f32 %v7983_v55  ;;  %v2510_v36 = vsel %vm824_vm0, %v8148_v19, 0.0  ;;  %v1682_v51 = vmul.f32 %v7618_v27, %v8158_v35  ;;  %v8175_v54 = vadd.f32 %v7988_v63, %v10836_v28  ;;  %v10837_v55 = vld [vmem:[#allocation24_spill] sm:$0xff]  ;;  %v1448_v12 = vld [vmem:[#allocation2 + $0xd9] sm:$0xff]  ;;  %v8219_v28 = vld [vmem:[#allocation2 + $0xf1] sm:$0xff] }
 0x198   : > { %6505 = vpow2.f32 %v5776_v32  ;;  %v5757_v24 = vmul.f32 -1.442695, %v8139_v2  ;;  %v8181_v0 = vadd.f32 %v7988_v63, %v10837_v55  ;;  %v8185_v38 = vadd.f32 %v7988_v63, %v10838_v16  ;;  %v1962_v57 = vld [vmem:[#allocation2 + $0x1a0] sm:$0xff]  ;;  %v8243_v19 = vld [vmem:[#allocation2 + $0xf8] sm:$0xff] }
 0x199   : > { %6507 = vpow2.f32 %v8045_v21  ;;  %v6498_v5 = vpop.eup %6497  ;;  %v2375_v30 = vadd.f32 1.0, %v6496_v3  ;;  %v1912_v41 = vadd.f32 %v1880_v31, %v1812_v45  ;;  %v8190_v62 = vadd.f32 %v7988_v63, %v10839_v13  ;;  %v8208_v3 = vld [vmem:[#allocation2 + $0xf0] sm:$0xff] }
 0x19a   : > { %6509 = vpow2.f32 %v8070_v20  ;;  %v8192_v21 = vadd.f32 %v2510_v36, %v2509_v23  ;;  %v1913_v26 = vadd.f32 %v1881_v59, %v1813_v46  ;;  %v5755_v34 = vmul.f32 -1.442695, %v8167_v6  ;;  %v1381_v61 = vld [vmem:[#allocation2 + $0xe0] sm:$0xff]  ;;  %v1961_v20 = vld [vmem:[#allocation2 + $0x198] sm:$0xff] }
 0x19b   : > { %10840 = vst [vmem:[#allocation28_spill] sm:$0xff] %v8190_v62  ;;  %6511 = vpow2.f32 %v5756_v60  ;;  %v1714_v39 = vadd.f32 %v1682_v51, %v1614_v53  ;;  %v1981_v10 = vmul.f32 %v7647_v9, %v8158_v35  ;;  %v5760_v44 = vmul.f32 -1.442695, %v8175_v54  ;;  %v2061_v60 = vld [vmem:[#allocation2 + $0x199] sm:$0xff]  ;;  %v1449_v45 = vld [vmem:[#allocation2 + $0xe1] sm:$0xff] }
 0x19c   : > { %10841 = vst [vmem:[#allocation21_spill] sm:$0xff] %v8192_v21  ;;  %6513 = vpow2.f32 %v5754_v18  ;;  %v2376_v32 = vadd.f32 1.0, %v6498_v5  ;;  %v8199_v63 = vmul.f32 -1.442695, %v8181_v0  ;;  %v8202_v48 = vmul.f32 -1.442695, %v8185_v38 }
 0x19d   : > { %6515 = vpow2.f32 %v5757_v24  ;;  %v6500_v31 = vpop.eup %6499  ;;  %v1782_v53 = vmul.f32 %v7623_v37, %v1448_v12  ;;  %v2013_v59 = vadd.f32 %v1981_v10, %v1912_v41  ;;  %v8206_v18 = vmul.f32 -1.442695, %v8190_v62  ;;  %v8210_v23 = vld [vmem:[#allocation2 + $0xda] sm:$0xff]  ;;  %v8222_v16 = vld [vmem:[#allocation2 + $0xe2] sm:$0xff] }
 0x19e   : > { %6517 = vrcp.f32 %v2375_v30  ;;  %v1683_v46 = vmul.f32 %v7618_v27, %v1381_v61  ;;  %v8214_v47 = vmul.f32 %v7647_v9, %v1961_v20  ;;  %v8217_v36 = vmul.f32 %v7647_v9, %v1962_v57 }
 0x19f   : > { %6519 = vpow2.f32 %v5755_v34  ;;  %v1814_v24 = vadd.f32 %v1782_v53, %v1714_v39  ;;  %v2081_v55 = vmul.f32 %v7666_v25, %v1448_v12  ;;  %v8225_v5 = vmul.f32 %v7666_v25, %v2061_v60 }
 0x1a0   : > { %10842 = vst [vmem:[#allocation22_spill] sm:$0xff] %v8214_v47  ;;  %10843 = vst [vmem:[#allocation23_spill] sm:$0xff] %v8217_v36  ;;  %v6502_v51 = vpop.eup %6501  ;;  %6521 = vpow2.f32 %v5760_v44  ;;  %v8227_v41 = vadd.f32 1.0, %v6500_v31  ;;  %v1715_v13 = vadd.f32 %v1683_v46, %v1615_v56  ;;  %v1783_v34 = vmul.f32 %v7623_v37, %v1449_v45 }
 0x1a1   : > { %10844 = vst [vmem:[#allocation24_spill] sm:$0xff] %v8225_v5  ;;  %v6504_v30 = vpop.eup %6503  ;;  %6523 = vrcp.f32 %v2376_v32  ;;  %v1983_v39 = vmul.f32 %v7647_v9, %v8208_v3  ;;  %v2113_v20 = vadd.f32 %v2081_v55, %v2013_v59  ;;  %v1882_v57 = vmul.f32 %v10814_v14, %v8210_v23 }
 0x1a2   : > { %v8230_v10 = vpop.eup %6505  ;;  %v1982_v44 = vmul.f32 %v7647_v9, %v1381_v61  ;;  %v2083_v31 = vmul.f32 %v7666_v25, %v8219_v28  ;;  %v1416_v56 = vmul.f32 %v7581_v49, %v8158_v35  ;;  %v1815_v32 = vadd.f32 %v1783_v34, %v1715_v13 }
 0x1a3   : > { %v6508_v60 = vpop.eup %6507  ;;  %v1883_v53 = vmul.f32 %v10814_v14, %v8222_v16  ;;  %v1914_v59 = vadd.f32 %v1882_v57, %v1814_v24  ;;  %v2082_v33 = vmul.f32 %v7666_v25, %v1449_v45  ;;  %v2181_v8 = vmul.f32 %v7677_v43, %v8210_v23 }
 0x1a4   : > { %v6510_v46 = vpop.eup %6509  ;;  %v2014_v55 = vadd.f32 %v1982_v44, %v1913_v26  ;;  %v1484_v58 = vmul.f32 %v7584_v50, %v1448_v12  ;;  %v1152_v21 = vadd.f32 1.0, %v6502_v51  ;;  %v1150_v35 = vadd.f32 1.0, %v6504_v30  ;;  %v8256_v12 = vld [vmem:[#allocation2 + $0xf9] sm:$0xff] }
 0x1a5   : > { %v6512_v11 = vpop.eup %6511  ;;  %v1915_v29 = vadd.f32 %v1883_v53, %v1815_v32  ;;  %v2182_v36 = vmul.f32 %v7677_v43, %v8222_v16  ;;  %v2213_v5 = vadd.f32 %v2181_v8, %v2113_v20  ;;  %v1153_v47 = vadd.f32 1.0, %v6508_v60 }
 0x1a6   : > { %v6514_v13 = vpop.eup %6513  ;;  %v2114_v34 = vadd.f32 %v2082_v33, %v2014_v55  ;;  %v1984_v26 = vmul.f32 %v7647_v9, %v8243_v19  ;;  %v1417_v57 = vmul.f32 %v7581_v49, %v1381_v61  ;;  %6525 = vrcp.f32 %v1152_v21  ;;  %v8261_v33 = vld [vmem:[%s10798_s27] ss:$0 sm:$0xff] }
 0x1a7   : > { %v6516_v24 = vpop.eup %6515  ;;  %v1151_v44 = vadd.f32 1.0, %v6510_v46  ;;  %v2015_v51 = vadd.f32 %v1983_v39, %v1914_v59  ;;  %10845 = vst [vmem:[#allocation25_spill] sm:$0xff] %v8261_v33  ;;  %v8264_v8 = vadd.f32 %v8261_v33, %v2213_v5  ;;  %6527 = vrcp.f32 %v1150_v35  ;;  %v8273_v5 = vld [vmem:[#allocation2 + $0xf2] sm:$0xff] }
 0x1a8   : > { %v8254_v62 = vpop.eup %6517  ;;  %v2214_v30 = vadd.f32 %v2182_v36, %v2114_v34  ;;  %v1485_v61 = vmul.f32 %v7584_v50, %v1449_v45  ;;  %v2016_v21 = vadd.f32 %v1984_v26, %v1915_v29  ;;  %6529 = vrcp.f32 %v1153_v47  ;;  %v2062_v45 = vld [vmem:[#allocation2 + $0x1a1] sm:$0xff] }
 0x1a9   : > { %10846 = vst [vmem:[#allocation26_spill] sm:$0xff] %v8264_v8  ;;  %v6520_v20 = vpop.eup %6519  ;;  %v1156_v60 = vadd.f32 1.0, %v6512_v11  ;;  %v5777_v36 = vmul.f32 -1.442695, %v8264_v8  ;;  %6531 = vrcp.f32 %v1151_v44  ;;  %v1154_v39 = vadd.f32 1.0, %v6514_v13  ;;  %v8277_v11 = vld [vmem:[#allocation2 + $0xfa] sm:$0xff] }
 0x1aa   : > { %v6522_v32 = vpop.eup %6521  ;;  %v8268_v53 = vadd.f32 %v8261_v33, %v2214_v30  ;;  %v1516_v59 = vadd.f32 %v1484_v58, %v1416_v56  ;;  %v2084_v55 = vmul.f32 %v7666_v25, %v8256_v12  ;;  %v1157_v29 = vadd.f32 1.0, %v6516_v24  ;;  %v2161_v56 = vld [vmem:[#allocation2 + $0x19a] sm:$0xff] }
 0x1ab   : > { %v8271_v46 = vpop.eup %6523  ;;  %6533 = vrcp.f32 %v1156_v60  ;;  %v1584_v47 = vmul.f32 %v7596_v4, %v8210_v23  ;;  %v2115_v35 = vadd.f32 %v2083_v31, %v2015_v51  ;;  %v1155_v34 = vadd.f32 1.0, %v6520_v20 }
 0x1ac   : > { %10847 = vst [vmem:[#allocation36_spill] sm:$0xff] %v8268_v53  ;;  %6535 = vpow2.f32 %v5777_v36  ;;  %v1517_v13 = vadd.f32 %v1485_v61, %v1417_v57  ;;  %v2116_v26 = vadd.f32 %v2084_v55, %v2016_v21  ;;  %v5778_v58 = vmul.f32 -1.442695, %v8268_v53 }
 0x1ad   : > { %6537 = vrcp.f32 %v1154_v39  ;;  %v1418_v24 = vmul.f32 %v7581_v49, %v8208_v3  ;;  %v2183_v44 = vmul.f32 %v7677_v43, %v8273_v5  ;;  %v8288_v30 = vmul.f32 %v7666_v25, %v2062_v45 }
 0x1ae   : > { %6539 = vrcp.f32 %v8227_v41  ;;  %v1486_v23 = vmul.f32 %v7584_v50, %v8219_v28  ;;  %v2184_v31 = vmul.f32 %v7677_v43, %v8277_v11  ;;  %v1585_v57 = vmul.f32 %v7596_v4, %v8222_v16 }
 0x1af   : > { %10848 = vst [vmem:[#allocation37_spill] sm:$0xff] %v8288_v30  ;;  %6541 = vrcp.f32 %v1157_v29  ;;  %v1616_v41 = vadd.f32 %v1584_v47, %v1516_v59  ;;  %v8297_v51 = vmul.f32 %v7677_v43, %v2161_v56  ;;  %v2215_v20 = vadd.f32 %v2183_v44, %v2115_v35 }
 0x1b0   : > { %6543 = vrcp.f32 %v1155_v34  ;;  %v6526_v61 = vpop.eup %6525  ;;  %v1684_v21 = vmul.f32 %v7618_v27, %v8208_v3  ;;  %v1617_v60 = vadd.f32 %v1585_v57, %v1517_v13  ;;  %v2216_v36 = vadd.f32 %v2184_v31, %v2116_v26 }
 0x1b1   : > { %10849 = vst [vmem:[#allocation38_spill] sm:$0xff] %v8297_v51  ;;  %6545 = vpow2.f32 %v5778_v58  ;;  %v6528_v39 = vpop.eup %6527  ;;  %v2378_v55 = vadd.f32 1.0, %v8230_v10  ;;  %v1419_v16 = vmul.f32 %v7581_v49, %v8243_v19  ;;  %v1487_v59 = vmul.f32 %v7584_v50, %v8256_v12 }
 0x1b2   : > { %v1248_v29 = vmul.f32 %v6526_v61, %v7912_v15  ;;  %v6530_v45 = vpop.eup %6529  ;;  %v1518_v47 = vadd.f32 %v1486_v23, %v1418_v24  ;;  %v1586_v35 = vmul.f32 %v7596_v4, %v8273_v5  ;;  %v1685_v3 = vmul.f32 %v7618_v27, %v8243_v19 }
 0x1b3   : > { %v1246_v34 = vmul.f32 %v6528_v39, %v7916_v1  ;;  %v6532_v13 = vpop.eup %6531  ;;  %v1716_v10 = vadd.f32 %v1684_v21, %v1616_v41  ;;  %v1249_v26 = vmul.f32 %v6530_v45, %v7923_v52  ;;  %v1160_v58 = vadd.f32 1.0, %v6522_v32 }
 0x1b4   : > { %1336 = vst.msk [vmem:[#allocation2 + $0x121] sm:$0xff] %vm824_vm0, %v1248_v29  ;;  %v8315_v56 = vadd.f32 %v8261_v33, %v2215_v20  ;;  %v1784_v24 = vmul.f32 %v7623_v37, %v8219_v28  ;;  %v1717_v44 = vadd.f32 %v1685_v3, %v1617_v60  ;;  %v1247_v19 = vmul.f32 %v6532_v13, %v7992_v22 }
 0x1b5   : > { %v6534_v15 = vpop.eup %6533  ;;  %1334 = vst.msk [vmem:[#allocation2 + $0x109] sm:$0xff] %vm824_vm0, %v1246_v34  ;;  %v8322_v1 = vadd.f32 %v8261_v33, %v2216_v36  ;;  %6547 = vrcp.f32 %v2378_v55  ;;  %v1519_v31 = vadd.f32 %v1487_v59, %v1419_v16  ;;  %v1587_v52 = vmul.f32 %v7596_v4, %v8277_v11  ;;  %1337 = vst.msk [vmem:[#allocation2 + $0x129] sm:$0xff] %vm824_vm0, %v1249_v26 }
 0x1b6   : > { %10850 = vst [vmem:[#allocation39_spill] sm:$0xff] %v8315_v56  ;;  %v6536_v23 = vpop.eup %6535  ;;  %v1252_v32 = vmul.f32 %v6534_v15, %v7996_v17  ;;  %v8330_v28 = vmul.f32 %v8254_v62, %v8054_v7  ;;  %v1618_v41 = vadd.f32 %v1586_v35, %v1518_v47  ;;  %v1785_v22 = vmul.f32 %v7623_v37, %v8256_v12 }
 0x1b7   : > { %10851 = vst [vmem:[#allocation40_spill] sm:$0xff] %v8322_v1  ;;  %v6538_v57 = vpop.eup %6537  ;;  %v1884_v20 = vmul.f32 %v10814_v14, %v8273_v5  ;;  %1335 = vst.msk [vmem:[#allocation2 + $0x111] sm:$0xff] %vm824_vm0, %v1247_v19  ;;  %v1816_v21 = vadd.f32 %v1784_v24, %v1716_v10  ;;  %6549 = vrcp.f32 %v1160_v58  ;;  %v5779_v7 = vmul.f32 -1.442695, %v8315_v56 }
 0x1b8   : > { %10852 = vst [vmem:[#allocation41_spill] sm:$0xff] %v8330_v28  ;;  %v8337_v61 = vpop.eup %6539  ;;  %1340 = vst.msk [vmem:[#allocation2 + $0x151] sm:$0xff] %vm824_vm0, %v1252_v32  ;;  %v1250_v17 = vmul.f32 %v6538_v57, %v8077_v40  ;;  %v1885_v60 = vmul.f32 %v10814_v14, %v8277_v11  ;;  %v1817_v12 = vadd.f32 %v1785_v22, %v1717_v44  ;;  %6551 = vpow2.f32 %v8199_v63 }
 0x1b9   : > { %10853 = vst [vmem:[#allocation42_spill] sm:$0xff] %v8337_v61  ;;  %v6542_v62 = vpop.eup %6541  ;;  %v5780_v5 = vmul.f32 -1.442695, %v8322_v1  ;;  %v8346_v39 = vadd.f32 %v1587_v52, %v1519_v31  ;;  %v2379_v55 = vadd.f32 1.0, %v6536_v23  ;;  %6553 = vpow2.f32 %v8202_v48 }
 0x1ba   : > { %v6544_v36 = vpop.eup %6543  ;;  %1338 = vst.msk [vmem:[#allocation2 + $0x139] sm:$0xff] %vm824_vm0, %v1250_v17  ;;  %v1253_v40 = vmul.f32 %v6542_v62, %v8139_v2  ;;  %v8353_v59 = vmul.f32 %v8271_v46, %v8073_v42  ;;  %v8357_v63 = vsel %vm824_vm0, %v8330_v28, 0.0  ;;  %6555 = vpow2.f32 %v8206_v18 }
 0x1bb   : > { %v6546_v16 = vpop.eup %6545  ;;  %10855 = vst [vmem:[#allocation44_spill] sm:$0xff] %v8357_v63  ;;  %v1386_v11 = vld [vmem:[#allocation2 + $0x120] sm:$0xff]  ;;  %v1251_v45 = vmul.f32 %v6544_v36, %v8167_v6  ;;  %v1916_v3 = vadd.f32 %v1884_v20, %v1816_v21  ;;  %6557 = vpow2.f32 %v5779_v7  ;;  %v8366_v6 = vadd.f32 %v1885_v60, %v1817_v12 }
 0x1bc   : > { %10854 = vst [vmem:[#allocation43_spill] sm:$0xff] %v8353_v59  ;;  %v1454_v29 = vld [vmem:[#allocation2 + $0x121] sm:$0xff]  ;;  %v1422_v47 = vmul.f32 %v7581_v49, %v1386_v11  ;;  %v1452_v35 = vld [vmem:[#allocation2 + $0x109] sm:$0xff]  ;;  %1341 = vst.msk [vmem:[#allocation2 + $0x159] sm:$0xff] %vm824_vm0, %v1253_v40  ;;  %6559 = vpow2.f32 %v5780_v5  ;;  %v8369_v18 = vadd.f32 1.0, %v6546_v16  ;;  %v1688_v15 = vmul.f32 %v7618_v27, %v1386_v11 }
 0x1bd   : > { %v1490_v2 = vmul.f32 %v7584_v50, %v1454_v29  ;;  %v1384_v48 = vld [vmem:[#allocation2 + $0x108] sm:$0xff]  ;;  %v1488_v46 = vmul.f32 %v7584_v50, %v1452_v35  ;;  %1339 = vst.msk [vmem:[#allocation2 + $0x141] sm:$0xff] %vm824_vm0, %v1251_v45  ;;  %6561 = vrcp.f32 %v2379_v55  ;;  %v8375_v24 = vmul.f32 %v7623_v37, %v1454_v29 }
 0x1be   : > { %v1420_v42 = vmul.f32 %v7581_v49, %v1384_v48  ;;  %v1387_v34 = vld [vmem:[#allocation2 + $0x128] sm:$0xff]  ;;  %10856 = vst [vmem:[#allocation45_spill] sm:$0xff] %v8369_v18  ;;  %v1686_v26 = vmul.f32 %v7618_v27, %v1384_v48  ;;  %v1985_v58 = vmul.f32 %v7647_v9, %v1384_v48  ;;  %v1385_v20 = vld [vmem:[#allocation2 + $0x110] sm:$0xff]  ;;  %v8385_v21 = vmul.f32 %v7647_v9, %v1386_v11 }
 0x1bf   : > { %v1455_v13 = vld [vmem:[#allocation2 + $0x129] sm:$0xff]  ;;  %v1423_v44 = vmul.f32 %v7581_v49, %v1387_v34  ;;  %v8381_v31 = vpop.eup %6547  ;;  %v1522_v52 = vadd.f32 %v1490_v2, %v1422_v47  ;;  %v8388_v17 = vmul.f32 %v7666_v25, %v1454_v29  ;;  %v1786_v62 = vmul.f32 %v7623_v37, %v1452_v35  ;;  %v1453_v60 = vld [vmem:[#allocation2 + $0x111] sm:$0xff] }
 0x1c0   : > { %v1554_v10 = vld [vmem:[#allocation2 + $0x122] sm:$0xff]  ;;  %v1491_v19 = vmul.f32 %v7584_v50, %v1455_v13  ;;  %v8379_v23 = vld [vmem:[#allocation2 + $0x12a] sm:$0xff]  ;;  %10857 = vst [vmem:[#allocation46_spill] sm:$0xff] %v8381_v31  ;;  %v1718_v32 = vadd.f32 %v1686_v26, %v1618_v41  ;;  %v2017_v57 = vadd.f32 %v1985_v58, %v1916_v3  ;;  %v1520_v7 = vadd.f32 %v1488_v46, %v1420_v42  ;;  %v1553_v42 = vld [vmem:[#allocation2 + $0x112] sm:$0xff] }
 0x1c1   : > { %v1590_v22 = vmul.f32 %v7596_v4, %v1554_v10  ;;  %v1552_v12 = vld [vmem:[#allocation2 + $0x10a] sm:$0xff]  ;;  %v6550_v5 = vpop.eup %6549  ;;  %v2085_v36 = vmul.f32 %v7666_v25, %v1452_v35  ;;  %v8396_v41 = vmul.f32 %v7596_v4, %v8379_v23  ;;  %v8399_v40 = vmul.f32 %v7618_v27, %v1387_v34  ;;  %v1388_v53 = vld [vmem:[#allocation2 + $0x138] sm:$0xff] }
 0x1c2   : > { %v8392_v55 = vadd.f32 %v1491_v19, %v1423_v44  ;;  %v6552_v16 = vpop.eup %6551  ;;  %v1818_v11 = vadd.f32 %v1786_v62, %v1718_v32  ;;  %v8402_v29 = vmul.f32 %v7623_v37, %v1455_v13  ;;  %v8405_v45 = vmul.f32 %v10814_v14, %v1554_v10  ;;  %v8435_v8 = vld [vmem:[#allocation2 + $0x139] sm:$0xff] }
 0x1c3   : > { %v1421_v47 = vmul.f32 %v7581_v49, %v1385_v20  ;;  %v6554_v2 = vpop.eup %6553  ;;  %v2117_v48 = vadd.f32 %v2085_v36, %v2017_v57  ;;  %v8408_v35 = vadd.f32 %v1590_v22, %v1522_v52  ;;  %v1489_v3 = vmul.f32 %v7584_v50, %v1453_v60 }
 0x1c4   : > { %v1588_v46 = vmul.f32 %v7596_v4, %v1552_v12  ;;  %v6556_v26 = vpop.eup %6555  ;;  %v8414_v58 = vmul.f32 %v10814_v14, %v8379_v23  ;;  %v8417_v44 = vmul.f32 %v7647_v9, %v1387_v34  ;;  %v8420_v19 = vmul.f32 %v7666_v25, %v1455_v13 }
 0x1c5   : > { %v1687_v32 = vmul.f32 %v7618_v27, %v1385_v20  ;;  %v8423_v52 = vpop.eup %6557  ;;  %v8426_v57 = vmul.f32 %v7677_v43, %v1554_v10  ;;  %v1521_v22 = vadd.f32 %v1489_v3, %v1421_v47  ;;  %v1886_v36 = vmul.f32 %v10814_v14, %v1552_v12 }
 0x1c6   : > { %10858 = vst [vmem:[#allocation47_spill] sm:$0xff] %v8423_v52  ;;  %v1620_v62 = vadd.f32 %v1588_v46, %v1520_v7  ;;  %v8429_v28 = vpop.eup %6559  ;;  %v1589_v1 = vmul.f32 %v7596_v4, %v1553_v42  ;;  %v1787_v13 = vmul.f32 %v7623_v37, %v1453_v60  ;;  %v1986_v56 = vmul.f32 %v7647_v9, %v1385_v20  ;;  %v8437_v52 = vld [vmem:[#allocation2 + $0x140] sm:$0xff] }
 0x1c7   : > { %10859 = vst [vmem:[#allocation48_spill] sm:$0xff] %v8429_v28  ;;  %v1719_v34 = vadd.f32 %v1687_v32, %v8346_v39  ;;  %v8439_v10 = vpop.eup %6561  ;;  %v1887_v7 = vmul.f32 %v10814_v14, %v1553_v42  ;;  %v8442_v47 = vadd.f32 %v1886_v36, %v1818_v11  ;;  %v2086_v3 = vmul.f32 %v7666_v25, %v1453_v60  ;;  %v8446_v39 = vld [vmem:[#allocation2 + $0x141] sm:$0xff]  ;;  %v8456_v11 = vld [vmem:[#allocation2 + $0x151] sm:$0xff] }
 0x1c8   : > { %10860 = vst [vmem:[#allocation49_spill] sm:$0xff] %v8439_v10  ;;  %v2185_v46 = vmul.f32 %v7677_v43, %v1552_v12  ;;  %v8448_v32 = vld [vmem:[#allocation2 + $0x13a] sm:$0xff]  ;;  %v1621_v20 = vadd.f32 %v1589_v1, %v1521_v22  ;;  %v1720_v28 = vadd.f32 %v1688_v15, %v1620_v62  ;;  %v2018_v31 = vadd.f32 %v1986_v56, %v8366_v6  ;;  %v8454_v10 = vld [vmem:[#allocation2 + $0x150] sm:$0xff]  ;;  %v8474_v62 = vld [vmem:[#allocation2 + $0x142] sm:$0xff] }
 0x1c9   : > { %v8452_v30 = vmul.f32 %v7677_v43, %v1553_v42  ;;  %v1819_v61 = vadd.f32 %v1787_v13, %v1719_v34  ;;  %v1424_v60 = vmul.f32 %v7581_v49, %v1388_v53  ;;  %v1492_v12 = vmul.f32 %v7584_v50, %v8435_v8  ;;  %v8463_v1 = vld [vmem:[#allocation2 + $0x158] sm:$0xff] }
 0x1ca   : > { %v1425_v36 = vmul.f32 %v7581_v49, %v8437_v52  ;;  %v8465_v15 = vld [vmem:[#allocation2 + $0x159] sm:$0xff]  ;;  %v8467_v56 = vadd.f32 %v2185_v46, %v2117_v48  ;;  %v1690_v6 = vmul.f32 %v7618_v27, %v1388_v53  ;;  %v1493_v42 = vmul.f32 %v7584_v50, %v8446_v39 }
 0x1cb   : > { %v1592_v22 = vmul.f32 %v7596_v4, %v8448_v32  ;;  %v1256_v34 = vmul.f32 %v6550_v5, %v8175_v54  ;;  %v1158_v13 = vadd.f32 1.0, %v6552_v16  ;;  %v1161_v59 = vadd.f32 1.0, %v6554_v2  ;;  %v8488_v16 = vld [vmem:[#allocation2 + $0x152] sm:$0xff] }
 0x1cc   : > { %10861 = vst [vmem:[#allocation50_spill] sm:$0xff] %v8467_v56  ;;  %v1159_v63 = vadd.f32 1.0, %v6556_v26  ;;  %v1426_v51 = vmul.f32 %v7581_v49, %v8454_v10  ;;  %v1427_v48 = vmul.f32 %v7581_v49, %v8463_v1  ;;  %v1494_v46 = vmul.f32 %v7584_v50, %v8456_v11  ;;  %v8496_v56 = vld [vmem:[#allocation2 + $0x15a] sm:$0xff] }
 0x1cd   : > { %v1495_v18 = vmul.f32 %v7584_v50, %v8465_v15  ;;  %v1691_v33 = vmul.f32 %v7618_v27, %v8437_v52  ;;  %1344 = vst.msk [vmem:[#allocation2 + $0x181] sm:$0xff] %vm824_vm0, %v1256_v34  ;;  %6563 = vrcp.f32 %v1158_v13  ;;  %v1524_v54 = vadd.f32 %v1492_v12, %v1424_v60 }
 0x1ce   : > { %v1525_v5 = vadd.f32 %v1493_v42, %v1425_v36  ;;  %v8490_v2 = vadd.f32 %v2086_v3, %v2018_v31  ;;  %v1790_v26 = vmul.f32 %v7623_v37, %v8435_v8  ;;  %6565 = vrcp.f32 %v1161_v59 }
 0x1cf   : > { %v1593_v49 = vmul.f32 %v7596_v4, %v8474_v62  ;;  %6567 = vrcp.f32 %v1159_v63  ;;  %v1526_v50 = vadd.f32 %v1494_v46, %v1426_v51  ;;  %v1623_v34 = vadd.f32 %v8396_v41, %v8392_v55 }
 0x1d0   : > { %v1624_v60 = vadd.f32 %v1592_v22, %v1524_v54  ;;  %v1527_v12 = vadd.f32 %v1495_v18, %v1427_v48  ;;  %v1594_v31 = vmul.f32 %v7596_v4, %v8488_v16  ;;  %v1692_v36 = vmul.f32 %v7618_v27, %v8454_v10 }
 0x1d1   : > { %v1625_v3 = vadd.f32 %v1593_v49, %v1525_v5  ;;  %v1693_v59 = vmul.f32 %v7618_v27, %v8463_v1  ;;  %v1721_v63 = vadd.f32 %v8399_v40, %v1621_v20  ;;  %v1722_v51 = vadd.f32 %v1690_v6, %v8408_v35 }
 0x1d2   : > { %v1723_v42 = vadd.f32 %v1691_v33, %v1623_v34  ;;  %v1989_v13 = vmul.f32 %v7647_v9, %v1388_v53  ;;  %v1595_v18 = vmul.f32 %v7596_v4, %v8496_v56  ;;  %v1724_v55 = vadd.f32 %v1692_v36, %v1624_v60 }
 0x1d3   : > { %v1791_v49 = vmul.f32 %v7623_v37, %v8446_v39  ;;  %v1725_v41 = vadd.f32 %v1693_v59, %v1625_v3  ;;  %v1820_v22 = vadd.f32 %v8375_v24, %v1720_v28  ;;  %v1821_v48 = vadd.f32 %v8402_v29, %v1721_v63 }
 0x1d4   : > { %v1822_v46 = vadd.f32 %v1790_v26, %v1722_v51  ;;  %v1919_v54 = vadd.f32 %v1887_v7, %v1819_v61  ;;  %v1660_v40 = vld [vmem:[#allocation2 + $0x180] sm:$0xff]  ;;  %v1792_v33 = vmul.f32 %v7623_v37, %v8456_v11  ;;  %v1890_v35 = vmul.f32 %v10814_v14, %v8448_v32 }
 0x1d5   : > { %v1760_v20 = vld [vmem:[#allocation2 + $0x181] sm:$0xff]  ;;  %v1823_v53 = vadd.f32 %v1791_v49, %v1723_v42  ;;  %v8519_v6 = vadd.f32 %v1594_v31, %v1526_v50  ;;  %v8521_v5 = vadd.f32 %v1595_v18, %v1527_v12  ;;  %v1793_v28 = vmul.f32 %v7623_v37, %v8465_v15 }
 0x1d6   : > { %v1891_v24 = vmul.f32 %v10814_v14, %v8474_v62  ;;  %v1824_v61 = vadd.f32 %v1792_v33, %v1724_v55  ;;  %v1920_v29 = vadd.f32 %v8405_v45, %v1820_v22  ;;  %v1921_v7 = vadd.f32 %v8414_v58, %v1821_v48 }
 0x1d7   : > { %v1922_v26 = vadd.f32 %v1890_v35, %v1822_v46  ;;  %v6564_v34 = vpop.eup %6563  ;;  %v8530_v60 = vmul.f32 %v7618_v27, %v1660_v40  ;;  %v8533_v50 = vmul.f32 %v7623_v37, %v1760_v20  ;;  %v1825_v12 = vadd.f32 %v1793_v28, %v1725_v41 }
 0x1d8   : > { %v1923_v31 = vadd.f32 %v1891_v24, %v1823_v53  ;;  %v6566_v3 = vpop.eup %6565  ;;  %v1254_v36 = vmul.f32 %v6564_v34, %v8181_v0  ;;  %v1990_v59 = vmul.f32 %v7647_v9, %v8437_v52  ;;  %v1991_v45 = vmul.f32 %v7647_v9, %v8454_v10  ;;  %v10862_v0 = vld [vmem:[#allocation28_spill] sm:$0xff]  ;;  %v10865_v34 = vld [vmem:[#allocation14_spill] sm:$0xff] }
 0x1d9   : > { %v1992_v58 = vmul.f32 %v7647_v9, %v8463_v1  ;;  %v6568_v63 = vpop.eup %6567  ;;  %v1257_v51 = vmul.f32 %v6566_v3, %v8185_v38  ;;  %v2019_v42 = vadd.f32 %v8385_v21, %v8442_v47  ;;  %v2020_v18 = vadd.f32 %v8417_v44, %v1919_v54 }
 0x1da   : > { %v2021_v55 = vadd.f32 %v1989_v13, %v1920_v29  ;;  %1342 = vst.msk [vmem:[#allocation2 + $0x169] sm:$0xff] %vm824_vm0, %v1254_v36  ;;  %v1255_v49 = vmul.f32 %v6568_v63, %v10862_v0  ;;  %v2022_v52 = vadd.f32 %v1990_v59, %v1921_v7  ;;  %v2023_v41 = vadd.f32 %v1991_v45, %v1922_v26 }
 0x1db   : > { %v2024_v22 = vadd.f32 %v1992_v58, %v1923_v31  ;;  %1345 = vst.msk [vmem:[#allocation2 + $0x189] sm:$0xff] %vm824_vm0, %v1257_v51  ;;  %v1892_v10 = vmul.f32 %v10814_v14, %v8488_v16  ;;  %v2089_v38 = vmul.f32 %v7666_v25, %v8435_v8  ;;  %v2090_v21 = vmul.f32 %v7666_v25, %v8446_v39 }
 0x1dc   : > { %v2091_v44 = vmul.f32 %v7666_v25, %v8456_v11  ;;  %1343 = vst.msk [vmem:[#allocation2 + $0x171] sm:$0xff] %vm824_vm0, %v1255_v49  ;;  %v1893_v47 = vmul.f32 %v10814_v14, %v8496_v56  ;;  %v2092_v1 = vmul.f32 %v7666_v25, %v8465_v15  ;;  %v2119_v13 = vadd.f32 %v8388_v17, %v2019_v42 }
 0x1dd   : > { %v2120_v48 = vadd.f32 %v8420_v19, %v2020_v18  ;;  %v2121_v46 = vadd.f32 %v2089_v38, %v2021_v55  ;;  %v2122_v8 = vadd.f32 %v2090_v21, %v2022_v52  ;;  %v2188_v39 = vmul.f32 %v7677_v43, %v8379_v23 }
 0x1de   : > { %v2123_v54 = vadd.f32 %v2091_v44, %v2023_v41  ;;  %v1924_v33 = vadd.f32 %v1892_v10, %v1824_v61  ;;  %v2124_v11 = vadd.f32 %v2092_v1, %v2024_v22  ;;  %v2189_v53 = vmul.f32 %v7677_v43, %v8448_v32 }
 0x1df   : > { %v2190_v35 = vmul.f32 %v7677_v43, %v8474_v62  ;;  %v2191_v15 = vmul.f32 %v7677_v43, %v8488_v16  ;;  %v2218_v17 = vadd.f32 %v8452_v30, %v8490_v2  ;;  %v2219_v19 = vadd.f32 %v8426_v57, %v2119_v13  ;;  %v10863_v30 = vld [vmem:[#allocation50_spill] sm:$0xff]  ;;  %v10864_v57 = vld [vmem:[#allocation25_spill] sm:$0xff] }
 0x1e0   : > { %v2220_v28 = vadd.f32 %v2188_v39, %v2120_v48  ;;  %v1925_v24 = vadd.f32 %v1893_v47, %v1825_v12  ;;  %v1995_v23 = vmul.f32 %v7647_v9, %v1660_v40  ;;  %v8577_v61 = vmul.f32 %v7666_v25, %v1760_v20  ;;  %v10866_v12 = vld [vmem:[#allocation15_spill] sm:$0xff] }
 0x1e1   : > { %v2192_v32 = vmul.f32 %v7677_v43, %v8496_v56  ;;  %v1392_v29 = vld [vmem:[#allocation2 + $0x168] sm:$0xff]  ;;  %v8581_v7 = vadd.f32 %v2189_v53, %v2121_v46  ;;  %v8583_v16 = vadd.f32 %v2190_v35, %v2122_v8  ;;  %v8585_v26 = vadd.f32 %v2191_v15, %v2123_v54 }
 0x1e2   : > { %v1460_v62 = vld [vmem:[#allocation2 + $0x169] sm:$0xff]  ;;  %v8589_v2 = vadd.f32 %v10864_v57, %v10863_v30  ;;  %v1428_v40 = vmul.f32 %v10865_v34, %v1392_v29  ;;  %v1694_v3 = vmul.f32 %v7618_v27, %v1392_v29  ;;  %v8598_v63 = vadd.f32 %v10864_v57, %v2218_v17 }
 0x1e3   : > { %v1496_v20 = vmul.f32 %v10866_v12, %v1460_v62  ;;  %v1661_v31 = vld [vmem:[#allocation2 + $0x188] sm:$0xff]  ;;  %v8594_v56 = vadd.f32 %v2192_v32, %v2124_v11  ;;  %v1393_v36 = vld [vmem:[#allocation2 + $0x170] sm:$0xff]  ;;  %v1794_v58 = vmul.f32 %v7623_v37, %v1460_v62  ;;  %v8601_v51 = vadd.f32 %v10864_v57, %v2219_v19 }
 0x1e4   : > { %v1461_v59 = vld [vmem:[#allocation2 + $0x171] sm:$0xff]  ;;  %v8604_v42 = vadd.f32 %v10864_v57, %v2220_v28  ;;  %v1429_v18 = vmul.f32 %v10865_v34, %v1393_v36  ;;  %v1695_v41 = vmul.f32 %v7618_v27, %v1393_v36  ;;  %v1697_v22 = vmul.f32 %v7618_v27, %v1661_v31  ;;  %v1761_v38 = vld [vmem:[#allocation2 + $0x189] sm:$0xff] }
 0x1e5   : > { %v1560_v45 = vld [vmem:[#allocation2 + $0x16a] sm:$0xff]  ;;  %v1497_v55 = vmul.f32 %v10866_v12, %v1461_v59  ;;  %v1528_v0 = vadd.f32 %v1496_v20, %v1428_v40  ;;  %v1561_v49 = vld [vmem:[#allocation2 + $0x172] sm:$0xff]  ;;  %v1726_v10 = vadd.f32 %v1694_v3, %v8519_v6  ;;  %v1993_v21 = vmul.f32 %v7647_v9, %v1392_v29  ;;  %v1860_v8 = vld [vmem:[#allocation2 + $0x182] sm:$0xff] }
 0x1e6   : > { %v1596_v52 = vmul.f32 %v7596_v4, %v1560_v45  ;;  %v1597_v47 = vmul.f32 %v7596_v4, %v1561_v49  ;;  %v1795_v13 = vmul.f32 %v7623_v37, %v1461_v59  ;;  %v1727_v48 = vadd.f32 %v1695_v41, %v8521_v5  ;;  %v1861_v15 = vld [vmem:[#allocation2 + $0x18a] sm:$0xff] }
 0x1e7   : > { %v1529_v44 = vadd.f32 %v1497_v55, %v1429_v18  ;;  %v1826_v46 = vadd.f32 %v1794_v58, %v1726_v10  ;;  %v1894_v54 = vmul.f32 %v10814_v14, %v1560_v45  ;;  %v1994_v39 = vmul.f32 %v7647_v9, %v1393_v36  ;;  %v10867_v18 = vld [vmem:[#allocation22_spill] sm:$0xff] }
 0x1e8   : > { %v1628_v1 = vadd.f32 %v1596_v52, %v1528_v0  ;;  %v1797_v11 = vmul.f32 %v7623_v37, %v1761_v38  ;;  %v2025_v53 = vadd.f32 %v1993_v21, %v1924_v33  ;;  %v1827_v35 = vadd.f32 %v1795_v13, %v1727_v48  ;;  %v10869_v0 = vld [vmem:[#allocation24_spill] sm:$0xff] }
 0x1e9   : > { %v1629_v27 = vadd.f32 %v1597_v47, %v1529_v44  ;;  %v1895_v4 = vmul.f32 %v10814_v14, %v1561_v49  ;;  %v1926_v17 = vadd.f32 %v1894_v54, %v1826_v46  ;;  %v2026_v19 = vadd.f32 %v1994_v39, %v1925_v24  ;;  %v2162_v21 = vld [vmem:[#allocation2 + $0x1a2] sm:$0xff]  ;;  %v10871_v46 = vld [vmem:[#allocation38_spill] sm:$0xff] }
 0x1ea   : > { %v1728_v6 = vadd.f32 %v8530_v60, %v1628_v1  ;;  %v1896_v32 = vmul.f32 %v10814_v14, %v1860_v8  ;;  %v2093_v29 = vmul.f32 %v7666_v25, %v1460_v62  ;;  %v1996_v34 = vmul.f32 %v7647_v9, %v1661_v31  ;;  %v10873_v39 = vld [vmem:[#allocation44_spill] sm:$0xff] }
 0x1eb   : > { %v1729_v28 = vadd.f32 %v1697_v22, %v1629_v27  ;;  %v1927_v30 = vadd.f32 %v1895_v4, %v1827_v35  ;;  %v2027_v60 = vadd.f32 %v1995_v23, %v1926_v17  ;;  %v2094_v37 = vmul.f32 %v7666_v25, %v1461_v59 }
 0x1ec   : > { %v1828_v5 = vadd.f32 %v8533_v50, %v1728_v6  ;;  %v1897_v40 = vmul.f32 %v10814_v14, %v1861_v15  ;;  %v2125_v20 = vadd.f32 %v2093_v29, %v2025_v53  ;;  %v2096_v24 = vmul.f32 %v7666_v25, %v1761_v38  ;;  %v10868_v25 = vld [vmem:[#allocation45_spill] sm:$0xff]  ;;  %v10874_v53 = vld [vmem:[#allocation43_spill] sm:$0xff] }
 0x1ed   : > { %v1829_v33 = vadd.f32 %v1797_v11, %v1729_v28  ;;  %v2028_v3 = vadd.f32 %v1996_v34, %v1927_v30  ;;  %v2126_v36 = vadd.f32 %v2094_v37, %v2026_v19  ;;  %v2127_v50 = vadd.f32 %v8577_v61, %v2027_v60  ;;  %v10876_v28 = vld [vmem:[#allocation42_spill] sm:$0xff] }
 0x1ee   : > { %v1928_v12 = vadd.f32 %v1896_v32, %v1828_v5  ;;  %v2193_v55 = vmul.f32 %v7677_v43, %v1560_v45  ;;  %v5781_v9 = vmul.f32 -1.442695, %v8589_v2  ;;  %v2194_v31 = vmul.f32 %v7677_v43, %v1561_v49  ;;  %v10870_v45 = vld [vmem:[#allocation23_spill] sm:$0xff]  ;;  %v10877_v32 = vld [vmem:[#allocation37_spill] sm:$0xff] }
 0x1ef   : > { %v1929_v58 = vadd.f32 %v1897_v40, %v1829_v33  ;;  %v2128_v23 = vadd.f32 %v2096_v24, %v2028_v3  ;;  %v2195_v14 = vmul.f32 %v7677_v43, %v1860_v8  ;;  %v8636_v59 = vadd.f32 %v10864_v57, %v8581_v7  ;;  %v10879_v3 = vld [vmem:[#allocation46_spill] sm:$0xff] }
 0x1f0   : > { %v2029_v62 = vadd.f32 %v10867_v18, %v1928_v12  ;;  %6569 = vrcp.f32 %v10868_v25  ;;  %v2225_v52 = vadd.f32 %v2193_v55, %v2125_v20  ;;  %v8642_v41 = vadd.f32 %v10864_v57, %v8583_v16  ;;  %v10878_v20 = vld [vmem:[#allocation33_spill] sm:$0xff] }
 0x1f1   : > { %v2030_v22 = vadd.f32 %v10870_v45, %v1929_v58  ;;  %v2196_v10 = vmul.f32 %v7677_v43, %v1861_v15  ;;  %v2226_v49 = vadd.f32 %v2194_v31, %v2126_v36  ;;  %v2227_v38 = vadd.f32 %v2195_v14, %v2127_v50  ;;  %v10882_v45 = vld [vmem:[#allocation26_spill] sm:$0xff] }
 0x1f2   : > { %v2129_v61 = vadd.f32 %v10869_v0, %v2029_v62  ;;  %v8648_v7 = vadd.f32 %v10864_v57, %v8585_v26  ;;  %v8652_v44 = vadd.f32 %v10864_v57, %v8594_v56  ;;  %6571 = vpow2.f32 %v5781_v9  ;;  %v10872_v56 = vld [vmem:[#allocation21_spill] sm:$0xff]  ;;  %v10880_v62 = vld [vmem:[#allocation47_spill] sm:$0xff] }
 0x1f3   : > { %v5782_v47 = vmul.f32 -1.442695, %v8598_v63  ;;  %v2228_v16 = vadd.f32 %v2196_v10, %v2128_v23  ;;  %v5783_v1 = vmul.f32 -1.442695, %v8601_v51  ;;  %v5784_v13 = vmul.f32 -1.442695, %v8604_v42 }
 0x1f4   : > { %v5785_v48 = vmul.f32 -1.442695, %v8636_v59  ;;  %v2229_v8 = vadd.f32 %v10871_v46, %v2129_v61  ;;  %v8660_v54 = vadd.f32 %v10864_v57, %v2225_v52  ;;  %v5786_v26 = vmul.f32 -1.442695, %v8642_v41  ;;  %v10881_v23 = vld [vmem:[#allocation48_spill] sm:$0xff] }
 0x1f5   : > { %6573 = vpow2.f32 %v5782_v47  ;;  %v2513_v27 = vadd.f32 %v10873_v39, %v10872_v56  ;;  %v2198_v6 = vmul.f32 %v7677_v43, %v2162_v21  ;;  %v8667_v11 = vadd.f32 %v10864_v57, %v2226_v49  ;;  %v10875_v43 = vld [vmem:[#allocation19_spill] sm:$0xff] }
 0x1f6   : > { %6575 = vpow2.f32 %v5783_v1  ;;  %v2514_v35 = vsel %vm824_vm0, %v10874_v53, 0.0  ;;  %v8672_v15 = vadd.f32 %v10864_v57, %v2227_v38  ;;  %v5787_v4 = vmul.f32 -1.442695, %v8648_v7 }
 0x1f7   : > { %6577 = vpow2.f32 %v5784_v13  ;;  %v8676_v17 = vadd.f32 %v10864_v57, %v2228_v16  ;;  %v5788_v19 = vmul.f32 -1.442695, %v8652_v44  ;;  %v8681_v5 = vmul.f32 %v10876_v28, %v10875_v43 }
 0x1f8   : > { %6579 = vpow2.f32 %v5785_v48  ;;  %v2130_v29 = vadd.f32 %v10877_v32, %v2030_v22  ;;  %v8685_v30 = vadd.f32 %v10864_v57, %v2229_v8  ;;  %v5789_v34 = vmul.f32 -1.442695, %v8660_v54  ;;  %v10883_v22 = vld [vmem:[#allocation49_spill] sm:$0xff] }
 0x1f9   : > { %6581 = vpow2.f32 %v5786_v26  ;;  %v5790_v60 = vmul.f32 -1.442695, %v8667_v11  ;;  %v5791_v33 = vmul.f32 -1.442695, %v8672_v15  ;;  %v2515_v40 = vadd.f32 %v2514_v35, %v2513_v27  ;;  %v10884_v26 = vld [vmem:[#allocation36_spill] sm:$0xff] }
 0x1fa   : > { %v6570_v37 = vpop.eup %6569  ;;  %6583 = vpow2.f32 %v5787_v4  ;;  %v5792_v12 = vmul.f32 -1.442695, %v8676_v17  ;;  %v8693_v24 = vmul.f32 %v10879_v3, %v10878_v20  ;;  %v2230_v50 = vadd.f32 %v2198_v6, %v2130_v29 }
 0x1fb   : > { %6585 = vpow2.f32 %v5788_v19  ;;  %v5793_v58 = vmul.f32 -1.442695, %v8685_v30  ;;  %v2516_v18 = vsel %vm824_vm0, %v8681_v5, 0.0  ;;  %v2381_v55 = vadd.f32 1.0, %v10880_v62 }
 0x1fc   : > { %v6572_v36 = vpop.eup %6571  ;;  %6587 = vpow2.f32 %v5789_v34  ;;  %v2382_v31 = vadd.f32 1.0, %v10881_v23  ;;  %v2517_v0 = vadd.f32 %v2516_v18, %v2515_v40  ;;  %v2518_v61 = vsel %vm824_vm0, %v8693_v24, 0.0 }
 0x1fd   : > { %6589 = vpow2.f32 %v5790_v60  ;;  %v2383_v25 = vadd.f32 1.0, %v6572_v36  ;;  %v8704_v10 = vmul.f32 %v10883_v22, %v10882_v45  ;;  %v8707_v49 = vadd.f32 %v10864_v57, %v2230_v50  ;;  %v10886_v50 = vld [vmem:[#allocation40_spill] sm:$0xff] }
 0x1fe   : > { %6591 = vpow2.f32 %v5791_v33  ;;  %v2519_v48 = vadd.f32 %v2518_v61, %v2517_v0  ;;  %v8711_v56 = vmul.f32 %v6570_v37, %v10884_v26 }
 0x1ff   : > { %v6574_v9 = vpop.eup %6573  ;;  %6593 = vpow2.f32 %v5792_v12  ;;  %v5794_v8 = vmul.f32 -1.442695, %v8707_v49  ;;  %v2520_v57 = vsel %vm824_vm0, %v8704_v10, 0.0  ;;  %v10885_v12 = vld [vmem:[#allocation39_spill] sm:$0xff] }
 0x200   : > { %v6576_v14 = vpop.eup %6575  ;;  %6595 = vpow2.f32 %v5793_v58  ;;  %v2384_v38 = vadd.f32 1.0, %v6574_v9  ;;  %v2521_v19 = vadd.f32 %v2520_v57, %v2519_v48  ;;  %v2522_v28 = vsel %vm824_vm0, %v8711_v56, 0.0 }
 0x201   : > { %v6578_v52 = vpop.eup %6577  ;;  %v2385_v47 = vadd.f32 1.0, %v6576_v14  ;;  %6597 = vrcp.f32 %v2381_v55 }
 0x202   : > { %v6580_v21 = vpop.eup %6579  ;;  %v2386_v1 = vadd.f32 1.0, %v6578_v52  ;;  %6599 = vrcp.f32 %v2382_v31  ;;  %v2523_v33 = vadd.f32 %v2522_v28, %v2521_v19 }
 0x203   : > { %v6582_v16 = vpop.eup %6581  ;;  %v2387_v13 = vadd.f32 1.0, %v6580_v21  ;;  %6601 = vrcp.f32 %v2383_v25 }
 0x204   : > { %v6584_v46 = vpop.eup %6583  ;;  %6603 = vrcp.f32 %v2384_v38  ;;  %v2388_v27 = vadd.f32 1.0, %v6582_v16 }
 0x205   : > { %v6586_v39 = vpop.eup %6585  ;;  %6605 = vrcp.f32 %v2385_v47  ;;  %v2389_v4 = vadd.f32 1.0, %v6584_v46 }
 0x206   : > { %v6588_v6 = vpop.eup %6587  ;;  %6607 = vrcp.f32 %v2386_v1  ;;  %v2390_v29 = vadd.f32 1.0, %v6586_v39 }
 0x207   : > { %v6590_v35 = vpop.eup %6589  ;;  %6609 = vrcp.f32 %v2387_v13  ;;  %v2391_v37 = vadd.f32 1.0, %v6588_v6 }
 0x208   : > { %v6592_v43 = vpop.eup %6591  ;;  %6611 = vpow2.f32 %v5794_v8  ;;  %v2392_v36 = vadd.f32 1.0, %v6590_v35 }
 0x209   : > { %v6594_v32 = vpop.eup %6593  ;;  %6613 = vrcp.f32 %v2388_v27  ;;  %v2393_v62 = vadd.f32 1.0, %v6592_v43 }
 0x20a   : > { %v6596_v34 = vpop.eup %6595  ;;  %6615 = vrcp.f32 %v2389_v4  ;;  %v2394_v45 = vadd.f32 1.0, %v6594_v32 }
 0x20b   : > { %v6598_v60 = vpop.eup %6597  ;;  %6617 = vrcp.f32 %v2390_v29  ;;  %v2395_v16 = vadd.f32 1.0, %v6596_v34 }
 0x20c   : > { %v6600_v40 = vpop.eup %6599  ;;  %v8718_v20 = vmul.f32 %v6598_v60, %v10885_v12  ;;  %6619 = vrcp.f32 %v2391_v37 }
 0x20d   : > { %v6602_v3 = vpop.eup %6601  ;;  %v8721_v58 = vmul.f32 %v6600_v40, %v10886_v50  ;;  %6621 = vrcp.f32 %v2392_v36 }
 0x20e   : > { %v6604_v18 = vpop.eup %6603  ;;  %v8724_v55 = vmul.f32 %v6602_v3, %v8589_v2  ;;  %v2524_v9 = vsel %vm824_vm0, %v8718_v20, 0.0  ;;  %6623 = vrcp.f32 %v2393_v62 }
 0x20f   : > { %v6606_v23 = vpop.eup %6605  ;;  %v8729_v31 = vmul.f32 %v6604_v18, %v8598_v63  ;;  %v2525_v14 = vadd.f32 %v2524_v9, %v2523_v33  ;;  %v2526_v25 = vsel %vm824_vm0, %v8721_v58, 0.0  ;;  %6625 = vrcp.f32 %v2394_v45 }
 0x210   : > { %v6608_v0 = vpop.eup %6607  ;;  %v8734_v61 = vmul.f32 %v6606_v23, %v8601_v51  ;;  %v2528_v2 = vsel %vm824_vm0, %v8724_v55, 0.0  ;;  %6627 = vrcp.f32 %v2395_v16 }
 0x211   : > { %v6610_v52 = vpop.eup %6609  ;;  %v2527_v22 = vadd.f32 %v2526_v25, %v2525_v14  ;;  %v8739_v21 = vmul.f32 %v6608_v0, %v8604_v42  ;;  %v2530_v63 = vsel %vm824_vm0, %v8729_v31, 0.0 }
 0x212   : > { %v6612_v38 = vpop.eup %6611  ;;  %v8744_v51 = vmul.f32 %v6610_v52, %v8636_v59  ;;  %v2532_v13 = vsel %vm824_vm0, %v8734_v61, 0.0 }
 0x213   : > { %v6614_v47 = vpop.eup %6613  ;;  %v2529_v1 = vadd.f32 %v2528_v2, %v2527_v22  ;;  %v2396_v46 = vadd.f32 1.0, %v6612_v38  ;;  %v2534_v26 = vsel %vm824_vm0, %v8739_v21, 0.0 }
 0x214   : > { %v6616_v48 = vpop.eup %6615  ;;  %v8749_v42 = vmul.f32 %v6614_v47, %v8642_v41  ;;  %v2536_v59 = vsel %vm824_vm0, %v8744_v51, 0.0 }
 0x215   : > { %v2531_v8 = vadd.f32 %v2530_v63, %v2529_v1  ;;  %v6618_v57 = vpop.eup %6617  ;;  %v8754_v27 = vmul.f32 %v6616_v48, %v8648_v7  ;;  %6629 = vrcp.f32 %v2396_v46  ;;  %v8798_v1 = vld [vmem:[#allocation3] sm:$0xff] }
 0x216   : > { %v6620_v6 = vpop.eup %6619  ;;  %v8759_v4 = vmul.f32 %v6618_v57, %v8652_v44  ;;  %v2538_v41 = vsel %vm824_vm0, %v8749_v42, 0.0 }
 0x217   : > { %v2533_v39 = vadd.f32 %v2532_v13, %v2531_v8  ;;  %v6622_v19 = vpop.eup %6621  ;;  %v8764_v28 = vmul.f32 %v6620_v6, %v8660_v54  ;;  %v2540_v7 = vsel %vm824_vm0, %v8754_v27, 0.0  ;;  %v1355_v13 = vld [vmem:[%s10887_s5] sm:$0xff]  ;;  %s10889_s5 = sld [smem:[#allocation60_spill]] }
 0x218   : > { %v6624_v32 = vpop.eup %6623  ;;  %v8769_v34 = vmul.f32 %v6622_v19, %v8667_v11  ;;  %v2542_v44 = vsel %vm824_vm0, %v8759_v4, 0.0  ;;  %v2624_v48 = vpack.c.bf16 %v1355_v13, %v1355_v13  ;;  %v5795_v8 = vld [vmem:[%s10888_s6] ss:$0 sm:$0xff]  ;;  %s755_s6 = sand.u32 1, %s7093_s2  }
 0x219   : > { %v2535_v35 = vadd.f32 %v2534_v26, %v2533_v39  ;;  %v6626_v60 = vpop.eup %6625  ;;  %v8774_v33 = vmul.f32 %v6624_v32, %v8672_v15  ;;  %v2544_v54 = vsel %vm824_vm0, %v8764_v28, 0.0  ;;  %v10895_v13 = vld [vmem:[#allocation31_spill] sm:$0xff]  ;;  %s756_s9 = scalar_lea.vmem [#allocation4], %s755_s6  ;;  %s5640_s7 = scalar_lea.sflag [#allocation5], %s755_s6 }
 0x21a   : > { %v6628_v40 = vpop.eup %6627  ;;  %v8779_v3 = vmul.f32 %v6626_v60, %v8676_v17  ;;  %v2546_v11 = vsel %vm824_vm0, %v8769_v34, 0.0  ;;  %v2637_v46 = vsel %vm2635_vm3, %v2624_v48, 0 }
 0x21b   : > { %v2537_v43 = vadd.f32 %v2536_v59, %v2535_v35  ;;  %v8784_v18 = vmul.f32 %v6628_v40, %v8685_v30  ;;  %v2548_v15 = vsel %vm824_vm0, %v8774_v33, 0.0 }
 0x21c   : > { %v2550_v23 = vsel %vm824_vm0, %v8779_v3, 0.0 }
 0x21d   : > { %v2539_v29 = vadd.f32 %v2538_v41, %v2537_v43  ;;  %v2552_v14 = vsel %vm824_vm0, %v8784_v18, 0.0 }
 0x21f   : > { %v2541_v37 = vadd.f32 %v2540_v7, %v2539_v29  ;;  %v6630_v36 = vpop.eup %6629  ;;  %v1357_v29 = vld [vmem:[%s10889_s5] sm:$0xff] }
 0x220   : > { %v8789_v9 = vmul.f32 %v6630_v36, %v8707_v49 }
 0x221   : > { %v2543_v12 = vadd.f32 %v2542_v44, %v2541_v37  ;;  %v1358_v44 = vld [vmem:[%s10889_s5 + $0x8] sm:$0xff]  ;;  %v1359_v37 = vld [vmem:[%s10889_s5 + $0x10] sm:$0xff] }
 0x222   : > { %v2554_v0 = vsel %vm824_vm0, %v8789_v9, 0.0  ;;  %v2737_v60 = vpack.c.bf16 %v1358_v44, %v1357_v29  ;;  %v10901_v29 = vld [vmem:[#allocation20_spill] sm:$0xff] }
 0x223   : > { %v2545_v50 = vadd.f32 %v2544_v54, %v2543_v12  ;;  %v1360_v54 = vld [vmem:[%s10889_s5 + $0x18] sm:$0xff]  ;;  %v2954_v12 = vld [vmem:[%s10664_s11] sm:$0xff]  ;;  %s5652_s5 = sshll.u32 %s756_s9, 4  ;;  %s10613_s5 = int_to_ptr.vmem [resolvable:$true] %s5652_s5 }
 0x224   : > { %v2738_v40 = vpack.c.bf16 %v1360_v54, %v1359_v37  ;;  %v10902_v54 = vld [vmem:[#allocation41_spill] sm:$0xff] }
 0x225   : > { %v2547_v62 = vadd.f32 %v2546_v11, %v2545_v50  ;;  %v2955_v11 = vld [vmem:[%s10664_s11 + $0x8] sm:$0xff]  ;;  %v5798_v50 = vld [vmem:[%s10890_s8] ss:$0 sm:$0xff]  ;;  %s7039_s8 = scalar_lea.vmem %s10613_s5, 16 }
 0x226   : > { %v2972_v36 = vpack.c.bf16 %v2955_v11, %v2954_v12  ;;  %p7040_p11 = scmp.ne.s32.totalorder %s10613_s5, %s7039_s8 }
 0x227   : > { %v2549_v17 = vadd.f32 %v2548_v15, %v2547_v62 }
 0x228   : > { %6167 = vmatprep.subr.bf16.mxu0 %v2972_v36  ;;  %p7041_p12 = pnand %p7040_p11, %p7274_p5 }
 0x229   : > { %v2551_v25 = vadd.f32 %v2550_v23, %v2549_v17  ;;  %6168 = vmatpush3.bf16.msra.mxu0 %v2972_v36 }
 0x22a   : > { %p7042_p13 = pneg %p7041_p12 }
 0x22b   : > { %v2553_v30 = vadd.f32 %v2552_v14, %v2551_v25 }
 0x22d   : > { %v2555_v2 = vadd.f32 %v2554_v0, %v2553_v30 }
 0x22f   : > { %v2556_v52 = vrot.slane %v2555_v2, 4 }
 0x231   : > { %v2557_v45 = vadd.f32 %v2556_v52, %v2555_v2  ;;  %v10891_v52 = vld [vmem:[#allocation12_spill] sm:$0xff] }
 0x233   : > { %v2558_v22 = vrot.slane %v2557_v45, 2 }
 0x235   : > { %v2559_v38 = vadd.f32 %v2558_v22, %v2557_v45  ;;  %v10892_v22 = vld [vmem:[#allocation27_spill] sm:$0xff] }
 0x237   : > { %v2560_v63 = vrot.slane %v2559_v38, 1 }
 0x239   : > { %v2561_v49 = vadd.f32 %v2560_v63, %v2559_v38  ;;  %v10893_v63 = vld [vmem:[#allocation35_spill] sm:$0xff] }
 0x23b   : > { %v2563_v47 = vmul.f32 0.00390625, %v2561_v49 }
 0x23d   : > { %v2564_v16 = vpack.c.bf16 %v2563_v47, %v2563_v47  ;;  %v10894_v47 = vld [vmem:[#allocation34_spill] sm:$0xff] }
 0x23f   : > { %6122 = vmatmul.mubr.msk.bf16.vlgmr.msra.gmra.mrb[0].mxu1 %vm824_vm0, %v2564_v16 }
 0x240   : > { %6127 = vmatprep.mubr.msk.bf16.mxu1 %vm7104_vm2, %v8798_v1  ;;  %6126 = vmatpush3.bf16.msra.mxu1 %v2637_v46  ;;  %v10896_v46 = vld [vmem:[#allocation17_spill] sm:$0xff] }
 0x241   : > { %6131 = vmatprep.subr.bf16.mxu1 %v2737_v60 }
 0x312   : > { %v2610_v26 = vpop.f32.mrb[0].mxu1 }
 0x313   : > { %v2611_v57 = vadd.f32 %v5795_v8, %v2610_v26  ;;  %v6123_v39 = vpop.f32.mrb[1].mxu1  ;;  %v10897_v26 = vld [vmem:[#allocation29_spill] sm:$0xff] }
 0x314   : > { %v2613_v59 = vpop.f32.mrb[2].mxu1 }
 0x315   : > { %v5797_v6 = vmul.f32 -1.442695, %v2611_v57  ;;  %v6124_v35 = vpop.f32.mrb[3].mxu1 }
 0x316   : > { %v10898_v35 = vld [vmem:[#allocation30_spill] sm:$0xff] }
 0x317   : > { %6631 = vpow2.f32 %v5797_v6 }
 0x321   : > { %v6632_v41 = vpop.eup %6631 }
 0x322   : > { %v2619_v19 = vadd.f32 1.0, %v6632_v41 }
 0x324   : > { %6633 = vrcp.f32 %v2619_v19  ;;  %v10899_v19 = vld [vmem:[#allocation18_spill] sm:$0xff] }
 0x32e   : > { %v6634_v43 = vpop.eup %6633 }
 0x32f   : > { %v2622_v7 = vmul.f32 %v6634_v43, %v2611_v57 }
 0x331   : > { %v2623_v32 = vpack.c.bf16 %v2622_v7, %v2622_v7  ;;  %v10900_v7 = vld [vmem:[#allocation32_spill] sm:$0xff] }
 0x333   : > { %6128 = vmatmul.mubr.msk.bf16.vlgmr.msra.gmra.mrb[4].mxu1 %vm2631_vm4, %v2623_v32 }
 0x334   : > { %6132 = vmatpush3.bf16.msra.mxu1 %v2737_v60 }
 0x335   : > { %6133 = vmatprep.subr.bf16.mxu1 %v2738_v40 }
 0x338   : > { %6134 = vmatpush3.bf16.msra.mxu1 %v2738_v40 }
 0x339   : > { %6201 = vmatprep.subr.bf16.mxu1 %v8798_v1 }
 0x406   : > { %v2673_v15 = vpop.f32.mrb[4].mxu1 }
 0x407   : > { %v2674_v62 = vadd.f32 %v5798_v50, %v2673_v15  ;;  %v6129_v23 = vpop.f32.mrb[5].mxu1 }
 0x408   : > { %v2676_v17 = vpop.f32.mrb[6].mxu1 }
 0x409   : > { %v5800_v14 = vmul.f32 -1.442695, %v2674_v62  ;;  %v6130_v25 = vpop.f32.mrb[7].mxu1 }
 0x40b   : > { %6635 = vpow2.f32 %v5800_v14 }
 0x415   : > { %v6636_v0 = vpop.eup %6635 }
 0x416   : > { %v2682_v30 = vadd.f32 1.0, %v6636_v0 }
 0x418   : > { %6637 = vrcp.f32 %v2682_v30 }
 0x422   : > { %v6638_v2 = vpop.eup %6637 }
 0x423   : > { %v2688_v45 = vrot.slane %v6638_v2, %v10891_v52 }
 0x425   : > { %v2689_v38 = vmul.f32 %v2688_v45, %v10892_v22  ;;  %v2690_v49 = vmul.f32 %v2688_v45, %v10893_v63  ;;  %v2691_v16 = vmul.f32 %v2688_v45, %v10894_v47  ;;  %v2692_v48 = vmul.f32 %v2688_v45, %v10895_v13 }
 0x426   : > { %v2693_v8 = vmul.f32 %v2688_v45, %v10896_v46  ;;  %v2694_v57 = vmul.f32 %v2688_v45, %v10897_v26  ;;  %v2695_v41 = vmul.f32 %v2688_v45, %v10898_v35  ;;  %v2696_v43 = vmul.f32 %v2688_v45, %v10899_v19 }
 0x427   : > { %v2721_v39 = vpack.c.bf16 %v2690_v49, %v2689_v38  ;;  %v2722_v59 = vpack.c.bf16 %v2692_v48, %v2691_v16  ;;  %v2697_v32 = vmul.f32 %v2688_v45, %v10900_v7  ;;  %v2698_v44 = vmul.f32 %v2688_v45, %v10901_v29 }
 0x428   : > { %v2723_v6 = vpack.c.bf16 %v2694_v57, %v2693_v8  ;;  %v2724_v60 = vpack.c.bf16 %v2696_v43, %v2695_v41  ;;  %v2699_v40 = vmul.f32 %v2688_v45, %v10902_v54  ;;  %v2700_v12 = vmul.f32 %v2688_v45, %v10874_v53 }
 0x429   : > { %6135 = vmatprep.mubr.msk.bf16.mxu1 %vm824_vm0, %v2721_v39  ;;  %v2725_v37 = vpack.c.bf16 %v2698_v44, %v2697_v32  ;;  %v2701_v11 = vmul.f32 %v2688_v45, %v8681_v5  ;;  %v2702_v36 = vmul.f32 %v2688_v45, %v8693_v24  ;;  %v2703_v62 = vmul.f32 %v2688_v45, %v8704_v10 }
 0x42a   : > { %6136 = vmatmul.mubr.msk.bf16.vlgmr.msra.gmra.mrb[8].mxu1 %vm824_vm0, %v2722_v59  ;;  %v2726_v50 = vpack.c.bf16 %v2700_v12, %v2699_v40  ;;  %v2704_v23 = vmul.f32 %v2688_v45, %v8711_v56  ;;  %v2705_v17 = vmul.f32 %v2688_v45, %v8718_v20  ;;  %v2706_v14 = vmul.f32 %v2688_v45, %v8721_v58 }
 0x42b   : > { %6139 = vmatprep.mubr.msk.bf16.mxu1 %vm824_vm0, %v2723_v6  ;;  %v2727_v15 = vpack.c.bf16 %v2702_v36, %v2701_v11  ;;  %v2707_v5 = vmul.f32 %v2688_v45, %v8724_v55  ;;  %v2708_v24 = vmul.f32 %v2688_v45, %v8729_v31  ;;  %v2709_v0 = vmul.f32 %v2688_v45, %v8734_v61 }
 0x42c   : > { %v2728_v25 = vpack.c.bf16 %v2704_v23, %v2703_v62  ;;  %v2729_v53 = vpack.c.bf16 %v2706_v14, %v2705_v17  ;;  %v2710_v10 = vmul.f32 %v2688_v45, %v8739_v21  ;;  %v2711_v20 = vmul.f32 %v2688_v45, %v8744_v51 }
 0x42d   : > { %v2730_v30 = vpack.c.bf16 %v2708_v24, %v2707_v5  ;;  %v2712_v58 = vmul.f32 %v2688_v45, %v8749_v42  ;;  %v2713_v2 = vmul.f32 %v2688_v45, %v8754_v27  ;;  %v2714_v55 = vmul.f32 %v2688_v45, %v8759_v4 }
 0x42e   : > { %v2731_v56 = vpack.c.bf16 %v2710_v10, %v2709_v0  ;;  %v2715_v61 = vmul.f32 %v2688_v45, %v8764_v28  ;;  %v2716_v21 = vmul.f32 %v2688_v45, %v8769_v34  ;;  %v2717_v38 = vmul.f32 %v2688_v45, %v8774_v33  ;;  %v8885_v34 = vld [vmem:[%s10903_s10] ss:$0 sm:$0xff]  ;;  %s7043_s10 = sshll.u32 %s7105_s1, 4  ;;  %s7044_s10 = int_to_ptr.vmem [resolvable:$false] %s7043_s10 }
 0x42f   : > { %v2732_v22 = vpack.c.bf16 %v2712_v58, %v2711_v20  ;;  %v2733_v31 = vpack.c.bf16 %v2714_v55, %v2713_v2  ;;  %v2718_v51 = vmul.f32 %v2688_v45, %v8779_v3  ;;  %v2719_v27 = vmul.f32 %v2688_v45, %v8784_v18  ;;  %s7045_s3 = scalar_lea.vmem %s7044_s10, 32  ;;  %p7046_p0 = scmp.lt.s32.totalorder %s10613_s5, %s7044_s10 }
 0x430   : > { %v2734_v63 = vpack.c.bf16 %v2716_v21, %v2715_v61  ;;  %v2720_v4 = vmul.f32 %v2688_v45, %v8789_v9  ;;  %p7047_p1 = scmp.lt.s32.totalorder %s7045_s3, %s7039_s8 }
 0x431   : > { %v2735_v42 = vpack.c.bf16 %v2718_v51, %v2717_v38 }
 0x432   : > { %6140 = vmatmul.mubr.msk.bf16.gmra.mrb[12].mxu1 %vm824_vm0, %v2724_v60  ;;  %v2736_v49 = vpack.c.bf16 %v2720_v4, %v2719_v27  ;;  %p7048_p2 = por %p7047_p1, %p7046_p0 }
 0x433   : > { %6143 = vmatprep.mubr.msk.bf16.mxu1 %vm824_vm0, %v2725_v37 }
 0x434   : > { %p7049_p3 = pnand %p7048_p2, %p7042_p13 }
 0x43a   : > { %6144 = vmatmul.mubr.msk.bf16.gmra.mrb[16].mxu1 %vm824_vm0, %v2726_v50 }
 0x43b   : > { %6147 = vmatprep.mubr.msk.bf16.mxu1 %vm824_vm0, %v2727_v15 }
 0x442   : > { %6148 = vmatmul.mubr.msk.bf16.gmra.mrb[20].mxu1 %vm824_vm0, %v2728_v25 }
 0x443   : > { %6151 = vmatprep.mubr.msk.bf16.mxu1 %vm824_vm0, %v2729_v53 }
 0x44a   : > { %6152 = vmatmul.mubr.msk.bf16.gmra.mrb[24].mxu1 %vm824_vm0, %v2730_v30 }
 0x44b   : > { %6155 = vmatprep.mubr.msk.bf16.mxu1 %vm824_vm0, %v2731_v56 }
 0x452   : > { %6156 = vmatmul.mubr.msk.bf16.gmra.mrb[28].mxu1 %vm824_vm0, %v2732_v22 }
 0x453   : > { %6159 = vmatprep.mubr.msk.bf16.mxu1 %vm824_vm0, %v2733_v31 }
 0x45a   : > { %6160 = vmatmul.mubr.msk.bf16.gmra.mrb[32].mxu1 %vm824_vm0, %v2734_v63 }
 0x45b   : > { %6163 = vmatprep.mubr.msk.bf16.mxu1 %vm824_vm0, %v2735_v42 }
 0x462   : > { %6164 = vmatmul.mubr.msk.bf16.gmra.mrb[36].mxu1 %vm824_vm0, %v2736_v49 }
 0x463   : > { %6217 = vmatprep.mubr.msk.bf16.mxu1 %vm7104_vm2, %v8798_v1 }
 0x4fd   : > { %v6137_v28 = vpop.f32.mrb[8].mxu1 }
 0x4fe   : > { %v2827_v33 = vpop.f32.mrb[9].mxu1  ;;  %v2836_v47 = vadd.f32 %v6137_v28, %v8885_v34 }
 0x4ff   : > { %v6138_v3 = vpop.f32.mrb[10].mxu1  ;;  %v2828_v9 = vadd.f32 %v8885_v34, %v2827_v33 }
 0x500   : > { %v2839_v18 = vadd.f32 %v6138_v3, %v8885_v34  ;;  %v2830_v16 = vpop.f32.mrb[11].mxu1 }
 0x501   : > { %v2831_v45 = vadd.f32 %v8885_v34, %v2830_v16 }
 0x502   : > { %v2957_v13 = vpack.c.bf16 %v2839_v18, %v2836_v47 }
 0x503   : > { %v2956_v48 = vpack.c.bf16 %v2831_v45, %v2828_v9 }
 0x505   : > { %v6141_v46 = vpop.f32.mrb[12].mxu1  ;;  %6169 = vmatprep.mubr.msk.bf16.mxu0 %vm2980_vm5, %v2956_v48 }
 0x506   : > { %v2843_v8 = vpop.f32.mrb[13].mxu1  ;;  %6170 = vmatmul.mubr.msk.bf16.vlgmr.msra.gmra.mrb[32].mxu0 %vm2980_vm5, %v2957_v13  ;;  %v2852_v57 = vadd.f32 %v6141_v46, %v8885_v34 }
 0x507   : > { %v6142_v26 = vpop.f32.mrb[14].mxu1  ;;  %v2844_v6 = vadd.f32 %v8885_v34, %v2843_v8 }
 0x508   : > { %v2855_v39 = vadd.f32 %v6142_v26, %v8885_v34  ;;  %v2846_v59 = vpop.f32.mrb[15].mxu1 }
 0x509   : > { %v2847_v35 = vadd.f32 %v8885_v34, %v2846_v59 }
 0x50a   : > { %v2959_v41 = vpack.c.bf16 %v2855_v39, %v2852_v57 }
 0x50b   : > { %v2958_v19 = vpack.c.bf16 %v2847_v35, %v2844_v6 }
 0x50d   : > { %v6145_v43 = vpop.f32.mrb[16].mxu1  ;;  %6173 = vmatprep.mubr.msk.bf16.mxu0 %vm2980_vm5, %v2958_v19  ;;  %v8938_v19 = vld [vmem:[%s10665_s12] ss:$0 sm:$0xff] }
 0x50e   : > { %v2859_v7 = vpop.f32.mrb[17].mxu1  ;;  %6174 = vmatmul.mubr.msk.bf16.gmra.mrb[36].mxu0 %vm2980_vm5, %v2959_v41  ;;  %v2868_v29 = vadd.f32 %v6145_v43, %v8885_v34 }
 0x50f   : > { %v6146_v32 = vpop.f32.mrb[18].mxu1  ;;  %v2860_v37 = vadd.f32 %v8885_v34, %v2859_v7 }
 0x510   : > { %v2871_v44 = vadd.f32 %v6146_v32, %v8885_v34  ;;  %v2862_v60 = vpop.f32.mrb[19].mxu1 }
 0x511   : > { %v2863_v54 = vadd.f32 %v8885_v34, %v2862_v60 }
 0x512   : > { %v2961_v40 = vpack.c.bf16 %v2871_v44, %v2868_v29 }
 0x513   : > { %v2960_v12 = vpack.c.bf16 %v2863_v54, %v2860_v37 }
 0x515   : > { %v6149_v11 = vpop.f32.mrb[20].mxu1  ;;  %6177 = vmatprep.mubr.msk.bf16.mxu0 %vm2980_vm5, %v2960_v12 }
 0x516   : > { %v2875_v36 = vpop.f32.mrb[21].mxu1  ;;  %6178 = vmatmul.mubr.msk.bf16.gmra.mrb[40].mxu0 %vm2980_vm5, %v2961_v40  ;;  %v2884_v15 = vadd.f32 %v6149_v11, %v8885_v34 }
 0x517   : > { %v6150_v50 = vpop.f32.mrb[22].mxu1  ;;  %v2876_v17 = vadd.f32 %v8885_v34, %v2875_v36 }
 0x518   : > { %v2887_v62 = vadd.f32 %v6150_v50, %v8885_v34  ;;  %v2878_v23 = vpop.f32.mrb[23].mxu1 }
 0x519   : > { %v2879_v14 = vadd.f32 %v8885_v34, %v2878_v23 }
 0x51a   : > { %v2963_v25 = vpack.c.bf16 %v2887_v62, %v2884_v15 }
 0x51b   : > { %v2962_v53 = vpack.c.bf16 %v2879_v14, %v2876_v17 }
 0x51d   : > { %v6153_v5 = vpop.f32.mrb[24].mxu1  ;;  %6181 = vmatprep.mubr.msk.bf16.mxu0 %vm2980_vm5, %v2962_v53 }
 0x51e   : > { %v2891_v24 = vpop.f32.mrb[25].mxu1  ;;  %6182 = vmatmul.mubr.msk.bf16.gmra.mrb[44].mxu0 %vm2980_vm5, %v2963_v25  ;;  %v2900_v10 = vadd.f32 %v6153_v5, %v8885_v34 }
 0x51f   : > { %v6154_v0 = vpop.f32.mrb[26].mxu1  ;;  %v2892_v20 = vadd.f32 %v8885_v34, %v2891_v24 }
 0x520   : > { %v2903_v30 = vadd.f32 %v6154_v0, %v8885_v34  ;;  %v2894_v56 = vpop.f32.mrb[27].mxu1 }
 0x521   : > { %v2895_v58 = vadd.f32 %v8885_v34, %v2894_v56 }
 0x522   : > { %v2965_v2 = vpack.c.bf16 %v2903_v30, %v2900_v10 }
 0x523   : > { %v2964_v55 = vpack.c.bf16 %v2895_v58, %v2892_v20 }
 0x525   : > { %v6157_v22 = vpop.f32.mrb[28].mxu1  ;;  %6185 = vmatprep.mubr.msk.bf16.mxu0 %vm2980_vm5, %v2964_v55 }
 0x526   : > { %v2907_v31 = vpop.f32.mrb[29].mxu1  ;;  %6186 = vmatmul.mubr.msk.bf16.gmra.mrb[48].mxu0 %vm2980_vm5, %v2965_v2  ;;  %v2916_v21 = vadd.f32 %v6157_v22, %v8885_v34 }
 0x527   : > { %v6158_v61 = vpop.f32.mrb[30].mxu1  ;;  %v2908_v63 = vadd.f32 %v8885_v34, %v2907_v31 }
 0x528   : > { %v2919_v38 = vadd.f32 %v6158_v61, %v8885_v34  ;;  %v2910_v51 = vpop.f32.mrb[31].mxu1 }
 0x529   : > { %v2911_v42 = vadd.f32 %v8885_v34, %v2910_v51 }
 0x52a   : > { %v2967_v27 = vpack.c.bf16 %v2919_v38, %v2916_v21 }
 0x52b   : > { %v2966_v4 = vpack.c.bf16 %v2911_v42, %v2908_v63 }
 0x52d   : > { %v6161_v49 = vpop.f32.mrb[32].mxu1  ;;  %6189 = vmatprep.mubr.msk.bf16.mxu0 %vm2980_vm5, %v2966_v4 }
 0x52e   : > { %v2923_v28 = vpop.f32.mrb[33].mxu1  ;;  %6190 = vmatmul.mubr.msk.bf16.gmra.mrb[52].mxu0 %vm2980_vm5, %v2967_v27  ;;  %v2932_v3 = vadd.f32 %v6161_v49, %v8885_v34 }
 0x52f   : > { %v6162_v33 = vpop.f32.mrb[34].mxu1  ;;  %v2924_v16 = vadd.f32 %v8885_v34, %v2923_v28 }
 0x530   : > { %v2935_v47 = vadd.f32 %v6162_v33, %v8885_v34  ;;  %v2926_v18 = vpop.f32.mrb[35].mxu1  ;;  %v3501_v33 = vld [vmem:[%s10666_s13] sm:$0x7] }
 0x531   : > { %v2927_v9 = vadd.f32 %v8885_v34, %v2926_v18 }
 0x532   : > { %v2969_v45 = vpack.c.bf16 %v2935_v47, %v2932_v3  ;;  %v8991_v47 = vrot.slane %v3501_v33, %v10891_v52 }
 0x533   : > { %v2968_v13 = vpack.c.bf16 %v2927_v9, %v2924_v16  ;;  %v3611_v16 = vld [vmem:[#allocation3 + $0x1] sm:$0xff] }
 0x535   : > { %v6165_v48 = vpop.f32.mrb[36].mxu1  ;;  %6193 = vmatprep.mubr.msk.bf16.mxu0 %vm2980_vm5, %v2968_v13 }
 0x536   : > { %v2939_v46 = vpop.f32.mrb[37].mxu1  ;;  %6194 = vmatmul.mubr.msk.bf16.gmra.mrb[56].mxu0 %vm2980_vm5, %v2969_v45  ;;  %v2948_v26 = vadd.f32 %v6165_v48, %v8885_v34  ;;  %v10904_v48 = vld [vmem:[#allocation13_spill] sm:$0xff] }
 0x537   : > { %v6166_v8 = vpop.f32.mrb[38].mxu1  ;;  %v2940_v59 = vadd.f32 %v8885_v34, %v2939_v46  ;;  %v8995_v46 = vrot.slane %v3501_v33, %v10904_v48 }
 0x538   : > { %v2951_v57 = vadd.f32 %v6166_v8, %v8885_v34  ;;  %v2942_v39 = vpop.f32.mrb[39].mxu1  ;;  %v3612_v8 = vld [vmem:[#allocation3 + $0x9] sm:$0xff] }
 0x539   : > { %v2943_v6 = vadd.f32 %v8885_v34, %v2942_v39 }
 0x53a   : > { %v2971_v35 = vpack.c.bf16 %v2951_v57, %v2948_v26 }
 0x53b   : > { %v2970_v41 = vpack.c.bf16 %v2943_v6, %v2940_v59  ;;  %v3579_v6 = vmul.f32 %v8798_v1, %v8991_v47 }
 0x53d   : > { %6197 = vmatprep.mubr.msk.bf16.mxu0 %vm2980_vm5, %v2970_v41 }
 0x53e   : > { %6198 = vmatmul.mubr.msk.bf16.gmra.mrb[60].mxu0 %vm2980_vm5, %v2971_v35  ;;  %v3647_v35 = vmul.f32 %v8995_v46, %v3611_v16 }
 0x5d9   : > { %v6171_v43 = vpop.f32.mrb[32].mxu0 }
 0x5da   : > { %v8941_v7 = vadd.f32 %v6171_v43, %v8938_v19  ;;  %v3063_v32 = vpop.f32.mrb[33].mxu0 }
 0x5db   : > { %v8944_v29 = vadd.f32 %v8938_v19, %v3063_v32  ;;  %v6172_v34 = vpop.f32.mrb[34].mxu0  ;;  %v10905_v32 = vld [vmem:[#allocation16_spill] sm:$0xff] }
 0x5dc   : > { %v5837_v44 = vmul.f32 -1.442695, %v8941_v7  ;;  %v8948_v60 = vadd.f32 %v6172_v34, %v8938_v19  ;;  %v3066_v37 = vpop.f32.mrb[35].mxu0  ;;  %v9001_v34 = vrot.slane %v3501_v33, %v10905_v32 }
 0x5dd   : > { %v5835_v54 = vmul.f32 -1.442695, %v8944_v29  ;;  %v8952_v40 = vadd.f32 %v8938_v19, %v3066_v37 }
 0x5de   : > { %6639 = vpow2.f32 %v5837_v44  ;;  %v5838_v12 = vmul.f32 -1.442695, %v8948_v60  ;;  %v3648_v44 = vmul.f32 %v8995_v46, %v3612_v8 }
 0x5df   : > { %6641 = vpow2.f32 %v5835_v54  ;;  %v5836_v11 = vmul.f32 -1.442695, %v8952_v40 }
 0x5e0   : > { %6643 = vpow2.f32 %v5838_v12  ;;  %v3711_v12 = vld [vmem:[#allocation3 + $0x2] sm:$0xff] }
 0x5e1   : > { %6645 = vpow2.f32 %v5836_v11  ;;  %v6175_v36 = vpop.f32.mrb[36].mxu0  ;;  %v3712_v11 = vld [vmem:[#allocation3 + $0xa] sm:$0xff] }
 0x5e2   : > { %v8957_v50 = vadd.f32 %v6175_v36, %v8938_v19  ;;  %v3079_v15 = vpop.f32.mrb[37].mxu0 }
 0x5e3   : > { %v8960_v62 = vadd.f32 %v8938_v19, %v3079_v15  ;;  %v6176_v23 = vpop.f32.mrb[38].mxu0 }
 0x5e4   : > { %v5841_v17 = vmul.f32 -1.442695, %v8957_v50  ;;  %v8964_v14 = vadd.f32 %v6176_v23, %v8938_v19  ;;  %v3082_v25 = vpop.f32.mrb[39].mxu0  ;;  %v3502_v23 = vld [vmem:[%s10666_s13 + $0x4] sm:$0x7] }
 0x5e5   : > { %v5839_v53 = vmul.f32 -1.442695, %v8960_v62  ;;  %v8969_v24 = vadd.f32 %v8938_v19, %v3082_v25 }
 0x5e6   : > { %6647 = vpow2.f32 %v5841_v17  ;;  %v5842_v5 = vmul.f32 -1.442695, %v8964_v14  ;;  %v3679_v17 = vadd.f32 %v3647_v35, %v3579_v6 }
 0x5e7   : > { %6649 = vpow2.f32 %v5839_v53  ;;  %v5840_v61 = vmul.f32 -1.442695, %v8969_v24 }
 0x5e8   : > { %v6640_v0 = vpop.eup %6639  ;;  %6651 = vpow2.f32 %v5842_v5 }
 0x5e9   : > { %v6642_v10 = vpop.eup %6641  ;;  %v3288_v30 = vadd.f32 1.0, %v6640_v0  ;;  %v6179_v56 = vpop.f32.mrb[40].mxu0  ;;  %v3680_v0 = vadd.f32 %v3648_v44, %v3579_v6 }
 0x5ea   : > { %v6644_v20 = vpop.eup %6643  ;;  %v3286_v58 = vadd.f32 1.0, %v6642_v10  ;;  %v8972_v2 = vadd.f32 %v6179_v56, %v8938_v19  ;;  %v3095_v55 = vpop.f32.mrb[41].mxu0  ;;  %v3748_v10 = vmul.f32 %v9001_v34, %v3712_v11 }
 0x5eb   : > { %v6646_v22 = vpop.eup %6645  ;;  %6653 = vrcp.f32 %v3288_v30  ;;  %v3289_v31 = vadd.f32 1.0, %v6644_v20  ;;  %v8976_v21 = vadd.f32 %v8938_v19, %v3095_v55  ;;  %v6180_v38 = vpop.f32.mrb[42].mxu0  ;;  %v9032_v55 = vrot.slane %v3502_v23, %v10904_v48 }
 0x5ec   : > { %6655 = vrcp.f32 %v3286_v58  ;;  %v3287_v51 = vadd.f32 1.0, %v6646_v22  ;;  %v5845_v63 = vmul.f32 -1.442695, %v8972_v2  ;;  %v8980_v42 = vadd.f32 %v6180_v38, %v8938_v19  ;;  %v3098_v27 = vpop.f32.mrb[43].mxu0 }
 0x5ed   : > { %6657 = vrcp.f32 %v3289_v31  ;;  %v5843_v4 = vmul.f32 -1.442695, %v8976_v21  ;;  %v8984_v49 = vadd.f32 %v8938_v19, %v3098_v27  ;;  %v9041_v38 = vrot.slane %v3502_v23, %v10891_v52 }
 0x5ee   : > { %6659 = vrcp.f32 %v3287_v51  ;;  %v5846_v28 = vmul.f32 -1.442695, %v8980_v42  ;;  %v3780_v16 = vadd.f32 %v3748_v10, %v3680_v0 }
 0x5ef   : > { %6661 = vpow2.f32 %v5840_v61  ;;  %v5844_v45 = vmul.f32 -1.442695, %v8984_v49 }
 0x5f0   : > { %v6648_v3 = vpop.eup %6647  ;;  %6663 = vpow2.f32 %v5845_v63 }
 0x5f1   : > { %v6650_v18 = vpop.eup %6649  ;;  %v3292_v9 = vadd.f32 1.0, %v6648_v3  ;;  %6665 = vpow2.f32 %v5843_v4  ;;  %v6183_v13 = vpop.f32.mrb[44].mxu0  ;;  %v9052_v3 = vrot.slane %v3502_v23, %v10905_v32 }
 0x5f2   : > { %v3290_v26 = vadd.f32 1.0, %v6650_v18  ;;  %6667 = vpow2.f32 %v5846_v28  ;;  %v3111_v57 = vpop.f32.mrb[45].mxu0  ;;  %v6652_v59 = vpop.eup %6651 }
 0x5f3   : > { %6669 = vrcp.f32 %v3292_v9  ;;  %v6184_v39 = vpop.f32.mrb[46].mxu0  ;;  %v9036_v22 = vadd.f32 %v8938_v19, %v3111_v57 }
 0x5f4   : > { %6671 = vrcp.f32 %v3290_v26  ;;  %v3114_v41 = vpop.f32.mrb[47].mxu0  ;;  %v9064_v8 = vadd.f32 %v6184_v39, %v8938_v19 }
 0x5f5   : > { %v6654_v43 = vpop.eup %6653  ;;  %6673 = vpow2.f32 %v5844_v45  ;;  %v9070_v35 = vmul.f32 -1.442695, %v9036_v22  ;;  %v9075_v39 = vadd.f32 %v8938_v19, %v3114_v41 }
 0x5f6   : > { %v6656_v37 = vpop.eup %6655  ;;  %v3384_v54 = vmul.f32 %v6654_v43, %v8941_v7  ;;  %v3503_v7 = vld [vmem:[%s10666_s13 + $0x8] sm:$0x7] }
 0x5f7   : > { %v6658_v36 = vpop.eup %6657  ;;  %v9006_v15 = vmul.f32 %v6656_v37, %v8944_v29  ;;  %v3747_v29 = vmul.f32 %v9001_v34, %v3711_v12  ;;  %v9044_v51 = vrot.slane %v3503_v7, %v10891_v52  ;;  %v9047_v63 = vrot.slane %v3503_v7, %v10904_v48  ;;  %10908 = vst [vmem:[#allocation25_spill] sm:$0xff] %v9075_v39 }
 0x5f8   : > { %v6660_v1 = vpop.eup %6659  ;;  %3471 = vst [vmem:[#allocation3 + $0x31] sm:$0xff] %v3384_v54  ;;  %v9012_v25 = vmul.f32 %v6658_v36, %v8948_v60  ;;  %v9027_v60 = vadd.f32 %v6183_v13, %v8938_v19  ;;  %v9055_v18 = vrot.slane %v3503_v7, %v10905_v32 }
 0x5f9   : > { %v6662_v53 = vpop.eup %6661  ;;  %3469 = vst [vmem:[#allocation3 + $0x19] sm:$0xff] %v9006_v15  ;;  %v9020_v5 = vmul.f32 %v6660_v1, %v8952_v40  ;;  %v9023_v30 = vpop.f32.mrb[48].mxu0  ;;  %v3293_v40 = vadd.f32 1.0, %v6652_v59  ;;  %v3779_v33 = vadd.f32 %v3747_v29, %v3679_v17  ;;  %v4248_v36 = vmul.f32 %v9047_v63, %v3384_v54 }
 0x5fa   : > { %v6664_v56 = vpop.eup %6663  ;;  %3472 = vst [vmem:[#allocation3 + $0x39] sm:$0xff] %v9012_v25  ;;  %v9029_v20 = vpop.f32.mrb[49].mxu0  ;;  %v3291_v27 = vadd.f32 1.0, %v6662_v53  ;;  %v9061_v48 = vmul.f32 -1.442695, %v9027_v60  ;;  %v3649_v1 = vmul.f32 %v8995_v46, %v9006_v15  ;;  %v3947_v29 = vmul.f32 %v9032_v55, %v9006_v15 }
 0x5fb   : > { %v6666_v58 = vpop.eup %6665  ;;  %3470 = vst [vmem:[#allocation3 + $0x21] sm:$0xff] %v9020_v5  ;;  %v9038_v31 = vpop.f32.mrb[50].mxu0  ;;  %v3296_v13 = vadd.f32 1.0, %v6664_v56  ;;  %6675 = vrcp.f32 %v3293_v40  ;;  %v3950_v0 = vmul.f32 %v9032_v55, %v9012_v25  ;;  %v3650_v40 = vmul.f32 %v8995_v46, %v9020_v5 }
 0x5fc   : > { %10906 = vst [vmem:[#allocation28_spill] sm:$0xff] %v9038_v31  ;;  %v6668_v61 = vpop.eup %6667  ;;  %v9049_v4 = vpop.f32.mrb[51].mxu0  ;;  %v3294_v6 = vadd.f32 1.0, %v6666_v58  ;;  %6677 = vrcp.f32 %v3291_v27  ;;  %v9099_v58 = vmul.f32 %v9047_v63, %v9012_v25 }
 0x5fd   : > { %10907 = vst [vmem:[#allocation50_spill] sm:$0xff] %v9049_v4  ;;  %v6670_v28 = vpop.eup %6669  ;;  %v3297_v32 = vadd.f32 1.0, %v6668_v61  ;;  %6679 = vrcp.f32 %v3296_v13 }
 0x5fe   : > { %v6672_v9 = vpop.eup %6671  ;;  %v9058_v45 = vmul.f32 %v6670_v28, %v8957_v50  ;;  %v3651_v50 = vmul.f32 %v8995_v46, %v3384_v54  ;;  %6681 = vrcp.f32 %v3294_v6 }
 0x5ff   : > { %v6674_v26 = vpop.eup %6673  ;;  %v3547_v57 = vld [vmem:[#allocation3 + $0x30] sm:$0xff]  ;;  %v9067_v59 = vmul.f32 %v6672_v9, %v8960_v62  ;;  %v9079_v62 = vmul.f32 %v9032_v55, %v3384_v54  ;;  %6683 = vrcp.f32 %v3297_v32 }
 0x600   : > { %v3545_v43 = vld [vmem:[#allocation3 + $0x18] sm:$0xff]  ;;  %3475 = vst [vmem:[#allocation3 + $0x61] sm:$0xff] %v9058_v45  ;;  %v3583_v44 = vmul.f32 %v8991_v47, %v3547_v57  ;;  %v3295_v17 = vadd.f32 1.0, %v6674_v26 }
 0x601   : > { %v3581_v37 = vmul.f32 %v8991_v47, %v3545_v43  ;;  %v3847_v12 = vmul.f32 %v9041_v38, %v3545_v43  ;;  %3473 = vst [vmem:[#allocation3 + $0x49] sm:$0xff] %v9067_v59  ;;  %v9084_v11 = vpop.f32.mrb[52].mxu0  ;;  %v3715_v41 = vld [vmem:[#allocation3 + $0x32] sm:$0xff]  ;;  %v3948_v43 = vmul.f32 %v9032_v55, %v9020_v5 }
 0x602   : > { %10909 = vst [vmem:[#allocation14_spill] sm:$0xff] %v9084_v11  ;;  %v3546_v23 = vld [vmem:[#allocation3 + $0x20] sm:$0xff]  ;;  %v9089_v53 = vpop.f32.mrb[53].mxu0  ;;  %v3683_v15 = vadd.f32 %v3651_v50, %v3583_v44  ;;  %v3751_v9 = vmul.f32 %v9001_v34, %v3715_v41  ;;  %6685 = vrcp.f32 %v3295_v17  ;;  %v4148_v44 = vmul.f32 %v9044_v51, %v3547_v57 }
 0x603   : > { %10910 = vst [vmem:[#allocation15_spill] sm:$0xff] %v9089_v53  ;;  %v3879_v7 = vadd.f32 %v3847_v12, %v3779_v33  ;;  %v3713_v10 = vld [vmem:[#allocation3 + $0x1a] sm:$0xff]  ;;  %v9095_v56 = vpop.f32.mrb[54].mxu0  ;;  %v3681_v54 = vadd.f32 %v3649_v1, %v3581_v37  ;;  %v3714_v61 = vld [vmem:[#allocation3 + $0x22] sm:$0xff]  ;;  %v3582_v13 = vmul.f32 %v8991_v47, %v3546_v23  ;;  %v3848_v6 = vmul.f32 %v9041_v38, %v3546_v23 }
 0x604   : > { %10911 = vst [vmem:[#allocation22_spill] sm:$0xff] %v9095_v56  ;;  %v9103_v27 = vpop.f32.mrb[55].mxu0  ;;  %v3548_v33 = vld [vmem:[#allocation3 + $0x38] sm:$0xff]  ;;  %v3749_v26 = vmul.f32 %v9001_v34, %v3713_v10  ;;  %v3849_v37 = vmul.f32 %v9041_v38, %v3547_v57  ;;  %v3750_v12 = vmul.f32 %v9001_v34, %v3714_v61  ;;  %v4047_v50 = vmul.f32 %v9052_v3, %v3713_v10 }
 0x605   : > { %10912 = vst [vmem:[#allocation45_spill] sm:$0xff] %v9103_v27  ;;  %v3979_v28 = vadd.f32 %v3947_v29, %v3879_v7  ;;  %v3682_v32 = vadd.f32 %v3650_v40, %v3582_v13  ;;  %v3850_v1 = vmul.f32 %v9041_v38, %v3548_v33  ;;  %v3880_v29 = vadd.f32 %v3848_v6, %v3780_v16  ;;  %v6676_v27 = vpop.eup %6675  ;;  %v3716_v6 = vld [vmem:[#allocation3 + $0x3a] sm:$0xff] }
 0x606   : > { %v3781_v7 = vadd.f32 %v3749_v26, %v3681_v54  ;;  %v3783_v23 = vadd.f32 %v3751_v9, %v3683_v15  ;;  %v4049_v56 = vmul.f32 %v9052_v3, %v3715_v41  ;;  %v6678_v40 = vpop.eup %6677  ;;  %v4048_v10 = vmul.f32 %v9052_v3, %v3714_v61 }
 0x607   : > { %v3782_v5 = vadd.f32 %v3750_v12, %v3682_v32  ;;  %v4079_v17 = vadd.f32 %v4047_v50, %v3979_v28  ;;  %v3980_v11 = vadd.f32 %v3948_v43, %v3880_v29  ;;  %v4149_v16 = vmul.f32 %v9044_v51, %v3548_v33  ;;  %v6680_v28 = vpop.eup %6679 }
 0x608   : > { %v3549_v52 = vld [vmem:[#allocation3 + $0x48] sm:$0xff]  ;;  %v3881_v13 = vadd.f32 %v3849_v37, %v3781_v7  ;;  %v4348_v54 = vmul.f32 %v9055_v18, %v3715_v41  ;;  %v3951_v43 = vmul.f32 %v9032_v55, %v9067_v59  ;;  %v6682_v50 = vpop.eup %6681  ;;  %v3389_v41 = vmul.f32 %v6676_v27, %v8964_v14 }
 0x609   : > { %v9117_v53 = vpop.f32.mrb[56].mxu0  ;;  %v3851_v57 = vmul.f32 %v9041_v38, %v3549_v52  ;;  %v3882_v15 = vadd.f32 %v3850_v1, %v3782_v5  ;;  %v4180_v9 = vadd.f32 %v4148_v44, %v4079_v17  ;;  %v4080_v32 = vadd.f32 %v4048_v10, %v3980_v11  ;;  %v6684_v1 = vpop.eup %6683 }
 0x60a   : > { %10913 = vst [vmem:[#allocation24_spill] sm:$0xff] %v9117_v53  ;;  %v9121_v4 = vpop.f32.mrb[57].mxu0  ;;  %v3981_v61 = vadd.f32 %v9079_v62, %v3881_v13  ;;  %v4150_v29 = vmul.f32 %v9044_v51, %v3549_v52  ;;  %v9135_v44 = vmul.f32 %v6678_v40, %v8969_v24  ;;  %v3584_v10 = vmul.f32 %v8991_v47, %v3548_v33  ;;  %v3551_v13 = vld [vmem:[#allocation3 + $0x60] sm:$0xff] }
 0x60b   : > { %10914 = vst [vmem:[#allocation23_spill] sm:$0xff] %v9121_v4  ;;  %v9125_v26 = vpop.f32.mrb[58].mxu0  ;;  %v3883_v12 = vadd.f32 %v3851_v57, %v3783_v23  ;;  %v4280_v7 = vadd.f32 %v4248_v36, %v4180_v9  ;;  %v4181_v5 = vadd.f32 %v4149_v16, %v4080_v32  ;;  %v3982_v17 = vadd.f32 %v3950_v0, %v3882_v15  ;;  %v9155_v57 = vld [vmem:[%s10667_s14] ss:$0 sm:$0xff] }
 0x60c   : > { %10915 = vst [vmem:[#allocation38_spill] sm:$0xff] %v9125_v26  ;;  %v9130_v37 = vpop.f32.mrb[59].mxu0  ;;  %v4081_v23 = vadd.f32 %v4049_v56, %v3981_v61  ;;  %v4349_v62 = vmul.f32 %v9055_v18, %v3716_v6  ;;  %3476 = vst [vmem:[#allocation3 + $0x69] sm:$0xff] %v3389_v41  ;;  %v5850_v36 = vmul.f32 -1.442695, %v9064_v8  ;;  %v9145_v14 = vadd.f32 %v9023_v30, %v8938_v19  ;;  %v6686_v24 = vpop.eup %6685 }
 0x60d   : > { %10916 = vst [vmem:[#allocation21_spill] sm:$0xff] %v9130_v37  ;;  %v9137_v11 = vadd.f32 %v3951_v43, %v3883_v12  ;;  %3474 = vst [vmem:[#allocation3 + $0x51] sm:$0xff] %v9135_v44  ;;  %v4281_v27 = vadd.f32 %v9099_v58, %v4181_v5  ;;  %v4380_v40 = vadd.f32 %v4348_v54, %v4280_v7  ;;  %6687 = vpow2.f32 %v9061_v48 }
 0x60e   : > { %10917 = vst [vmem:[#allocation44_spill] sm:$0xff] %v9145_v14  ;;  %v4182_v56 = vadd.f32 %v4150_v29, %v4081_v23  ;;  %v4250_v0 = vmul.f32 %v9047_v63, %v9067_v59  ;;  %v3652_v33 = vmul.f32 %v8995_v46, %v9012_v25  ;;  %v9158_v30 = vmul.f32 %v6680_v28, %v8972_v2 }
 0x60f   : > { %v4381_v58 = vadd.f32 %v4349_v62, %v4281_v27  ;;  %v9164_v54 = vmul.f32 %v6682_v50, %v8976_v21  ;;  %v9167_v15 = vmul.f32 %v6684_v1, %v8980_v42  ;;  %v3587_v9 = vmul.f32 %v8991_v47, %v3551_v13 }
 0x610   : > { %v9161_v16 = vadd.f32 %v4250_v0, %v4182_v56  ;;  %v3684_v25 = vadd.f32 %v3652_v33, %v3584_v10  ;;  %3479 = vst [vmem:[#allocation3 + $0x91] sm:$0xff] %v9158_v30  ;;  %6689 = vpow2.f32 %v9070_v35  ;;  %v9173_v2 = vmul.f32 -1.442695, %v9075_v39 }
 0x611   : > { %v9176_v48 = vadd.f32 %v9155_v57, %v4380_v40  ;;  %v3585_v28 = vmul.f32 %v8991_v47, %v3549_v52  ;;  %3477 = vst [vmem:[#allocation3 + $0x79] sm:$0xff] %v9164_v54  ;;  %3480 = vst [vmem:[#allocation3 + $0x99] sm:$0xff] %v9167_v15  ;;  %6691 = vpow2.f32 %v5850_v36  ;;  %v9182_v21 = vmul.f32 -1.442695, %v9145_v14  ;;  %v9214_v40 = vpop.f32.mrb[60].mxu0 }
 0x612   : > { %v3752_v42 = vmul.f32 %v9001_v34, %v3716_v6  ;;  %v9186_v35 = vadd.f32 %v9155_v57, %v4381_v58  ;;  %v3655_v32 = vmul.f32 %v8995_v46, %v9058_v45  ;;  %v9192_v12 = vmul.f32 %v9032_v55, %v9058_v45  ;;  %10918 = vst [vmem:[#allocation43_spill] sm:$0xff] %v9214_v40  ;;  %v9222_v58 = vpop.f32.mrb[61].mxu0 }
 0x613   : > { %v4050_v52 = vmul.f32 %v9052_v3, %v3716_v6  ;;  %v4252_v43 = vmul.f32 %v9047_v63, %v9058_v45  ;;  %v3653_v61 = vmul.f32 %v8995_v46, %v9067_v59  ;;  %v9200_v50 = vmul.f32 %v6686_v24, %v8984_v49  ;;  %10919 = vst [vmem:[#allocation19_spill] sm:$0xff] %v9222_v58 }
 0x614   : > { %v3784_v7 = vadd.f32 %v3752_v42, %v3684_v25  ;;  %v3687_v29 = vadd.f32 %v3655_v32, %v3587_v9  ;;  %v3853_v1 = vmul.f32 %v9041_v38, %v3551_v13  ;;  %v4152_v5 = vmul.f32 %v9044_v51, %v3551_v13  ;;  %v3550_v23 = vld [vmem:[#allocation3 + $0x50] sm:$0xff] }
 0x615   : > { %v3717_v10 = vld [vmem:[#allocation3 + $0x4a] sm:$0xff]  ;;  %v5868_v62 = vmul.f32 -1.442695, %v9176_v48  ;;  %v3685_v6 = vadd.f32 %v3653_v61, %v3585_v28  ;;  %v3656_v36 = vmul.f32 %v8995_v46, %v3389_v41  ;;  %v9207_v45 = vmul.f32 %v9032_v55, %v3389_v41  ;;  %3478 = vst [vmem:[#allocation3 + $0x81] sm:$0xff] %v9200_v50  ;;  %v3718_v9 = vld [vmem:[#allocation3 + $0x52] sm:$0xff] }
 0x616   : > { %v5869_v49 = vmul.f32 -1.442695, %v9186_v35  ;;  %v4253_v59 = vmul.f32 %v9047_v63, %v3389_v41  ;;  %v3654_v24 = vmul.f32 %v8995_v46, %v9135_v44  ;;  %v4082_v27 = vadd.f32 %v4050_v52, %v3982_v17  ;;  %v3719_v41 = vld [vmem:[#allocation3 + $0x62] sm:$0xff] }
 0x617   : > { %v3753_v13 = vmul.f32 %v9001_v34, %v3717_v10  ;;  %v3852_v56 = vmul.f32 %v9041_v38, %v3550_v23  ;;  %v3952_v0 = vmul.f32 %v9032_v55, %v9135_v44  ;;  %v4251_v33 = vmul.f32 %v9047_v63, %v9135_v44  ;;  %v9224_v25 = vpop.eup %6687  ;;  %v3552_v52 = vld [vmem:[#allocation3 + $0x68] sm:$0xff] }
 0x618   : > { %v4051_v17 = vmul.f32 %v9052_v3, %v3717_v10  ;;  %v4151_v28 = vmul.f32 %v9044_v51, %v3550_v23  ;;  %v9230_v42 = vmul.f32 %v9047_v63, %v9158_v30  ;;  %v3955_v32 = vmul.f32 %v9032_v55, %v9164_v54 }
 0x619   : > { %6693 = vpow2.f32 %v5868_v62  ;;  %v3785_v44 = vadd.f32 %v3753_v13, %v3685_v6  ;;  %v3884_v61 = vadd.f32 %v3852_v56, %v3784_v7  ;;  %v4350_v58 = vmul.f32 %v9055_v18, %v3717_v10  ;;  %v3553_v56 = vld [vmem:[#allocation3 + $0x78] sm:$0xff] }
 0x61a   : > { %v9235_v40 = vpop.eup %6689  ;;  %6695 = vpow2.f32 %v5869_v49  ;;  %v3586_v37 = vmul.f32 %v8991_v47, %v3550_v23  ;;  %v4083_v26 = vadd.f32 %v4051_v17, %v9137_v11  ;;  %v4183_v4 = vadd.f32 %v4151_v28, %v4082_v27  ;;  %v9250_v28 = vpop.f32.mrb[62].mxu0 }
 0x61b   : > { %v9239_v53 = vpop.eup %6691  ;;  %v3755_v14 = vmul.f32 %v9001_v34, %v3719_v41  ;;  %v3984_v39 = vadd.f32 %v3952_v0, %v3884_v61  ;;  %v4052_v62 = vmul.f32 %v9052_v3, %v3718_v9  ;;  %v4382_v6 = vadd.f32 %v4350_v58, %v9161_v16  ;;  %v9253_v31 = vpop.f32.mrb[63].mxu0 }
 0x61c   : > { %v3588_v7 = vmul.f32 %v8991_v47, %v3552_v52  ;;  %v4184_v10 = vadd.f32 %v4152_v5, %v4083_v26  ;;  %v4283_v13 = vadd.f32 %v4251_v33, %v4183_v4  ;;  %v4351_v49 = vmul.f32 %v9055_v18, %v3718_v9  ;;  %v3720_v4 = vld [vmem:[#allocation3 + $0x6a] sm:$0xff] }
 0x61d   : > { %v4153_v23 = vmul.f32 %v9044_v51, %v3552_v52  ;;  %v3885_v11 = vadd.f32 %v3853_v1, %v3785_v44  ;;  %v4084_v27 = vadd.f32 %v4052_v62, %v3984_v39  ;;  %v9248_v17 = vadd.f32 %v9155_v57, %v4382_v6 }
 0x61e   : > { %v4352_v0 = vmul.f32 %v9055_v18, %v3719_v41  ;;  %v3686_v61 = vadd.f32 %v3654_v24, %v3586_v37  ;;  %v4284_v16 = vadd.f32 %v4252_v43, %v4184_v10  ;;  %v4383_v58 = vadd.f32 %v4351_v49, %v4283_v13 }
 0x61f   : > { %v3787_v26 = vadd.f32 %v3755_v14, %v3687_v29  ;;  %v4185_v5 = vadd.f32 %v4153_v23, %v4084_v27  ;;  %v5870_v33 = vmul.f32 -1.442695, %v9248_v17  ;;  %v3855_v1 = vmul.f32 %v9041_v38, %v3553_v56 }
 0x620   : > { %v4053_v39 = vmul.f32 %v9052_v3, %v3719_v41  ;;  %v3754_v44 = vmul.f32 %v9001_v34, %v3718_v9  ;;  %v4384_v62 = vadd.f32 %v4352_v0, %v4284_v16  ;;  %v9260_v6 = vadd.f32 %v9155_v57, %v4383_v58  ;;  %v3554_v58 = vld [vmem:[#allocation3 + $0x80] sm:$0xff] }
 0x621   : > { %v3688_v37 = vadd.f32 %v3656_v36, %v3588_v7  ;;  %v4285_v43 = vadd.f32 %v4253_v59, %v4185_v5  ;;  %v3887_v24 = vadd.f32 %v3855_v1, %v3787_v26  ;;  %v3985_v10 = vadd.f32 %v9192_v12, %v3885_v11  ;;  %v9279_v5 = vld [vmem:[#allocation3 + $0x90] sm:$0xff] }
 0x622   : > { %v4353_v14 = vmul.f32 %v9055_v18, %v3720_v4  ;;  %v3786_v29 = vadd.f32 %v3754_v44, %v3686_v61  ;;  %v9265_v13 = vadd.f32 %v9155_v57, %v4384_v62  ;;  %6697 = vpow2.f32 %v5870_v33  ;;  %v3721_v33 = vld [vmem:[#allocation3 + $0x7a] sm:$0xff] }
 0x623   : > { %v6694_v49 = vpop.eup %6693  ;;  %v3589_v41 = vmul.f32 %v8991_v47, %v3553_v56  ;;  %v3987_v9 = vadd.f32 %v3955_v32, %v3887_v24  ;;  %v4085_v23 = vadd.f32 %v4053_v39, %v3985_v10  ;;  %v4154_v27 = vmul.f32 %v9044_v51, %v3553_v56 }
 0x624   : > { %v6696_v0 = vpop.eup %6695  ;;  %v3854_v36 = vmul.f32 %v9041_v38, %v3552_v52  ;;  %v4385_v59 = vadd.f32 %v4353_v14, %v4285_v43  ;;  %v5871_v12 = vmul.f32 -1.442695, %v9260_v6  ;;  %v3657_v7 = vmul.f32 %v8995_v46, %v9164_v54 }
 0x625   : > { %v3756_v11 = vmul.f32 %v9001_v34, %v3720_v4  ;;  %v4186_v61 = vadd.f32 %v4154_v27, %v4085_v23  ;;  %v4254_v16 = vmul.f32 %v9047_v63, %v9164_v54  ;;  %v3300_v32 = vadd.f32 1.0, %v9224_v25  ;;  %v9295_v23 = vld [vmem:[#allocation3 + $0x98] sm:$0xff] }
 0x626   : > { %v4054_v56 = vmul.f32 %v9052_v3, %v3720_v4  ;;  %v3886_v26 = vadd.f32 %v3854_v36, %v3786_v29  ;;  %v5872_v52 = vmul.f32 -1.442695, %v9265_v13  ;;  %6699 = vpow2.f32 %v9173_v2  ;;  %v3722_v29 = vld [vmem:[#allocation3 + $0x82] sm:$0xff] }
 0x627   : > { %v4547_v1 = vadd.f32 1.0, %v6696_v0  ;;  %v3788_v39 = vadd.f32 %v3756_v11, %v3688_v37  ;;  %v3689_v44 = vadd.f32 %v3657_v7, %v3589_v41  ;;  %v4286_v62 = vadd.f32 %v4254_v16, %v4186_v61 }
 0x628   : > { %v9283_v43 = vadd.f32 %v9155_v57, %v4385_v59  ;;  %6701 = vpow2.f32 %v5871_v12  ;;  %v3590_v54 = vmul.f32 %v8991_v47, %v3554_v58  ;;  %v3658_v25 = vmul.f32 %v8995_v46, %v9200_v50 }
 0x629   : > { %v4546_v4 = vadd.f32 1.0, %v6694_v49  ;;  %v3857_v24 = vmul.f32 %v9041_v38, %v9279_v5  ;;  %v3757_v10 = vmul.f32 %v9001_v34, %v3721_v33  ;;  %v3856_v2 = vmul.f32 %v9041_v38, %v3554_v58 }
 0x62a   : > { %6703 = vpow2.f32 %v5872_v52  ;;  %v4156_v37 = vmul.f32 %v9044_v51, %v9279_v5  ;;  %v3690_v14 = vadd.f32 %v3658_v25, %v3590_v54  ;;  %v3986_v41 = vadd.f32 %v9207_v45, %v3886_v26 }
 0x62b   : > { %v3789_v27 = vadd.f32 %v3757_v10, %v3689_v44  ;;  %v3888_v0 = vadd.f32 %v3856_v2, %v3788_v39  ;;  %v3956_v49 = vmul.f32 %v9032_v55, %v9200_v50  ;;  %v4055_v36 = vmul.f32 %v9052_v3, %v3721_v33 }
 0x62c   : > { %v6698_v59 = vpop.eup %6697  ;;  %6705 = vrcp.f32 %v4547_v1  ;;  %v5873_v12 = vmul.f32 -1.442695, %v9283_v43  ;;  %v4086_v7 = vadd.f32 %v4054_v56, %v3986_v41  ;;  %v4155_v11 = vmul.f32 %v9044_v51, %v3554_v58 }
 0x62d   : > { %v3758_v61 = vmul.f32 %v9001_v34, %v3722_v29  ;;  %v3988_v16 = vadd.f32 %v3956_v49, %v3888_v0  ;;  %v4056_v45 = vmul.f32 %v9052_v3, %v3722_v29  ;;  %v4087_v26 = vadd.f32 %v4055_v36, %v3987_v9 }
 0x62e   : > { %v4157_v52 = vmul.f32 %v9044_v51, %v9295_v23  ;;  %v3889_v39 = vadd.f32 %v3857_v24, %v3789_v27  ;;  %v4187_v44 = vadd.f32 %v4155_v11, %v4086_v7  ;;  %v4255_v54 = vmul.f32 %v9047_v63, %v9200_v50 }
 0x62f   : > { %v4548_v1 = vadd.f32 1.0, %v6698_v59  ;;  %v3790_v25 = vadd.f32 %v3758_v61, %v3690_v14  ;;  %v4088_v10 = vadd.f32 %v4056_v45, %v3988_v16  ;;  %v4188_v56 = vadd.f32 %v4156_v37, %v4087_v26  ;;  %v3724_v26 = vld [vmem:[#allocation3 + $0x9a] sm:$0xff] }
 0x630   : > { %v6700_v2 = vpop.eup %6699  ;;  %v3957_v58 = vmul.f32 %v9032_v55, %v9158_v30  ;;  %v4257_v41 = vmul.f32 %v9047_v63, %v9167_v15  ;;  %v4287_v9 = vadd.f32 %v4255_v54, %v4187_v44  ;;  %6707 = vrcp.f32 %v3300_v32 }
 0x631   : > { %6709 = vpow2.f32 %v5873_v12  ;;  %v3858_v24 = vmul.f32 %v9041_v38, %v9295_v23  ;;  %v4189_v27 = vadd.f32 %v4157_v52, %v4088_v10  ;;  %v4288_v50 = vadd.f32 %v9230_v42, %v4188_v56 }
 0x632   : > { %v6702_v0 = vpop.eup %6701  ;;  %6711 = vrcp.f32 %v4546_v4  ;;  %v4354_v37 = vmul.f32 %v9055_v18, %v3721_v33  ;;  %v3298_v14 = vadd.f32 1.0, %v9235_v40  ;;  %v9317_v49 = vadd.f32 %v3957_v58, %v3889_v39 }
 0x633   : > { %6713 = vrcp.f32 %v4548_v1  ;;  %v3890_v36 = vadd.f32 %v3858_v24, %v3790_v25  ;;  %v4289_v59 = vadd.f32 %v4257_v41, %v4189_v27  ;;  %v3301_v32 = vadd.f32 1.0, %v9239_v53  ;;  %v3723_v53 = vld [vmem:[#allocation3 + $0x92] sm:$0xff] }
 0x634   : > { %v6704_v12 = vpop.eup %6703  ;;  %v4386_v7 = vadd.f32 %v4354_v37, %v4286_v62  ;;  %6715 = vrcp.f32 %v3298_v14  ;;  %v9322_v11 = vadd.f32 %v8938_v19, %v9029_v20  ;;  %v4549_v42 = vadd.f32 1.0, %v6702_v0 }
 0x635   : > { %v3958_v33 = vmul.f32 %v9032_v55, %v9167_v15  ;;  %v4355_v40 = vmul.f32 %v9055_v18, %v3722_v29  ;;  %6717 = vrcp.f32 %v3301_v32  ;;  %v4550_v61 = vadd.f32 1.0, %v6704_v12 }
 0x636   : > { %v6706_v4 = vpop.eup %6705  ;;  %6719 = vpow2.f32 %v9182_v21  ;;  %v9331_v62 = vadd.f32 %v9155_v57, %v4386_v7  ;;  %v3299_v20 = vadd.f32 1.0, %v6700_v2  ;;  %v5851_v52 = vmul.f32 -1.442695, %v9322_v11 }
 0x637   : > { %v4387_v16 = vadd.f32 %v4355_v40, %v4287_v9  ;;  %v9327_v45 = vadd.f32 %v3958_v33, %v3890_v36  ;;  %6721 = vrcp.f32 %v4549_v42  ;;  %v4356_v29 = vmul.f32 %v9055_v18, %v3723_v53  ;;  %v10922_v36 = vld [vmem:[#allocation28_spill] sm:$0xff] }
 0x638   : > { %6723 = vrcp.f32 %v4550_v61  ;;  %v4357_v25 = vmul.f32 %v9055_v18, %v3724_v26  ;;  %v5874_v10 = vmul.f32 -1.442695, %v9331_v62  ;;  %v9344_v2 = vmul.f32 %v6706_v4, %v9186_v35 }
 0x639   : > { %v9336_v54 = vadd.f32 %v9155_v57, %v4387_v16  ;;  %6725 = vrcp.f32 %v3299_v20  ;;  %v4388_v58 = vadd.f32 %v4356_v29, %v4288_v50  ;;  %v3591_v0 = vmul.f32 %v8991_v47, %v9279_v5 }
 0x63a   : > { %v6708_v39 = vpop.eup %6707  ;;  %10920 = vst [vmem:[#allocation42_spill] sm:$0xff] %v9344_v2  ;;  %6727 = vpow2.f32 %v5851_v52  ;;  %v4389_v24 = vadd.f32 %v4357_v25, %v4289_v59  ;;  %v3592_v35 = vmul.f32 %v8991_v47, %v9295_v23  ;;  %v9363_v59 = vadd.f32 %v10922_v36, %v8938_v19  ;;  %v10929_v36 = vld [vmem:[#allocation22_spill] sm:$0xff] }
 0x63b   : > { %v6710_v44 = vpop.eup %6709  ;;  %v9339_v1 = vmul.f32 %v6708_v39, %v9027_v60  ;;  %v5875_v37 = vmul.f32 -1.442695, %v9336_v54  ;;  %6729 = vpow2.f32 %v5874_v10  ;;  %v3659_v32 = vmul.f32 %v8995_v46, %v9158_v30  ;;  %v10925_v39 = vld [vmem:[#allocation14_spill] sm:$0xff] }
 0x63c   : > { %v6712_v21 = vpop.eup %6711  ;;  %v4551_v9 = vadd.f32 1.0, %v6710_v44  ;;  %v9372_v23 = vadd.f32 %v9155_v57, %v4388_v58  ;;  %v9379_v12 = vadd.f32 %v9155_v57, %v4389_v24  ;;  %v3759_v33 = vmul.f32 %v9001_v34, %v3723_v53 }
 0x63d   : > { %v6714_v56 = vpop.eup %6713  ;;  %3483 = vst [vmem:[#allocation3 + $0xc1] sm:$0xff] %v9339_v1  ;;  %v9348_v60 = vmul.f32 %v6712_v21, %v9176_v48  ;;  %v3691_v30 = vadd.f32 %v3659_v32, %v3591_v0  ;;  %v3760_v16 = vmul.f32 %v9001_v34, %v3724_v26  ;;  %v4057_v20 = vmul.f32 %v9052_v3, %v3723_v53 }
 0x63e   : > { %v6716_v41 = vpop.eup %6715  ;;  %6731 = vrcp.f32 %v4551_v9  ;;  %v5876_v52 = vmul.f32 -1.442695, %v9372_v23  ;;  %v9393_v44 = vadd.f32 %v10925_v39, %v8938_v19  ;;  %v4058_v10 = vmul.f32 %v9052_v3, %v3724_v26  ;;  %v10927_v9 = vld [vmem:[#allocation25_spill] sm:$0xff] }
 0x63f   : > { %v6718_v27 = vpop.eup %6717  ;;  %10921 = vst [vmem:[#allocation37_spill] sm:$0xff] %v9348_v60  ;;  %v9354_v14 = vmul.f32 %v6716_v41, %v9036_v22  ;;  %v4674_v5 = vadd.f32 %v9344_v2, %v9348_v60  ;;  %v3660_v22 = vmul.f32 %v8995_v46, %v9167_v15  ;;  %6733 = vpow2.f32 %v5875_v37  ;;  %v10924_v15 = vld [vmem:[#allocation50_spill] sm:$0xff] }
 0x640   : > { %v9359_v50 = vmul.f32 %v6718_v27, %v9064_v8  ;;  %v6720_v48 = vpop.eup %6719  ;;  %v9376_v8 = vmul.f32 %v6714_v56, %v9248_v17  ;;  %v9385_v40 = vadd.f32 %v8938_v19, %v10924_v15  ;;  %v5854_v17 = vmul.f32 -1.442695, %v9363_v59 }
 0x641   : > { %3481 = vst [vmem:[#allocation3 + $0xa9] sm:$0xff] %v9354_v14  ;;  %v3304_v7 = vadd.f32 1.0, %v6720_v48  ;;  %v6722_v42 = vpop.eup %6721  ;;  %v3692_v4 = vadd.f32 %v3660_v22, %v3592_v35  ;;  %v5877_v56 = vmul.f32 -1.442695, %v9379_v12  ;;  %v3791_v41 = vadd.f32 %v3759_v33, %v3691_v30  ;;  %v10928_v35 = vld [vmem:[#allocation15_spill] sm:$0xff] }
 0x642   : > { %10923 = vst [vmem:[#allocation33_spill] sm:$0xff] %v9376_v8  ;;  %3484 = vst [vmem:[#allocation3 + $0xc9] sm:$0xff] %v9359_v50  ;;  %v6724_v61 = vpop.eup %6723  ;;  %v9396_v21 = vmul.f32 %v6722_v42, %v9260_v6  ;;  %v4675_v25 = vadd.f32 %v4674_v5, %v9376_v8  ;;  %v4089_v53 = vadd.f32 %v4057_v20, %v9317_v49  ;;  %v5852_v27 = vmul.f32 -1.442695, %v9385_v40 }
 0x643   : > { %6735 = vrcp.f32 %v3304_v7  ;;  %v6726_v29 = vpop.eup %6725  ;;  %v9406_v0 = vadd.f32 %v3760_v16, %v3692_v4  ;;  %v9409_v6 = vadd.f32 %v4058_v10, %v9327_v45  ;;  %v9413_v26 = vadd.f32 %v8938_v19, %v10928_v35 }
 0x644   : > { %10926 = vst [vmem:[#allocation46_spill] sm:$0xff] %v9396_v21  ;;  %v6728_v58 = vpop.eup %6727  ;;  %v9403_v24 = vmul.f32 %v6726_v29, %v10927_v9  ;;  %v9417_v48 = vadd.f32 %v10929_v36, %v8938_v19  ;;  %6737 = vpow2.f32 %v5876_v52  ;;  %v5857_v32 = vmul.f32 -1.442695, %v9393_v44  ;;  %v10931_v9 = vld [vmem:[#allocation44_spill] sm:$0xff] }
 0x645   : > { %v6730_v22 = vpop.eup %6729  ;;  %v9424_v45 = vmul.f32 %v6724_v61, %v9265_v13  ;;  %v4676_v7 = vadd.f32 %v4675_v25, %v9396_v21  ;;  %6739 = vpow2.f32 %v5877_v56  ;;  %v3302_v42 = vadd.f32 1.0, %v6728_v58 }
 0x646   : > { %3482 = vst [vmem:[#allocation3 + $0xb1] sm:$0xff] %v9403_v24  ;;  %v3959_v19 = vmul.f32 %v9032_v55, %v9354_v14  ;;  %v4258_v15 = vmul.f32 %v9047_v63, %v9354_v14  ;;  %6741 = vpow2.f32 %v5854_v17  ;;  %v5855_v20 = vmul.f32 -1.442695, %v9413_v26 }
 0x647   : > { %10930 = vst [vmem:[#allocation47_spill] sm:$0xff] %v9424_v45  ;;  %v5858_v13 = vmul.f32 -1.442695, %v9417_v48  ;;  %v4552_v52 = vadd.f32 1.0, %v6730_v22  ;;  %6743 = vpow2.f32 %v5852_v27  ;;  %v9436_v10 = vmul.f32 %v8995_v46, %v9339_v1 }
 0x648   : > { %v3557_v37 = vld [vmem:[#allocation3 + $0xa8] sm:$0xff]  ;;  %v6732_v4 = vpop.eup %6731  ;;  %v9440_v56 = vmul.f32 %v9032_v55, %v9339_v1  ;;  %v3661_v17 = vmul.f32 %v8995_v46, %v9354_v14  ;;  %6745 = vrcp.f32 %v3302_v42  ;;  %v9445_v58 = vadd.f32 %v4676_v7, %v9424_v45 }
 0x649   : > { %v3859_v49 = vmul.f32 %v9041_v38, %v3557_v37  ;;  %v4158_v5 = vmul.f32 %v9044_v51, %v3557_v37  ;;  %v3593_v16 = vmul.f32 %v8991_v47, %v3557_v37  ;;  %v6734_v61 = vpop.eup %6733  ;;  %6747 = vpow2.f32 %v5857_v32 }
 0x64a   : > { %v4553_v37 = vadd.f32 1.0, %v6734_v61  ;;  %v9453_v35 = vmul.f32 %v6732_v4, %v9283_v43  ;;  %6749 = vpow2.f32 %v5855_v20  ;;  %v3662_v22 = vmul.f32 %v8995_v46, %v9403_v24  ;;  %v9462_v43 = vld [vmem:[#allocation3 + $0xc8] sm:$0xff] }
 0x64b   : > { %v3891_v30 = vadd.f32 %v3859_v49, %v3791_v41  ;;  %v4190_v33 = vadd.f32 %v4158_v5, %v4089_v53  ;;  %v3559_v41 = vld [vmem:[#allocation3 + $0xc0] sm:$0xff]  ;;  %v4260_v53 = vmul.f32 %v9047_v63, %v9339_v1  ;;  %v3693_v36 = vadd.f32 %v3661_v17, %v3593_v16 }
 0x64c   : > { %10932 = vst [vmem:[#allocation48_spill] sm:$0xff] %v9453_v35  ;;  %6751 = vrcp.f32 %v4552_v52  ;;  %v3861_v32 = vmul.f32 %v9041_v38, %v3559_v41  ;;  %v4160_v7 = vmul.f32 %v9044_v51, %v3559_v41  ;;  %v3960_v4 = vmul.f32 %v9032_v55, %v9403_v24  ;;  %v9469_v61 = vld [vmem:[#allocation3 + $0xc2] sm:$0xff] }
 0x64d   : > { %v3991_v39 = vadd.f32 %v3959_v19, %v3891_v30  ;;  %v4290_v29 = vadd.f32 %v4258_v15, %v4190_v33  ;;  %v6736_v25 = vpop.eup %6735  ;;  %v3558_v49 = vld [vmem:[#allocation3 + $0xb0] sm:$0xff]  ;;  %6753 = vpow2.f32 %v5858_v13  ;;  %v4161_v45 = vmul.f32 %v9044_v51, %v9462_v43 }
 0x64e   : > { %v9450_v27 = vmul.f32 %v6736_v25, %v10931_v9  ;;  %v3725_v5 = vld [vmem:[#allocation3 + $0xaa] sm:$0xff]  ;;  %v3594_v14 = vmul.f32 %v8991_v47, %v3558_v49  ;;  %v3726_v42 = vld [vmem:[#allocation3 + $0xb2] sm:$0xff]  ;;  %v3860_v30 = vmul.f32 %v9041_v38, %v3558_v49  ;;  %v6738_v33 = vpop.eup %6737  ;;  %v4159_v16 = vmul.f32 %v9044_v51, %v3558_v49 }
 0x64f   : > { %v3761_v1 = vmul.f32 %v9001_v34, %v3725_v5  ;;  %v4059_v19 = vmul.f32 %v9052_v3, %v3725_v5  ;;  %v6740_v20 = vpop.eup %6739  ;;  %v4358_v9 = vmul.f32 %v9055_v18, %v3725_v5  ;;  %v4259_v49 = vmul.f32 %v9047_v63, %v9403_v24 }
 0x650   : > { %3487 = vst [vmem:[#allocation3 + $0xf1] sm:$0xff] %v9450_v27  ;;  %v3694_v15 = vadd.f32 %v3662_v22, %v3594_v14  ;;  %v3892_v25 = vadd.f32 %v3860_v30, %v9406_v0  ;;  %v3762_v14 = vmul.f32 %v9001_v34, %v3726_v42  ;;  %v4191_v22 = vadd.f32 %v4159_v16, %v9409_v6  ;;  %v6742_v13 = vpop.eup %6741 }
 0x651   : > { %v3793_v52 = vadd.f32 %v3761_v1, %v3693_v36  ;;  %v4091_v17 = vadd.f32 %v4059_v19, %v3991_v39  ;;  %v4060_v8 = vmul.f32 %v9052_v3, %v3726_v42  ;;  %v4390_v1 = vadd.f32 %v4358_v9, %v4290_v29  ;;  %v6744_v0 = vpop.eup %6743 }
 0x652   : > { %v3992_v21 = vadd.f32 %v3960_v4, %v3892_v25  ;;  %v4360_v39 = vmul.f32 %v9055_v18, %v9469_v61  ;;  %v3794_v5 = vadd.f32 %v3762_v14, %v3694_v15  ;;  %v4291_v30 = vadd.f32 %v4259_v49, %v4191_v22  ;;  %v6746_v2 = vpop.eup %6745 }
 0x653   : > { %v4192_v36 = vadd.f32 %v4160_v7, %v4091_v17  ;;  %v4359_v19 = vmul.f32 %v9055_v18, %v3726_v42  ;;  %v3893_v60 = vadd.f32 %v3861_v32, %v3793_v52  ;;  %v9484_v24 = vadd.f32 %v9155_v57, %v4390_v1  ;;  %v6748_v4 = vpop.eup %6747 }
 0x654   : > { %v4092_v6 = vadd.f32 %v4060_v8, %v3992_v21  ;;  %v4554_v25 = vadd.f32 1.0, %v6738_v33  ;;  %v3595_v7 = vmul.f32 %v8991_v47, %v3559_v41  ;;  %v3862_v29 = vmul.f32 %v9041_v38, %v9462_v43  ;;  %v6750_v9 = vpop.eup %6749 }
 0x655   : > { %v4292_v16 = vadd.f32 %v4260_v53, %v4192_v36  ;;  %v4391_v17 = vadd.f32 %v4359_v19, %v4291_v30  ;;  %v4261_v15 = vmul.f32 %v9047_v63, %v9359_v50  ;;  %v3305_v32 = vadd.f32 1.0, %v6742_v13  ;;  %v9491_v53 = vld [vmem:[#allocation3 + $0xca] sm:$0xff] }
 0x656   : > { %v4193_v42 = vadd.f32 %v4161_v45, %v4092_v6  ;;  %v6752_v8 = vpop.eup %6751  ;;  %v4555_v21 = vadd.f32 1.0, %v6740_v20  ;;  %6755 = vrcp.f32 %v4553_v37  ;;  %v3894_v52 = vadd.f32 %v3862_v29, %v3794_v5  ;;  %v3507_v5 = vld [vmem:[%s10668_s15 + $0x10] sm:$0xff]  ;;  %v3508_v30 = vld [vmem:[%s10668_s15 + $0x18] sm:$0xff] }
 0x657   : > { %v4392_v14 = vadd.f32 %v4360_v39, %v4292_v16  ;;  %v9494_v33 = vmul.f32 %v6746_v2, %v9322_v11  ;;  %v9497_v22 = vadd.f32 %v9155_v57, %v4391_v17  ;;  %v5878_v49 = vmul.f32 -1.442695, %v9484_v24  ;;  %v6754_v45 = vpop.eup %6753  ;;  %v3505_v11 = vld [vmem:[%s10668_s15] sm:$0xff]  ;;  %v3506_v2 = vld [vmem:[%s10668_s15 + $0x8] sm:$0xff] }
 0x658   : > { %v4293_v41 = vadd.f32 %v4261_v15, %v4193_v42  ;;  %v3993_v36 = vadd.f32 %v9440_v56, %v3893_v60  ;;  %6757 = vrcp.f32 %v4554_v25  ;;  %v3695_v13 = vadd.f32 %v9436_v10, %v3595_v7  ;;  %v3509_v15 = vld [vmem:[%s10668_s15 + $0x20] sm:$0xff] }
 0x659   : > { %v3962_v37 = vmul.f32 %v9032_v55, %v9359_v50  ;;  %3485 = vst [vmem:[#allocation3 + $0xd9] sm:$0xff] %v9494_v33  ;;  %v3303_v20 = vadd.f32 1.0, %v6744_v0  ;;  %v4361_v60 = vmul.f32 %v9055_v18, %v9491_v53  ;;  %v9514_v56 = vadd.f32 %v9155_v57, %v4392_v14 }
 0x65a   : > { %6759 = vrcp.f32 %v3305_v32  ;;  %v3308_v10 = vadd.f32 1.0, %v6748_v4  ;;  %v3763_v1 = vmul.f32 %v9001_v34, %v9469_v61  ;;  %v3306_v39 = vadd.f32 1.0, %v6750_v9  ;;  %v9530_v9 = vld [vmem:[#allocation3] sm:$0xff] }
 0x65b   : > { %6761 = vrcp.f32 %v4555_v21  ;;  %v9518_v0 = vadd.f32 %v3962_v37, %v3894_v52  ;;  %v4393_v19 = vadd.f32 %v4361_v60, %v4293_v41  ;;  %v5879_v6 = vmul.f32 -1.442695, %v9497_v22 }
 0x65c   : > { %6763 = vpow2.f32 %v5878_v49  ;;  %v4713_v16 = vpack.c.bf16 %v3506_v2, %v3505_v11  ;;  %v4061_v4 = vmul.f32 %v9052_v3, %v9469_v61  ;;  %v3309_v25 = vadd.f32 1.0, %v6754_v45  ;;  %v3510_v61 = vld [vmem:[%s10668_s15 + $0x28] sm:$0xff] }
 0x65d   : > { %6765 = vrcp.f32 %v3303_v20  ;;  %v5880_v7 = vmul.f32 -1.442695, %v9514_v56  ;;  %v4714_v29 = vpack.c.bf16 %v3508_v30, %v3507_v5  ;;  %v4678_v42 = vadd.f32 %v9445_v58, %v9453_v35  ;;  %v3512_v20 = vld [vmem:[%s10668_s15 + $0x38] sm:$0xff] }
 0x65e   : > { %6767 = vrcp.f32 %v3308_v10  ;;  %6202 = vmatpush3.bf16.msra.mxu1 %v4713_v16  ;;  %v4093_v17 = vadd.f32 %v4061_v4, %v3993_v36  ;;  %v3795_v14 = vadd.f32 %v3763_v1, %v3695_v13  ;;  %v9542_v32 = vadd.f32 %v9155_v57, %v4393_v19  ;;  %v10935_v16 = vld [vmem:[#allocation45_spill] sm:$0xff]  ;;  %v10936_v4 = vld [vmem:[#allocation24_spill] sm:$0xff] }
 0x65f   : > { %6769 = vrcp.f32 %v3306_v39  ;;  %6203 = vmatprep.subr.bf16.mxu1 %v9530_v9  ;;  %v9547_v41 = vmul.f32 %v6752_v8, %v9331_v62  ;;  %v4715_v58 = vpack.c.bf16 %v3510_v61, %v3509_v15  ;;  %v3963_v13 = vmul.f32 %v9032_v55, %v9494_v33  ;;  %v3511_v8 = vld [vmem:[%s10668_s15 + $0x30] sm:$0xff] }
 0x660   : > { %6771 = vpow2.f32 %v5879_v6  ;;  %v9544_v21 = vld [vmem:[#allocation3 + $0xd8] sm:$0xff]  ;;  %v6756_v52 = vpop.eup %6755  ;;  %v4262_v62 = vmul.f32 %v9047_v63, %v9494_v33  ;;  %v3596_v60 = vmul.f32 %v8991_v47, %v9462_v43  ;;  %v5881_v10 = vmul.f32 -1.442695, %v9542_v32  ;;  %v10939_v61 = vld [vmem:[#allocation38_spill] sm:$0xff] }
 0x661   : > { %10933 = vst [vmem:[#allocation26_spill] sm:$0xff] %v9547_v41  ;;  %v3863_v49 = vmul.f32 %v9041_v38, %v9544_v21  ;;  %v4162_v36 = vmul.f32 %v9044_v51, %v9544_v21  ;;  %6773 = vrcp.f32 %v3309_v25  ;;  %v9565_v2 = vmul.f32 %v6756_v52, %v9336_v54  ;;  %v9581_v54 = vld [vmem:[%s10665_s12] ss:$0 sm:$0xff] }
 0x662   : > { %6775 = vpow2.f32 %v5880_v7  ;;  %6204 = vmatpush3.bf16.msra.mxu1 %v4714_v29  ;;  %v6758_v45 = vpop.eup %6757  ;;  %v4679_v39 = vadd.f32 %v4678_v42, %v9547_v41  ;;  %v9585_v43 = vadd.f32 %v9581_v54, %v10935_v16  ;;  %v9589_v25 = vadd.f32 %v9581_v54, %v10936_v4  ;;  %v3516_v16 = vld [vmem:[%s10668_s15 + $0x58] sm:$0xff] }
 0x663   : > { %v3895_v57 = vadd.f32 %v3863_v49, %v3795_v14  ;;  %v4194_v37 = vadd.f32 %v4162_v36, %v4093_v17  ;;  %6205 = vmatprep.subr.bf16.mxu1 %v9530_v9  ;;  %10934 = vst [vmem:[#allocation49_spill] sm:$0xff] %v9565_v2  ;;  %v4716_v7 = vpack.c.bf16 %v3512_v20, %v3511_v8  ;;  %v10937_v17 = vld [vmem:[#allocation23_spill] sm:$0xff]  ;;  %6777 = vpow2.f32 %v5881_v10 }
 0x664   : > { %v6760_v11 = vpop.eup %6759  ;;  %v9596_v15 = vadd.f32 %v9581_v54, %v10937_v17  ;;  %v9600_v42 = vadd.f32 %v9581_v54, %v10939_v61  ;;  %v3513_v14 = vld [vmem:[%s10668_s15 + $0x40] sm:$0xff] }
 0x665   : > { %v6762_v1 = vpop.eup %6761  ;;  %v9571_v5 = vadd.f32 %v3963_v13, %v3895_v57  ;;  %v9573_v30 = vadd.f32 %v4262_v62, %v4194_v37  ;;  %v9576_v19 = vmul.f32 %v6760_v11, %v9363_v59  ;;  %v3664_v59 = vmul.f32 %v8995_v46, %v9359_v50  ;;  %v3514_v50 = vld [vmem:[%s10668_s15 + $0x48] sm:$0xff]  ;;  %v3563_v37 = vld [vmem:[#allocation3 + $0xf0] sm:$0xff] }
 0x666   : > { %v6764_v6 = vpop.eup %6763  ;;  %6206 = vmatpush3.bf16.msra.mxu1 %v4715_v58  ;;  %10938 = vst [vmem:[#allocation36_spill] sm:$0xff] %v9596_v15  ;;  %10940 = vst [vmem:[#allocation39_spill] sm:$0xff] %v9600_v42  ;;  %v9613_v58 = vmul.f32 %v6758_v45, %v9372_v23  ;;  %v4680_v57 = vadd.f32 %v4679_v39, %v9565_v2  ;;  %v5861_v11 = vmul.f32 -1.442695, %v9589_v25  ;;  %v5859_v10 = vmul.f32 -1.442695, %v9596_v15 }
 0x667   : > { %v6766_v29 = vpop.eup %6765  ;;  %3488 = vst [vmem:[#allocation3 + $0xf9] sm:$0xff] %v9576_v19  ;;  %6207 = vmatprep.subr.bf16.mxu1 %v9530_v9  ;;  %v3696_v13 = vadd.f32 %v3664_v59, %v3596_v60  ;;  %v4717_v23 = vpack.c.bf16 %v3514_v50, %v3513_v14  ;;  %v3764_v60 = vmul.f32 %v9001_v34, %v9491_v53  ;;  %v3515_v39 = vld [vmem:[%s10668_s15 + $0x50] sm:$0xff] }
 0x668   : > { %v6768_v52 = vpop.eup %6767  ;;  %v9610_v49 = vmul.f32 %v6766_v29, %v9385_v40  ;;  %10941 = vst [vmem:[#allocation40_spill] sm:$0xff] %v9613_v58  ;;  %v5856_v40 = vmul.f32 -1.442695, %v9585_v43  ;;  %v3597_v29 = vmul.f32 %v8991_v47, %v9544_v21  ;;  %v9649_v17 = vadd.f32 %v4680_v57, %v9613_v58  ;;  %v3517_v21 = vld [vmem:[%s10668_s15 + $0x60] sm:$0xff] }
 0x669   : > { %v6770_v36 = vpop.eup %6769  ;;  %v9617_v62 = vmul.f32 %v6768_v52, %v9393_v44  ;;  %v4062_v44 = vmul.f32 %v9052_v3, %v9491_v53  ;;  %v3599_v53 = vmul.f32 %v8991_v47, %v3563_v37  ;;  %v3796_v61 = vadd.f32 %v3764_v60, %v3696_v13  ;;  %v3520_v13 = vld [vmem:[%s10668_s15 + $0x78] sm:$0xff] }
 0x66a   : > { %v6772_v8 = vpop.eup %6771  ;;  %3486 = vst [vmem:[#allocation3 + $0xe1] sm:$0xff] %v9610_v49  ;;  %v9621_v20 = vmul.f32 %v6770_v36, %v9413_v26  ;;  %6208 = vmatpush3.bf16.msra.mxu1 %v4716_v7  ;;  %v9632_v26 = vmul.f32 -1.442695, %v9600_v42  ;;  %v4556_v7 = vadd.f32 1.0, %v6764_v6  ;;  %v9652_v14 = vmul.f32 %v6762_v1, %v9379_v12  ;;  %v3518_v12 = vld [vmem:[%s10668_s15 + $0x68] sm:$0xff] }
 0x66b   : > { %v6774_v45 = vpop.eup %6773  ;;  %3491 = vst [vmem:[#allocation3 + $0x121] sm:$0xff] %v9617_v62  ;;  %6209 = vmatprep.subr.bf16.mxu1 %v9530_v9  ;;  %v3667_v6 = vmul.f32 %v8995_v46, %v9450_v27  ;;  %v4557_v50 = vadd.f32 1.0, %v6772_v8  ;;  %v3665_v52 = vmul.f32 %v8995_v46, %v9494_v33  ;;  %6779 = vpow2.f32 %v5856_v40  ;;  %v3519_v33 = vld [vmem:[%s10668_s15 + $0x70] sm:$0xff] }
 0x66c   : > { %v6776_v4 = vpop.eup %6775  ;;  %3489 = vst [vmem:[#allocation3 + $0x109] sm:$0xff] %v9621_v20  ;;  %v9646_v59 = vmul.f32 %v6774_v45, %v9417_v48  ;;  %10942 = vst [vmem:[#allocation27_spill] sm:$0xff] %v9652_v14  ;;  %v4718_v48 = vpack.c.bf16 %v3516_v16, %v3515_v39  ;;  %v3865_v36 = vmul.f32 %v9041_v38, %v3563_v37  ;;  %6781 = vpow2.f32 %v5861_v11 }
 0x66d   : > { %v4558_v1 = vadd.f32 1.0, %v6776_v4  ;;  %v9668_v57 = vmul.f32 %v9032_v55, %v9450_v27  ;;  %6783 = vrcp.f32 %v4556_v7  ;;  %v9677_v8 = vadd.f32 %v3667_v6, %v3599_v53  ;;  %v6778_v4 = vpop.eup %6777 }
 0x66e   : > { %3492 = vst [vmem:[#allocation3 + $0x129] sm:$0xff] %v9646_v59  ;;  %6210 = vmatpush3.bf16.msra.mxu1 %v4717_v23  ;;  %v4164_v40 = vmul.f32 %v9044_v51, %v3563_v37  ;;  %v3697_v23 = vadd.f32 %v3665_v52, %v3597_v29  ;;  %v4264_v45 = vmul.f32 %v9047_v63, %v9450_v27  ;;  %6785 = vpow2.f32 %v5859_v10  ;;  %v9686_v37 = vld [vmem:[#allocation3 + $0xf8] sm:$0xff] }
 0x66f   : > { %6211 = vmatprep.subr.bf16.mxu1 %v9530_v9  ;;  %v4094_v39 = vadd.f32 %v4062_v44, %v9518_v0  ;;  %v4719_v16 = vpack.c.bf16 %v3518_v12, %v3517_v21  ;;  %6787 = vrcp.f32 %v4557_v50  ;;  %v4265_v58 = vmul.f32 %v9047_v63, %v9576_v19  ;;  %v3731_v29 = vld [vmem:[#allocation3 + $0xf2] sm:$0xff] }
 0x670   : > { %v4720_v53 = vpack.c.bf16 %v3520_v13, %v3519_v33  ;;  %6789 = vrcp.f32 %v4558_v1  ;;  %v3666_v27 = vmul.f32 %v8995_v46, %v9610_v49  ;;  %v3964_v52 = vmul.f32 %v9032_v55, %v9610_v49 }
 0x671   : > { %v3562_v11 = vld [vmem:[#allocation3 + $0xe0] sm:$0xff]  ;;  %v4559_v21 = vadd.f32 1.0, %v6778_v4  ;;  %v3767_v13 = vmul.f32 %v9001_v34, %v3731_v29  ;;  %v4165_v2 = vmul.f32 %v9044_v51, %v9686_v37  ;;  %6791 = vpow2.f32 %v9632_v26 }
 0x672   : > { %v3729_v60 = vld [vmem:[#allocation3 + $0xda] sm:$0xff]  ;;  %6212 = vmatpush3.bf16.msra.mxu1 %v4718_v48  ;;  %v3864_v0 = vmul.f32 %v9041_v38, %v3562_v11  ;;  %v3598_v10 = vmul.f32 %v8991_v47, %v3562_v11  ;;  %v3730_v6 = vld [vmem:[#allocation3 + $0xe2] sm:$0xff]  ;;  %v4263_v48 = vmul.f32 %v9047_v63, %v9610_v49  ;;  %v4163_v33 = vmul.f32 %v9044_v51, %v3562_v11 }
 0x673   : > { %v3765_v7 = vmul.f32 %v9001_v34, %v3729_v60  ;;  %v4063_v44 = vmul.f32 %v9052_v3, %v3729_v60  ;;  %6213 = vmatprep.subr.bf16.mxu1 %v9530_v9  ;;  %v4362_v41 = vmul.f32 %v9055_v18, %v3729_v60  ;;  %v4363_v26 = vmul.f32 %v9055_v18, %v3730_v6 }
 0x674   : > { %v3896_v12 = vadd.f32 %v3864_v0, %v3796_v61  ;;  %v4195_v49 = vadd.f32 %v4163_v33, %v4094_v39  ;;  %v4364_v61 = vmul.f32 %v9055_v18, %v3731_v29  ;;  %v3698_v11 = vadd.f32 %v3666_v27, %v3598_v10  ;;  %v9712_v39 = vld [vmem:[#allocation3 + $0xfa] sm:$0xff] }
 0x675   : > { %v3797_v50 = vadd.f32 %v3765_v7, %v3697_v23  ;;  %v4095_v1 = vadd.f32 %v4063_v44, %v9571_v5  ;;  %v4064_v7 = vmul.f32 %v9052_v3, %v3730_v6  ;;  %v6780_v5 = vpop.eup %6779  ;;  %v4394_v44 = vadd.f32 %v4362_v41, %v9573_v30  ;;  %v9720_v41 = vld [vmem:[%s10667_s14] ss:$0 sm:$0xff] }
 0x676   : > { %6214 = vmatpush3.bf16.msra.mxu1 %v4719_v16  ;;  %v3996_v23 = vadd.f32 %v3964_v52, %v3896_v12  ;;  %v6782_v35 = vpop.eup %6781  ;;  %v4295_v60 = vadd.f32 %v4263_v48, %v4195_v49  ;;  %v9710_v16 = vld [vmem:[#allocation3 + $0x108] sm:$0xff]  ;;  %v3766_v12 = vmul.f32 %v9001_v34, %v3730_v6  ;;  %v4065_v27 = vmul.f32 %v9052_v3, %v3731_v29 }
 0x677   : > { %v4196_v4 = vadd.f32 %v4164_v40, %v4095_v1  ;;  %6215 = vmatprep.subr.bf16.mxu1 %v9530_v9  ;;  %v3897_v0 = vadd.f32 %v3865_v36, %v3797_v50  ;;  %v6784_v52 = vpop.eup %6783  ;;  %v3866_v40 = vmul.f32 %v9041_v38, %v9686_v37  ;;  %v9723_v30 = vadd.f32 %v9720_v41, %v4394_v44 }
 0x678   : > { %v4096_v42 = vadd.f32 %v4064_v7, %v3996_v23  ;;  %v3967_v36 = vmul.f32 %v9032_v55, %v9621_v20  ;;  %v4395_v50 = vadd.f32 %v4363_v26, %v4295_v60  ;;  %v3799_v1 = vadd.f32 %v3767_v13, %v9677_v8 }
 0x679   : > { %v4296_v15 = vadd.f32 %v4264_v45, %v4196_v4  ;;  %v6786_v45 = vpop.eup %6785  ;;  %v3798_v33 = vadd.f32 %v3766_v12, %v3698_v11  ;;  %v3867_v23 = vmul.f32 %v9041_v38, %v9710_v16  ;;  %v3997_v7 = vadd.f32 %v9668_v57, %v3897_v0 }
 0x67a   : > { %6216 = vmatpush3.bf16.msra.mxu1 %v4720_v53  ;;  %v4197_v10 = vadd.f32 %v4165_v2, %v4096_v42  ;;  %v6788_v6 = vpop.eup %6787  ;;  %v4365_v53 = vmul.f32 %v9055_v18, %v9712_v39  ;;  %v9736_v2 = vadd.f32 %v9720_v41, %v4395_v50  ;;  %v5882_v42 = vmul.f32 -1.442695, %v9723_v30 }
 0x67b   : > { %v4396_v48 = vadd.f32 %v4364_v61, %v4296_v15  ;;  %6221 = vmatprep.subr.bf16.mxu1 %v9530_v9  ;;  %v6790_v49 = vpop.eup %6789  ;;  %v3899_v8 = vadd.f32 %v3867_v23, %v3799_v1  ;;  %v4097_v29 = vadd.f32 %v4065_v27, %v3997_v7  ;;  %v4166_v13 = vmul.f32 %v9044_v51, %v9710_v16 }
 0x67c   : > { %v4297_v4 = vadd.f32 %v4265_v58, %v4197_v10  ;;  %v5883_v57 = vmul.f32 -1.442695, %v9736_v2  ;;  %v4266_v11 = vmul.f32 %v9047_v63, %v9621_v20  ;;  %v10943_v58 = vld [vmem:[#allocation21_spill] sm:$0xff]  ;;  %v6792_v44 = vpop.eup %6791  ;;  %v3898_v60 = vadd.f32 %v3866_v40, %v3798_v33 }
 0x67d   : > { %v9739_v15 = vadd.f32 %v9720_v41, %v4396_v48  ;;  %v9749_v0 = vadd.f32 %v9581_v54, %v10943_v58  ;;  %v9751_v26 = vadd.f32 %v3967_v36, %v3899_v8  ;;  %v4198_v12 = vadd.f32 %v4166_v13, %v4097_v29  ;;  %v10944_v48 = vld [vmem:[#allocation43_spill] sm:$0xff] }
 0x67e   : > { %v4397_v61 = vadd.f32 %v4365_v53, %v4297_v4  ;;  %v3307_v10 = vadd.f32 1.0, %v6780_v5  ;;  %6793 = vrcp.f32 %v4559_v21  ;;  %v4682_v27 = vadd.f32 %v9649_v17, %v9652_v14  ;;  %v10947_v5 = vld [vmem:[#allocation19_spill] sm:$0xff] }
 0x67f   : > { %v5884_v50 = vmul.f32 -1.442695, %v9739_v15  ;;  %v9758_v1 = vadd.f32 %v9581_v54, %v10944_v48  ;;  %v9761_v23 = vmul.f32 %v6784_v52, %v9484_v24  ;;  %v3966_v40 = vmul.f32 %v9032_v55, %v9576_v19 }
 0x680   : > { %6795 = vpow2.f32 %v5882_v42  ;;  %v9765_v36 = vadd.f32 %v4266_v11, %v4198_v12  ;;  %v9768_v21 = vadd.f32 %v9720_v41, %v4397_v61  ;;  %v5860_v17 = vmul.f32 -1.442695, %v9749_v0  ;;  %v4243_v61 = vld [vmem:[#allocation3 + $0x1a1] sm:$0xff] }
 0x681   : > { %10945 = vst [vmem:[#allocation35_spill] sm:$0xff] %v9761_v23  ;;  %6797 = vpow2.f32 %v5883_v57  ;;  %v9773_v33 = vadd.f32 %v9581_v54, %v10947_v5  ;;  %v9775_v7 = vadd.f32 %v3966_v40, %v3898_v60  ;;  %v3312_v24 = vadd.f32 1.0, %v6782_v35  ;;  %v4342_v57 = vld [vmem:[#allocation3 + $0x19a] sm:$0xff]  ;;  %v4343_v11 = vld [vmem:[#allocation3 + $0x1a2] sm:$0xff] }
 0x682   : > { %10946 = vst [vmem:[#allocation34_spill] sm:$0xff] %v9768_v21  ;;  %6799 = vrcp.f32 %v3307_v10  ;;  %v9779_v52 = vadd.f32 %v9581_v54, %v9250_v28  ;;  %v3310_v53 = vadd.f32 1.0, %v6786_v45  ;;  %v3313_v4 = vadd.f32 1.0, %v6792_v44  ;;  %v4242_v45 = vld [vmem:[#allocation3 + $0x199] sm:$0xff]  ;;  %v9806_v60 = vld [vmem:[#allocation3 + $0x128] sm:$0xff] }
 0x683   : > { %6801 = vpow2.f32 %v5884_v50  ;;  %v9783_v42 = vadd.f32 %v9581_v54, %v9253_v31  ;;  %v9786_v8 = vmul.f32 %v6788_v6, %v9497_v22  ;;  %v4683_v29 = vadd.f32 %v4682_v27, %v9761_v23  ;;  %v3567_v22 = vld [vmem:[#allocation3 + $0x120] sm:$0xff] }
 0x684   : > { %10948 = vst [vmem:[#allocation31_spill] sm:$0xff] %v9779_v52  ;;  %6803 = vrcp.f32 %v3312_v24  ;;  %v5865_v13 = vmul.f32 -1.442695, %v9758_v1  ;;  %v5885_v35 = vmul.f32 -1.442695, %v9768_v21  ;;  %v3600_v31 = vmul.f32 %v8991_v47, %v9686_v37 }
 0x685   : > { %10949 = vst [vmem:[#allocation17_spill] sm:$0xff] %v9783_v42  ;;  %10950 = vst [vmem:[#allocation29_spill] sm:$0xff] %v9786_v8  ;;  %6805 = vrcp.f32 %v3310_v53  ;;  %v9792_v28 = vmul.f32 -1.442695, %v9773_v33  ;;  %v9797_v54 = vmul.f32 -1.442695, %v9779_v52  ;;  %v9803_v58 = vmul.f32 %v6790_v49, %v9514_v56 }
 0x686   : > { %6807 = vrcp.f32 %v3313_v4  ;;  %v9800_v6 = vmul.f32 -1.442695, %v9783_v42  ;;  %v4684_v44 = vadd.f32 %v4683_v29, %v9786_v8  ;;  %v9810_v37 = vmul.f32 %v9530_v9, %v9044_v51  ;;  %v3735_v4 = vld [vmem:[#allocation3 + $0x122] sm:$0xff] }
 0x687   : > { %6809 = vpow2.f32 %v5860_v17  ;;  %10951 = vst [vmem:[#allocation30_spill] sm:$0xff] %v9803_v58  ;;  %v3668_v10 = vmul.f32 %v8995_v46, %v9576_v19  ;;  %v9815_v27 = vmul.f32 %v9047_v63, %v4242_v45  ;;  %v9818_v56 = vmul.f32 %v9047_v63, %v4243_v61 }
 0x688   : > { %6811 = vpow2.f32 %v5865_v13  ;;  %10952 = vst [vmem:[#allocation18_spill] sm:$0xff] %v9810_v37  ;;  %v6794_v12 = vpop.eup %6793  ;;  %v3603_v50 = vmul.f32 %v8991_v47, %v3567_v22  ;;  %v3671_v48 = vmul.f32 %v8995_v46, %v9617_v62  ;;  %v9824_v9 = vmul.f32 %v9055_v18, %v4342_v57 }
 0x689   : > { %6813 = vpow2.f32 %v5885_v35  ;;  %10953 = vst [vmem:[#allocation32_spill] sm:$0xff] %v9815_v27  ;;  %10954 = vst [vmem:[#allocation20_spill] sm:$0xff] %v9818_v56  ;;  %v9827_v40 = vmul.f32 %v9055_v18, %v4343_v11  ;;  %v3700_v17 = vadd.f32 %v3668_v10, %v3600_v31  ;;  %v9831_v5 = vmul.f32 %v9032_v55, %v9617_v62 }
 0x68a   : > { %v6796_v49 = vpop.eup %6795  ;;  %10955 = vst [vmem:[#allocation41_spill] sm:$0xff] %v9824_v9  ;;  %v9835_v24 = vmul.f32 %v9047_v63, %v9617_v62  ;;  %v3604_v53 = vmul.f32 %v8991_v47, %v9806_v60  ;;  %v4685_v13 = vadd.f32 %v4684_v44, %v9803_v58  ;;  %v9841_v35 = vmul.f32 %v6794_v12, %v9542_v32 }
 0x68b   : > { %10956 = vst [vmem:[#allocation13_spill] sm:$0xff] %v9827_v40  ;;  %v6798_v19 = vpop.eup %6797  ;;  %v3669_v45 = vmul.f32 %v8995_v46, %v9621_v20  ;;  %v3672_v61 = vmul.f32 %v8995_v46, %v9646_v59  ;;  %v3768_v62 = vmul.f32 %v9001_v34, %v9712_v39  ;;  %v4560_v31 = vadd.f32 1.0, %v6796_v49  ;;  %v3736_v20 = vld [vmem:[#allocation3 + $0x12a] sm:$0xff]  ;;  %v10958_v40 = vld [vmem:[#allocation36_spill] sm:$0xff] }
 0x68c   : > { %v6800_v29 = vpop.eup %6799  ;;  %10957 = vst [vmem:[#allocation16_spill] sm:$0xff] %v9841_v35  ;;  %v9851_v11 = vmul.f32 %v9032_v55, %v9646_v59  ;;  %v3703_v32 = vadd.f32 %v3671_v48, %v3603_v50  ;;  %v3601_v12 = vmul.f32 %v8991_v47, %v9710_v16  ;;  %v3771_v58 = vmul.f32 %v9001_v34, %v3735_v4 }
 0x68d   : > { %v6802_v57 = vpop.eup %6801  ;;  %v3403_v44 = vmul.f32 %v6800_v29, %v9585_v43  ;;  %v9859_v8 = vmul.f32 %v9047_v63, %v9646_v59  ;;  %v3800_v49 = vadd.f32 %v3768_v62, %v3700_v17  ;;  %v4066_v14 = vmul.f32 %v9052_v3, %v9712_v39 }
 0x68e   : > { %v6804_v10 = vpop.eup %6803  ;;  %v3704_v21 = vadd.f32 %v3672_v61, %v3604_v53  ;;  %v4561_v48 = vadd.f32 1.0, %v6798_v19  ;;  %v9867_v16 = vadd.f32 %v4685_v13, %v9841_v35  ;;  %v3869_v29 = vmul.f32 %v9041_v38, %v3567_v22  ;;  %v10959_v53 = vld [vmem:[#allocation39_spill] sm:$0xff] }
 0x68f   : > { %v6806_v23 = vpop.eup %6805  ;;  %3490 = vst [vmem:[#allocation3 + $0x111] sm:$0xff] %v3403_v44  ;;  %v9864_v43 = vmul.f32 %v6804_v10, %v9589_v25  ;;  %v4562_v17 = vadd.f32 1.0, %v6802_v57  ;;  %6815 = vrcp.f32 %v4560_v31  ;;  %v3772_v39 = vmul.f32 %v9001_v34, %v3736_v20 }
 0x690   : > { %v6808_v50 = vpop.eup %6807  ;;  %v9871_v59 = vmul.f32 %v6806_v23, %v10958_v40  ;;  %v4168_v19 = vmul.f32 %v9044_v51, %v3567_v22  ;;  %v3701_v13 = vadd.f32 %v3669_v45, %v3601_v12  ;;  %v9879_v62 = vadd.f32 %v3771_v58, %v3703_v32 }
 0x691   : > { %v6810_v9 = vpop.eup %6809  ;;  %3495 = vst [vmem:[#allocation3 + $0x151] sm:$0xff] %v9864_v43  ;;  %v9876_v25 = vmul.f32 %v6808_v50, %v10959_v53  ;;  %6817 = vpow2.f32 %v9792_v28  ;;  %v9883_v40 = vadd.f32 %v3772_v39, %v3704_v21  ;;  %v9887_v57 = vmul.f32 %v9041_v38, %v9806_v60 }
 0x692   : > { %v6812_v61 = vpop.eup %6811  ;;  %3493 = vst [vmem:[#allocation3 + $0x139] sm:$0xff] %v9871_v59  ;;  %v9890_v31 = vmul.f32 %v9052_v3, %v3735_v4  ;;  %6819 = vpow2.f32 %v9797_v54  ;;  %v9895_v22 = vmul.f32 %v9052_v3, %v3736_v20  ;;  %v4169_v28 = vmul.f32 %v9044_v51, %v9806_v60 }
 0x693   : > { %v6814_v23 = vpop.eup %6813  ;;  %3496 = vst [vmem:[#allocation3 + $0x159] sm:$0xff] %v9876_v25  ;;  %6821 = vrcp.f32 %v4561_v48  ;;  %v3311_v21 = vadd.f32 1.0, %v6810_v9  ;;  %v9900_v58 = vmul.f32 %v9055_v18, %v3735_v4  ;;  %v9903_v45 = vmul.f32 %v9055_v18, %v3736_v20 }
 0x694   : > { %6823 = vrcp.f32 %v4562_v17  ;;  %v3316_v10 = vadd.f32 1.0, %v6812_v61  ;;  %v4563_v32 = vadd.f32 1.0, %v6814_v23  ;;  %v3670_v54 = vmul.f32 %v8995_v46, %v3403_v44 }
 0x695   : > { %v4098_v48 = vadd.f32 %v4066_v14, %v9775_v7  ;;  %6825 = vpow2.f32 %v9800_v6  ;;  %v3968_v4 = vmul.f32 %v9032_v55, %v3403_v44  ;;  %v4267_v20 = vmul.f32 %v9047_v63, %v3403_v44 }
 0x696   : > { %v3566_v12 = vld [vmem:[#allocation3 + $0x110] sm:$0xff]  ;;  %6827 = vrcp.f32 %v3311_v21 }
 0x697   : > { %v3733_v50 = vld [vmem:[#allocation3 + $0x10a] sm:$0xff]  ;;  %v3602_v60 = vmul.f32 %v8991_v47, %v3566_v12  ;;  %v3734_v9 = vld [vmem:[#allocation3 + $0x112] sm:$0xff]  ;;  %v3868_v39 = vmul.f32 %v9041_v38, %v3566_v12  ;;  %v4167_v61 = vmul.f32 %v9044_v51, %v3566_v12  ;;  %6829 = vrcp.f32 %v3316_v10 }
 0x698   : > { %v3769_v17 = vmul.f32 %v9001_v34, %v3733_v50  ;;  %v4067_v53 = vmul.f32 %v9052_v3, %v3733_v50  ;;  %v4366_v7 = vmul.f32 %v9055_v18, %v3733_v50  ;;  %v3770_v6 = vmul.f32 %v9001_v34, %v3734_v9 }
 0x699   : > { %v3702_v23 = vadd.f32 %v3670_v54, %v3602_v60  ;;  %v3900_v35 = vadd.f32 %v3868_v39, %v3800_v49  ;;  %v4199_v27 = vadd.f32 %v4167_v61, %v4098_v48  ;;  %v6816_v37 = vpop.eup %6815  ;;  %v4068_v42 = vmul.f32 %v9052_v3, %v3734_v9  ;;  %v3569_v10 = vld [vmem:[#allocation3 + $0x138] sm:$0xff] }
 0x69a   : > { %v3801_v14 = vadd.f32 %v3769_v17, %v3701_v13  ;;  %v4099_v56 = vadd.f32 %v4067_v53, %v9751_v26  ;;  %v4367_v52 = vmul.f32 %v9055_v18, %v3734_v9  ;;  %v4398_v12 = vadd.f32 %v4366_v7, %v9765_v36  ;;  %v3571_v26 = vld [vmem:[#allocation3 + $0x150] sm:$0xff] }
 0x69b   : > { %v6818_v21 = vpop.eup %6817  ;;  %v3802_v54 = vadd.f32 %v3770_v6, %v3702_v23  ;;  %v4000_v13 = vadd.f32 %v3968_v4, %v3900_v35  ;;  %v4299_v50 = vadd.f32 %v4267_v20, %v4199_v27  ;;  %6831 = vrcp.f32 %v4563_v32 }
 0x69c   : > { %v3901_v44 = vadd.f32 %v3869_v29, %v3801_v14  ;;  %v4200_v60 = vadd.f32 %v4168_v19, %v4099_v56  ;;  %v6820_v17 = vpop.eup %6819  ;;  %v9922_v49 = vadd.f32 %v9720_v41, %v4398_v12  ;;  %v3675_v29 = vmul.f32 %v8995_v46, %v9864_v43  ;;  %v3572_v14 = vld [vmem:[#allocation3 + $0x158] sm:$0xff] }
 0x69d   : > { %v3971_v48 = vmul.f32 %v9032_v55, %v9871_v59  ;;  %v6822_v9 = vpop.eup %6821  ;;  %v4100_v36 = vadd.f32 %v4068_v42, %v4000_v13  ;;  %v4399_v35 = vadd.f32 %v4367_v52, %v4299_v50  ;;  %v4270_v27 = vmul.f32 %v9047_v63, %v9871_v59 }
 0x69e   : > { %10960 = vst [vmem:[#allocation28_spill] sm:$0xff] %v9922_v49  ;;  %v4300_v39 = vadd.f32 %v9835_v24, %v4200_v60  ;;  %v9931_v56 = vpop.eup %6823  ;;  %v9934_v19 = vmul.f32 %v6816_v37, %v9723_v30  ;;  %v5886_v32 = vmul.f32 -1.442695, %v9922_v49  ;;  %v3871_v4 = vmul.f32 %v9041_v38, %v3569_v10  ;;  %v10967_v49 = vld [vmem:[#allocation17_spill] sm:$0xff] }
 0x69f   : > { %v4001_v20 = vadd.f32 %v9831_v5, %v3901_v44  ;;  %v6826_v53 = vpop.eup %6825  ;;  %v3902_v42 = vadd.f32 %v9887_v57, %v3802_v54  ;;  %v4201_v61 = vadd.f32 %v4169_v28, %v4100_v36  ;;  %v9941_v52 = vadd.f32 %v9720_v41, %v4399_v35 }
 0x6a0   : > { %10961 = vst [vmem:[#allocation50_spill] sm:$0xff] %v9934_v19  ;;  %v3607_v24 = vmul.f32 %v8991_v47, %v3571_v26  ;;  %6833 = vpow2.f32 %v5886_v32  ;;  %v3903_v23 = vadd.f32 %v3871_v4, %v9879_v62  ;;  %v4170_v37 = vmul.f32 %v9044_v51, %v3569_v10  ;;  %v6828_v7 = vpop.eup %6827 }
 0x6a1   : > { %10962 = vst [vmem:[#allocation14_spill] sm:$0xff] %v9941_v52  ;;  %v4101_v30 = vadd.f32 %v9890_v31, %v4001_v20  ;;  %v4301_v5 = vadd.f32 %v9859_v8, %v4201_v61  ;;  %v5887_v6 = vmul.f32 -1.442695, %v9941_v52  ;;  %v3676_v57 = vmul.f32 %v8995_v46, %v9876_v25  ;;  %v6830_v44 = vpop.eup %6829  ;;  %v3739_v31 = vld [vmem:[#allocation3 + $0x152] sm:$0xff] }
 0x6a2   : > { %v3314_v28 = vadd.f32 1.0, %v6818_v21  ;;  %v4687_v12 = vadd.f32 %v9867_v16, %v9934_v19  ;;  %v9953_v54 = vadd.f32 %v3971_v48, %v3903_v23  ;;  %v3317_v13 = vadd.f32 1.0, %v6820_v17 }
 0x6a3   : > { %v4202_v62 = vadd.f32 %v4170_v37, %v4101_v30  ;;  %v9956_v60 = vmul.f32 %v6822_v9, %v9736_v2  ;;  %6835 = vpow2.f32 %v5887_v6  ;;  %v3707_v8 = vadd.f32 %v3675_v29, %v3607_v24 }
 0x6a4   : > { %v3608_v50 = vmul.f32 %v8991_v47, %v3572_v14  ;;  %v3605_v36 = vmul.f32 %v8991_v47, %v3569_v10  ;;  %v3407_v21 = vmul.f32 %v6828_v7, %v9749_v0  ;;  %v4002_v16 = vadd.f32 %v9851_v11, %v3902_v42  ;;  %v3740_v11 = vld [vmem:[#allocation3 + $0x15a] sm:$0xff] }
 0x6a5   : > { %10963 = vst [vmem:[#allocation25_spill] sm:$0xff] %v9956_v60  ;;  %v9960_v35 = vadd.f32 %v4270_v27, %v4202_v62  ;;  %v3775_v48 = vmul.f32 %v9001_v34, %v3739_v31  ;;  %v3412_v32 = vmul.f32 %v6830_v44, %v9758_v1  ;;  %6837 = vrcp.f32 %v3314_v28  ;;  %v9966_v2 = vpop.eup %6831 }
 0x6a6   : > { %v3315_v17 = vadd.f32 1.0, %v6826_v53  ;;  %v9970_v29 = vmul.f32 %v9032_v55, %v9864_v43  ;;  %v9974_v10 = vmul.f32 %v9047_v63, %v9864_v43  ;;  %v3673_v0 = vmul.f32 %v8995_v46, %v9871_v59  ;;  %3494 = vst [vmem:[#allocation3 + $0x141] sm:$0xff] %v3407_v21 }
 0x6a7   : > { %v9980_v9 = vmul.f32 %v9032_v55, %v9876_v25  ;;  %v9983_v1 = vadd.f32 %v4687_v12, %v9956_v60  ;;  %v3708_v27 = vadd.f32 %v3676_v57, %v3608_v50  ;;  %v9987_v4 = vmul.f32 %v9047_v63, %v9876_v25  ;;  %3499 = vst [vmem:[#allocation3 + $0x181] sm:$0xff] %v3412_v32 }
 0x6a8   : > { %6839 = vrcp.f32 %v3317_v13  ;;  %v3873_v43 = vmul.f32 %v9041_v38, %v3571_v26  ;;  %v9991_v59 = vmul.f32 %v9044_v51, %v3571_v26  ;;  %v4400_v20 = vadd.f32 %v9900_v58, %v4300_v39 }
 0x6a9   : > { %10964 = vst [vmem:[#allocation15_spill] sm:$0xff] %v9983_v1  ;;  %6841 = vrcp.f32 %v3315_v17  ;;  %v3705_v53 = vadd.f32 %v3673_v0, %v3605_v36  ;;  %v3776_v42 = vmul.f32 %v9001_v34, %v3740_v11  ;;  %v9995_v61 = vadd.f32 %v3775_v48, %v3707_v8 }
 0x6aa   : > { %v3874_v24 = vmul.f32 %v9041_v38, %v3572_v14  ;;  %v6834_v23 = vpop.eup %6833  ;;  %v9999_v25 = vmul.f32 %v9052_v3, %v3739_v31  ;;  %v10002_v30 = vmul.f32 %v9052_v3, %v3740_v11  ;;  %v4401_v26 = vadd.f32 %v9903_v45, %v4301_v5 }
 0x6ab   : > { %v10006_v37 = vadd.f32 %v9720_v41, %v4400_v20  ;;  %v4564_v58 = vadd.f32 1.0, %v6834_v23  ;;  %v4173_v39 = vmul.f32 %v9044_v51, %v3572_v14  ;;  %v10010_v7 = vmul.f32 %v9055_v18, %v3739_v31 }
 0x6ac   : > { %v10012_v6 = vadd.f32 %v3776_v42, %v3708_v27  ;;  %v3674_v57 = vmul.f32 %v8995_v46, %v3407_v21  ;;  %v3972_v28 = vmul.f32 %v9032_v55, %v3407_v21  ;;  %v4102_v44 = vadd.f32 %v9895_v22, %v4002_v16 }
 0x6ad   : > { %10965 = vst [vmem:[#allocation22_spill] sm:$0xff] %v10006_v37  ;;  %v4271_v12 = vmul.f32 %v9047_v63, %v3407_v21  ;;  %v6836_v45 = vpop.eup %6835  ;;  %v3570_v5 = vld [vmem:[#allocation3 + $0x140] sm:$0xff]  ;;  %v10019_v8 = vmul.f32 %v9032_v55, %v3412_v32  ;;  %v10022_v14 = vmul.f32 %v9047_v63, %v3412_v32  ;;  %v10025_v31 = vmul.f32 %v9055_v18, %v3740_v11 }
 0x6ae   : > { %v3737_v62 = vld [vmem:[#allocation3 + $0x13a] sm:$0xff]  ;;  %v3738_v13 = vld [vmem:[#allocation3 + $0x142] sm:$0xff]  ;;  %v10029_v50 = vmul.f32 %v9931_v56, %v9739_v15  ;;  %v3606_v22 = vmul.f32 %v8991_v47, %v3570_v5  ;;  %v10034_v21 = vadd.f32 %v9720_v41, %v4401_v26  ;;  %v5888_v16 = vmul.f32 -1.442695, %v10006_v37 }
 0x6af   : > { %v3773_v36 = vmul.f32 %v9001_v34, %v3737_v62  ;;  %v6838_v48 = vpop.eup %6837  ;;  %v4565_v17 = vadd.f32 1.0, %v6836_v45  ;;  %6843 = vrcp.f32 %v4564_v58  ;;  %v3872_v32 = vmul.f32 %v9041_v38, %v3570_v5 }
 0x6b0   : > { %v4171_v0 = vmul.f32 %v9044_v51, %v3570_v5  ;;  %v3706_v11 = vadd.f32 %v3674_v57, %v3606_v22  ;;  %v3774_v15 = vmul.f32 %v9001_v34, %v3738_v13  ;;  %v4071_v27 = vmul.f32 %v9052_v3, %v3737_v62 }
 0x6b1   : > { %v3805_v56 = vadd.f32 %v3773_v36, %v3705_v53  ;;  %v3904_v42 = vadd.f32 %v3872_v32, %v9883_v40  ;;  %v4072_v23 = vmul.f32 %v9052_v3, %v3738_v13  ;;  %v4370_v60 = vmul.f32 %v9055_v18, %v3737_v62  ;;  %v3841_v53 = vld [vmem:[#allocation3 + $0x180] sm:$0xff]  ;;  %v10966_v36 = vld [vmem:[#allocation31_spill] sm:$0xff] }
 0x6b2   : > { %v6840_v20 = vpop.eup %6839  ;;  %v4203_v26 = vadd.f32 %v4171_v0, %v4102_v44  ;;  %v3806_v58 = vadd.f32 %v3774_v15, %v3706_v11  ;;  %v4103_v37 = vadd.f32 %v4071_v27, %v9953_v54  ;;  %v3410_v57 = vmul.f32 %v6838_v48, %v9773_v33 }
 0x6b3   : > { %v6842_v45 = vpop.eup %6841  ;;  %v3905_v19 = vadd.f32 %v3873_v43, %v3805_v56  ;;  %v4004_v5 = vadd.f32 %v3972_v28, %v3904_v42  ;;  %v3413_v52 = vmul.f32 %v6840_v20, %v10966_v36  ;;  %6845 = vrcp.f32 %v4565_v17 }
 0x6b4   : > { %v4303_v22 = vadd.f32 %v4271_v12, %v4203_v26  ;;  %v3411_v1 = vmul.f32 %v6842_v45, %v10967_v49  ;;  %v4371_v40 = vmul.f32 %v9055_v18, %v3738_v13  ;;  %3497 = vst [vmem:[#allocation3 + $0x169] sm:$0xff] %v3410_v57  ;;  %v3906_v44 = vadd.f32 %v3874_v24, %v3806_v58 }
 0x6b5   : > { %v5889_v62 = vmul.f32 -1.442695, %v10034_v21  ;;  %v4104_v32 = vadd.f32 %v4072_v23, %v4004_v5  ;;  %v4402_v43 = vadd.f32 %v4370_v60, %v9960_v35  ;;  %v3677_v54 = vmul.f32 %v8995_v46, %v3410_v57  ;;  %3500 = vst [vmem:[#allocation3 + $0x189] sm:$0xff] %v3413_v52 }
 0x6b6   : > { %v3975_v33 = vmul.f32 %v9032_v55, %v3410_v57  ;;  %3498 = vst [vmem:[#allocation3 + $0x171] sm:$0xff] %v3411_v1  ;;  %v3877_v28 = vmul.f32 %v9041_v38, %v3841_v53  ;;  %v4005_v49 = vadd.f32 %v9970_v29, %v3905_v19  ;;  %v4006_v12 = vadd.f32 %v9980_v9, %v3906_v44 }
 0x6b7   : > { %v4204_v13 = vadd.f32 %v9991_v59, %v4103_v37  ;;  %v3678_v24 = vmul.f32 %v8995_v46, %v3411_v1  ;;  %v3976_v48 = vmul.f32 %v9032_v55, %v3411_v1  ;;  %v10060_v60 = vmul.f32 %v9032_v55, %v3413_v52 }
 0x6b8   : > { %v4205_v35 = vadd.f32 %v4173_v39, %v4104_v32  ;;  %v4176_v17 = vmul.f32 %v9044_v51, %v3841_v53  ;;  %v4274_v0 = vmul.f32 %v9047_v63, %v3410_v57  ;;  %v4275_v11 = vmul.f32 %v9047_v63, %v3411_v1 }
 0x6b9   : > { %v4304_v19 = vadd.f32 %v9974_v10, %v4204_v13  ;;  %v10066_v29 = vpop.eup %6843  ;;  %v10069_v9 = vmul.f32 %v9047_v63, %v3413_v52  ;;  %v4403_v59 = vadd.f32 %v4371_v40, %v4303_v22  ;;  %v10073_v55 = vadd.f32 %v9720_v41, %v4402_v43 }
 0x6ba   : > { %v4305_v46 = vadd.f32 %v9987_v4, %v4205_v35  ;;  %v4105_v37 = vadd.f32 %v9999_v25, %v4005_v49  ;;  %v4106_v39 = vadd.f32 %v10002_v30, %v4006_v12  ;;  %6847 = vpow2.f32 %v5888_v16 }
 0x6bb   : > { %v4404_v15 = vadd.f32 %v10010_v7, %v4304_v19  ;;  %v3573_v1 = vld [vmem:[#allocation3 + $0x168] sm:$0xff]  ;;  %v10080_v56 = vadd.f32 %v9720_v41, %v4403_v59  ;;  %6849 = vpow2.f32 %v5889_v62  ;;  %v5890_v63 = vmul.f32 -1.442695, %v10073_v55 }
 0x6bc   : > { %v4405_v10 = vadd.f32 %v10025_v31, %v4305_v46  ;;  %v3609_v52 = vmul.f32 %v8991_v47, %v3573_v1  ;;  %v3875_v4 = vmul.f32 %v9041_v38, %v3573_v1  ;;  %v4174_v25 = vmul.f32 %v9044_v51, %v3573_v1  ;;  %v3842_v26 = vld [vmem:[#allocation3 + $0x188] sm:$0xff] }
 0x6bd   : > { %v3574_v27 = vld [vmem:[#allocation3 + $0x170] sm:$0xff]  ;;  %v10087_v7 = vadd.f32 %v9720_v41, %v4404_v15  ;;  %v4041_v45 = vld [vmem:[#allocation3 + $0x182] sm:$0xff]  ;;  %v10093_v57 = vpop.eup %6845  ;;  %v3878_v22 = vmul.f32 %v9041_v38, %v3842_v26  ;;  %6851 = vpow2.f32 %v5890_v63 }
 0x6be   : > { %v3741_v30 = vld [vmem:[#allocation3 + $0x16a] sm:$0xff]  ;;  %v3742_v20 = vld [vmem:[#allocation3 + $0x172] sm:$0xff]  ;;  %v3610_v31 = vmul.f32 %v8991_v47, %v3574_v27  ;;  %v3876_v42 = vmul.f32 %v9041_v38, %v3574_v27  ;;  %v3709_v5 = vadd.f32 %v3677_v54, %v3609_v52  ;;  %v3907_v53 = vadd.f32 %v3875_v4, %v9995_v61 }
 0x6bf   : > { %v3777_v16 = vmul.f32 %v9001_v34, %v3741_v30  ;;  %v3778_v23 = vmul.f32 %v9001_v34, %v3742_v20  ;;  %v4042_v58 = vld [vmem:[#allocation3 + $0x18a] sm:$0xff]  ;;  %v4075_v36 = vmul.f32 %v9052_v3, %v3741_v30  ;;  %v4076_v44 = vmul.f32 %v9052_v3, %v3742_v20 }
 0x6c0   : > { %v3710_v40 = vadd.f32 %v3678_v24, %v3610_v31  ;;  %v3908_v47 = vadd.f32 %v3876_v42, %v10012_v6  ;;  %v4077_v62 = vmul.f32 %v9052_v3, %v4041_v45  ;;  %v4007_v32 = vadd.f32 %v3975_v33, %v3907_v53 }
 0x6c1   : > { %v3809_v34 = vadd.f32 %v3777_v16, %v3709_v5  ;;  %v4078_v43 = vmul.f32 %v9052_v3, %v4042_v58  ;;  %v4175_v49 = vmul.f32 %v9044_v51, %v3574_v27  ;;  %v4177_v38 = vmul.f32 %v9044_v51, %v3842_v26 }
 0x6c2   : > { %v3810_v54 = vadd.f32 %v3778_v23, %v3710_v40  ;;  %v4008_v12 = vadd.f32 %v3976_v48, %v3908_v47  ;;  %v4206_v61 = vadd.f32 %v4174_v25, %v4105_v37  ;;  %v4107_v35 = vadd.f32 %v4075_v36, %v4007_v32  ;;  %v10971_v36 = vld [vmem:[#allocation41_spill] sm:$0xff] }
 0x6c3   : > { %v3909_v13 = vadd.f32 %v3877_v28, %v3809_v34  ;;  %v4207_v24 = vadd.f32 %v4175_v49, %v4106_v39  ;;  %v4374_v6 = vmul.f32 %v9055_v18, %v3741_v30  ;;  %v4375_v15 = vmul.f32 %v9055_v18, %v3742_v20  ;;  %v10973_v49 = vld [vmem:[#allocation34_spill] sm:$0xff] }
 0x6c4   : > { %v3910_v19 = vadd.f32 %v3878_v22, %v3810_v54  ;;  %v4108_v46 = vadd.f32 %v4076_v44, %v4008_v12  ;;  %v4306_v59 = vadd.f32 %v4274_v0, %v4206_v61  ;;  %v6848_v33 = vpop.eup %6847  ;;  %v4208_v1 = vadd.f32 %v4176_v17, %v4107_v35  ;;  %v10972_v44 = vld [vmem:[#allocation13_spill] sm:$0xff]  ;;  %v10974_v12 = vld [vmem:[#allocation15_spill] sm:$0xff] }
 0x6c5   : > { %v4009_v3 = vadd.f32 %v10019_v8, %v3909_v13  ;;  %v4307_v52 = vadd.f32 %v4275_v11, %v4207_v24  ;;  %v4376_v48 = vmul.f32 %v9055_v18, %v4041_v45  ;;  %v6850_v4 = vpop.eup %6849  ;;  %v4377_v37 = vmul.f32 %v9055_v18, %v4042_v58  ;;  %v10968_v11 = vld [vmem:[#allocation18_spill] sm:$0xff]  ;;  %v10970_v58 = vld [vmem:[#allocation20_spill] sm:$0xff] }
 0x6c6   : > { %v4010_v51 = vadd.f32 %v10060_v60, %v3910_v19  ;;  %v4209_v28 = vadd.f32 %v4177_v38, %v4108_v46  ;;  %v4406_v39 = vadd.f32 %v4374_v6, %v4306_v59  ;;  %v4308_v27 = vadd.f32 %v10022_v14, %v4208_v1  ;;  %v10975_v19 = vld [vmem:[#allocation28_spill] sm:$0xff] }
 0x6c7   : > { %v4109_v25 = vadd.f32 %v4077_v62, %v4009_v3  ;;  %v4407_v0 = vadd.f32 %v4375_v15, %v4307_v52  ;;  %v10112_v30 = vadd.f32 %v9720_v41, %v4405_v10  ;;  %v5891_v16 = vmul.f32 -1.442695, %v10080_v56  ;;  %v6852_v24 = vpop.eup %6851  ;;  %v10976_v52 = vld [vmem:[#allocation14_spill] sm:$0xff] }
 0x6c8   : > { %v4110_v20 = vadd.f32 %v4078_v43, %v4010_v51  ;;  %v4309_v8 = vadd.f32 %v10069_v9, %v4209_v28  ;;  %v10116_v17 = vadd.f32 %v9720_v41, %v4406_v39  ;;  %v4408_v31 = vadd.f32 %v4376_v48, %v4308_v27  ;;  %v10969_v9 = vld [vmem:[#allocation32_spill] sm:$0xff] }
 0x6c9   : > { %v4210_v60 = vadd.f32 %v10968_v11, %v4109_v25  ;;  %v10120_v18 = vadd.f32 %v9720_v41, %v4407_v0  ;;  %v5892_v10 = vmul.f32 -1.442695, %v10087_v7  ;;  %v5893_v23 = vmul.f32 -1.442695, %v10112_v30 }
 0x6ca   : > { %v4211_v14 = vadd.f32 %v10968_v11, %v4110_v20  ;;  %v4409_v42 = vadd.f32 %v4377_v37, %v4309_v8  ;;  %v10128_v45 = vadd.f32 %v9720_v41, %v4408_v31  ;;  %6853 = vpow2.f32 %v5891_v16 }
 0x6cb   : > { %v4310_v26 = vadd.f32 %v10969_v9, %v4210_v60  ;;  %v5894_v63 = vmul.f32 -1.442695, %v10116_v17  ;;  %6855 = vpow2.f32 %v5892_v10  ;;  %v5895_v53 = vmul.f32 -1.442695, %v10120_v18  ;;  %v10977_v60 = vld [vmem:[#allocation22_spill] sm:$0xff] }
 0x6cc   : > { %v4311_v5 = vadd.f32 %v10970_v58, %v4211_v14  ;;  %v10133_v22 = vadd.f32 %v9720_v41, %v4409_v42  ;;  %6857 = vpow2.f32 %v5893_v23  ;;  %v5896_v47 = vmul.f32 -1.442695, %v10128_v45 }
 0x6cd   : > { %v4410_v40 = vadd.f32 %v10971_v36, %v4310_v26  ;;  %6859 = vpow2.f32 %v5894_v63  ;;  %v4566_v32 = vadd.f32 1.0, %v6848_v33  ;;  %v10145_v54 = vmul.f32 %v9966_v2, %v10973_v49 }
 0x6ce   : > { %v4411_v62 = vadd.f32 %v10972_v44, %v4311_v5  ;;  %v5897_v34 = vmul.f32 -1.442695, %v10133_v22  ;;  %6861 = vpow2.f32 %v5895_v53  ;;  %v4689_v38 = vadd.f32 %v10974_v12, %v10029_v50 }
 0x6cf   : > { %v10141_v43 = vadd.f32 %v9720_v41, %v4410_v40  ;;  %6863 = vpow2.f32 %v5896_v47  ;;  %v4567_v35 = vadd.f32 1.0, %v6850_v4  ;;  %v10156_v46 = vmul.f32 %v10066_v29, %v10975_v19 }
 0x6d0   : > { %v10150_v61 = vadd.f32 %v9720_v41, %v4411_v62  ;;  %6865 = vpow2.f32 %v5897_v34  ;;  %v4568_v2 = vadd.f32 1.0, %v6852_v24  ;;  %v4690_v59 = vadd.f32 %v4689_v38, %v10145_v54 }
 0x6d1   : > { %v5898_v13 = vmul.f32 -1.442695, %v10141_v43  ;;  %6867 = vrcp.f32 %v4566_v32  ;;  %v10161_v48 = vmul.f32 %v10093_v57, %v10976_v52 }
 0x6d2   : > { %v5899_v6 = vmul.f32 -1.442695, %v10150_v61  ;;  %v4691_v4 = vadd.f32 %v4690_v59, %v10156_v46 }
 0x6d3   : > { %6869 = vpow2.f32 %v5898_v13 }
 0x6d4   : > { %6871 = vpow2.f32 %v5899_v6  ;;  %v6854_v41 = vpop.eup %6853  ;;  %v4692_v20 = vadd.f32 %v4691_v4, %v10161_v48 }
 0x6d5   : > { %6873 = vrcp.f32 %v4567_v35  ;;  %v6856_v15 = vpop.eup %6855  ;;  %v4569_v33 = vadd.f32 1.0, %v6854_v41 }
 0x6d6   : > { %6875 = vrcp.f32 %v4568_v2  ;;  %v6858_v3 = vpop.eup %6857  ;;  %v4570_v1 = vadd.f32 1.0, %v6856_v15 }
 0x6d7   : > { %v6860_v29 = vpop.eup %6859  ;;  %v4571_v51 = vadd.f32 1.0, %v6858_v3  ;;  %6877 = vrcp.f32 %v4569_v33 }
 0x6d8   : > { %v6862_v28 = vpop.eup %6861  ;;  %v4572_v37 = vadd.f32 1.0, %v6860_v29  ;;  %6879 = vrcp.f32 %v4570_v1  ;;  %v10213_v29 = vld [vmem:[#allocation3] sm:$0xff] }
 0x6d9   : > { %v6864_v39 = vpop.eup %6863  ;;  %v4573_v25 = vadd.f32 1.0, %v6862_v28  ;;  %6881 = vrcp.f32 %v4571_v51  ;;  %v3523_v51 = vld [vmem:[%s10670_s17 + $0x8] sm:$0xff] }
 0x6da   : > { %v6866_v27 = vpop.eup %6865  ;;  %v4574_v0 = vadd.f32 1.0, %v6864_v39  ;;  %6883 = vrcp.f32 %v4572_v37  ;;  %v3524_v37 = vld [vmem:[%s10670_s17 + $0x10] sm:$0xff] }
 0x6db   : > { %v6868_v8 = vpop.eup %6867  ;;  %v4575_v57 = vadd.f32 1.0, %v6866_v27  ;;  %6885 = vrcp.f32 %v4573_v25  ;;  %v4776_v39 = vpack.c.bf16 %v3524_v37, %v3524_v37  ;;  %v5900_v27 = vld [vmem:[%s10669_s16] ss:$0 sm:$0xff] }
 0x6dc   : > { %v10166_v31 = vmul.f32 %v6868_v8, %v10977_v60  ;;  %6887 = vrcp.f32 %v4574_v0 }
 0x6dd   : > { %v6870_v11 = vpop.eup %6869  ;;  %6889 = vrcp.f32 %v4575_v57  ;;  %v4788_v25 = vsel %vm2635_vm3, %v4776_v39, 0 }
 0x6de   : > { %v6872_v16 = vpop.eup %6871  ;;  %v4576_v42 = vadd.f32 1.0, %v6870_v11  ;;  %v4693_v10 = vadd.f32 %v4692_v20, %v10166_v31 }
 0x6df   : > { %v6874_v14 = vpop.eup %6873  ;;  %v4577_v26 = vadd.f32 1.0, %v6872_v16 }
 0x6e0   : > { %v6876_v23 = vpop.eup %6875  ;;  %v10170_v9 = vmul.f32 %v6874_v14, %v10034_v21  ;;  %6891 = vrcp.f32 %v4576_v42 }
 0x6e1   : > { %v10173_v63 = vmul.f32 %v6876_v23, %v10073_v55  ;;  %v6878_v58 = vpop.eup %6877  ;;  %6893 = vrcp.f32 %v4577_v26  ;;  %v3526_v26 = vld [vmem:[%s10672_s19] sm:$0xff] }
 0x6e2   : > { %v4694_v5 = vadd.f32 %v4693_v10, %v10170_v9  ;;  %v6880_v53 = vpop.eup %6879  ;;  %v10177_v36 = vmul.f32 %v6878_v58, %v10080_v56  ;;  %v3527_v58 = vld [vmem:[%s10672_s19 + $0x8] sm:$0xff] }
 0x6e3   : > { %v6882_v40 = vpop.eup %6881  ;;  %v10180_v47 = vmul.f32 %v6880_v53, %v10087_v7  ;;  %v3528_v53 = vld [vmem:[%s10672_s19 + $0x10] sm:$0xff] }
 0x6e4   : > { %v4695_v21 = vadd.f32 %v4694_v5, %v10173_v63  ;;  %v6884_v44 = vpop.eup %6883  ;;  %v10184_v62 = vmul.f32 %v6882_v40, %v10112_v30  ;;  %v4888_v5 = vpack.c.bf16 %v3527_v58, %v3526_v26  ;;  %v3529_v40 = vld [vmem:[%s10672_s19 + $0x18] sm:$0xff] }
 0x6e5   : > { %v6886_v34 = vpop.eup %6885  ;;  %v10188_v32 = vmul.f32 %v6884_v44, %v10116_v17  ;;  %v3530_v44 = vld [vmem:[%s10672_s19 + $0x20] sm:$0xff]  ;;  %v10982_v58 = vld [vmem:[#allocation46_spill] sm:$0xff] }
 0x6e6   : > { %v4696_v55 = vadd.f32 %v4695_v21, %v10177_v36  ;;  %v6888_v49 = vpop.eup %6887  ;;  %v10192_v12 = vmul.f32 %v6886_v34, %v10120_v18  ;;  %v4889_v21 = vpack.c.bf16 %v3529_v40, %v3528_v53  ;;  %v10983_v53 = vld [vmem:[#allocation47_spill] sm:$0xff] }
 0x6e7   : > { %v6890_v38 = vpop.eup %6889  ;;  %v10196_v13 = vmul.f32 %v6888_v49, %v10128_v45  ;;  %v3533_v49 = vld [vmem:[%s10672_s19 + $0x38] sm:$0xff] }
 0x6e8   : > { %v4697_v56 = vadd.f32 %v4696_v55, %v10180_v47  ;;  %v10200_v24 = vmul.f32 %v6890_v38, %v10133_v22  ;;  %v3531_v55 = vld [vmem:[%s10672_s19 + $0x28] sm:$0xff]  ;;  %v3534_v38 = vld [vmem:[%s10672_s19 + $0x40] sm:$0xff] }
 0x6e9   : > { %v4890_v34 = vpack.c.bf16 %v3531_v55, %v3530_v44 }
 0x6ea   : > { %v4698_v7 = vadd.f32 %v4697_v56, %v10184_v62  ;;  %v6892_v35 = vpop.eup %6891  ;;  %v3532_v56 = vld [vmem:[%s10672_s19 + $0x30] sm:$0xff] }
 0x6eb   : > { %v6894_v6 = vpop.eup %6893  ;;  %v10204_v19 = vmul.f32 %v6892_v35, %v10141_v43 }
 0x6ec   : > { %v4699_v30 = vadd.f32 %v4698_v7, %v10188_v32  ;;  %v10208_v2 = vmul.f32 %v6894_v6, %v10150_v61  ;;  %v3522_v61 = vld [vmem:[%s10670_s17] sm:$0xff]  ;;  %v4891_v7 = vpack.c.bf16 %v3533_v49, %v3532_v56  ;;  %v3537_v6 = vld [vmem:[%s10672_s19 + $0x58] sm:$0xff] }
 0x6ed   : > { %v4775_v28 = vpack.c.bf16 %v3523_v51, %v3522_v61  ;;  %v5902_v51 = vld [vmem:[%s10671_s18] ss:$0 sm:$0xff]  ;;  %v10985_v49 = vld [vmem:[#allocation26_spill] sm:$0xff] }
 0x6ee   : > { %v4700_v17 = vadd.f32 %v4699_v30, %v10192_v12  ;;  %v3535_v30 = vld [vmem:[%s10672_s19 + $0x48] sm:$0xff] }
 0x6ef   : > { %v4892_v35 = vpack.c.bf16 %v3535_v30, %v3534_v38  ;;  %v10986_v38 = vld [vmem:[#allocation49_spill] sm:$0xff] }
 0x6f0   : > { %v4701_v18 = vadd.f32 %v4700_v17, %v10196_v13  ;;  %v3536_v17 = vld [vmem:[%s10672_s19 + $0x50] sm:$0xff] }
 0x6f2   : > { %v4702_v45 = vadd.f32 %v4701_v18, %v10200_v24  ;;  %v4893_v18 = vpack.c.bf16 %v3537_v6, %v3536_v17  ;;  %v10988_v6 = vld [vmem:[#allocation27_spill] sm:$0xff] }
 0x6f4   : > { %v4703_v59 = vadd.f32 %v4702_v45, %v10204_v19  ;;  %v3538_v45 = vld [vmem:[%s10672_s19 + $0x60] sm:$0xff] }
 0x6f6   : > { %v4704_v41 = vadd.f32 %v4703_v59, %v10208_v2  ;;  %v3539_v59 = vld [vmem:[%s10672_s19 + $0x68] sm:$0xff] }
 0x6f8   : > { %v4705_v15 = vrot.slane %v4704_v41, 4 }
 0x6fa   : > { %v4706_v22 = vadd.f32 %v4705_v15, %v4704_v41  ;;  %v4894_v41 = vpack.c.bf16 %v3539_v59, %v3538_v45  ;;  %v3540_v15 = vld [vmem:[%s10672_s19 + $0x70] sm:$0xff] }
 0x6fc   : > { %v4707_v33 = vrot.slane %v4706_v22, 2 }
 0x6fe   : > { %v4708_v3 = vadd.f32 %v4707_v33, %v4706_v22  ;;  %v3541_v22 = vld [vmem:[%s10672_s19 + $0x78] sm:$0xff] }
 0x6ff   : > { %v4895_v33 = vpack.c.bf16 %v3541_v22, %v3540_v15  ;;  %v10990_v22 = vld [vmem:[#allocation29_spill] sm:$0xff] }
 0x700   : > { %v4709_v1 = vrot.slane %v4708_v3, 1 }
 0x702   : > { %v4710_v52 = vadd.f32 %v4709_v1, %v4708_v3  ;;  %v5063_v3 = vld [vmem:[%s10674_s21] sm:$0xff]  ;;  %v5064_v1 = vld [vmem:[%s10674_s21 + $0x8] sm:$0xff] }
 0x704   : > { %v4711_v4 = vmul.f32 0.00390625, %v4710_v52  ;;  %v5065_v52 = vld [vmem:[%s10674_s21 + $0x10] sm:$0xff] }
 0x706   : > { %v4712_v43 = vpack.c.bf16 %v4711_v4, %v4711_v4  ;;  %v5082_v4 = vpack.c.bf16 %v5064_v1, %v5063_v3  ;;  %v10991_v3 = vld [vmem:[#allocation30_spill] sm:$0xff] }
 0x708   : > { %6218 = vmatmul.mubr.bf16.vlgmr.msra.gmra.mrb[40].mxu1 %v4712_v43  ;;  %v5083_v43 = vpack.c.bf16 %v5065_v52, %v5065_v52  ;;  %6277 = vmatprep.subr.bf16.mxu0 %v5082_v4  ;;  %v10992_v52 = vld [vmem:[#allocation16_spill] sm:$0xff] }
 0x709   : > { %6225 = vmatprep.mubr.msk.bf16.mxu1 %vm7104_vm2, %v10213_v29  ;;  %6222 = vmatpush3.bf16.msra.mxu1 %v4775_v28 }
 0x70a   : > { %6223 = vmatprep.subr.bf16.mxu1 %v10213_v29  ;;  %6278 = vmatpush3.bf16.msra.mxu0 %v5082_v4  ;;  %v5140_v61 = vsel %vm2635_vm3, %v5083_v43, 0 }
 0x70b   : > { %6333 = vmatprep.subr.msk.bf16.mxu0 %vm2635_vm3, %v5083_v43 }
 0x70d   : > { %6224 = vmatpush3.bf16.msra.mxu1 %v4788_v25 }
 0x70e   : > { %6229 = vmatprep.subr.bf16.mxu1 %v4888_v5  ;;  %6280 = vmatpush3.bf16.msra.mxu0 %v5140_v61 }
 0x7db   : > { %v4761_v0 = vpop.f32.mrb[40].mxu1 }
 0x7dc   : > { %v4762_v20 = vadd.f32 %v5900_v27, %v4761_v0  ;;  %v6219_v8 = vpop.f32.mrb[41].mxu1 }
 0x7dd   : > { %v4764_v11 = vpop.f32.mrb[42].mxu1 }
 0x7de   : > { %v5901_v57 = vmul.f32 -1.442695, %v4762_v20  ;;  %v6220_v60 = vpop.f32.mrb[43].mxu1 }
 0x7e0   : > { %6895 = vpow2.f32 %v5901_v57  ;;  %v10978_v57 = vld [vmem:[#allocation12_spill] sm:$0xff] }
 0x7ea   : > { %v6896_v16 = vpop.eup %6895 }
 0x7eb   : > { %v4770_v14 = vadd.f32 1.0, %v6896_v16  ;;  %v10979_v16 = vld [vmem:[#allocation37_spill] sm:$0xff] }
 0x7ed   : > { %6897 = vrcp.f32 %v4770_v14 }
 0x7f7   : > { %v6898_v42 = vpop.eup %6897 }
 0x7f8   : > { %v4773_v10 = vmul.f32 %v6898_v42, %v4762_v20  ;;  %v10980_v42 = vld [vmem:[#allocation42_spill] sm:$0xff] }
 0x7fa   : > { %v4774_v23 = vpack.c.bf16 %v4773_v10, %v4773_v10 }
 0x7fc   : > { %6226 = vmatmul.mubr.msk.bf16.vlgmr.msra.gmra.mrb[44].mxu1 %vm4783_vm6, %v4774_v23  ;;  %v10981_v23 = vld [vmem:[#allocation33_spill] sm:$0xff] }
 0x7fd   : > { %6230 = vmatpush3.bf16.msra.mxu1 %v4888_v5 }
 0x7fe   : > { %6231 = vmatprep.subr.bf16.mxu1 %v4889_v21 }
 0x801   : > { %6232 = vmatpush3.bf16.msra.mxu1 %v4889_v21  ;;  %v10984_v21 = vld [vmem:[#allocation48_spill] sm:$0xff] }
 0x802   : > { %6233 = vmatprep.subr.bf16.mxu1 %v4890_v34 }
 0x805   : > { %6234 = vmatpush3.bf16.msra.mxu1 %v4890_v34 }
 0x806   : > { %6235 = vmatprep.subr.bf16.mxu1 %v4891_v7 }
 0x809   : > { %6236 = vmatpush3.bf16.msra.mxu1 %v4891_v7 }
 0x80a   : > { %6237 = vmatprep.subr.bf16.mxu1 %v4892_v35 }
 0x80d   : > { %6238 = vmatpush3.bf16.msra.mxu1 %v4892_v35  ;;  %v10987_v35 = vld [vmem:[#allocation40_spill] sm:$0xff] }
 0x80e   : > { %6239 = vmatprep.subr.bf16.mxu1 %v4893_v18 }
 0x811   : > { %6240 = vmatpush3.bf16.msra.mxu1 %v4893_v18 }
 0x812   : > { %6241 = vmatprep.subr.bf16.mxu1 %v4894_v41 }
 0x815   : > { %6242 = vmatpush3.bf16.msra.mxu1 %v4894_v41  ;;  %v10989_v41 = vld [vmem:[#allocation35_spill] sm:$0xff] }
 0x816   : > { %6243 = vmatprep.subr.bf16.mxu1 %v4895_v33 }
 0x819   : > { %6244 = vmatpush3.bf16.msra.mxu1 %v4895_v33 }
 0x81a   : > { %6313 = vmatprep.subr.bf16.mxu1 %v10213_v29 }
 0x8cf   : > { %v4824_v28 = vpop.f32.mrb[44].mxu1 }
 0x8d0   : > { %v4825_v37 = vadd.f32 %v5902_v51, %v4824_v28  ;;  %v6227_v39 = vpop.f32.mrb[45].mxu1  ;;  %v10993_v51 = vld [vmem:[#allocation50_spill] sm:$0xff] }
 0x8d1   : > { %v4827_v25 = vpop.f32.mrb[46].mxu1 }
 0x8d2   : > { %v5904_v27 = vmul.f32 -1.442695, %v4825_v37  ;;  %v6228_v0 = vpop.f32.mrb[47].mxu1  ;;  %v10994_v37 = vld [vmem:[#allocation25_spill] sm:$0xff] }
 0x8d4   : > { %6899 = vpow2.f32 %v5904_v27 }
 0x8de   : > { %v6900_v20 = vpop.eup %6899 }
 0x8df   : > { %v4833_v8 = vadd.f32 1.0, %v6900_v20 }
 0x8e1   : > { %6901 = vrcp.f32 %v4833_v8 }
 0x8eb   : > { %v6902_v11 = vpop.eup %6901 }
 0x8ec   : > { %v4839_v60 = vrot.slane %v6902_v11, %v10978_v57 }
 0x8ee   : > { %v4840_v14 = vmul.f32 %v4839_v60, %v10979_v16  ;;  %v4841_v10 = vmul.f32 %v4839_v60, %v10980_v42  ;;  %v4842_v26 = vmul.f32 %v4839_v60, %v10981_v23  ;;  %v4843_v5 = vmul.f32 %v4839_v60, %v10982_v58 }
 0x8ef   : > { %v4844_v40 = vmul.f32 %v4839_v60, %v10983_v53  ;;  %v4845_v44 = vmul.f32 %v4839_v60, %v10984_v21  ;;  %v4846_v7 = vmul.f32 %v4839_v60, %v10985_v49  ;;  %v4847_v30 = vmul.f32 %v4839_v60, %v10986_v38 }
 0x8f0   : > { %v4872_v55 = vpack.c.bf16 %v4841_v10, %v4840_v14  ;;  %v4873_v34 = vpack.c.bf16 %v4843_v5, %v4842_v26  ;;  %v4848_v17 = vmul.f32 %v4839_v60, %v10987_v35  ;;  %v4849_v18 = vmul.f32 %v4839_v60, %v10988_v6 }
 0x8f1   : > { %v4874_v56 = vpack.c.bf16 %v4845_v44, %v4844_v40  ;;  %v4875_v45 = vpack.c.bf16 %v4847_v30, %v4846_v7  ;;  %v4850_v15 = vmul.f32 %v4839_v60, %v10989_v41  ;;  %v4851_v33 = vmul.f32 %v4839_v60, %v10990_v22 }
 0x8f2   : > { %6245 = vmatprep.mubr.bf16.mxu1 %v4872_v55  ;;  %v4876_v59 = vpack.c.bf16 %v4849_v18, %v4848_v17  ;;  %v4852_v1 = vmul.f32 %v4839_v60, %v10991_v3  ;;  %v4853_v4 = vmul.f32 %v4839_v60, %v10992_v52  ;;  %v4854_v28 = vmul.f32 %v4839_v60, %v10993_v51 }
 0x8f3   : > { %6246 = vmatmul.mubr.bf16.vlgmr.msra.gmra.mrb[48].mxu1 %v4873_v34  ;;  %v4877_v43 = vpack.c.bf16 %v4851_v33, %v4850_v15  ;;  %v4855_v39 = vmul.f32 %v4839_v60, %v10994_v37  ;;  %v4856_v25 = vmul.f32 %v4839_v60, %v10029_v50  ;;  %v4857_v27 = vmul.f32 %v4839_v60, %v10145_v54 }
 0x8f4   : > { %6249 = vmatprep.mubr.bf16.mxu1 %v4874_v56  ;;  %v4878_v61 = vpack.c.bf16 %v4853_v4, %v4852_v1  ;;  %v4858_v8 = vmul.f32 %v4839_v60, %v10156_v46  ;;  %v4859_v11 = vmul.f32 %v4839_v60, %v10161_v48  ;;  %v4860_v57 = vmul.f32 %v4839_v60, %v10166_v31 }
 0x8f5   : > { %v4879_v0 = vpack.c.bf16 %v4855_v39, %v4854_v28  ;;  %v4880_v20 = vpack.c.bf16 %v4857_v27, %v4856_v25  ;;  %v4861_v16 = vmul.f32 %v4839_v60, %v10170_v9  ;;  %v4862_v50 = vmul.f32 %v4839_v60, %v10173_v63 }
 0x8f6   : > { %v4881_v14 = vpack.c.bf16 %v4859_v11, %v4858_v8  ;;  %v4863_v54 = vmul.f32 %v4839_v60, %v10177_v36  ;;  %v4864_v10 = vmul.f32 %v4839_v60, %v10180_v47  ;;  %v4865_v23 = vmul.f32 %v4839_v60, %v10184_v62 }
 0x8f7   : > { %v4882_v42 = vpack.c.bf16 %v4861_v16, %v4860_v57  ;;  %v4866_v48 = vmul.f32 %v4839_v60, %v10188_v32  ;;  %v4867_v31 = vmul.f32 %v4839_v60, %v10192_v12  ;;  %v4868_v9 = vmul.f32 %v4839_v60, %v10196_v13  ;;  %v10333_v12 = vld [vmem:[%s10673_s20] ss:$0 sm:$0xff] }
 0x8f8   : > { %v4883_v26 = vpack.c.bf16 %v4863_v54, %v4862_v50  ;;  %v4884_v46 = vpack.c.bf16 %v4865_v23, %v4864_v10  ;;  %v4869_v58 = vmul.f32 %v4839_v60, %v10200_v24  ;;  %v4870_v36 = vmul.f32 %v4839_v60, %v10204_v19 }
 0x8f9   : > { %v4885_v5 = vpack.c.bf16 %v4867_v31, %v4866_v48  ;;  %v4871_v47 = vmul.f32 %v4839_v60, %v10208_v2 }
 0x8fa   : > { %v4886_v63 = vpack.c.bf16 %v4869_v58, %v4868_v9 }
 0x8fb   : > { %6250 = vmatmul.mubr.bf16.gmra.mrb[52].mxu1 %v4875_v45  ;;  %v4887_v62 = vpack.c.bf16 %v4871_v47, %v4870_v36 }
 0x8fc   : > { %6253 = vmatprep.mubr.bf16.mxu1 %v4876_v59 }
 0x903   : > { %6254 = vmatmul.mubr.bf16.gmra.mrb[56].mxu1 %v4877_v43 }
 0x904   : > { %6257 = vmatprep.mubr.bf16.mxu1 %v4878_v61 }
 0x90b   : > { %6258 = vmatmul.mubr.bf16.gmra.mrb[60].mxu1 %v4879_v0 }
 0x90c   : > { %6261 = vmatprep.mubr.bf16.mxu1 %v4880_v20 }
 0x913   : > { %6262 = vmatmul.mubr.bf16.gmra.mrb[64].mxu1 %v4881_v14 }
 0x914   : > { %6265 = vmatprep.mubr.bf16.mxu1 %v4882_v42 }
 0x91b   : > { %6266 = vmatmul.mubr.bf16.gmra.mrb[68].mxu1 %v4883_v26 }
 0x91c   : > { %6269 = vmatprep.mubr.bf16.mxu1 %v4884_v46 }
 0x923   : > { %6270 = vmatmul.mubr.bf16.gmra.mrb[72].mxu1 %v4885_v5 }
 0x924   : > { %6273 = vmatprep.mubr.bf16.mxu1 %v4886_v63 }
 0x92b   : > { %6274 = vmatmul.mubr.bf16.gmra.mrb[76].mxu1 %v4887_v62 }
 0x92c   : > { %6329 = vmatprep.mubr.msk.bf16.mxu1 %vm7104_vm2, %v10213_v29 }
 0x9c6   : > { %v6247_v32 = vpop.f32.mrb[48].mxu1 }
 0x9c7   : > { %v4936_v13 = vpop.f32.mrb[49].mxu1  ;;  %v4945_v53 = vadd.f32 %v6247_v32, %v10333_v12 }
 0x9c8   : > { %v6248_v24 = vpop.f32.mrb[50].mxu1  ;;  %v4937_v2 = vadd.f32 %v10333_v12, %v4936_v13 }
 0x9c9   : > { %v4948_v40 = vadd.f32 %v6248_v24, %v10333_v12  ;;  %v4939_v19 = vpop.f32.mrb[51].mxu1 }
 0x9ca   : > { %v4940_v60 = vadd.f32 %v10333_v12, %v4939_v19 }
 0x9cb   : > { %v5067_v21 = vpack.c.bf16 %v4948_v40, %v4945_v53 }
 0x9cc   : > { %v5066_v44 = vpack.c.bf16 %v4940_v60, %v4937_v2 }
 0x9ce   : > { %v6251_v55 = vpop.f32.mrb[52].mxu1  ;;  %6281 = vmatprep.mubr.msk.bf16.mxu0 %vm4783_vm6, %v5066_v44 }
 0x9cf   : > { %v4952_v34 = vpop.f32.mrb[53].mxu1  ;;  %6282 = vmatmul.mubr.msk.bf16.vlgmr.msra.gmra.mrb[64].mxu0 %vm4783_vm6, %v5067_v21  ;;  %v4961_v49 = vadd.f32 %v6251_v55, %v10333_v12 }
 0x9d0   : > { %v6252_v56 = vpop.f32.mrb[54].mxu1  ;;  %v4953_v30 = vadd.f32 %v10333_v12, %v4952_v34 }
 0x9d1   : > { %v4964_v7 = vadd.f32 %v6252_v56, %v10333_v12  ;;  %v4955_v38 = vpop.f32.mrb[55].mxu1 }
 0x9d2   : > { %v4956_v35 = vadd.f32 %v10333_v12, %v4955_v38 }
 0x9d3   : > { %v5069_v17 = vpack.c.bf16 %v4964_v7, %v4961_v49 }
 0x9d4   : > { %v5068_v6 = vpack.c.bf16 %v4956_v35, %v4953_v30 }
 0x9d6   : > { %v6255_v18 = vpop.f32.mrb[56].mxu1  ;;  %6285 = vmatprep.mubr.msk.bf16.mxu0 %vm4783_vm6, %v5068_v6  ;;  %v5566_v6 = vld [vmem:[%s10676_s23 + $0x8] sm:$0xff] }
 0x9d7   : > { %v4968_v45 = vpop.f32.mrb[57].mxu1  ;;  %6286 = vmatmul.mubr.msk.bf16.gmra.mrb[68].mxu0 %vm4783_vm6, %v5069_v17  ;;  %v4977_v41 = vadd.f32 %v6255_v18, %v10333_v12  ;;  %v5565_v17 = vld [vmem:[%s10676_s23] sm:$0xff] }
 0x9d8   : > { %v6256_v59 = vpop.f32.mrb[58].mxu1  ;;  %v4969_v33 = vadd.f32 %v10333_v12, %v4968_v45  ;;  %v5582_v18 = vpack.c.bf16 %v5566_v6, %v5565_v17  ;;  %v5568_v45 = vld [vmem:[%s10676_s23 + $0x18] sm:$0xff] }
 0x9d9   : > { %v4980_v15 = vadd.f32 %v6256_v59, %v10333_v12  ;;  %v4971_v22 = vpop.f32.mrb[59].mxu1 }
 0x9da   : > { %v4972_v3 = vadd.f32 %v10333_v12, %v4971_v22  ;;  %6314 = vmatpush3.bf16.msra.mxu1 %v5582_v18 }
 0x9db   : > { %v5071_v1 = vpack.c.bf16 %v4980_v15, %v4977_v41  ;;  %6315 = vmatprep.subr.bf16.mxu1 %v10213_v29  ;;  %v5569_v41 = vld [vmem:[%s10676_s23 + $0x20] sm:$0xff]  ;;  %v5570_v15 = vld [vmem:[%s10676_s23 + $0x28] sm:$0xff] }
 0x9dc   : > { %v5070_v52 = vpack.c.bf16 %v4972_v3, %v4969_v33  ;;  %v5584_v22 = vpack.c.bf16 %v5570_v15, %v5569_v41  ;;  %v5571_v33 = vld [vmem:[%s10676_s23 + $0x30] sm:$0xff]  ;;  %v5572_v3 = vld [vmem:[%s10676_s23 + $0x38] sm:$0xff] }
 0x9de   : > { %v6259_v4 = vpop.f32.mrb[60].mxu1  ;;  %6289 = vmatprep.mubr.msk.bf16.mxu0 %vm4783_vm6, %v5070_v52  ;;  %v5573_v52 = vld [vmem:[%s10676_s23 + $0x40] sm:$0xff] }
 0x9df   : > { %v4984_v43 = vpop.f32.mrb[61].mxu1  ;;  %6290 = vmatmul.mubr.msk.bf16.gmra.mrb[72].mxu0 %vm4783_vm6, %v5071_v1  ;;  %v4993_v51 = vadd.f32 %v6259_v4, %v10333_v12  ;;  %v5585_v1 = vpack.c.bf16 %v5572_v3, %v5571_v33  ;;  %v5574_v4 = vld [vmem:[%s10676_s23 + $0x48] sm:$0xff] }
 0x9e0   : > { %v6260_v61 = vpop.f32.mrb[62].mxu1  ;;  %v4985_v39 = vadd.f32 %v10333_v12, %v4984_v43  ;;  %v5586_v43 = vpack.c.bf16 %v5574_v4, %v5573_v52 }
 0x9e1   : > { %v4996_v28 = vadd.f32 %v6260_v61, %v10333_v12  ;;  %v4987_v37 = vpop.f32.mrb[63].mxu1  ;;  %v5575_v61 = vld [vmem:[%s10676_s23 + $0x50] sm:$0xff] }
 0x9e2   : > { %v4988_v25 = vadd.f32 %v10333_v12, %v4987_v37  ;;  %v5577_v37 = vld [vmem:[%s10676_s23 + $0x60] sm:$0xff] }
 0x9e3   : > { %v5073_v27 = vpack.c.bf16 %v4996_v28, %v4993_v51  ;;  %v5576_v51 = vld [vmem:[%s10676_s23 + $0x58] sm:$0xff] }
 0x9e4   : > { %v5072_v0 = vpack.c.bf16 %v4988_v25, %v4985_v39  ;;  %v5587_v28 = vpack.c.bf16 %v5576_v51, %v5575_v61  ;;  %v5578_v39 = vld [vmem:[%s10676_s23 + $0x68] sm:$0xff] }
 0x9e5   : > { %v5588_v25 = vpack.c.bf16 %v5578_v39, %v5577_v37 }
 0x9e6   : > { %v6263_v20 = vpop.f32.mrb[64].mxu1  ;;  %6293 = vmatprep.mubr.msk.bf16.mxu0 %vm4783_vm6, %v5072_v0  ;;  %v5580_v0 = vld [vmem:[%s10676_s23 + $0x78] sm:$0xff] }
 0x9e7   : > { %v5000_v8 = vpop.f32.mrb[65].mxu1  ;;  %6294 = vmatmul.mubr.msk.bf16.gmra.mrb[76].mxu0 %vm4783_vm6, %v5073_v27  ;;  %v5009_v57 = vadd.f32 %v6263_v20, %v10333_v12  ;;  %v5579_v27 = vld [vmem:[%s10676_s23 + $0x70] sm:$0xff] }
 0x9e8   : > { %v6264_v11 = vpop.f32.mrb[66].mxu1  ;;  %v5001_v42 = vadd.f32 %v10333_v12, %v5000_v8  ;;  %v5589_v20 = vpack.c.bf16 %v5580_v0, %v5579_v27  ;;  %v10441_v8 = vld [vmem:[%s10675_s22] ss:$0 sm:$0xff] }
 0x9e9   : > { %v5012_v16 = vadd.f32 %v6264_v11, %v10333_v12  ;;  %v5003_v14 = vpop.f32.mrb[67].mxu1 }
 0x9ea   : > { %v5004_v50 = vadd.f32 %v10333_v12, %v5003_v14 }
 0x9eb   : > { %v5075_v54 = vpack.c.bf16 %v5012_v16, %v5009_v57 }
 0x9ec   : > { %v5074_v10 = vpack.c.bf16 %v5004_v50, %v5001_v42 }
 0x9ee   : > { %v6267_v23 = vpop.f32.mrb[68].mxu1  ;;  %6297 = vmatprep.mubr.msk.bf16.mxu0 %vm4783_vm6, %v5074_v10 }
 0x9ef   : > { %v5016_v26 = vpop.f32.mrb[69].mxu1  ;;  %6298 = vmatmul.mubr.msk.bf16.gmra.mrb[80].mxu0 %vm4783_vm6, %v5075_v54  ;;  %v5025_v48 = vadd.f32 %v6267_v23, %v10333_v12 }
 0x9f0   : > { %v6268_v46 = vpop.f32.mrb[70].mxu1  ;;  %v5017_v58 = vadd.f32 %v10333_v12, %v5016_v26 }
 0x9f1   : > { %v5028_v31 = vadd.f32 %v6268_v46, %v10333_v12  ;;  %v5019_v9 = vpop.f32.mrb[71].mxu1 }
 0x9f2   : > { %v5020_v5 = vadd.f32 %v10333_v12, %v5019_v9 }
 0x9f3   : > { %v5077_v63 = vpack.c.bf16 %v5028_v31, %v5025_v48 }
 0x9f4   : > { %v5076_v36 = vpack.c.bf16 %v5020_v5, %v5017_v58 }
 0x9f6   : > { %v6271_v47 = vpop.f32.mrb[72].mxu1  ;;  %6301 = vmatprep.mubr.msk.bf16.mxu0 %vm4783_vm6, %v5076_v36 }
 0x9f7   : > { %v5032_v62 = vpop.f32.mrb[73].mxu1  ;;  %6302 = vmatmul.mubr.msk.bf16.gmra.mrb[84].mxu0 %vm4783_vm6, %v5077_v63  ;;  %v5041_v13 = vadd.f32 %v6271_v47, %v10333_v12 }
 0x9f8   : > { %v6272_v32 = vpop.f32.mrb[74].mxu1  ;;  %v5033_v40 = vadd.f32 %v10333_v12, %v5032_v62 }
 0x9f9   : > { %v5044_v24 = vadd.f32 %v6272_v32, %v10333_v12  ;;  %v5035_v53 = vpop.f32.mrb[75].mxu1 }
 0x9fa   : > { %v5036_v19 = vadd.f32 %v10333_v12, %v5035_v53 }
 0x9fb   : > { %v5079_v2 = vpack.c.bf16 %v5044_v24, %v5041_v13 }
 0x9fc   : > { %v5078_v60 = vpack.c.bf16 %v5036_v19, %v5033_v40 }
 0x9fe   : > { %v6275_v21 = vpop.f32.mrb[76].mxu1  ;;  %6305 = vmatprep.mubr.msk.bf16.mxu0 %vm4783_vm6, %v5078_v60 }
 0x9ff   : > { %v5048_v44 = vpop.f32.mrb[77].mxu1  ;;  %6306 = vmatmul.mubr.msk.bf16.gmra.mrb[88].mxu0 %vm4783_vm6, %v5079_v2  ;;  %v5057_v34 = vadd.f32 %v6275_v21, %v10333_v12 }
 0xa00   : > { %v6276_v55 = vpop.f32.mrb[78].mxu1  ;;  %v5049_v7 = vadd.f32 %v10333_v12, %v5048_v44 }
 0xa01   : > { %v5060_v56 = vadd.f32 %v6276_v55, %v10333_v12  ;;  %v5051_v49 = vpop.f32.mrb[79].mxu1 }
 0xa02   : > { %v5052_v38 = vadd.f32 %v10333_v12, %v5051_v49  ;;  %v5567_v12 = vld [vmem:[%s10676_s23 + $0x10] sm:$0xff] }
 0xa03   : > { %v5081_v30 = vpack.c.bf16 %v5060_v56, %v5057_v34  ;;  %v5583_v59 = vpack.c.bf16 %v5568_v45, %v5567_v12 }
 0xa04   : > { %v5080_v35 = vpack.c.bf16 %v5052_v38, %v5049_v7 }
 0xa05   : > { %6316 = vmatpush3.bf16.msra.mxu1 %v5583_v59 }
 0xa06   : > { %6309 = vmatprep.mubr.msk.bf16.mxu0 %vm4783_vm6, %v5080_v35  ;;  %6317 = vmatprep.subr.bf16.mxu1 %v10213_v29 }
 0xa07   : > { %6310 = vmatmul.mubr.msk.bf16.gmra.mrb[92].mxu0 %vm4783_vm6, %v5081_v30 }
 0xa09   : > { %6318 = vmatpush3.bf16.msra.mxu1 %v5584_v22 }
 0xa0a   : > { %6319 = vmatprep.subr.bf16.mxu1 %v10213_v29 }
 0xa0d   : > { %6320 = vmatpush3.bf16.msra.mxu1 %v5585_v1 }
 0xa0e   : > { %6321 = vmatprep.subr.bf16.mxu1 %v10213_v29 }
 0xa11   : > { %6322 = vmatpush3.bf16.msra.mxu1 %v5586_v43 }
 0xa12   : > { %6323 = vmatprep.subr.bf16.mxu1 %v10213_v29 }
 0xa15   : > { %6324 = vmatpush3.bf16.msra.mxu1 %v5587_v28 }
 0xa16   : > { %6325 = vmatprep.subr.bf16.mxu1 %v10213_v29 }
 0xa19   : > { %6326 = vmatpush3.bf16.msra.mxu1 %v5588_v25 }
 0xa1a   : > { %6327 = vmatprep.subr.bf16.mxu1 %v10213_v29 }
 0xa1d   : > { %6328 = vmatpush3.bf16.msra.mxu1 %v5589_v20 }
 0xaa2   : > { %v6283_v11 = vpop.f32.mrb[64].mxu0 }
 0xaa3   : > { %v10444_v57 = vadd.f32 %v6283_v11, %v10441_v8  ;;  %v5176_v16 = vpop.f32.mrb[65].mxu0 }
 0xaa4   : > { %v10447_v14 = vadd.f32 %v10441_v8, %v5176_v16  ;;  %v6284_v42 = vpop.f32.mrb[66].mxu0 }
 0xaa5   : > { %v5925_v50 = vmul.f32 -1.442695, %v10444_v57  ;;  %v10451_v54 = vadd.f32 %v6284_v42, %v10441_v8  ;;  %v5179_v29 = vpop.f32.mrb[67].mxu0 }
 0xaa6   : > { %v5923_v10 = vmul.f32 -1.442695, %v10447_v14  ;;  %v10455_v23 = vadd.f32 %v10441_v8, %v5179_v29 }
 0xaa7   : > { %6903 = vpow2.f32 %v5925_v50  ;;  %v5926_v26 = vmul.f32 -1.442695, %v10451_v54 }
 0xaa8   : > { %6905 = vpow2.f32 %v5923_v10  ;;  %v5924_v46 = vmul.f32 -1.442695, %v10455_v23 }
 0xaa9   : > { %6907 = vpow2.f32 %v5926_v26 }
 0xaaa   : > { %6909 = vpow2.f32 %v5924_v46  ;;  %v6287_v48 = vpop.f32.mrb[68].mxu0 }
 0xaab   : > { %v10460_v31 = vadd.f32 %v6287_v48, %v10441_v8  ;;  %v5192_v9 = vpop.f32.mrb[69].mxu0 }
 0xaac   : > { %v10463_v58 = vadd.f32 %v10441_v8, %v5192_v9  ;;  %v6288_v5 = vpop.f32.mrb[70].mxu0 }
 0xaad   : > { %v5929_v63 = vmul.f32 -1.442695, %v10460_v31  ;;  %v10467_v36 = vadd.f32 %v6288_v5, %v10441_v8  ;;  %v5195_v47 = vpop.f32.mrb[71].mxu0 }
 0xaae   : > { %v5927_v62 = vmul.f32 -1.442695, %v10463_v58  ;;  %v10471_v32 = vadd.f32 %v10441_v8, %v5195_v47 }
 0xaaf   : > { %6911 = vpow2.f32 %v5929_v63  ;;  %v5930_v13 = vmul.f32 -1.442695, %v10467_v36 }
 0xab0   : > { %6913 = vpow2.f32 %v5927_v62  ;;  %v5928_v24 = vmul.f32 -1.442695, %v10471_v32 }
 0xab1   : > { %v6904_v53 = vpop.eup %6903  ;;  %6915 = vpow2.f32 %v5930_v13 }
 0xab2   : > { %v6906_v40 = vpop.eup %6905  ;;  %v5401_v19 = vadd.f32 1.0, %v6904_v53  ;;  %6917 = vpow2.f32 %v5928_v24  ;;  %v6291_v2 = vpop.f32.mrb[72].mxu0 }
 0xab3   : > { %v6908_v60 = vpop.eup %6907  ;;  %v5399_v21 = vadd.f32 1.0, %v6906_v40  ;;  %v10476_v44 = vadd.f32 %v6291_v2, %v10441_v8  ;;  %v5208_v55 = vpop.f32.mrb[73].mxu0 }
 0xab4   : > { %v6910_v34 = vpop.eup %6909  ;;  %6919 = vrcp.f32 %v5401_v19  ;;  %v5402_v56 = vadd.f32 1.0, %v6908_v60  ;;  %v10479_v49 = vadd.f32 %v10441_v8, %v5208_v55  ;;  %v6292_v7 = vpop.f32.mrb[74].mxu0 }
 0xab5   : > { %6921 = vrcp.f32 %v5399_v21  ;;  %v5400_v38 = vadd.f32 1.0, %v6910_v34  ;;  %v5933_v30 = vmul.f32 -1.442695, %v10476_v44  ;;  %v10483_v35 = vadd.f32 %v6292_v7, %v10441_v8  ;;  %v5211_v17 = vpop.f32.mrb[75].mxu0 }
 0xab6   : > { %6923 = vrcp.f32 %v5402_v56  ;;  %v5931_v6 = vmul.f32 -1.442695, %v10479_v49  ;;  %v10487_v18 = vadd.f32 %v10441_v8, %v5211_v17 }
 0xab7   : > { %6925 = vrcp.f32 %v5400_v38  ;;  %v5934_v12 = vmul.f32 -1.442695, %v10483_v35 }
 0xab8   : > { %6927 = vpow2.f32 %v5933_v30  ;;  %v5932_v45 = vmul.f32 -1.442695, %v10487_v18 }
 0xab9   : > { %v6912_v59 = vpop.eup %6911  ;;  %6929 = vpow2.f32 %v5931_v6 }
 0xaba   : > { %v6914_v41 = vpop.eup %6913  ;;  %v5405_v15 = vadd.f32 1.0, %v6912_v59  ;;  %6931 = vpow2.f32 %v5934_v12  ;;  %v6295_v22 = vpop.f32.mrb[76].mxu0 }
 0xabb   : > { %v6916_v33 = vpop.eup %6915  ;;  %v5403_v3 = vadd.f32 1.0, %v6914_v41  ;;  %6933 = vpow2.f32 %v5932_v45  ;;  %v10492_v1 = vadd.f32 %v6295_v22, %v10441_v8  ;;  %v5224_v52 = vpop.f32.mrb[77].mxu0 }
 0xabc   : > { %v6918_v4 = vpop.eup %6917  ;;  %6935 = vrcp.f32 %v5405_v15  ;;  %v5406_v43 = vadd.f32 1.0, %v6916_v33  ;;  %v10495_v61 = vadd.f32 %v10441_v8, %v5224_v52  ;;  %v6296_v51 = vpop.f32.mrb[78].mxu0 }
 0xabd   : > { %6937 = vrcp.f32 %v5403_v3  ;;  %v5404_v28 = vadd.f32 1.0, %v6918_v4  ;;  %v5937_v37 = vmul.f32 -1.442695, %v10492_v1  ;;  %v10499_v39 = vadd.f32 %v6296_v51, %v10441_v8  ;;  %v5227_v25 = vpop.f32.mrb[79].mxu0 }
 0xabe   : > { %v6920_v27 = vpop.eup %6919  ;;  %6939 = vrcp.f32 %v5406_v43  ;;  %v5935_v0 = vmul.f32 -1.442695, %v10495_v61  ;;  %v10503_v20 = vadd.f32 %v10441_v8, %v5227_v25 }
 0xabf   : > { %v6922_v11 = vpop.eup %6921  ;;  %6941 = vrcp.f32 %v5404_v28  ;;  %v5938_v16 = vmul.f32 -1.442695, %v10499_v39  ;;  %v5497_v5 = vmul.f32 %v6920_v27, %v10444_v57 }
 0xac0   : > { %v6924_v42 = vpop.eup %6923  ;;  %6943 = vpow2.f32 %v5937_v37  ;;  %v5936_v50 = vmul.f32 -1.442695, %v10503_v20  ;;  %v5495_v26 = vmul.f32 %v6922_v11, %v10447_v14 }
 0xac1   : > { %v6926_v29 = vpop.eup %6925  ;;  %6945 = vpow2.f32 %v5935_v0  ;;  %v5498_v24 = vmul.f32 %v6924_v42, %v10451_v54 }
 0xac2   : > { %v6928_v10 = vpop.eup %6927  ;;  %v5496_v46 = vmul.f32 %v6926_v29, %v10455_v23  ;;  %6947 = vpow2.f32 %v5938_v16  ;;  %v6299_v48 = vpop.f32.mrb[80].mxu0 }
 0xac3   : > { %v6930_v9 = vpop.eup %6929  ;;  %v5409_v63 = vadd.f32 1.0, %v6928_v10  ;;  %6949 = vpow2.f32 %v5936_v50  ;;  %v10511_v47 = vadd.f32 %v6299_v48, %v10441_v8  ;;  %v5240_v62 = vpop.f32.mrb[81].mxu0 }
 0xac4   : > { %v6932_v13 = vpop.eup %6931  ;;  %v5527_v53 = vadd.f32 %v5496_v46, %v5495_v26  ;;  %v5407_v40 = vadd.f32 1.0, %v6930_v9  ;;  %v10515_v14 = vadd.f32 %v10441_v8, %v5240_v62  ;;  %v6300_v23 = vpop.f32.mrb[82].mxu0 }
 0xac5   : > { %v6934_v19 = vpop.eup %6933  ;;  %6951 = vrcp.f32 %v5409_v63  ;;  %v5410_v2 = vadd.f32 1.0, %v6932_v13  ;;  %v5941_v57 = vmul.f32 -1.442695, %v10511_v47  ;;  %v10519_v60 = vadd.f32 %v6300_v23, %v10441_v8  ;;  %v5243_v21 = vpop.f32.mrb[83].mxu0 }
 0xac6   : > { %v6936_v55 = vpop.eup %6935  ;;  %v5528_v34 = vadd.f32 %v5527_v53, %v5497_v5  ;;  %6953 = vrcp.f32 %v5407_v40  ;;  %v5408_v56 = vadd.f32 1.0, %v6934_v19  ;;  %v5939_v54 = vmul.f32 -1.442695, %v10515_v14 }
 0xac7   : > { %v6938_v7 = vpop.eup %6937  ;;  %6955 = vrcp.f32 %v5410_v2  ;;  %v5942_v38 = vmul.f32 -1.442695, %v10519_v60  ;;  %v10524_v30 = vadd.f32 %v10441_v8, %v5243_v21  ;;  %v5501_v15 = vmul.f32 %v6936_v55, %v10460_v31 }
 0xac8   : > { %v6940_v17 = vpop.eup %6939  ;;  %v5499_v6 = vmul.f32 %v6938_v7, %v10463_v58  ;;  %v5529_v12 = vadd.f32 %v5528_v34, %v5498_v24  ;;  %6957 = vrcp.f32 %v5408_v56 }
 0xac9   : > { %v6942_v45 = vpop.eup %6941  ;;  %6959 = vpow2.f32 %v5941_v57  ;;  %v5940_v59 = vmul.f32 -1.442695, %v10524_v30  ;;  %v5502_v4 = vmul.f32 %v6940_v17, %v10467_v36 }
 0xaca   : > { %v6944_v41 = vpop.eup %6943  ;;  %v5530_v22 = vadd.f32 %v5529_v12, %v5499_v6  ;;  %v5500_v33 = vmul.f32 %v6942_v45, %v10471_v32  ;;  %6961 = vpow2.f32 %v5939_v54  ;;  %v6303_v3 = vpop.f32.mrb[84].mxu0 }
 0xacb   : > { %v6946_v52 = vpop.eup %6945  ;;  %v5413_v43 = vadd.f32 1.0, %v6944_v41  ;;  %6963 = vpow2.f32 %v5942_v38  ;;  %v10532_v58 = vadd.f32 %v6303_v3, %v10441_v8  ;;  %v5256_v51 = vpop.f32.mrb[85].mxu0 }
 0xacc   : > { %v6948_v28 = vpop.eup %6947  ;;  %v5531_v37 = vadd.f32 %v5530_v22, %v5500_v33  ;;  %v5411_v25 = vadd.f32 1.0, %v6946_v52  ;;  %6965 = vpow2.f32 %v5940_v59  ;;  %v10535_v31 = vadd.f32 %v10441_v8, %v5256_v51  ;;  %v6304_v27 = vpop.f32.mrb[86].mxu0 }
 0xacd   : > { %v6950_v32 = vpop.eup %6949  ;;  %6967 = vrcp.f32 %v5413_v43  ;;  %v5414_v0 = vadd.f32 1.0, %v6948_v28  ;;  %v5945_v11 = vmul.f32 -1.442695, %v10532_v58  ;;  %v10539_v36 = vadd.f32 %v6304_v27, %v10441_v8  ;;  %v5259_v16 = vpop.f32.mrb[87].mxu0 }
 0xace   : > { %v5532_v42 = vadd.f32 %v5531_v37, %v5501_v15  ;;  %6969 = vrcp.f32 %v5411_v25  ;;  %v5412_v50 = vadd.f32 1.0, %v6950_v32  ;;  %v5943_v29 = vmul.f32 -1.442695, %v10535_v31 }
 0xacf   : > { %v6952_v10 = vpop.eup %6951  ;;  %6971 = vrcp.f32 %v5414_v0  ;;  %v5946_v26 = vmul.f32 -1.442695, %v10539_v36  ;;  %v10544_v46 = vadd.f32 %v10441_v8, %v5259_v16 }
 0xad0   : > { %v6954_v48 = vpop.eup %6953  ;;  %v5533_v9 = vadd.f32 %v5532_v42, %v5502_v4  ;;  %6973 = vrcp.f32 %v5412_v50  ;;  %v5505_v21 = vmul.f32 %v6952_v10, %v10476_v44 }
 0xad1   : > { %v6956_v5 = vpop.eup %6955  ;;  %v5503_v63 = vmul.f32 %v6954_v48, %v10479_v49  ;;  %6975 = vpow2.f32 %v5945_v11  ;;  %v5944_v62 = vmul.f32 -1.442695, %v10544_v46 }
 0xad2   : > { %v6958_v13 = vpop.eup %6957  ;;  %6977 = vpow2.f32 %v5943_v29  ;;  %v6307_v24 = vpop.f32.mrb[88].mxu0  ;;  %v5506_v54 = vmul.f32 %v6956_v5, %v10483_v35 }
 0xad3   : > { %v6960_v53 = vpop.eup %6959  ;;  %v5534_v40 = vadd.f32 %v5533_v9, %v5503_v63  ;;  %v5504_v23 = vmul.f32 %v6958_v13, %v10487_v18  ;;  %6979 = vpow2.f32 %v5946_v26  ;;  %v10550_v19 = vadd.f32 %v6307_v24, %v10441_v8  ;;  %v5272_v2 = vpop.f32.mrb[89].mxu0 }
 0xad4   : > { %v6962_v57 = vpop.eup %6961  ;;  %v5417_v55 = vadd.f32 1.0, %v6960_v53  ;;  %6981 = vpow2.f32 %v5944_v62  ;;  %v10554_v49 = vadd.f32 %v10441_v8, %v5272_v2  ;;  %v6308_v34 = vpop.f32.mrb[90].mxu0 }
 0xad5   : > { %v6964_v56 = vpop.eup %6963  ;;  %v5535_v7 = vadd.f32 %v5534_v40, %v5504_v23  ;;  %v5415_v38 = vadd.f32 1.0, %v6962_v57  ;;  %v10558_v18 = vadd.f32 %v6308_v34, %v10441_v8  ;;  %v5275_v17 = vpop.f32.mrb[91].mxu0  ;;  %v5949_v44 = vmul.f32 -1.442695, %v10550_v19 }
 0xad6   : > { %v6966_v6 = vpop.eup %6965  ;;  %6983 = vrcp.f32 %v5417_v55  ;;  %v5418_v12 = vadd.f32 1.0, %v6964_v56  ;;  %v10562_v45 = vadd.f32 %v10441_v8, %v5275_v17  ;;  %v5947_v35 = vmul.f32 -1.442695, %v10554_v49 }
 0xad7   : > { %v6968_v59 = vpop.eup %6967  ;;  %v5536_v41 = vadd.f32 %v5535_v7, %v5505_v21  ;;  %6985 = vrcp.f32 %v5415_v38  ;;  %v5416_v15 = vadd.f32 1.0, %v6966_v6  ;;  %v5950_v33 = vmul.f32 -1.442695, %v10558_v18 }
 0xad8   : > { %v6970_v22 = vpop.eup %6969  ;;  %6987 = vrcp.f32 %v5418_v12  ;;  %v5948_v43 = vmul.f32 -1.442695, %v10562_v45  ;;  %v5509_v28 = vmul.f32 %v6968_v59, %v10492_v1 }
 0xad9   : > { %v6972_v3 = vpop.eup %6971  ;;  %v5507_v52 = vmul.f32 %v6970_v22, %v10495_v61  ;;  %v5537_v4 = vadd.f32 %v5536_v41, %v5506_v54  ;;  %6989 = vrcp.f32 %v5416_v15 }
 0xada   : > { %v6974_v51 = vpop.eup %6973  ;;  %6991 = vpow2.f32 %v5949_v44  ;;  %v6311_v37 = vpop.f32.mrb[92].mxu0  ;;  %v5510_v61 = vmul.f32 %v6972_v3, %v10499_v39 }
 0xadb   : > { %v6976_v25 = vpop.eup %6975  ;;  %v5538_v27 = vadd.f32 %v5537_v4, %v5507_v52  ;;  %v5508_v32 = vmul.f32 %v6974_v51, %v10503_v20  ;;  %6993 = vpow2.f32 %v5947_v35  ;;  %v10571_v0 = vadd.f32 %v6311_v37, %v10441_v8  ;;  %v5288_v11 = vpop.f32.mrb[93].mxu0 }
 0xadc   : > { %v6978_v16 = vpop.eup %6977  ;;  %v5421_v42 = vadd.f32 1.0, %v6976_v25  ;;  %6995 = vpow2.f32 %v5950_v33  ;;  %v10575_v50 = vadd.f32 %v10441_v8, %v5288_v11  ;;  %v6312_v1 = vpop.f32.mrb[94].mxu0 }
 0xadd   : > { %v6980_v29 = vpop.eup %6979  ;;  %v5539_v10 = vadd.f32 %v5538_v27, %v5508_v32  ;;  %v5419_v26 = vadd.f32 1.0, %v6978_v16  ;;  %6997 = vpow2.f32 %v5948_v43  ;;  %v5953_v20 = vmul.f32 -1.442695, %v10571_v0  ;;  %v5291_v48 = vpop.f32.mrb[95].mxu0 }
 0xade   : > { %v6982_v9 = vpop.eup %6981  ;;  %6999 = vrcp.f32 %v5421_v42  ;;  %v5422_v5 = vadd.f32 1.0, %v6980_v29  ;;  %v5951_v63 = vmul.f32 -1.442695, %v10575_v50  ;;  %v10580_v39 = vadd.f32 %v6312_v1, %v10441_v8 }
 0xadf   : > { %v5540_v62 = vadd.f32 %v5539_v10, %v5509_v28  ;;  %7001 = vrcp.f32 %v5419_v26  ;;  %v5420_v13 = vadd.f32 1.0, %v6982_v9  ;;  %v10583_v24 = vadd.f32 %v10441_v8, %v5291_v48 }
 0xae0   : > { %v6984_v53 = vpop.eup %6983  ;;  %7003 = vrcp.f32 %v5422_v5  ;;  %v5954_v40 = vmul.f32 -1.442695, %v10580_v39 }
 0xae1   : > { %v6986_v23 = vpop.eup %6985  ;;  %v5541_v2 = vadd.f32 %v5540_v62, %v5510_v61  ;;  %7005 = vrcp.f32 %v5420_v13  ;;  %v5952_v57 = vmul.f32 -1.442695, %v10583_v24  ;;  %v5513_v6 = vmul.f32 %v6984_v53, %v10511_v47 }
 0xae2   : > { %v6988_v21 = vpop.eup %6987  ;;  %v5511_v55 = vmul.f32 %v6986_v23, %v10515_v14  ;;  %7007 = vpow2.f32 %v5953_v20 }
 0xae3   : > { %v6990_v34 = vpop.eup %6989  ;;  %7009 = vpow2.f32 %v5951_v63  ;;  %v5514_v41 = vmul.f32 %v6988_v21, %v10519_v60 }
 0xae4   : > { %v6992_v56 = vpop.eup %6991  ;;  %v5542_v54 = vadd.f32 %v5541_v2, %v5511_v55  ;;  %v5512_v8 = vmul.f32 %v6990_v34, %v10524_v30  ;;  %7011 = vpow2.f32 %v5954_v40 }
 0xae5   : > { %v6994_v7 = vpop.eup %6993  ;;  %v5425_v38 = vadd.f32 1.0, %v6992_v56  ;;  %7013 = vpow2.f32 %v5952_v57 }
 0xae6   : > { %v6996_v17 = vpop.eup %6995  ;;  %v5543_v12 = vadd.f32 %v5542_v54, %v5512_v8  ;;  %v5423_v44 = vadd.f32 1.0, %v6994_v7 }
 0xae7   : > { %v6998_v59 = vpop.eup %6997  ;;  %v5426_v35 = vadd.f32 1.0, %v6996_v17 }
 0xae8   : > { %v7000_v14 = vpop.eup %6999  ;;  %v5544_v15 = vadd.f32 %v5543_v12, %v5513_v6  ;;  %7015 = vrcp.f32 %v5423_v44  ;;  %v5424_v22 = vadd.f32 1.0, %v6998_v59 }
 0xae9   : > { %v7002_v33 = vpop.eup %7001  ;;  %7017 = vrcp.f32 %v5425_v38  ;;  %v5517_v25 = vmul.f32 %v7000_v14, %v10532_v58 }
 0xaea   : > { %v7004_v30 = vpop.eup %7003  ;;  %v5515_v3 = vmul.f32 %v7002_v33, %v10535_v31  ;;  %v5545_v52 = vadd.f32 %v5544_v15, %v5514_v41  ;;  %7019 = vrcp.f32 %v5424_v22 }
 0xaeb   : > { %v7006_v4 = vpop.eup %7005  ;;  %7021 = vrcp.f32 %v5426_v35  ;;  %v5518_v16 = vmul.f32 %v7004_v30, %v10539_v36 }
 0xaec   : > { %v7008_v43 = vpop.eup %7007  ;;  %v5546_v47 = vadd.f32 %v5545_v52, %v5515_v3  ;;  %v5516_v51 = vmul.f32 %v7006_v4, %v10544_v46 }
 0xaed   : > { %v7010_v28 = vpop.eup %7009  ;;  %v5429_v60 = vadd.f32 1.0, %v7008_v43 }
 0xaee   : > { %v7012_v37 = vpop.eup %7011  ;;  %v5547_v27 = vadd.f32 %v5546_v47, %v5516_v51  ;;  %v5427_v32 = vadd.f32 1.0, %v7010_v28 }
 0xaef   : > { %v7014_v11 = vpop.eup %7013  ;;  %v5430_v31 = vadd.f32 1.0, %v7012_v37 }
 0xaf0   : > { %v5548_v61 = vadd.f32 %v5547_v27, %v5517_v25  ;;  %7023 = vrcp.f32 %v5427_v32  ;;  %v5428_v42 = vadd.f32 1.0, %v7014_v11 }
 0xaf1   : > { %7025 = vrcp.f32 %v5429_v60 }
 0xaf2   : > { %v7016_v1 = vpop.eup %7015  ;;  %v5549_v29 = vadd.f32 %v5548_v61, %v5518_v16  ;;  %7027 = vrcp.f32 %v5428_v42 }
 0xaf3   : > { %v7018_v46 = vpop.eup %7017  ;;  %v5519_v10 = vmul.f32 %v7016_v1, %v10554_v49  ;;  %7029 = vrcp.f32 %v5430_v31 }
 0xaf4   : > { %v7020_v26 = vpop.eup %7019  ;;  %v5521_v9 = vmul.f32 %v7018_v46, %v10550_v19 }
 0xaf5   : > { %v5550_v20 = vadd.f32 %v5549_v29, %v5519_v10  ;;  %v5520_v58 = vmul.f32 %v7020_v26, %v10562_v45  ;;  %v7022_v48 = vpop.eup %7021 }
 0xaf6   : > { %v5522_v5 = vmul.f32 %v7022_v48, %v10558_v18 }
 0xaf7   : > { %v5551_v36 = vadd.f32 %v5550_v20, %v5520_v58 }
 0xaf9   : > { %v5552_v63 = vadd.f32 %v5551_v36, %v5521_v9 }
 0xafa   : > { %v7024_v62 = vpop.eup %7023 }
 0xafb   : > { %v7026_v13 = vpop.eup %7025  ;;  %v5523_v53 = vmul.f32 %v7024_v62, %v10575_v50  ;;  %v5553_v40 = vadd.f32 %v5552_v63, %v5522_v5 }
 0xafc   : > { %v7028_v23 = vpop.eup %7027  ;;  %v5525_v45 = vmul.f32 %v7026_v13, %v10571_v0  ;;  %v5955_v0 = vld [vmem:[%s10677_s24] ss:$0 sm:$0xff] }
 0xafd   : > { %v5554_v2 = vadd.f32 %v5553_v40, %v5523_v53  ;;  %v5524_v49 = vmul.f32 %v7028_v23, %v10583_v24  ;;  %v7030_v57 = vpop.eup %7029 }
 0xafe   : > { %v5526_v19 = vmul.f32 %v7030_v57, %v10580_v39 }
 0xaff   : > { %v5555_v21 = vadd.f32 %v5554_v2, %v5524_v49 }
 0xb01   : > { %v5556_v55 = vadd.f32 %v5555_v21, %v5525_v45 }
 0xb03   : > { %v5557_v18 = vadd.f32 %v5556_v55, %v5526_v19 }
 0xb05   : > { %v5558_v34 = vrot.slane %v5557_v18, 4 }
 0xb07   : > { %v5559_v56 = vadd.f32 %v5558_v34, %v5557_v18 }
 0xb09   : > { %v5560_v54 = vrot.slane %v5559_v56, 2 }
 0xb0b   : > { %v5561_v8 = vadd.f32 %v5560_v54, %v5559_v56 }
 0xb0d   : > { %v5562_v50 = vrot.slane %v5561_v8, 1 }
 0xb0f   : > { %v5563_v7 = vadd.f32 %v5562_v50, %v5561_v8 }
 0xb11   : > { %v5564_v38 = vmul.f32 0.00390625, %v5563_v7 }
 0xb13   : > { %v5581_v17 = vpack.c.bf16 %v5564_v38, %v5564_v38 }
 0xb15   : > { %6330 = vmatmul.mubr.bf16.vlgmr.msra.gmra.mrb[80].mxu1 %v5581_v17 }
 0xbe8   : > { %v5631_v39 = vpop.f32.mrb[80].mxu1 }
 0xbe9   : > { %v5632_v24 = vadd.f32 %v5955_v0, %v5631_v39  ;;  %v6331_v6 = vpop.f32.mrb[81].mxu1 }
 0xbea   : > { %v5634_v12 = vpop.f32.mrb[82].mxu1 }
 0xbeb   : > { %v6332_v44 = vpop.f32.mrb[83].mxu1  ;;  %5638 = vst.msk [vmem:[%s756_s9] sm:$0x1] %vm5637_vm7, %v5632_v24 }
 0xbec   : > { %7052 = shalt.err (!%p7049_p3)
}
 0xbed   : > { %s7053_s6 = scalar_lea.hbm %s10611_s0, 16  ;;  %s7057_s29 = scalar_lea.hbm %s10678_s25, 32 }
 0xbee   : > { %p7054_p4 = scmp.ne.s32.totalorder %s10611_s0, %s7053_s6  ;;  %p7058_p9 = scmp.lt.u32.totalorder %s10611_s0, %s10678_s25 }
 0xbef   : > { %p7059_p10 = scmp.lt.u32.totalorder %s7057_s29, %s7053_s6  ;;  %p7061_p12 = scmp.lt.u32.totalorder %s7053_s6, %s10611_s0 }
 0xbf0   : > { %p7055_p7 = pnand %p7054_p4, %p7274_p5 }
 0xbf1   : > { %p7060_p11 = por %p7059_p10, %p7058_p9 }
 0xbf2   : > { %p7056_p8 = pneg %p7055_p7 }
 0xbf3   : > { %p7062_p13 = por %p7061_p12, %p7060_p11 }
 0xbf5   : > { %p7063_p0 = pnand %p7062_p13, %p7056_p8 }
 0xbf7   : > { %7066 = shalt.err (!%p7063_p0)
}
 0xbf8   : > { %6334 = dma.vmem_to_hbm [thread:$0]  (%p7274_p5), %s10613_s5, 16, %s10611_s0, %s5640_s7  }
 0xbf9 PF: > { %s10995_s8 = sld [smem:[#allocation7_spill]]  ;;  %p6340_p1 = scmp.ge.s32.totalorder %s7101_s30, 2 }
 0xbfb   : > { %p6337_p2 = pnand %p6340_p1, %p7278_p6 }
 0xbff   : > { %s5664_s28 = sand.u32 1, %s10995_s8  }
 0xc00   : > { %s5665_s9 = scalar_lea.sflag [#allocation5], %s5664_s28 }
 0xc01   : > { %7084 = dma.done.wait (!%p6337_p2), %s5665_s9, 16  }
 0xc02   : > { %7086 = vsyncadd (!%p6337_p2), %s5665_s9, 4294967280  ;;  %s10997_s30 = sld [smem:[#allocation9_spill]]  ;;  %s10998_s6 = sld [smem:[#allocation8_spill]] }
 0xc03   : > { %s10999_s1 = sld [smem:[#allocation10_spill]]  ;;  %s11000_s29 = smov %s7093_s2 }
 0xc08   : > { %p35_p3 = scmp.ge.s32.totalorder %s10997_s30, 4   ;;  %s11001_s2 = smov %s10998_s6 }
 0xc09   : > { %s11002_s6 = smov %s10999_s1 }
 0xc0a   :  { %37 = sbr.rel (!%p35_p3) target bundleno = 15 (0xf), region = 159 }
 0xc11   :  { %5669 = vsyncpa [#allocation5], 1 }
 0xc12   :  { %5671 = vsyncpa [#allocation5 + $0x1], 1 }

</bundles_post_ra>
